<compile_context>
chip_gen: v7x
topology: tpu7x:2x2x1
jax: 0.10.0
libtpu: 0.0.40
codegen_flags: <defaults>
</compile_context>

<pallas_src>
import jax
import jax.numpy as jnp
import numpy as np
from jax import lax
from jax.experimental import pallas as pl
from jax.experimental.pallas import tpu as pltpu

K = 15          # conv kernel extent (15,1) / (1,15)
EPS = 1e-5      # BatchNorm eps


# ---------------- in-kernel helpers (traced inside the Pallas kernel) --------

def _bn_scale_shift(y, mask, inv_count, gamma, beta):
    """Folded training-mode BatchNorm on a (C, P) channels-on-sublanes tensor.

    Stats are taken over the lane axis restricted to `mask` (1.0 / 0.0 columns)
    using the one-pass E[y^2] - mean^2 form.  Returns (scale, shift) such that
    bn(y) == y * scale + shift at all valid positions.
    """
    ym = y * mask
    mean = jnp.sum(ym, axis=1, keepdims=True) * inv_count
    ex2 = jnp.sum(ym * y, axis=1, keepdims=True) * inv_count
    var = ex2 - mean * mean
    scale = gamma * lax.rsqrt(var + EPS)
    shift = beta - mean * scale
    return scale, shift


def _bn_relu(y, mask, inv_count, gamma, beta):
    scale, shift = _bn_scale_shift(y, mask, inv_count, gamma, beta)
    return jnp.maximum(y * scale + shift, 0.0)


def _run_branch(x_ref, w1, w2, g1, b1, g2, b2, gF, bF, m1, m2,
                o_ref, slab, ybuf, *, s1, s2, inv_n1, inv_n2, C, PP):
    """One WCBlock branch: conv(shift s1) -> BN -> ReLU -> conv(shift s2) ->
    BN -> ReLU -> final-BN(half) -> ReLU.  Everything is (C, PP) lane-dense."""
    # ---- conv 1: im2col as K lane-shifted full-width copies (shift = k*s1) ---
    for k in range(K):
        slab[k * C:(k + 1) * C, :] = (
            x_ref[:, k * s1:k * s1 + PP].astype(slab.dtype))
    y = jnp.dot(w1[...], slab[...], preferred_element_type=jnp.float32)
    y = _bn_relu(y, m1[...], inv_n1, g1[...], b1[...])
    ybuf[:, :PP] = y

    # ---- conv 2: same trick on the intermediate activation (shift = k*s2) ----
    for k in range(K):
        slab[k * C:(k + 1) * C, :] = (
            ybuf[:, k * s2:k * s2 + PP].astype(slab.dtype))
    z = jnp.dot(w2[...], slab[...], preferred_element_type=jnp.float32)
    z = _bn_relu(z, m2[...], inv_n2, g2[...], b2[...])

    # ---- final BN on this branch's half of the concat channels, then ReLU ----
    scale, shift = _bn_scale_shift(z, m2[...], inv_n2, gF[...], bF[...])
    o_ref[...] = jnp.maximum(z * scale + shift, 0.0)


# ---------------- wrapper ------------------------------------------------------

def wcblock_forward(x_nchw, p, *, mxu_dtype=jnp.float32):
    x_nchw = x_nchw.astype(jnp.float32)
    N, Cin, H, W = x_nchw.shape
    Cout = p["w11"].shape[-1]
    # The module only type-checks when in_channels == out_channels (the second
    # conv of each branch is declared with in_channels but fed out_channels).
    assert Cin == Cout, "WCBlock requires in_channels == out_channels"
    C = Cout
    Ho, Wo = H - (K - 1), W - (K - 1)
    assert Ho > 0 and Wo > 0, "spatial dims must be >= 15"

    P = N * H * W                        # flattened (n, h, w) grid
    PP = ((P + 127) // 128) * 128        # lane-dense padded position count
    PAD = (K - 1) * W                    # max read-ahead of an H-direction tap
    WTOT = PP + PAD                      # width of padded source buffers
    KC = K * C                           # real contraction extent
    KCP = ((KC + 127) // 128) * 128      # contraction padded to full lane tiles

    # Channels-first, spatially flattened, zero-padded input: (C, WTOT).
    x2 = jnp.transpose(x_nchw, (1, 0, 2, 3)).reshape(C, P)
    x2 = jnp.pad(x2, ((0, 0), (0, WTOT - P)))

    # Fold the 15 taps into the MXU contraction dim, transposed + zero-padded:
    # (K, Ci, Co) -> (Co, K*Ci) -> (Co, KCP).  Biases are dropped (BN cancels).
    def wprep(w):
        wt = w.reshape(KC, C).T
        return jnp.pad(wt, ((0, 0), (0, KCP - KC))).astype(mxu_dtype)

    w1 = jnp.stack([wprep(p["w11"]), wprep(p["w21"])])        # (2, Co, KCP)
    w2 = jnp.stack([wprep(p["w12"]), wprep(p["w22"])])        # (2, Co, KCP)

    def bnprep(a, b):                                          # -> (2, Co, 1)
        return jnp.stack([a.reshape(C), b.reshape(C)])[:, :, None]

    g1, b1 = bnprep(p["g11"], p["g21"]), bnprep(p["be11"], p["be21"])
    g2, b2 = bnprep(p["g12"], p["g22"]), bnprep(p["be12"], p["be22"])
    gF = p["gF"].reshape(2, C)[:, :, None]        # per-branch half of concat BN
    bF = p["beF"].reshape(2, C)[:, :, None]

    # Validity masks over the flattened grid (exclude wrap-around/pad columns).
    m = jnp.arange(PP)
    inside = m < P
    hh = (m % (H * W)) // W
    ww = m % W
    mask_h = (inside & (hh < Ho)).astype(jnp.float32)    # valid after H-conv
    mask_w = (inside & (ww < Wo)).astype(jnp.float32)    # valid after W-conv
    mask_hw = mask_h * mask_w                            # valid after both
    m1 = jnp.stack([mask_h, mask_w])[:, None, :]         # (2, 1, PP) per branch
    m2 = mask_hw[None, :]                                 # (1, PP) shared

    inv_n_h = 1.0 / float(N * Ho * W)     # branch-1 first BN count
    inv_n_w = 1.0 / float(N * H * Wo)     # branch-2 first BN count
    inv_n_hw = 1.0 / float(N * Ho * Wo)   # second / final BN count

    def kernel(x_ref, w1_ref, w2_ref, g1_ref, b1_ref, g2_ref, b2_ref,
               gF_ref, bF_ref, m1_ref, m2_ref, o_ref, slab, ybuf):
        # Zero the padded contraction rows and the read-ahead tail so the
        # lane-shifted slab reads stay finite (done per step: with CORE_PARALLEL
        # each TensorCore has its own scratch and runs only one branch).
        if KCP > KC:
            slab[KC:, :] = jnp.zeros((KCP - KC, PP), slab.dtype)
        ybuf[:, PP:] = jnp.zeros((C, WTOT - PP), jnp.float32)

        refs = (x_ref, w1_ref, w2_ref, g1_ref, b1_ref, g2_ref, b2_ref,
                gF_ref, bF_ref, m1_ref, m2_ref, o_ref, slab, ybuf)

        @pl.when(pl.program_id(0) == 0)
        def _branch1():   # conv (15,1) along H, then (1,15) along W
            _run_branch(*refs, s1=W, s2=1, inv_n1=inv_n_h, inv_n2=inv_n_hw,
                        C=C, PP=PP)

        @pl.when(pl.program_id(0) == 1)
        def _branch2():   # conv (1,15) along W, then (15,1) along H
            _run_branch(*refs, s1=1, s2=W, inv_n1=inv_n_w, inv_n2=inv_n_hw,
                        C=C, PP=PP)

    args = (x2, w1, w2, g1, b1, g2, b2, gF, bF, m1, m2)

    def branch_block(a):   # leading dim selected by the branch grid axis
        return pl.BlockSpec((None,) + a.shape[1:],
                            lambda b, nd=a.ndim: (b,) + (0,) * (nd - 1))

    def whole_block(a):    # whole array, same block for both branches
        return pl.BlockSpec(a.shape, lambda b, nd=a.ndim: (0,) * nd)

    in_specs = ([whole_block(x2)]
                + [branch_block(a) for a in (w1, w2, g1, b1, g2, b2, gF, bF, m1)]
                + [whole_block(m2)])

    def call(semantics):
        return pl.pallas_call(
            kernel,
            out_shape=jax.ShapeDtypeStruct((2, C, PP), jnp.float32),
            grid=(2,),                                   # one step per branch
            in_specs=in_specs,
            out_specs=pl.BlockSpec((None, C, PP), lambda b: (b, 0, 0)),
            scratch_shapes=[
                pltpu.VMEM((KCP, PP), mxu_dtype),    # single reusable im2col slab
                pltpu.VMEM((C, WTOT), jnp.float32),  # intermediate act + read-ahead
            ],
            compiler_params=pltpu.CompilerParams(
                dimension_semantics=semantics),
        )(*args)

    # CORE_PARALLEL maps one branch per TensorCore on v7x (2 TCs/chip); it is a
    # no-op on single-TC chips.  Fall back to plain "parallel" if this Mosaic
    # build rejects core-parallel grid axes.
    try:
        out = call((pltpu.CORE_PARALLEL,))
    except Exception:
        out = call(("parallel",))

    # (branch, C, PP) -> drop pad/garbage columns -> NCHW with channel concat.
    out = out[:, :, :P].reshape(2, C, N, H, W)[:, :, :, :Ho, :Wo]
    return jnp.transpose(out, (2, 0, 1, 3, 4)).reshape(N, 2 * C, Ho, Wo)


# ---------------- pure-JAX reference (for self-check) -------------------------

def _bn4(y, gamma, beta):
    mean = jnp.mean(y, axis=(0, 1, 2), keepdims=True)
    var = jnp.mean(jnp.square(y - mean), axis=(0, 1, 2), keepdims=True)
    return (y - mean) * lax.rsqrt(var + EPS) * gamma + beta


def _bn_relu4(y, gamma, beta):
    return jnp.maximum(_bn4(y, gamma, beta), 0.0)


def _conv_ref(x, w, b, orient):
    w_hwio = w[:, None, :, :] if orient == "h" else w[None, :, :, :]
    y = lax.conv_general_dilated(x, w_hwio, (1, 1), "VALID",
                                 dimension_numbers=("NHWC", "HWIO", "NHWC"),
                                 precision=lax.Precision.HIGHEST)
    return y + b


def wcblock_reference(x_nchw, p):
    x = jnp.transpose(x_nchw, (0, 2, 3, 1)).astype(jnp.float32)
    y1 = _bn_relu4(_conv_ref(x, p["w11"], p["b11"], "h"), p["g11"], p["be11"])
    y1 = _bn_relu4(_conv_ref(y1, p["w12"], p["b12"], "w"), p["g12"], p["be12"])
    y2 = _bn_relu4(_conv_ref(x, p["w21"], p["b21"], "w"), p["g21"], p["be21"])
    y2 = _bn_relu4(_conv_ref(y2, p["w22"], p["b22"], "h"), p["g22"], p["be22"])
    y = jnp.concatenate([y1, y2], axis=-1)
    y = jnp.maximum(_bn4(y, p["gF"], p["beF"]), 0.0)
    return jnp.transpose(y, (0, 3, 1, 2))


# ---------------- deterministic parameter init --------------------------------

def init_params(key, cin, cout):
    ks = jax.random.split(key, 16)

    def conv(kw, kb, ci):
        w = 0.1 * jax.random.normal(kw, (K, ci, cout), jnp.float32)
        b = 0.1 * jax.random.normal(kb, (1, 1, 1, cout), jnp.float32)
        return w, b

    def bn(kg, kb, c):
        g = 1.0 + 0.1 * jax.random.normal(kg, (1, 1, 1, c), jnp.float32)
        be = 0.1 * jax.random.normal(kb, (1, 1, 1, c), jnp.float32)
        return g, be

    p = {}
    p["w11"], p["b11"] = conv(ks[0], ks[1], cin)
    p["g11"], p["be11"] = bn(ks[2], ks[3], cout)
    p["w12"], p["b12"] = conv(ks[4], ks[5], cout)
    p["g12"], p["be12"] = bn(ks[6], ks[7], cout)
    p["w21"], p["b21"] = conv(ks[8], ks[9], cin)
    p["g21"], p["be21"] = bn(ks[10], ks[11], cout)
    p["w22"], p["b22"] = conv(ks[12], ks[13], cout)
    p["g22"], p["be22"] = bn(ks[14], ks[15], cout)
    kf1, kf2 = jax.random.split(jax.random.fold_in(key, 99))
    p["gF"], p["beF"] = bn(kf1, kf2, 2 * cout)
    return p


if __name__ == "__main__":
    N, C, H, W = 2, 8, 30, 30        # spatial >= 15 required by the (15,1)/(1,15) convs
    key = jax.random.PRNGKey(0)
    kx, kp = jax.random.split(key)
    x = jax.random.normal(kx, (N, C, H, W), jnp.float32)   # NCHW like PyTorch
    params = init_params(kp, C, C)

    # mxu_dtype=jnp.bfloat16 is the recommended production setting on v6e/v7x;
    # the self-check stays in f32 so the tight tolerance vs. the f32 reference holds.
    out = jax.block_until_ready(wcblock_forward(x, params))
    ref = jax.block_until_ready(wcblock_reference(x, params))

    assert out.shape == (N, 2 * C, H - 14, W - 14), out.shape
    np.testing.assert_allclose(np.asarray(out), np.asarray(ref), rtol=1e-4, atol=1e-4)

    print("KERNEL_OK")
</pallas_src>

<mosaic_0001>
module attributes {stable_mosaic.version = 11 : i64} {
  func.func @kernel(%arg0: i32, %arg1: memref<8x2340xf32, #tpu.memory_space<vmem>>, %arg2: memref<1x8x128xf32, #tpu.memory_space<vmem>>, %arg3: memref<1x8x128xf32, #tpu.memory_space<vmem>>, %arg4: memref<1x8x1xf32, #tpu.memory_space<vmem>>, %arg5: memref<1x8x1xf32, #tpu.memory_space<vmem>>, %arg6: memref<1x8x1xf32, #tpu.memory_space<vmem>>, %arg7: memref<1x8x1xf32, #tpu.memory_space<vmem>>, %arg8: memref<1x8x1xf32, #tpu.memory_space<vmem>>, %arg9: memref<1x8x1xf32, #tpu.memory_space<vmem>>, %arg10: memref<1x1x1920xf32, #tpu.memory_space<vmem>>, %arg11: memref<1x1920xf32, #tpu.memory_space<vmem>>, %arg12: memref<1x8x1920xf32, #tpu.memory_space<vmem>>, %arg13: memref<128x1920xf32, #tpu.memory_space<vmem>>, %arg14: memref<8x2340xf32, #tpu.memory_space<vmem>>) attributes {dimension_semantics = [#tpu.dimension_semantics<core_parallel>], iteration_bounds = array<i64: 2>, scalar_prefetch = 0 : i64, scratch_operands = 2 : i64, tpu.core_type = #tpu.core_type<tc>, window_params = [{pipeline_mode = #tpu.pipeline_mode<synchronous>, transform_indices = @transform_0, window_bounds = array<i64: 8, 2340>}, {transform_indices = @transform_1, window_bounds = array<i64: 1, 8, 128>}, {transform_indices = @transform_2, window_bounds = array<i64: 1, 8, 128>}, {transform_indices = @transform_3, window_bounds = array<i64: 1, 8, 1>}, {transform_indices = @transform_4, window_bounds = array<i64: 1, 8, 1>}, {transform_indices = @transform_5, window_bounds = array<i64: 1, 8, 1>}, {transform_indices = @transform_6, window_bounds = array<i64: 1, 8, 1>}, {transform_indices = @transform_7, window_bounds = array<i64: 1, 8, 1>}, {transform_indices = @transform_8, window_bounds = array<i64: 1, 8, 1>}, {transform_indices = @transform_9, window_bounds = array<i64: 1, 1, 1920>}, {pipeline_mode = #tpu.pipeline_mode<synchronous>, transform_indices = @transform_10, window_bounds = array<i64: 1, 1920>}, {transform_indices = @transform_11, window_bounds = array<i64: 1, 8, 1920>}]} {
    %cst = arith.constant 0.000000e+00 : f32
    %0 = vector.broadcast %cst : f32 to vector<8x1920xf32>
    %c120 = arith.constant 120 : index
    %c0 = arith.constant 0 : index
    %1 = vector.load %arg13[%c120, %c0] : memref<128x1920xf32, #tpu.memory_space<vmem>>, vector<8x1920xf32>
    tpu.vector_store %arg13[%c120, %c0], %0 {strides = array<i32>} : memref<128x1920xf32, #tpu.memory_space<vmem>>, vector<8x1920xf32>,
    %cst_0 = arith.constant 0.000000e+00 : f32
    %2 = vector.broadcast %cst_0 : f32 to vector<8x420xf32>
    %c0_1 = arith.constant 0 : index
    %c1920 = arith.constant 1920 : index
    %3 = vector.load %arg14[%c0_1, %c1920] : memref<8x2340xf32, #tpu.memory_space<vmem>>, vector<8x420xf32>
    tpu.vector_store %arg14[%c0_1, %c1920], %2 {strides = array<i32>} : memref<8x2340xf32, #tpu.memory_space<vmem>>, vector<8x420xf32>,
    %c0_i32 = arith.constant 0 : i32
    %4 = arith.cmpi eq, %arg0, %c0_i32 : i32
    %5 = arith.extui %4 : i1 to i32
    %c0_i32_2 = arith.constant 0 : i32
    %6 = arith.cmpi ne, %5, %c0_i32_2 : i32
    scf.if %6 {
      %c0_4 = arith.constant 0 : index
      %c0_5 = arith.constant 0 : index
      %10 = vector.load %arg1[%c0_4, %c0_5] : memref<8x2340xf32, #tpu.memory_space<vmem>>, vector<8x1920xf32>
      %c0_6 = arith.constant 0 : index
      %c0_7 = arith.constant 0 : index
      %11 = vector.load %arg13[%c0_6, %c0_7] : memref<128x1920xf32, #tpu.memory_space<vmem>>, vector<8x1920xf32>
      tpu.vector_store %arg13[%c0_6, %c0_7], %10 {strides = array<i32>} : memref<128x1920xf32, #tpu.memory_space<vmem>>, vector<8x1920xf32>,
      %c0_8 = arith.constant 0 : index
      %c30 = arith.constant 30 : index
      %12 = vector.load %arg1[%c0_8, %c30] : memref<8x2340xf32, #tpu.memory_space<vmem>>, vector<8x1920xf32>
      %c8 = arith.constant 8 : index
      %c0_9 = arith.constant 0 : index
      %13 = vector.load %arg13[%c8, %c0_9] : memref<128x1920xf32, #tpu.memory_space<vmem>>, vector<8x1920xf32>
      tpu.vector_store %arg13[%c8, %c0_9], %12 {strides = array<i32>} : memref<128x1920xf32, #tpu.memory_space<vmem>>, vector<8x1920xf32>,
      %c0_10 = arith.constant 0 : index
      %c60 = arith.constant 60 : index
      %14 = vector.load %arg1[%c0_10, %c60] : memref<8x2340xf32, #tpu.memory_space<vmem>>, vector<8x1920xf32>
      %c16 = arith.constant 16 : index
      %c0_11 = arith.constant 0 : index
      %15 = vector.load %arg13[%c16, %c0_11] : memref<128x1920xf32, #tpu.memory_space<vmem>>, vector<8x1920xf32>
      tpu.vector_store %arg13[%c16, %c0_11], %14 {strides = array<i32>} : memref<128x1920xf32, #tpu.memory_space<vmem>>, vector<8x1920xf32>,
      %c0_12 = arith.constant 0 : index
      %c90 = arith.constant 90 : index
      %16 = vector.load %arg1[%c0_12, %c90] : memref<8x2340xf32, #tpu.memory_space<vmem>>, vector<8x1920xf32>
      %c24 = arith.constant 24 : index
      %c0_13 = arith.constant 0 : index
      %17 = vector.load %arg13[%c24, %c0_13] : memref<128x1920xf32, #tpu.memory_space<vmem>>, vector<8x1920xf32>
      tpu.vector_store %arg13[%c24, %c0_13], %16 {strides = array<i32>} : memref<128x1920xf32, #tpu.memory_space<vmem>>, vector<8x1920xf32>,
      %c0_14 = arith.constant 0 : index
      %c120_15 = arith.constant 120 : index
      %18 = vector.load %arg1[%c0_14, %c120_15] : memref<8x2340xf32, #tpu.memory_space<vmem>>, vector<8x1920xf32>
      %c32 = arith.constant 32 : index
      %c0_16 = arith.constant 0 : index
      %19 = vector.load %arg13[%c32, %c0_16] : memref<128x1920xf32, #tpu.memory_space<vmem>>, vector<8x1920xf32>
      tpu.vector_store %arg13[%c32, %c0_16], %18 {strides = array<i32>} : memref<128x1920xf32, #tpu.memory_space<vmem>>, vector<8x1920xf32>,
      %c0_17 = arith.constant 0 : index
      %c150 = arith.constant 150 : index
      %20 = vector.load %arg1[%c0_17, %c150] : memref<8x2340xf32, #tpu.memory_space<vmem>>, vector<8x1920xf32>
      %c40 = arith.constant 40 : index
      %c0_18 = arith.constant 0 : index
      %21 = vector.load %arg13[%c40, %c0_18] : memref<128x1920xf32, #tpu.memory_space<vmem>>, vector<8x1920xf32>
      tpu.vector_store %arg13[%c40, %c0_18], %20 {strides = array<i32>} : memref<128x1920xf32, #tpu.memory_space<vmem>>, vector<8x1920xf32>,
      %c0_19 = arith.constant 0 : index
      %c180 = arith.constant 180 : index
      %22 = vector.load %arg1[%c0_19, %c180] : memref<8x2340xf32, #tpu.memory_space<vmem>>, vector<8x1920xf32>
      %c48 = arith.constant 48 : index
      %c0_20 = arith.constant 0 : index
      %23 = vector.load %arg13[%c48, %c0_20] : memref<128x1920xf32, #tpu.memory_space<vmem>>, vector<8x1920xf32>
      tpu.vector_store %arg13[%c48, %c0_20], %22 {strides = array<i32>} : memref<128x1920xf32, #tpu.memory_space<vmem>>, vector<8x1920xf32>,
      %c0_21 = arith.constant 0 : index
      %c210 = arith.constant 210 : index
      %24 = vector.load %arg1[%c0_21, %c210] : memref<8x2340xf32, #tpu.memory_space<vmem>>, vector<8x1920xf32>
      %c56 = arith.constant 56 : index
      %c0_22 = arith.constant 0 : index
      %25 = vector.load %arg13[%c56, %c0_22] : memref<128x1920xf32, #tpu.memory_space<vmem>>, vector<8x1920xf32>
      tpu.vector_store %arg13[%c56, %c0_22], %24 {strides = array<i32>} : memref<128x1920xf32, #tpu.memory_space<vmem>>, vector<8x1920xf32>,
      %c0_23 = arith.constant 0 : index
      %c240 = arith.constant 240 : index
      %26 = vector.load %arg1[%c0_23, %c240] : memref<8x2340xf32, #tpu.memory_space<vmem>>, vector<8x1920xf32>
      %c64 = arith.constant 64 : index
      %c0_24 = arith.constant 0 : index
      %27 = vector.load %arg13[%c64, %c0_24] : memref<128x1920xf32, #tpu.memory_space<vmem>>, vector<8x1920xf32>
      tpu.vector_store %arg13[%c64, %c0_24], %26 {strides = array<i32>} : memref<128x1920xf32, #tpu.memory_space<vmem>>, vector<8x1920xf32>,
      %c0_25 = arith.constant 0 : index
      %c270 = arith.constant 270 : index
      %28 = vector.load %arg1[%c0_25, %c270] : memref<8x2340xf32, #tpu.memory_space<vmem>>, vector<8x1920xf32>
      %c72 = arith.constant 72 : index
      %c0_26 = arith.constant 0 : index
      %29 = vector.load %arg13[%c72, %c0_26] : memref<128x1920xf32, #tpu.memory_space<vmem>>, vector<8x1920xf32>
      tpu.vector_store %arg13[%c72, %c0_26], %28 {strides = array<i32>} : memref<128x1920xf32, #tpu.memory_space<vmem>>, vector<8x1920xf32>,
      %c0_27 = arith.constant 0 : index
      %c300 = arith.constant 300 : index
      %30 = vector.load %arg1[%c0_27, %c300] : memref<8x2340xf32, #tpu.memory_space<vmem>>, vector<8x1920xf32>
      %c80 = arith.constant 80 : index
      %c0_28 = arith.constant 0 : index
      %31 = vector.load %arg13[%c80, %c0_28] : memref<128x1920xf32, #tpu.memory_space<vmem>>, vector<8x1920xf32>
      tpu.vector_store %arg13[%c80, %c0_28], %30 {strides = array<i32>} : memref<128x1920xf32, #tpu.memory_space<vmem>>, vector<8x1920xf32>,
      %c0_29 = arith.constant 0 : index
      %c330 = arith.constant 330 : index
      %32 = vector.load %arg1[%c0_29, %c330] : memref<8x2340xf32, #tpu.memory_space<vmem>>, vector<8x1920xf32>
      %c88 = arith.constant 88 : index
      %c0_30 = arith.constant 0 : index
      %33 = vector.load %arg13[%c88, %c0_30] : memref<128x1920xf32, #tpu.memory_space<vmem>>, vector<8x1920xf32>
      tpu.vector_store %arg13[%c88, %c0_30], %32 {strides = array<i32>} : memref<128x1920xf32, #tpu.memory_space<vmem>>, vector<8x1920xf32>,
      %c0_31 = arith.constant 0 : index
      %c360 = arith.constant 360 : index
      %34 = vector.load %arg1[%c0_31, %c360] : memref<8x2340xf32, #tpu.memory_space<vmem>>, vector<8x1920xf32>
      %c96 = arith.constant 96 : index
      %c0_32 = arith.constant 0 : index
      %35 = vector.load %arg13[%c96, %c0_32] : memref<128x1920xf32, #tpu.memory_space<vmem>>, vector<8x1920xf32>
      tpu.vector_store %arg13[%c96, %c0_32], %34 {strides = array<i32>} : memref<128x1920xf32, #tpu.memory_space<vmem>>, vector<8x1920xf32>,
      %c0_33 = arith.constant 0 : index
      %c390 = arith.constant 390 : index
      %36 = vector.load %arg1[%c0_33, %c390] : memref<8x2340xf32, #tpu.memory_space<vmem>>, vector<8x1920xf32>
      %c104 = arith.constant 104 : index
      %c0_34 = arith.constant 0 : index
      %37 = vector.load %arg13[%c104, %c0_34] : memref<128x1920xf32, #tpu.memory_space<vmem>>, vector<8x1920xf32>
      tpu.vector_store %arg13[%c104, %c0_34], %36 {strides = array<i32>} : memref<128x1920xf32, #tpu.memory_space<vmem>>, vector<8x1920xf32>,
      %c0_35 = arith.constant 0 : index
      %c420 = arith.constant 420 : index
      %38 = vector.load %arg1[%c0_35, %c420] : memref<8x2340xf32, #tpu.memory_space<vmem>>, vector<8x1920xf32>
      %c112 = arith.constant 112 : index
      %c0_36 = arith.constant 0 : index
      %39 = vector.load %arg13[%c112, %c0_36] : memref<128x1920xf32, #tpu.memory_space<vmem>>, vector<8x1920xf32>
      tpu.vector_store %arg13[%c112, %c0_36], %38 {strides = array<i32>} : memref<128x1920xf32, #tpu.memory_space<vmem>>, vector<8x1920xf32>,
      %c0_37 = arith.constant 0 : index
      %c0_38 = arith.constant 0 : index
      %c0_39 = arith.constant 0 : index
      %40 = vector.load %arg2[%c0_37, %c0_38, %c0_39] : memref<1x8x128xf32, #tpu.memory_space<vmem>>, vector<1x8x128xf32>
      %41 = vector.shape_cast %40 : vector<1x8x128xf32> to vector<8x128xf32>
      %c0_40 = arith.constant 0 : index
      %c0_41 = arith.constant 0 : index
      %42 = vector.load %arg13[%c0_40, %c0_41] : memref<128x1920xf32, #tpu.memory_space<vmem>>, vector<128x1920xf32>
      %cst_42 = arith.constant dense<0.000000e+00> : vector<8x1920xf32>
      %43 = tpu.matmul %41, %42, %cst_42 {dimension_numbers = #tpu.dot_dimension_numbers<[1], [0], [0], [1], [0, 0, 1, 1], [], []>} : vector<8x128xf32>, vector<128x1920xf32>, vector<8x1920xf32> -> vector<8x1920xf32>
      %c0_43 = arith.constant 0 : index
      %c0_44 = arith.constant 0 : index
      %c0_45 = arith.constant 0 : index
      %44 = vector.load %arg10[%c0_43, %c0_44, %c0_45] : memref<1x1x1920xf32, #tpu.memory_space<vmem>>, vector<1x1x1920xf32>
      %45 = vector.shape_cast %44 : vector<1x1x1920xf32> to vector<1x1920xf32>
      %c0_46 = arith.constant 0 : index
      %c0_47 = arith.constant 0 : index
      %c0_48 = arith.constant 0 : index
      %46 = vector.load %arg4[%c0_46, %c0_47, %c0_48] : memref<1x8x1xf32, #tpu.memory_space<vmem>>, vector<1x8x1xf32>
      %47 = vector.shape_cast %46 : vector<1x8x1xf32> to vector<8x1xf32>
      %c0_49 = arith.constant 0 : index
      %c0_50 = arith.constant 0 : index
      %c0_51 = arith.constant 0 : index
      %48 = vector.load %arg5[%c0_49, %c0_50, %c0_51] : memref<1x8x1xf32, #tpu.memory_space<vmem>>, vector<1x8x1xf32>
      %49 = vector.shape_cast %48 : vector<1x8x1xf32> to vector<8x1xf32>
      %50 = vector.broadcast %45 : vector<1x1920xf32> to vector<8x1920xf32>
      %51 = arith.mulf %43, %50 : vector<8x1920xf32>
      %cst_52 = arith.constant dense<0.000000e+00> : vector<8xf32>
      %52 = vector.multi_reduction <add>, %51, %cst_52 [1] : vector<8x1920xf32> to vector<8xf32>
      %53 = vector.shape_cast %52 : vector<8xf32> to vector<8x1xf32>
      %cst_53 = arith.constant 0.00104166672 : f32
      %54 = vector.broadcast %cst_53 : f32 to vector<8x1xf32>
      %55 = arith.mulf %53, %54 : vector<8x1xf32>
      %56 = arith.mulf %51, %43 : vector<8x1920xf32>
      %cst_54 = arith.constant dense<0.000000e+00> : vector<8xf32>
      %57 = vector.multi_reduction <add>, %56, %cst_54 [1] : vector<8x1920xf32> to vector<8xf32>
      %58 = vector.shape_cast %57 : vector<8xf32> to vector<8x1xf32>
      %cst_55 = arith.constant 0.00104166672 : f32
      %59 = vector.broadcast %cst_55 : f32 to vector<8x1xf32>
      %60 = arith.mulf %58, %59 : vector<8x1xf32>
      %61 = arith.mulf %55, %55 : vector<8x1xf32>
      %62 = arith.subf %60, %61 : vector<8x1xf32>
      %cst_56 = arith.constant 9.99999974E-6 : f32
      %63 = vector.broadcast %cst_56 : f32 to vector<8x1xf32>
      %64 = arith.addf %62, %63 : vector<8x1xf32>
      %65 = math.rsqrt %64 : vector<8x1xf32>
      %66 = arith.mulf %47, %65 : vector<8x1xf32>
      %67 = arith.mulf %55, %66 : vector<8x1xf32>
      %68 = arith.subf %49, %67 : vector<8x1xf32>
      %69 = vector.broadcast %66 : vector<8x1xf32> to vector<8x1920xf32>
      %70 = arith.mulf %43, %69 : vector<8x1920xf32>
      %71 = vector.broadcast %68 : vector<8x1xf32> to vector<8x1920xf32>
      %72 = arith.addf %70, %71 : vector<8x1920xf32>
      %cst_57 = arith.constant 0.000000e+00 : f32
      %73 = vector.broadcast %cst_57 : f32 to vector<8x1920xf32>
      %74 = arith.maximumf %72, %73 : vector<8x1920xf32>
      %c0_58 = arith.constant 0 : index
      %c0_59 = arith.constant 0 : index
      %75 = vector.load %arg14[%c0_58, %c0_59] : memref<8x2340xf32, #tpu.memory_space<vmem>>, vector<8x1920xf32>
      tpu.vector_store %arg14[%c0_58, %c0_59], %74 {strides = array<i32>} : memref<8x2340xf32, #tpu.memory_space<vmem>>, vector<8x1920xf32>,
      %c0_60 = arith.constant 0 : index
      %c0_61 = arith.constant 0 : index
      %76 = vector.load %arg14[%c0_60, %c0_61] : memref<8x2340xf32, #tpu.memory_space<vmem>>, vector<8x1920xf32>
      %c0_62 = arith.constant 0 : index
      %c0_63 = arith.constant 0 : index
      %77 = vector.load %arg13[%c0_62, %c0_63] : memref<128x1920xf32, #tpu.memory_space<vmem>>, vector<8x1920xf32>
      tpu.vector_store %arg13[%c0_62, %c0_63], %76 {strides = array<i32>} : memref<128x1920xf32, #tpu.memory_space<vmem>>, vector<8x1920xf32>,
      %c0_64 = arith.constant 0 : index
      %c1 = arith.constant 1 : index
      %78 = vector.load %arg14[%c0_64, %c1] : memref<8x2340xf32, #tpu.memory_space<vmem>>, vector<8x1920xf32>
      %c8_65 = arith.constant 8 : index
      %c0_66 = arith.constant 0 : index
      %79 = vector.load %arg13[%c8_65, %c0_66] : memref<128x1920xf32, #tpu.memory_space<vmem>>, vector<8x1920xf32>
      tpu.vector_store %arg13[%c8_65, %c0_66], %78 {strides = array<i32>} : memref<128x1920xf32, #tpu.memory_space<vmem>>, vector<8x1920xf32>,
      %c0_67 = arith.constant 0 : index
      %c2 = arith.constant 2 : index
      %80 = vector.load %arg14[%c0_67, %c2] : memref<8x2340xf32, #tpu.memory_space<vmem>>, vector<8x1920xf32>
      %c16_68 = arith.constant 16 : index
      %c0_69 = arith.constant 0 : index
      %81 = vector.load %arg13[%c16_68, %c0_69] : memref<128x1920xf32, #tpu.memory_space<vmem>>, vector<8x1920xf32>
      tpu.vector_store %arg13[%c16_68, %c0_69], %80 {strides = array<i32>} : memref<128x1920xf32, #tpu.memory_space<vmem>>, vector<8x1920xf32>,
      %c0_70 = arith.constant 0 : index
      %c3 = arith.constant 3 : index
      %82 = vector.load %arg14[%c0_70, %c3] : memref<8x2340xf32, #tpu.memory_space<vmem>>, vector<8x1920xf32>
      %c24_71 = arith.constant 24 : index
      %c0_72 = arith.constant 0 : index
      %83 = vector.load %arg13[%c24_71, %c0_72] : memref<128x1920xf32, #tpu.memory_space<vmem>>, vector<8x1920xf32>
      tpu.vector_store %arg13[%c24_71, %c0_72], %82 {strides = array<i32>} : memref<128x1920xf32, #tpu.memory_space<vmem>>, vector<8x1920xf32>,
      %c0_73 = arith.constant 0 : index
      %c4 = arith.constant 4 : index
      %84 = vector.load %arg14[%c0_73, %c4] : memref<8x2340xf32, #tpu.memory_space<vmem>>, vector<8x1920xf32>
      %c32_74 = arith.constant 32 : index
      %c0_75 = arith.constant 0 : index
      %85 = vector.load %arg13[%c32_74, %c0_75] : memref<128x1920xf32, #tpu.memory_space<vmem>>, vector<8x1920xf32>
      tpu.vector_store %arg13[%c32_74, %c0_75], %84 {strides = array<i32>} : memref<128x1920xf32, #tpu.memory_space<vmem>>, vector<8x1920xf32>,
      %c0_76 = arith.constant 0 : index
      %c5 = arith.constant 5 : index
      %86 = vector.load %arg14[%c0_76, %c5] : memref<8x2340xf32, #tpu.memory_space<vmem>>, vector<8x1920xf32>
      %c40_77 = arith.constant 40 : index
      %c0_78 = arith.constant 0 : index
      %87 = vector.load %arg13[%c40_77, %c0_78] : memref<128x1920xf32, #tpu.memory_space<vmem>>, vector<8x1920xf32>
      tpu.vector_store %arg13[%c40_77, %c0_78], %86 {strides = array<i32>} : memref<128x1920xf32, #tpu.memory_space<vmem>>, vector<8x1920xf32>,
      %c0_79 = arith.constant 0 : index
      %c6 = arith.constant 6 : index
      %88 = vector.load %arg14[%c0_79, %c6] : memref<8x2340xf32, #tpu.memory_space<vmem>>, vector<8x1920xf32>
      %c48_80 = arith.constant 48 : index
      %c0_81 = arith.constant 0 : index
      %89 = vector.load %arg13[%c48_80, %c0_81] : memref<128x1920xf32, #tpu.memory_space<vmem>>, vector<8x1920xf32>
      tpu.vector_store %arg13[%c48_80, %c0_81], %88 {strides = array<i32>} : memref<128x1920xf32, #tpu.memory_space<vmem>>, vector<8x1920xf32>,
      %c0_82 = arith.constant 0 : index
      %c7 = arith.constant 7 : index
      %90 = vector.load %arg14[%c0_82, %c7] : memref<8x2340xf32, #tpu.memory_space<vmem>>, vector<8x1920xf32>
      %c56_83 = arith.constant 56 : index
      %c0_84 = arith.constant 0 : index
      %91 = vector.load %arg13[%c56_83, %c0_84] : memref<128x1920xf32, #tpu.memory_space<vmem>>, vector<8x1920xf32>
      tpu.vector_store %arg13[%c56_83, %c0_84], %90 {strides = array<i32>} : memref<128x1920xf32, #tpu.memory_space<vmem>>, vector<8x1920xf32>,
      %c0_85 = arith.constant 0 : index
      %c8_86 = arith.constant 8 : index
      %92 = vector.load %arg14[%c0_85, %c8_86] : memref<8x2340xf32, #tpu.memory_space<vmem>>, vector<8x1920xf32>
      %c64_87 = arith.constant 64 : index
      %c0_88 = arith.constant 0 : index
      %93 = vector.load %arg13[%c64_87, %c0_88] : memref<128x1920xf32, #tpu.memory_space<vmem>>, vector<8x1920xf32>
      tpu.vector_store %arg13[%c64_87, %c0_88], %92 {strides = array<i32>} : memref<128x1920xf32, #tpu.memory_space<vmem>>, vector<8x1920xf32>,
      %c0_89 = arith.constant 0 : index
      %c9 = arith.constant 9 : index
      %94 = vector.load %arg14[%c0_89, %c9] : memref<8x2340xf32, #tpu.memory_space<vmem>>, vector<8x1920xf32>
      %c72_90 = arith.constant 72 : index
      %c0_91 = arith.constant 0 : index
      %95 = vector.load %arg13[%c72_90, %c0_91] : memref<128x1920xf32, #tpu.memory_space<vmem>>, vector<8x1920xf32>
      tpu.vector_store %arg13[%c72_90, %c0_91], %94 {strides = array<i32>} : memref<128x1920xf32, #tpu.memory_space<vmem>>, vector<8x1920xf32>,
      %c0_92 = arith.constant 0 : index
      %c10 = arith.constant 10 : index
      %96 = vector.load %arg14[%c0_92, %c10] : memref<8x2340xf32, #tpu.memory_space<vmem>>, vector<8x1920xf32>
      %c80_93 = arith.constant 80 : index
      %c0_94 = arith.constant 0 : index
      %97 = vector.load %arg13[%c80_93, %c0_94] : memref<128x1920xf32, #tpu.memory_space<vmem>>, vector<8x1920xf32>
      tpu.vector_store %arg13[%c80_93, %c0_94], %96 {strides = array<i32>} : memref<128x1920xf32, #tpu.memory_space<vmem>>, vector<8x1920xf32>,
      %c0_95 = arith.constant 0 : index
      %c11 = arith.constant 11 : index
      %98 = vector.load %arg14[%c0_95, %c11] : memref<8x2340xf32, #tpu.memory_space<vmem>>, vector<8x1920xf32>
      %c88_96 = arith.constant 88 : index
      %c0_97 = arith.constant 0 : index
      %99 = vector.load %arg13[%c88_96, %c0_97] : memref<128x1920xf32, #tpu.memory_space<vmem>>, vector<8x1920xf32>
      tpu.vector_store %arg13[%c88_96, %c0_97], %98 {strides = array<i32>} : memref<128x1920xf32, #tpu.memory_space<vmem>>, vector<8x1920xf32>,
      %c0_98 = arith.constant 0 : index
      %c12 = arith.constant 12 : index
      %100 = vector.load %arg14[%c0_98, %c12] : memref<8x2340xf32, #tpu.memory_space<vmem>>, vector<8x1920xf32>
      %c96_99 = arith.constant 96 : index
      %c0_100 = arith.constant 0 : index
      %101 = vector.load %arg13[%c96_99, %c0_100] : memref<128x1920xf32, #tpu.memory_space<vmem>>, vector<8x1920xf32>
      tpu.vector_store %arg13[%c96_99, %c0_100], %100 {strides = array<i32>} : memref<128x1920xf32, #tpu.memory_space<vmem>>, vector<8x1920xf32>,
      %c0_101 = arith.constant 0 : index
      %c13 = arith.constant 13 : index
      %102 = vector.load %arg14[%c0_101, %c13] : memref<8x2340xf32, #tpu.memory_space<vmem>>, vector<8x1920xf32>
      %c104_102 = arith.constant 104 : index
      %c0_103 = arith.constant 0 : index
      %103 = vector.load %arg13[%c104_102, %c0_103] : memref<128x1920xf32, #tpu.memory_space<vmem>>, vector<8x1920xf32>
      tpu.vector_store %arg13[%c104_102, %c0_103], %102 {strides = array<i32>} : memref<128x1920xf32, #tpu.memory_space<vmem>>, vector<8x1920xf32>,
      %c0_104 = arith.constant 0 : index
      %c14 = arith.constant 14 : index
      %104 = vector.load %arg14[%c0_104, %c14] : memref<8x2340xf32, #tpu.memory_space<vmem>>, vector<8x1920xf32>
      %c112_105 = arith.constant 112 : index
      %c0_106 = arith.constant 0 : index
      %105 = vector.load %arg13[%c112_105, %c0_106] : memref<128x1920xf32, #tpu.memory_space<vmem>>, vector<8x1920xf32>
      tpu.vector_store %arg13[%c112_105, %c0_106], %104 {strides = array<i32>} : memref<128x1920xf32, #tpu.memory_space<vmem>>, vector<8x1920xf32>,
      %c0_107 = arith.constant 0 : index
      %c0_108 = arith.constant 0 : index
      %c0_109 = arith.constant 0 : index
      %106 = vector.load %arg3[%c0_107, %c0_108, %c0_109] : memref<1x8x128xf32, #tpu.memory_space<vmem>>, vector<1x8x128xf32>
      %107 = vector.shape_cast %106 : vector<1x8x128xf32> to vector<8x128xf32>
      %c0_110 = arith.constant 0 : index
      %c0_111 = arith.constant 0 : index
      %108 = vector.load %arg13[%c0_110, %c0_111] : memref<128x1920xf32, #tpu.memory_space<vmem>>, vector<128x1920xf32>
      %cst_112 = arith.constant dense<0.000000e+00> : vector<8x1920xf32>
      %109 = tpu.matmul %107, %108, %cst_112 {dimension_numbers = #tpu.dot_dimension_numbers<[1], [0], [0], [1], [0, 0, 1, 1], [], []>} : vector<8x128xf32>, vector<128x1920xf32>, vector<8x1920xf32> -> vector<8x1920xf32>
      %c0_113 = arith.constant 0 : index
      %c0_114 = arith.constant 0 : index
      %110 = vector.load %arg11[%c0_113, %c0_114] : memref<1x1920xf32, #tpu.memory_space<vmem>>, vector<1x1920xf32>
      %c0_115 = arith.constant 0 : index
      %c0_116 = arith.constant 0 : index
      %c0_117 = arith.constant 0 : index
      %111 = vector.load %arg6[%c0_115, %c0_116, %c0_117] : memref<1x8x1xf32, #tpu.memory_space<vmem>>, vector<1x8x1xf32>
      %112 = vector.shape_cast %111 : vector<1x8x1xf32> to vector<8x1xf32>
      %c0_118 = arith.constant 0 : index
      %c0_119 = arith.constant 0 : index
      %c0_120 = arith.constant 0 : index
      %113 = vector.load %arg7[%c0_118, %c0_119, %c0_120] : memref<1x8x1xf32, #tpu.memory_space<vmem>>, vector<1x8x1xf32>
      %114 = vector.shape_cast %113 : vector<1x8x1xf32> to vector<8x1xf32>
      %115 = vector.broadcast %110 : vector<1x1920xf32> to vector<8x1920xf32>
      %116 = arith.mulf %109, %115 : vector<8x1920xf32>
      %cst_121 = arith.constant dense<0.000000e+00> : vector<8xf32>
      %117 = vector.multi_reduction <add>, %116, %cst_121 [1] : vector<8x1920xf32> to vector<8xf32>
      %118 = vector.shape_cast %117 : vector<8xf32> to vector<8x1xf32>
      %cst_122 = arith.constant 0.001953125 : f32
      %119 = vector.broadcast %cst_122 : f32 to vector<8x1xf32>
      %120 = arith.mulf %118, %119 : vector<8x1xf32>
      %121 = arith.mulf %116, %109 : vector<8x1920xf32>
      %cst_123 = arith.constant dense<0.000000e+00> : vector<8xf32>
      %122 = vector.multi_reduction <add>, %121, %cst_123 [1] : vector<8x1920xf32> to vector<8xf32>
      %123 = vector.shape_cast %122 : vector<8xf32> to vector<8x1xf32>
      %cst_124 = arith.constant 0.001953125 : f32
      %124 = vector.broadcast %cst_124 : f32 to vector<8x1xf32>
      %125 = arith.mulf %123, %124 : vector<8x1xf32>
      %126 = arith.mulf %120, %120 : vector<8x1xf32>
      %127 = arith.subf %125, %126 : vector<8x1xf32>
      %cst_125 = arith.constant 9.99999974E-6 : f32
      %128 = vector.broadcast %cst_125 : f32 to vector<8x1xf32>
      %129 = arith.addf %127, %128 : vector<8x1xf32>
      %130 = math.rsqrt %129 : vector<8x1xf32>
      %131 = arith.mulf %112, %130 : vector<8x1xf32>
      %132 = arith.mulf %120, %131 : vector<8x1xf32>
      %133 = arith.subf %114, %132 : vector<8x1xf32>
      %134 = vector.broadcast %131 : vector<8x1xf32> to vector<8x1920xf32>
      %135 = arith.mulf %109, %134 : vector<8x1920xf32>
      %136 = vector.broadcast %133 : vector<8x1xf32> to vector<8x1920xf32>
      %137 = arith.addf %135, %136 : vector<8x1920xf32>
      %cst_126 = arith.constant 0.000000e+00 : f32
      %138 = vector.broadcast %cst_126 : f32 to vector<8x1920xf32>
      %139 = arith.maximumf %137, %138 : vector<8x1920xf32>
      %c0_127 = arith.constant 0 : index
      %c0_128 = arith.constant 0 : index
      %140 = vector.load %arg11[%c0_127, %c0_128] : memref<1x1920xf32, #tpu.memory_space<vmem>>, vector<1x1920xf32>
      %c0_129 = arith.constant 0 : index
      %c0_130 = arith.constant 0 : index
      %c0_131 = arith.constant 0 : index
      %141 = vector.load %arg8[%c0_129, %c0_130, %c0_131] : memref<1x8x1xf32, #tpu.memory_space<vmem>>, vector<1x8x1xf32>
      %142 = vector.shape_cast %141 : vector<1x8x1xf32> to vector<8x1xf32>
      %c0_132 = arith.constant 0 : index
      %c0_133 = arith.constant 0 : index
      %c0_134 = arith.constant 0 : index
      %143 = vector.load %arg9[%c0_132, %c0_133, %c0_134] : memref<1x8x1xf32, #tpu.memory_space<vmem>>, vector<1x8x1xf32>
      %144 = vector.shape_cast %143 : vector<1x8x1xf32> to vector<8x1xf32>
      %145 = vector.broadcast %140 : vector<1x1920xf32> to vector<8x1920xf32>
      %146 = arith.mulf %139, %145 : vector<8x1920xf32>
      %cst_135 = arith.constant dense<0.000000e+00> : vector<8xf32>
      %147 = vector.multi_reduction <add>, %146, %cst_135 [1] : vector<8x1920xf32> to vector<8xf32>
      %148 = vector.shape_cast %147 : vector<8xf32> to vector<8x1xf32>
      %cst_136 = arith.constant 0.001953125 : f32
      %149 = vector.broadcast %cst_136 : f32 to vector<8x1xf32>
      %150 = arith.mulf %148, %149 : vector<8x1xf32>
      %151 = arith.mulf %146, %139 : vector<8x1920xf32>
      %cst_137 = arith.constant dense<0.000000e+00> : vector<8xf32>
      %152 = vector.multi_reduction <add>, %151, %cst_137 [1] : vector<8x1920xf32> to vector<8xf32>
      %153 = vector.shape_cast %152 : vector<8xf32> to vector<8x1xf32>
      %cst_138 = arith.constant 0.001953125 : f32
      %154 = vector.broadcast %cst_138 : f32 to vector<8x1xf32>
      %155 = arith.mulf %153, %154 : vector<8x1xf32>
      %156 = arith.mulf %150, %150 : vector<8x1xf32>
      %157 = arith.subf %155, %156 : vector<8x1xf32>
      %cst_139 = arith.constant 9.99999974E-6 : f32
      %158 = vector.broadcast %cst_139 : f32 to vector<8x1xf32>
      %159 = arith.addf %157, %158 : vector<8x1xf32>
      %160 = math.rsqrt %159 : vector<8x1xf32>
      %161 = arith.mulf %142, %160 : vector<8x1xf32>
      %162 = arith.mulf %150, %161 : vector<8x1xf32>
      %163 = arith.subf %144, %162 : vector<8x1xf32>
      %164 = vector.broadcast %161 : vector<8x1xf32> to vector<8x1920xf32>
      %165 = arith.mulf %139, %164 : vector<8x1920xf32>
      %166 = vector.broadcast %163 : vector<8x1xf32> to vector<8x1920xf32>
      %167 = arith.addf %165, %166 : vector<8x1920xf32>
      %cst_140 = arith.constant 0.000000e+00 : f32
      %168 = vector.broadcast %cst_140 : f32 to vector<8x1920xf32>
      %169 = arith.maximumf %167, %168 : vector<8x1920xf32>
      %c0_141 = arith.constant 0 : index
      %c0_142 = arith.constant 0 : index
      %c0_143 = arith.constant 0 : index
      %170 = vector.load %arg12[%c0_141, %c0_142, %c0_143] : memref<1x8x1920xf32, #tpu.memory_space<vmem>>, vector<1x8x1920xf32>
      %171 = vector.shape_cast %170 : vector<1x8x1920xf32> to vector<8x1920xf32>
      %172 = vector.shape_cast %169 : vector<8x1920xf32> to vector<1x8x1920xf32>
      tpu.vector_store %arg12[%c0_141, %c0_142, %c0_143], %172 {strides = array<i32>} : memref<1x8x1920xf32, #tpu.memory_space<vmem>>, vector<1x8x1920xf32>,
    } else {
    }
    %c1_i32 = arith.constant 1 : i32
    %7 = arith.cmpi eq, %arg0, %c1_i32 : i32
    %8 = arith.extui %7 : i1 to i32
    %c0_i32_3 = arith.constant 0 : i32
    %9 = arith.cmpi ne, %8, %c0_i32_3 : i32
    scf.if %9 {
      %c0_4 = arith.constant 0 : index
      %c0_5 = arith.constant 0 : index
      %10 = vector.load %arg1[%c0_4, %c0_5] : memref<8x2340xf32, #tpu.memory_space<vmem>>, vector<8x1920xf32>
      %c0_6 = arith.constant 0 : index
      %c0_7 = arith.constant 0 : index
      %11 = vector.load %arg13[%c0_6, %c0_7] : memref<128x1920xf32, #tpu.memory_space<vmem>>, vector<8x1920xf32>
      tpu.vector_store %arg13[%c0_6, %c0_7], %10 {strides = array<i32>} : memref<128x1920xf32, #tpu.memory_space<vmem>>, vector<8x1920xf32>,
      %c0_8 = arith.constant 0 : index
      %c1 = arith.constant 1 : index
      %12 = vector.load %arg1[%c0_8, %c1] : memref<8x2340xf32, #tpu.memory_space<vmem>>, vector<8x1920xf32>
      %c8 = arith.constant 8 : index
      %c0_9 = arith.constant 0 : index
      %13 = vector.load %arg13[%c8, %c0_9] : memref<128x1920xf32, #tpu.memory_space<vmem>>, vector<8x1920xf32>
      tpu.vector_store %arg13[%c8, %c0_9], %12 {strides = array<i32>} : memref<128x1920xf32, #tpu.memory_space<vmem>>, vector<8x1920xf32>,
      %c0_10 = arith.constant 0 : index
      %c2 = arith.constant 2 : index
      %14 = vector.load %arg1[%c0_10, %c2] : memref<8x2340xf32, #tpu.memory_space<vmem>>, vector<8x1920xf32>
      %c16 = arith.constant 16 : index
      %c0_11 = arith.constant 0 : index
      %15 = vector.load %arg13[%c16, %c0_11] : memref<128x1920xf32, #tpu.memory_space<vmem>>, vector<8x1920xf32>
      tpu.vector_store %arg13[%c16, %c0_11], %14 {strides = array<i32>} : memref<128x1920xf32, #tpu.memory_space<vmem>>, vector<8x1920xf32>,
      %c0_12 = arith.constant 0 : index
      %c3 = arith.constant 3 : index
      %16 = vector.load %arg1[%c0_12, %c3] : memref<8x2340xf32, #tpu.memory_space<vmem>>, vector<8x1920xf32>
      %c24 = arith.constant 24 : index
      %c0_13 = arith.constant 0 : index
      %17 = vector.load %arg13[%c24, %c0_13] : memref<128x1920xf32, #tpu.memory_space<vmem>>, vector<8x1920xf32>
      tpu.vector_store %arg13[%c24, %c0_13], %16 {strides = array<i32>} : memref<128x1920xf32, #tpu.memory_space<vmem>>, vector<8x1920xf32>,
      %c0_14 = arith.constant 0 : index
      %c4 = arith.constant 4 : index
      %18 = vector.load %arg1[%c0_14, %c4] : memref<8x2340xf32, #tpu.memory_space<vmem>>, vector<8x1920xf32>
      %c32 = arith.constant 32 : index
      %c0_15 = arith.constant 0 : index
      %19 = vector.load %arg13[%c32, %c0_15] : memref<128x1920xf32, #tpu.memory_space<vmem>>, vector<8x1920xf32>
      tpu.vector_store %arg13[%c32, %c0_15], %18 {strides = array<i32>} : memref<128x1920xf32, #tpu.memory_space<vmem>>, vector<8x1920xf32>,
      %c0_16 = arith.constant 0 : index
      %c5 = arith.constant 5 : index
      %20 = vector.load %arg1[%c0_16, %c5] : memref<8x2340xf32, #tpu.memory_space<vmem>>, vector<8x1920xf32>
      %c40 = arith.constant 40 : index
      %c0_17 = arith.constant 0 : index
      %21 = vector.load %arg13[%c40, %c0_17] : memref<128x1920xf32, #tpu.memory_space<vmem>>, vector<8x1920xf32>
      tpu.vector_store %arg13[%c40, %c0_17], %20 {strides = array<i32>} : memref<128x1920xf32, #tpu.memory_space<vmem>>, vector<8x1920xf32>,
      %c0_18 = arith.constant 0 : index
      %c6 = arith.constant 6 : index
      %22 = vector.load %arg1[%c0_18, %c6] : memref<8x2340xf32, #tpu.memory_space<vmem>>, vector<8x1920xf32>
      %c48 = arith.constant 48 : index
      %c0_19 = arith.constant 0 : index
      %23 = vector.load %arg13[%c48, %c0_19] : memref<128x1920xf32, #tpu.memory_space<vmem>>, vector<8x1920xf32>
      tpu.vector_store %arg13[%c48, %c0_19], %22 {strides = array<i32>} : memref<128x1920xf32, #tpu.memory_space<vmem>>, vector<8x1920xf32>,
      %c0_20 = arith.constant 0 : index
      %c7 = arith.constant 7 : index
      %24 = vector.load %arg1[%c0_20, %c7] : memref<8x2340xf32, #tpu.memory_space<vmem>>, vector<8x1920xf32>
      %c56 = arith.constant 56 : index
      %c0_21 = arith.constant 0 : index
      %25 = vector.load %arg13[%c56, %c0_21] : memref<128x1920xf32, #tpu.memory_space<vmem>>, vector<8x1920xf32>
      tpu.vector_store %arg13[%c56, %c0_21], %24 {strides = array<i32>} : memref<128x1920xf32, #tpu.memory_space<vmem>>, vector<8x1920xf32>,
      %c0_22 = arith.constant 0 : index
      %c8_23 = arith.constant 8 : index
      %26 = vector.load %arg1[%c0_22, %c8_23] : memref<8x2340xf32, #tpu.memory_space<vmem>>, vector<8x1920xf32>
      %c64 = arith.constant 64 : index
      %c0_24 = arith.constant 0 : index
      %27 = vector.load %arg13[%c64, %c0_24] : memref<128x1920xf32, #tpu.memory_space<vmem>>, vector<8x1920xf32>
      tpu.vector_store %arg13[%c64, %c0_24], %26 {strides = array<i32>} : memref<128x1920xf32, #tpu.memory_space<vmem>>, vector<8x1920xf32>,
      %c0_25 = arith.constant 0 : index
      %c9 = arith.constant 9 : index
      %28 = vector.load %arg1[%c0_25, %c9] : memref<8x2340xf32, #tpu.memory_space<vmem>>, vector<8x1920xf32>
      %c72 = arith.constant 72 : index
      %c0_26 = arith.constant 0 : index
      %29 = vector.load %arg13[%c72, %c0_26] : memref<128x1920xf32, #tpu.memory_space<vmem>>, vector<8x1920xf32>
      tpu.vector_store %arg13[%c72, %c0_26], %28 {strides = array<i32>} : memref<128x1920xf32, #tpu.memory_space<vmem>>, vector<8x1920xf32>,
      %c0_27 = arith.constant 0 : index
      %c10 = arith.constant 10 : index
      %30 = vector.load %arg1[%c0_27, %c10] : memref<8x2340xf32, #tpu.memory_space<vmem>>, vector<8x1920xf32>
      %c80 = arith.constant 80 : index
      %c0_28 = arith.constant 0 : index
      %31 = vector.load %arg13[%c80, %c0_28] : memref<128x1920xf32, #tpu.memory_space<vmem>>, vector<8x1920xf32>
      tpu.vector_store %arg13[%c80, %c0_28], %30 {strides = array<i32>} : memref<128x1920xf32, #tpu.memory_space<vmem>>, vector<8x1920xf32>,
      %c0_29 = arith.constant 0 : index
      %c11 = arith.constant 11 : index
      %32 = vector.load %arg1[%c0_29, %c11] : memref<8x2340xf32, #tpu.memory_space<vmem>>, vector<8x1920xf32>
      %c88 = arith.constant 88 : index
      %c0_30 = arith.constant 0 : index
      %33 = vector.load %arg13[%c88, %c0_30] : memref<128x1920xf32, #tpu.memory_space<vmem>>, vector<8x1920xf32>
      tpu.vector_store %arg13[%c88, %c0_30], %32 {strides = array<i32>} : memref<128x1920xf32, #tpu.memory_space<vmem>>, vector<8x1920xf32>,
      %c0_31 = arith.constant 0 : index
      %c12 = arith.constant 12 : index
      %34 = vector.load %arg1[%c0_31, %c12] : memref<8x2340xf32, #tpu.memory_space<vmem>>, vector<8x1920xf32>
      %c96 = arith.constant 96 : index
      %c0_32 = arith.constant 0 : index
      %35 = vector.load %arg13[%c96, %c0_32] : memref<128x1920xf32, #tpu.memory_space<vmem>>, vector<8x1920xf32>
      tpu.vector_store %arg13[%c96, %c0_32], %34 {strides = array<i32>} : memref<128x1920xf32, #tpu.memory_space<vmem>>, vector<8x1920xf32>,
      %c0_33 = arith.constant 0 : index
      %c13 = arith.constant 13 : index
      %36 = vector.load %arg1[%c0_33, %c13] : memref<8x2340xf32, #tpu.memory_space<vmem>>, vector<8x1920xf32>
      %c104 = arith.constant 104 : index
      %c0_34 = arith.constant 0 : index
      %37 = vector.load %arg13[%c104, %c0_34] : memref<128x1920xf32, #tpu.memory_space<vmem>>, vector<8x1920xf32>
      tpu.vector_store %arg13[%c104, %c0_34], %36 {strides = array<i32>} : memref<128x1920xf32, #tpu.memory_space<vmem>>, vector<8x1920xf32>,
      %c0_35 = arith.constant 0 : index
      %c14 = arith.constant 14 : index
      %38 = vector.load %arg1[%c0_35, %c14] : memref<8x2340xf32, #tpu.memory_space<vmem>>, vector<8x1920xf32>
      %c112 = arith.constant 112 : index
      %c0_36 = arith.constant 0 : index
      %39 = vector.load %arg13[%c112, %c0_36] : memref<128x1920xf32, #tpu.memory_space<vmem>>, vector<8x1920xf32>
      tpu.vector_store %arg13[%c112, %c0_36], %38 {strides = array<i32>} : memref<128x1920xf32, #tpu.memory_space<vmem>>, vector<8x1920xf32>,
      %c0_37 = arith.constant 0 : index
      %c0_38 = arith.constant 0 : index
      %c0_39 = arith.constant 0 : index
      %40 = vector.load %arg2[%c0_37, %c0_38, %c0_39] : memref<1x8x128xf32, #tpu.memory_space<vmem>>, vector<1x8x128xf32>
      %41 = vector.shape_cast %40 : vector<1x8x128xf32> to vector<8x128xf32>
      %c0_40 = arith.constant 0 : index
      %c0_41 = arith.constant 0 : index
      %42 = vector.load %arg13[%c0_40, %c0_41] : memref<128x1920xf32, #tpu.memory_space<vmem>>, vector<128x1920xf32>
      %cst_42 = arith.constant dense<0.000000e+00> : vector<8x1920xf32>
      %43 = tpu.matmul %41, %42, %cst_42 {dimension_numbers = #tpu.dot_dimension_numbers<[1], [0], [0], [1], [0, 0, 1, 1], [], []>} : vector<8x128xf32>, vector<128x1920xf32>, vector<8x1920xf32> -> vector<8x1920xf32>
      %c0_43 = arith.constant 0 : index
      %c0_44 = arith.constant 0 : index
      %c0_45 = arith.constant 0 : index
      %44 = vector.load %arg10[%c0_43, %c0_44, %c0_45] : memref<1x1x1920xf32, #tpu.memory_space<vmem>>, vector<1x1x1920xf32>
      %45 = vector.shape_cast %44 : vector<1x1x1920xf32> to vector<1x1920xf32>
      %c0_46 = arith.constant 0 : index
      %c0_47 = arith.constant 0 : index
      %c0_48 = arith.constant 0 : index
      %46 = vector.load %arg4[%c0_46, %c0_47, %c0_48] : memref<1x8x1xf32, #tpu.memory_space<vmem>>, vector<1x8x1xf32>
      %47 = vector.shape_cast %46 : vector<1x8x1xf32> to vector<8x1xf32>
      %c0_49 = arith.constant 0 : index
      %c0_50 = arith.constant 0 : index
      %c0_51 = arith.constant 0 : index
      %48 = vector.load %arg5[%c0_49, %c0_50, %c0_51] : memref<1x8x1xf32, #tpu.memory_space<vmem>>, vector<1x8x1xf32>
      %49 = vector.shape_cast %48 : vector<1x8x1xf32> to vector<8x1xf32>
      %50 = vector.broadcast %45 : vector<1x1920xf32> to vector<8x1920xf32>
      %51 = arith.mulf %43, %50 : vector<8x1920xf32>
      %cst_52 = arith.constant dense<0.000000e+00> : vector<8xf32>
      %52 = vector.multi_reduction <add>, %51, %cst_52 [1] : vector<8x1920xf32> to vector<8xf32>
      %53 = vector.shape_cast %52 : vector<8xf32> to vector<8x1xf32>
      %cst_53 = arith.constant 0.00104166672 : f32
      %54 = vector.broadcast %cst_53 : f32 to vector<8x1xf32>
      %55 = arith.mulf %53, %54 : vector<8x1xf32>
      %56 = arith.mulf %51, %43 : vector<8x1920xf32>
      %cst_54 = arith.constant dense<0.000000e+00> : vector<8xf32>
      %57 = vector.multi_reduction <add>, %56, %cst_54 [1] : vector<8x1920xf32> to vector<8xf32>
      %58 = vector.shape_cast %57 : vector<8xf32> to vector<8x1xf32>
      %cst_55 = arith.constant 0.00104166672 : f32
      %59 = vector.broadcast %cst_55 : f32 to vector<8x1xf32>
      %60 = arith.mulf %58, %59 : vector<8x1xf32>
      %61 = arith.mulf %55, %55 : vector<8x1xf32>
      %62 = arith.subf %60, %61 : vector<8x1xf32>
      %cst_56 = arith.constant 9.99999974E-6 : f32
      %63 = vector.broadcast %cst_56 : f32 to vector<8x1xf32>
      %64 = arith.addf %62, %63 : vector<8x1xf32>
      %65 = math.rsqrt %64 : vector<8x1xf32>
      %66 = arith.mulf %47, %65 : vector<8x1xf32>
      %67 = arith.mulf %55, %66 : vector<8x1xf32>
      %68 = arith.subf %49, %67 : vector<8x1xf32>
      %69 = vector.broadcast %66 : vector<8x1xf32> to vector<8x1920xf32>
      %70 = arith.mulf %43, %69 : vector<8x1920xf32>
      %71 = vector.broadcast %68 : vector<8x1xf32> to vector<8x1920xf32>
      %72 = arith.addf %70, %71 : vector<8x1920xf32>
      %cst_57 = arith.constant 0.000000e+00 : f32
      %73 = vector.broadcast %cst_57 : f32 to vector<8x1920xf32>
      %74 = arith.maximumf %72, %73 : vector<8x1920xf32>
      %c0_58 = arith.constant 0 : index
      %c0_59 = arith.constant 0 : index
      %75 = vector.load %arg14[%c0_58, %c0_59] : memref<8x2340xf32, #tpu.memory_space<vmem>>, vector<8x1920xf32>
      tpu.vector_store %arg14[%c0_58, %c0_59], %74 {strides = array<i32>} : memref<8x2340xf32, #tpu.memory_space<vmem>>, vector<8x1920xf32>,
      %c0_60 = arith.constant 0 : index
      %c0_61 = arith.constant 0 : index
      %76 = vector.load %arg14[%c0_60, %c0_61] : memref<8x2340xf32, #tpu.memory_space<vmem>>, vector<8x1920xf32>
      %c0_62 = arith.constant 0 : index
      %c0_63 = arith.constant 0 : index
      %77 = vector.load %arg13[%c0_62, %c0_63] : memref<128x1920xf32, #tpu.memory_space<vmem>>, vector<8x1920xf32>
      tpu.vector_store %arg13[%c0_62, %c0_63], %76 {strides = array<i32>} : memref<128x1920xf32, #tpu.memory_space<vmem>>, vector<8x1920xf32>,
      %c0_64 = arith.constant 0 : index
      %c30 = arith.constant 30 : index
      %78 = vector.load %arg14[%c0_64, %c30] : memref<8x2340xf32, #tpu.memory_space<vmem>>, vector<8x1920xf32>
      %c8_65 = arith.constant 8 : index
      %c0_66 = arith.constant 0 : index
      %79 = vector.load %arg13[%c8_65, %c0_66] : memref<128x1920xf32, #tpu.memory_space<vmem>>, vector<8x1920xf32>
      tpu.vector_store %arg13[%c8_65, %c0_66], %78 {strides = array<i32>} : memref<128x1920xf32, #tpu.memory_space<vmem>>, vector<8x1920xf32>,
      %c0_67 = arith.constant 0 : index
      %c60 = arith.constant 60 : index
      %80 = vector.load %arg14[%c0_67, %c60] : memref<8x2340xf32, #tpu.memory_space<vmem>>, vector<8x1920xf32>
      %c16_68 = arith.constant 16 : index
      %c0_69 = arith.constant 0 : index
      %81 = vector.load %arg13[%c16_68, %c0_69] : memref<128x1920xf32, #tpu.memory_space<vmem>>, vector<8x1920xf32>
      tpu.vector_store %arg13[%c16_68, %c0_69], %80 {strides = array<i32>} : memref<128x1920xf32, #tpu.memory_space<vmem>>, vector<8x1920xf32>,
      %c0_70 = arith.constant 0 : index
      %c90 = arith.constant 90 : index
      %82 = vector.load %arg14[%c0_70, %c90] : memref<8x2340xf32, #tpu.memory_space<vmem>>, vector<8x1920xf32>
      %c24_71 = arith.constant 24 : index
      %c0_72 = arith.constant 0 : index
      %83 = vector.load %arg13[%c24_71, %c0_72] : memref<128x1920xf32, #tpu.memory_space<vmem>>, vector<8x1920xf32>
      tpu.vector_store %arg13[%c24_71, %c0_72], %82 {strides = array<i32>} : memref<128x1920xf32, #tpu.memory_space<vmem>>, vector<8x1920xf32>,
      %c0_73 = arith.constant 0 : index
      %c120_74 = arith.constant 120 : index
      %84 = vector.load %arg14[%c0_73, %c120_74] : memref<8x2340xf32, #tpu.memory_space<vmem>>, vector<8x1920xf32>
      %c32_75 = arith.constant 32 : index
      %c0_76 = arith.constant 0 : index
      %85 = vector.load %arg13[%c32_75, %c0_76] : memref<128x1920xf32, #tpu.memory_space<vmem>>, vector<8x1920xf32>
      tpu.vector_store %arg13[%c32_75, %c0_76], %84 {strides = array<i32>} : memref<128x1920xf32, #tpu.memory_space<vmem>>, vector<8x1920xf32>,
      %c0_77 = arith.constant 0 : index
      %c150 = arith.constant 150 : index
      %86 = vector.load %arg14[%c0_77, %c150] : memref<8x2340xf32, #tpu.memory_space<vmem>>, vector<8x1920xf32>
      %c40_78 = arith.constant 40 : index
      %c0_79 = arith.constant 0 : index
      %87 = vector.load %arg13[%c40_78, %c0_79] : memref<128x1920xf32, #tpu.memory_space<vmem>>, vector<8x1920xf32>
      tpu.vector_store %arg13[%c40_78, %c0_79], %86 {strides = array<i32>} : memref<128x1920xf32, #tpu.memory_space<vmem>>, vector<8x1920xf32>,
      %c0_80 = arith.constant 0 : index
      %c180 = arith.constant 180 : index
      %88 = vector.load %arg14[%c0_80, %c180] : memref<8x2340xf32, #tpu.memory_space<vmem>>, vector<8x1920xf32>
      %c48_81 = arith.constant 48 : index
      %c0_82 = arith.constant 0 : index
      %89 = vector.load %arg13[%c48_81, %c0_82] : memref<128x1920xf32, #tpu.memory_space<vmem>>, vector<8x1920xf32>
      tpu.vector_store %arg13[%c48_81, %c0_82], %88 {strides = array<i32>} : memref<128x1920xf32, #tpu.memory_space<vmem>>, vector<8x1920xf32>,
      %c0_83 = arith.constant 0 : index
      %c210 = arith.constant 210 : index
      %90 = vector.load %arg14[%c0_83, %c210] : memref<8x2340xf32, #tpu.memory_space<vmem>>, vector<8x1920xf32>
      %c56_84 = arith.constant 56 : index
      %c0_85 = arith.constant 0 : index
      %91 = vector.load %arg13[%c56_84, %c0_85] : memref<128x1920xf32, #tpu.memory_space<vmem>>, vector<8x1920xf32>
      tpu.vector_store %arg13[%c56_84, %c0_85], %90 {strides = array<i32>} : memref<128x1920xf32, #tpu.memory_space<vmem>>, vector<8x1920xf32>,
      %c0_86 = arith.constant 0 : index
      %c240 = arith.constant 240 : index
      %92 = vector.load %arg14[%c0_86, %c240] : memref<8x2340xf32, #tpu.memory_space<vmem>>, vector<8x1920xf32>
      %c64_87 = arith.constant 64 : index
      %c0_88 = arith.constant 0 : index
      %93 = vector.load %arg13[%c64_87, %c0_88] : memref<128x1920xf32, #tpu.memory_space<vmem>>, vector<8x1920xf32>
      tpu.vector_store %arg13[%c64_87, %c0_88], %92 {strides = array<i32>} : memref<128x1920xf32, #tpu.memory_space<vmem>>, vector<8x1920xf32>,
      %c0_89 = arith.constant 0 : index
      %c270 = arith.constant 270 : index
      %94 = vector.load %arg14[%c0_89, %c270] : memref<8x2340xf32, #tpu.memory_space<vmem>>, vector<8x1920xf32>
      %c72_90 = arith.constant 72 : index
      %c0_91 = arith.constant 0 : index
      %95 = vector.load %arg13[%c72_90, %c0_91] : memref<128x1920xf32, #tpu.memory_space<vmem>>, vector<8x1920xf32>
      tpu.vector_store %arg13[%c72_90, %c0_91], %94 {strides = array<i32>} : memref<128x1920xf32, #tpu.memory_space<vmem>>, vector<8x1920xf32>,
      %c0_92 = arith.constant 0 : index
      %c300 = arith.constant 300 : index
      %96 = vector.load %arg14[%c0_92, %c300] : memref<8x2340xf32, #tpu.memory_space<vmem>>, vector<8x1920xf32>
      %c80_93 = arith.constant 80 : index
      %c0_94 = arith.constant 0 : index
      %97 = vector.load %arg13[%c80_93, %c0_94] : memref<128x1920xf32, #tpu.memory_space<vmem>>, vector<8x1920xf32>
      tpu.vector_store %arg13[%c80_93, %c0_94], %96 {strides = array<i32>} : memref<128x1920xf32, #tpu.memory_space<vmem>>, vector<8x1920xf32>,
      %c0_95 = arith.constant 0 : index
      %c330 = arith.constant 330 : index
      %98 = vector.load %arg14[%c0_95, %c330] : memref<8x2340xf32, #tpu.memory_space<vmem>>, vector<8x1920xf32>
      %c88_96 = arith.constant 88 : index
      %c0_97 = arith.constant 0 : index
      %99 = vector.load %arg13[%c88_96, %c0_97] : memref<128x1920xf32, #tpu.memory_space<vmem>>, vector<8x1920xf32>
      tpu.vector_store %arg13[%c88_96, %c0_97], %98 {strides = array<i32>} : memref<128x1920xf32, #tpu.memory_space<vmem>>, vector<8x1920xf32>,
      %c0_98 = arith.constant 0 : index
      %c360 = arith.constant 360 : index
      %100 = vector.load %arg14[%c0_98, %c360] : memref<8x2340xf32, #tpu.memory_space<vmem>>, vector<8x1920xf32>
      %c96_99 = arith.constant 96 : index
      %c0_100 = arith.constant 0 : index
      %101 = vector.load %arg13[%c96_99, %c0_100] : memref<128x1920xf32, #tpu.memory_space<vmem>>, vector<8x1920xf32>
      tpu.vector_store %arg13[%c96_99, %c0_100], %100 {strides = array<i32>} : memref<128x1920xf32, #tpu.memory_space<vmem>>, vector<8x1920xf32>,
      %c0_101 = arith.constant 0 : index
      %c390 = arith.constant 390 : index
      %102 = vector.load %arg14[%c0_101, %c390] : memref<8x2340xf32, #tpu.memory_space<vmem>>, vector<8x1920xf32>
      %c104_102 = arith.constant 104 : index
      %c0_103 = arith.constant 0 : index
      %103 = vector.load %arg13[%c104_102, %c0_103] : memref<128x1920xf32, #tpu.memory_space<vmem>>, vector<8x1920xf32>
      tpu.vector_store %arg13[%c104_102, %c0_103], %102 {strides = array<i32>} : memref<128x1920xf32, #tpu.memory_space<vmem>>, vector<8x1920xf32>,
      %c0_104 = arith.constant 0 : index
      %c420 = arith.constant 420 : index
      %104 = vector.load %arg14[%c0_104, %c420] : memref<8x2340xf32, #tpu.memory_space<vmem>>, vector<8x1920xf32>
      %c112_105 = arith.constant 112 : index
      %c0_106 = arith.constant 0 : index
      %105 = vector.load %arg13[%c112_105, %c0_106] : memref<128x1920xf32, #tpu.memory_space<vmem>>, vector<8x1920xf32>
      tpu.vector_store %arg13[%c112_105, %c0_106], %104 {strides = array<i32>} : memref<128x1920xf32, #tpu.memory_space<vmem>>, vector<8x1920xf32>,
      %c0_107 = arith.constant 0 : index
      %c0_108 = arith.constant 0 : index
      %c0_109 = arith.constant 0 : index
      %106 = vector.load %arg3[%c0_107, %c0_108, %c0_109] : memref<1x8x128xf32, #tpu.memory_space<vmem>>, vector<1x8x128xf32>
      %107 = vector.shape_cast %106 : vector<1x8x128xf32> to vector<8x128xf32>
      %c0_110 = arith.constant 0 : index
      %c0_111 = arith.constant 0 : index
      %108 = vector.load %arg13[%c0_110, %c0_111] : memref<128x1920xf32, #tpu.memory_space<vmem>>, vector<128x1920xf32>
      %cst_112 = arith.constant dense<0.000000e+00> : vector<8x1920xf32>
      %109 = tpu.matmul %107, %108, %cst_112 {dimension_numbers = #tpu.dot_dimension_numbers<[1], [0], [0], [1], [0, 0, 1, 1], [], []>} : vector<8x128xf32>, vector<128x1920xf32>, vector<8x1920xf32> -> vector<8x1920xf32>
      %c0_113 = arith.constant 0 : index
      %c0_114 = arith.constant 0 : index
      %110 = vector.load %arg11[%c0_113, %c0_114] : memref<1x1920xf32, #tpu.memory_space<vmem>>, vector<1x1920xf32>
      %c0_115 = arith.constant 0 : index
      %c0_116 = arith.constant 0 : index
      %c0_117 = arith.constant 0 : index
      %111 = vector.load %arg6[%c0_115, %c0_116, %c0_117] : memref<1x8x1xf32, #tpu.memory_space<vmem>>, vector<1x8x1xf32>
      %112 = vector.shape_cast %111 : vector<1x8x1xf32> to vector<8x1xf32>
      %c0_118 = arith.constant 0 : index
      %c0_119 = arith.constant 0 : index
      %c0_120 = arith.constant 0 : index
      %113 = vector.load %arg7[%c0_118, %c0_119, %c0_120] : memref<1x8x1xf32, #tpu.memory_space<vmem>>, vector<1x8x1xf32>
      %114 = vector.shape_cast %113 : vector<1x8x1xf32> to vector<8x1xf32>
      %115 = vector.broadcast %110 : vector<1x1920xf32> to vector<8x1920xf32>
      %116 = arith.mulf %109, %115 : vector<8x1920xf32>
      %cst_121 = arith.constant dense<0.000000e+00> : vector<8xf32>
      %117 = vector.multi_reduction <add>, %116, %cst_121 [1] : vector<8x1920xf32> to vector<8xf32>
      %118 = vector.shape_cast %117 : vector<8xf32> to vector<8x1xf32>
      %cst_122 = arith.constant 0.001953125 : f32
      %119 = vector.broadcast %cst_122 : f32 to vector<8x1xf32>
      %120 = arith.mulf %118, %119 : vector<8x1xf32>
      %121 = arith.mulf %116, %109 : vector<8x1920xf32>
      %cst_123 = arith.constant dense<0.000000e+00> : vector<8xf32>
      %122 = vector.multi_reduction <add>, %121, %cst_123 [1] : vector<8x1920xf32> to vector<8xf32>
      %123 = vector.shape_cast %122 : vector<8xf32> to vector<8x1xf32>
      %cst_124 = arith.constant 0.001953125 : f32
      %124 = vector.broadcast %cst_124 : f32 to vector<8x1xf32>
      %125 = arith.mulf %123, %124 : vector<8x1xf32>
      %126 = arith.mulf %120, %120 : vector<8x1xf32>
      %127 = arith.subf %125, %126 : vector<8x1xf32>
      %cst_125 = arith.constant 9.99999974E-6 : f32
      %128 = vector.broadcast %cst_125 : f32 to vector<8x1xf32>
      %129 = arith.addf %127, %128 : vector<8x1xf32>
      %130 = math.rsqrt %129 : vector<8x1xf32>
      %131 = arith.mulf %112, %130 : vector<8x1xf32>
      %132 = arith.mulf %120, %131 : vector<8x1xf32>
      %133 = arith.subf %114, %132 : vector<8x1xf32>
      %134 = vector.broadcast %131 : vector<8x1xf32> to vector<8x1920xf32>
      %135 = arith.mulf %109, %134 : vector<8x1920xf32>
      %136 = vector.broadcast %133 : vector<8x1xf32> to vector<8x1920xf32>
      %137 = arith.addf %135, %136 : vector<8x1920xf32>
      %cst_126 = arith.constant 0.000000e+00 : f32
      %138 = vector.broadcast %cst_126 : f32 to vector<8x1920xf32>
      %139 = arith.maximumf %137, %138 : vector<8x1920xf32>
      %c0_127 = arith.constant 0 : index
      %c0_128 = arith.constant 0 : index
      %140 = vector.load %arg11[%c0_127, %c0_128] : memref<1x1920xf32, #tpu.memory_space<vmem>>, vector<1x1920xf32>
      %c0_129 = arith.constant 0 : index
      %c0_130 = arith.constant 0 : index
      %c0_131 = arith.constant 0 : index
      %141 = vector.load %arg8[%c0_129, %c0_130, %c0_131] : memref<1x8x1xf32, #tpu.memory_space<vmem>>, vector<1x8x1xf32>
      %142 = vector.shape_cast %141 : vector<1x8x1xf32> to vector<8x1xf32>
      %c0_132 = arith.constant 0 : index
      %c0_133 = arith.constant 0 : index
      %c0_134 = arith.constant 0 : index
      %143 = vector.load %arg9[%c0_132, %c0_133, %c0_134] : memref<1x8x1xf32, #tpu.memory_space<vmem>>, vector<1x8x1xf32>
      %144 = vector.shape_cast %143 : vector<1x8x1xf32> to vector<8x1xf32>
      %145 = vector.broadcast %140 : vector<1x1920xf32> to vector<8x1920xf32>
      %146 = arith.mulf %139, %145 : vector<8x1920xf32>
      %cst_135 = arith.constant dense<0.000000e+00> : vector<8xf32>
      %147 = vector.multi_reduction <add>, %146, %cst_135 [1] : vector<8x1920xf32> to vector<8xf32>
      %148 = vector.shape_cast %147 : vector<8xf32> to vector<8x1xf32>
      %cst_136 = arith.constant 0.001953125 : f32
      %149 = vector.broadcast %cst_136 : f32 to vector<8x1xf32>
      %150 = arith.mulf %148, %149 : vector<8x1xf32>
      %151 = arith.mulf %146, %139 : vector<8x1920xf32>
      %cst_137 = arith.constant dense<0.000000e+00> : vector<8xf32>
      %152 = vector.multi_reduction <add>, %151, %cst_137 [1] : vector<8x1920xf32> to vector<8xf32>
      %153 = vector.shape_cast %152 : vector<8xf32> to vector<8x1xf32>
      %cst_138 = arith.constant 0.001953125 : f32
      %154 = vector.broadcast %cst_138 : f32 to vector<8x1xf32>
      %155 = arith.mulf %153, %154 : vector<8x1xf32>
      %156 = arith.mulf %150, %150 : vector<8x1xf32>
      %157 = arith.subf %155, %156 : vector<8x1xf32>
      %cst_139 = arith.constant 9.99999974E-6 : f32
      %158 = vector.broadcast %cst_139 : f32 to vector<8x1xf32>
      %159 = arith.addf %157, %158 : vector<8x1xf32>
      %160 = math.rsqrt %159 : vector<8x1xf32>
      %161 = arith.mulf %142, %160 : vector<8x1xf32>
      %162 = arith.mulf %150, %161 : vector<8x1xf32>
      %163 = arith.subf %144, %162 : vector<8x1xf32>
      %164 = vector.broadcast %161 : vector<8x1xf32> to vector<8x1920xf32>
      %165 = arith.mulf %139, %164 : vector<8x1920xf32>
      %166 = vector.broadcast %163 : vector<8x1xf32> to vector<8x1920xf32>
      %167 = arith.addf %165, %166 : vector<8x1920xf32>
      %cst_140 = arith.constant 0.000000e+00 : f32
      %168 = vector.broadcast %cst_140 : f32 to vector<8x1920xf32>
      %169 = arith.maximumf %167, %168 : vector<8x1920xf32>
      %c0_141 = arith.constant 0 : index
      %c0_142 = arith.constant 0 : index
      %c0_143 = arith.constant 0 : index
      %170 = vector.load %arg12[%c0_141, %c0_142, %c0_143] : memref<1x8x1920xf32, #tpu.memory_space<vmem>>, vector<1x8x1920xf32>
      %171 = vector.shape_cast %170 : vector<1x8x1920xf32> to vector<8x1920xf32>
      %172 = vector.shape_cast %169 : vector<8x1920xf32> to vector<1x8x1920xf32>
      tpu.vector_store %arg12[%c0_141, %c0_142, %c0_143], %172 {strides = array<i32>} : memref<1x8x1920xf32, #tpu.memory_space<vmem>>, vector<1x8x1920xf32>,
    } else {
    }
    return
  }
  func.func @transform_0(%arg0: i32) -> (i32, i32) {
    %c0_i32 = arith.constant 0 : i32
    %c0_i32_0 = arith.constant 0 : i32
    %c0_i32_1 = arith.constant 0 : i32
    return %c0_i32, %c0_i32_0 : i32, i32
  }
  func.func @transform_1(%arg0: i32) -> (i32, i32, i32) {
    %c0_i32 = arith.constant 0 : i32
    %c0_i32_0 = arith.constant 0 : i32
    %c0_i32_1 = arith.constant 0 : i32
    return %arg0, %c0_i32, %c0_i32_0 : i32, i32, i32
  }
  func.func @transform_2(%arg0: i32) -> (i32, i32, i32) {
    %c0_i32 = arith.constant 0 : i32
    %c0_i32_0 = arith.constant 0 : i32
    %c0_i32_1 = arith.constant 0 : i32
    return %arg0, %c0_i32, %c0_i32_0 : i32, i32, i32
  }
  func.func @transform_3(%arg0: i32) -> (i32, i32, i32) {
    %c0_i32 = arith.constant 0 : i32
    %c0_i32_0 = arith.constant 0 : i32
    %c0_i32_1 = arith.constant 0 : i32
    return %arg0, %c0_i32, %c0_i32_0 : i32, i32, i32
  }
  func.func @transform_4(%arg0: i32) -> (i32, i32, i32) {
    %c0_i32 = arith.constant 0 : i32
    %c0_i32_0 = arith.constant 0 : i32
    %c0_i32_1 = arith.constant 0 : i32
    return %arg0, %c0_i32, %c0_i32_0 : i32, i32, i32
  }
  func.func @transform_5(%arg0: i32) -> (i32, i32, i32) {
    %c0_i32 = arith.constant 0 : i32
    %c0_i32_0 = arith.constant 0 : i32
    %c0_i32_1 = arith.constant 0 : i32
    return %arg0, %c0_i32, %c0_i32_0 : i32, i32, i32
  }
  func.func @transform_6(%arg0: i32) -> (i32, i32, i32) {
    %c0_i32 = arith.constant 0 : i32
    %c0_i32_0 = arith.constant 0 : i32
    %c0_i32_1 = arith.constant 0 : i32
    return %arg0, %c0_i32, %c0_i32_0 : i32, i32, i32
  }
  func.func @transform_7(%arg0: i32) -> (i32, i32, i32) {
    %c0_i32 = arith.constant 0 : i32
    %c0_i32_0 = arith.constant 0 : i32
    %c0_i32_1 = arith.constant 0 : i32
    return %arg0, %c0_i32, %c0_i32_0 : i32, i32, i32
  }
  func.func @transform_8(%arg0: i32) -> (i32, i32, i32) {
    %c0_i32 = arith.constant 0 : i32
    %c0_i32_0 = arith.constant 0 : i32
    %c0_i32_1 = arith.constant 0 : i32
    return %arg0, %c0_i32, %c0_i32_0 : i32, i32, i32
  }
  func.func @transform_9(%arg0: i32) -> (i32, i32, i32) {
    %c0_i32 = arith.constant 0 : i32
    %c0_i32_0 = arith.constant 0 : i32
    %c0_i32_1 = arith.constant 0 : i32
    return %arg0, %c0_i32, %c0_i32_0 : i32, i32, i32
  }
  func.func @transform_10(%arg0: i32) -> (i32, i32) {
    %c0_i32 = arith.constant 0 : i32
    %c0_i32_0 = arith.constant 0 : i32
    %c0_i32_1 = arith.constant 0 : i32
    return %c0_i32, %c0_i32_0 : i32, i32
  }
  func.func @transform_11(%arg0: i32) -> (i32, i32, i32) {
    %c0_i32 = arith.constant 0 : i32
    %c0_i32_0 = arith.constant 0 : i32
    %c0_i32_1 = arith.constant 0 : i32
    return %arg0, %c0_i32, %c0_i32_0 : i32, i32, i32
  }
}

module attributes {stable_mosaic.version = 11 : i64} {
  func.func @kernel(%arg0: i32, %arg1: memref<8x2340xf32, #tpu.memory_space<vmem>>, %arg2: memref<1x8x128xf32, #tpu.memory_space<vmem>>, %arg3: memref<1x8x128xf32, #tpu.memory_space<vmem>>, %arg4: memref<1x8x1xf32, #tpu.memory_space<vmem>>, %arg5: memref<1x8x1xf32, #tpu.memory_space<vmem>>, %arg6: memref<1x8x1xf32, #tpu.memory_space<vmem>>, %arg7: memref<1x8x1xf32, #tpu.memory_space<vmem>>, %arg8: memref<1x8x1xf32, #tpu.memory_space<vmem>>, %arg9: memref<1x8x1xf32, #tpu.memory_space<vmem>>, %arg10: memref<1x1x1920xf32, #tpu.memory_space<vmem>>, %arg11: memref<1x1920xf32, #tpu.memory_space<vmem>>, %arg12: memref<1x8x1920xf32, #tpu.memory_space<vmem>>, %arg13: memref<128x1920xf32, #tpu.memory_space<vmem>>, %arg14: memref<8x2340xf32, #tpu.memory_space<vmem>>) attributes {dimension_semantics = [#tpu.dimension_semantics<parallel>], iteration_bounds = array<i64: 2>, scalar_prefetch = 0 : i64, scratch_operands = 2 : i64, tpu.core_type = #tpu.core_type<tc>, window_params = [{pipeline_mode = #tpu.pipeline_mode<synchronous>, transform_indices = @transform_0, window_bounds = array<i64: 8, 2340>}, {transform_indices = @transform_1, window_bounds = array<i64: 1, 8, 128>}, {transform_indices = @transform_2, window_bounds = array<i64: 1, 8, 128>}, {transform_indices = @transform_3, window_bounds = array<i64: 1, 8, 1>}, {transform_indices = @transform_4, window_bounds = array<i64: 1, 8, 1>}, {transform_indices = @transform_5, window_bounds = array<i64: 1, 8, 1>}, {transform_indices = @transform_6, window_bounds = array<i64: 1, 8, 1>}, {transform_indices = @transform_7, window_bounds = array<i64: 1, 8, 1>}, {transform_indices = @transform_8, window_bounds = array<i64: 1, 8, 1>}, {transform_indices = @transform_9, window_bounds = array<i64: 1, 1, 1920>}, {pipeline_mode = #tpu.pipeline_mode<synchronous>, transform_indices = @transform_10, window_bounds = array<i64: 1, 1920>}, {transform_indices = @transform_11, window_bounds = array<i64: 1, 8, 1920>}]} {
    %cst = arith.constant 0.000000e+00 : f32
    %0 = vector.broadcast %cst : f32 to vector<8x1920xf32>
    %c120 = arith.constant 120 : index
    %c0 = arith.constant 0 : index
    %1 = vector.load %arg13[%c120, %c0] : memref<128x1920xf32, #tpu.memory_space<vmem>>, vector<8x1920xf32>
    tpu.vector_store %arg13[%c120, %c0], %0 {strides = array<i32>} : memref<128x1920xf32, #tpu.memory_space<vmem>>, vector<8x1920xf32>,
    %cst_0 = arith.constant 0.000000e+00 : f32
    %2 = vector.broadcast %cst_0 : f32 to vector<8x420xf32>
    %c0_1 = arith.constant 0 : index
    %c1920 = arith.constant 1920 : index
    %3 = vector.load %arg14[%c0_1, %c1920] : memref<8x2340xf32, #tpu.memory_space<vmem>>, vector<8x420xf32>
    tpu.vector_store %arg14[%c0_1, %c1920], %2 {strides = array<i32>} : memref<8x2340xf32, #tpu.memory_space<vmem>>, vector<8x420xf32>,
    %c0_i32 = arith.constant 0 : i32
    %4 = arith.cmpi eq, %arg0, %c0_i32 : i32
    %5 = arith.extui %4 : i1 to i32
    %c0_i32_2 = arith.constant 0 : i32
    %6 = arith.cmpi ne, %5, %c0_i32_2 : i32
    scf.if %6 {
      %c0_4 = arith.constant 0 : index
      %c0_5 = arith.constant 0 : index
      %10 = vector.load %arg1[%c0_4, %c0_5] : memref<8x2340xf32, #tpu.memory_space<vmem>>, vector<8x1920xf32>
      %c0_6 = arith.constant 0 : index
      %c0_7 = arith.constant 0 : index
      %11 = vector.load %arg13[%c0_6, %c0_7] : memref<128x1920xf32, #tpu.memory_space<vmem>>, vector<8x1920xf32>
      tpu.vector_store %arg13[%c0_6, %c0_7], %10 {strides = array<i32>} : memref<128x1920xf32, #tpu.memory_space<vmem>>, vector<8x1920xf32>,
      %c0_8 = arith.constant 0 : index
      %c30 = arith.constant 30 : index
      %12 = vector.load %arg1[%c0_8, %c30] : memref<8x2340xf32, #tpu.memory_space<vmem>>, vector<8x1920xf32>
      %c8 = arith.constant 8 : index
      %c0_9 = arith.constant 0 : index
      %13 = vector.load %arg13[%c8, %c0_9] : memref<128x1920xf32, #tpu.memory_space<vmem>>, vector<8x1920xf32>
      tpu.vector_store %arg13[%c8, %c0_9], %12 {strides = array<i32>} : memref<128x1920xf32, #tpu.memory_space<vmem>>, vector<8x1920xf32>,
      %c0_10 = arith.constant 0 : index
      %c60 = arith.constant 60 : index
      %14 = vector.load %arg1[%c0_10, %c60] : memref<8x2340xf32, #tpu.memory_space<vmem>>, vector<8x1920xf32>
      %c16 = arith.constant 16 : index
      %c0_11 = arith.constant 0 : index
      %15 = vector.load %arg13[%c16, %c0_11] : memref<128x1920xf32, #tpu.memory_space<vmem>>, vector<8x1920xf32>
      tpu.vector_store %arg13[%c16, %c0_11], %14 {strides = array<i32>} : memref<128x1920xf32, #tpu.memory_space<vmem>>, vector<8x1920xf32>,
      %c0_12 = arith.constant 0 : index
      %c90 = arith.constant 90 : index
      %16 = vector.load %arg1[%c0_12, %c90] : memref<8x2340xf32, #tpu.memory_space<vmem>>, vector<8x1920xf32>
      %c24 = arith.constant 24 : index
      %c0_13 = arith.constant 0 : index
      %17 = vector.load %arg13[%c24, %c0_13] : memref<128x1920xf32, #tpu.memory_space<vmem>>, vector<8x1920xf32>
      tpu.vector_store %arg13[%c24, %c0_13], %16 {strides = array<i32>} : memref<128x1920xf32, #tpu.memory_space<vmem>>, vector<8x1920xf32>,
      %c0_14 = arith.constant 0 : index
      %c120_15 = arith.constant 120 : index
      %18 = vector.load %arg1[%c0_14, %c120_15] : memref<8x2340xf32, #tpu.memory_space<vmem>>, vector<8x1920xf32>
      %c32 = arith.constant 32 : index
      %c0_16 = arith.constant 0 : index
      %19 = vector.load %arg13[%c32, %c0_16] : memref<128x1920xf32, #tpu.memory_space<vmem>>, vector<8x1920xf32>
      tpu.vector_store %arg13[%c32, %c0_16], %18 {strides = array<i32>} : memref<128x1920xf32, #tpu.memory_space<vmem>>, vector<8x1920xf32>,
      %c0_17 = arith.constant 0 : index
      %c150 = arith.constant 150 : index
      %20 = vector.load %arg1[%c0_17, %c150] : memref<8x2340xf32, #tpu.memory_space<vmem>>, vector<8x1920xf32>
      %c40 = arith.constant 40 : index
      %c0_18 = arith.constant 0 : index
      %21 = vector.load %arg13[%c40, %c0_18] : memref<128x1920xf32, #tpu.memory_space<vmem>>, vector<8x1920xf32>
      tpu.vector_store %arg13[%c40, %c0_18], %20 {strides = array<i32>} : memref<128x1920xf32, #tpu.memory_space<vmem>>, vector<8x1920xf32>,
      %c0_19 = arith.constant 0 : index
      %c180 = arith.constant 180 : index
      %22 = vector.load %arg1[%c0_19, %c180] : memref<8x2340xf32, #tpu.memory_space<vmem>>, vector<8x1920xf32>
      %c48 = arith.constant 48 : index
      %c0_20 = arith.constant 0 : index
      %23 = vector.load %arg13[%c48, %c0_20] : memref<128x1920xf32, #tpu.memory_space<vmem>>, vector<8x1920xf32>
      tpu.vector_store %arg13[%c48, %c0_20], %22 {strides = array<i32>} : memref<128x1920xf32, #tpu.memory_space<vmem>>, vector<8x1920xf32>,
      %c0_21 = arith.constant 0 : index
      %c210 = arith.constant 210 : index
      %24 = vector.load %arg1[%c0_21, %c210] : memref<8x2340xf32, #tpu.memory_space<vmem>>, vector<8x1920xf32>
      %c56 = arith.constant 56 : index
      %c0_22 = arith.constant 0 : index
      %25 = vector.load %arg13[%c56, %c0_22] : memref<128x1920xf32, #tpu.memory_space<vmem>>, vector<8x1920xf32>
      tpu.vector_store %arg13[%c56, %c0_22], %24 {strides = array<i32>} : memref<128x1920xf32, #tpu.memory_space<vmem>>, vector<8x1920xf32>,
      %c0_23 = arith.constant 0 : index
      %c240 = arith.constant 240 : index
      %26 = vector.load %arg1[%c0_23, %c240] : memref<8x2340xf32, #tpu.memory_space<vmem>>, vector<8x1920xf32>
      %c64 = arith.constant 64 : index
      %c0_24 = arith.constant 0 : index
      %27 = vector.load %arg13[%c64, %c0_24] : memref<128x1920xf32, #tpu.memory_space<vmem>>, vector<8x1920xf32>
      tpu.vector_store %arg13[%c64, %c0_24], %26 {strides = array<i32>} : memref<128x1920xf32, #tpu.memory_space<vmem>>, vector<8x1920xf32>,
      %c0_25 = arith.constant 0 : index
      %c270 = arith.constant 270 : index
      %28 = vector.load %arg1[%c0_25, %c270] : memref<8x2340xf32, #tpu.memory_space<vmem>>, vector<8x1920xf32>
      %c72 = arith.constant 72 : index
      %c0_26 = arith.constant 0 : index
      %29 = vector.load %arg13[%c72, %c0_26] : memref<128x1920xf32, #tpu.memory_space<vmem>>, vector<8x1920xf32>
      tpu.vector_store %arg13[%c72, %c0_26], %28 {strides = array<i32>} : memref<128x1920xf32, #tpu.memory_space<vmem>>, vector<8x1920xf32>,
      %c0_27 = arith.constant 0 : index
      %c300 = arith.constant 300 : index
      %30 = vector.load %arg1[%c0_27, %c300] : memref<8x2340xf32, #tpu.memory_space<vmem>>, vector<8x1920xf32>
      %c80 = arith.constant 80 : index
      %c0_28 = arith.constant 0 : index
      %31 = vector.load %arg13[%c80, %c0_28] : memref<128x1920xf32, #tpu.memory_space<vmem>>, vector<8x1920xf32>
      tpu.vector_store %arg13[%c80, %c0_28], %30 {strides = array<i32>} : memref<128x1920xf32, #tpu.memory_space<vmem>>, vector<8x1920xf32>,
      %c0_29 = arith.constant 0 : index
      %c330 = arith.constant 330 : index
      %32 = vector.load %arg1[%c0_29, %c330] : memref<8x2340xf32, #tpu.memory_space<vmem>>, vector<8x1920xf32>
      %c88 = arith.constant 88 : index
      %c0_30 = arith.constant 0 : index
      %33 = vector.load %arg13[%c88, %c0_30] : memref<128x1920xf32, #tpu.memory_space<vmem>>, vector<8x1920xf32>
      tpu.vector_store %arg13[%c88, %c0_30], %32 {strides = array<i32>} : memref<128x1920xf32, #tpu.memory_space<vmem>>, vector<8x1920xf32>,
      %c0_31 = arith.constant 0 : index
      %c360 = arith.constant 360 : index
      %34 = vector.load %arg1[%c0_31, %c360] : memref<8x2340xf32, #tpu.memory_space<vmem>>, vector<8x1920xf32>
      %c96 = arith.constant 96 : index
      %c0_32 = arith.constant 0 : index
      %35 = vector.load %arg13[%c96, %c0_32] : memref<128x1920xf32, #tpu.memory_space<vmem>>, vector<8x1920xf32>
      tpu.vector_store %arg13[%c96, %c0_32], %34 {strides = array<i32>} : memref<128x1920xf32, #tpu.memory_space<vmem>>, vector<8x1920xf32>,
      %c0_33 = arith.constant 0 : index
      %c390 = arith.constant 390 : index
      %36 = vector.load %arg1[%c0_33, %c390] : memref<8x2340xf32, #tpu.memory_space<vmem>>, vector<8x1920xf32>
      %c104 = arith.constant 104 : index
      %c0_34 = arith.constant 0 : index
      %37 = vector.load %arg13[%c104, %c0_34] : memref<128x1920xf32, #tpu.memory_space<vmem>>, vector<8x1920xf32>
      tpu.vector_store %arg13[%c104, %c0_34], %36 {strides = array<i32>} : memref<128x1920xf32, #tpu.memory_space<vmem>>, vector<8x1920xf32>,
      %c0_35 = arith.constant 0 : index
      %c420 = arith.constant 420 : index
      %38 = vector.load %arg1[%c0_35, %c420] : memref<8x2340xf32, #tpu.memory_space<vmem>>, vector<8x1920xf32>
      %c112 = arith.constant 112 : index
      %c0_36 = arith.constant 0 : index
      %39 = vector.load %arg13[%c112, %c0_36] : memref<128x1920xf32, #tpu.memory_space<vmem>>, vector<8x1920xf32>
      tpu.vector_store %arg13[%c112, %c0_36], %38 {strides = array<i32>} : memref<128x1920xf32, #tpu.memory_space<vmem>>, vector<8x1920xf32>,
      %c0_37 = arith.constant 0 : index
      %c0_38 = arith.constant 0 : index
      %c0_39 = arith.constant 0 : index
      %40 = vector.load %arg2[%c0_37, %c0_38, %c0_39] : memref<1x8x128xf32, #tpu.memory_space<vmem>>, vector<1x8x128xf32>
      %41 = vector.shape_cast %40 : vector<1x8x128xf32> to vector<8x128xf32>
      %c0_40 = arith.constant 0 : index
      %c0_41 = arith.constant 0 : index
      %42 = vector.load %arg13[%c0_40, %c0_41] : memref<128x1920xf32, #tpu.memory_space<vmem>>, vector<128x1920xf32>
      %cst_42 = arith.constant dense<0.000000e+00> : vector<8x1920xf32>
      %43 = tpu.matmul %41, %42, %cst_42 {dimension_numbers = #tpu.dot_dimension_numbers<[1], [0], [0], [1], [0, 0, 1, 1], [], []>} : vector<8x128xf32>, vector<128x1920xf32>, vector<8x1920xf32> -> vector<8x1920xf32>
      %c0_43 = arith.constant 0 : index
      %c0_44 = arith.constant 0 : index
      %c0_45 = arith.constant 0 : index
      %44 = vector.load %arg10[%c0_43, %c0_44, %c0_45] : memref<1x1x1920xf32, #tpu.memory_space<vmem>>, vector<1x1x1920xf32>
      %45 = vector.shape_cast %44 : vector<1x1x1920xf32> to vector<1x1920xf32>
      %c0_46 = arith.constant 0 : index
      %c0_47 = arith.constant 0 : index
      %c0_48 = arith.constant 0 : index
      %46 = vector.load %arg4[%c0_46, %c0_47, %c0_48] : memref<1x8x1xf32, #tpu.memory_space<vmem>>, vector<1x8x1xf32>
      %47 = vector.shape_cast %46 : vector<1x8x1xf32> to vector<8x1xf32>
      %c0_49 = arith.constant 0 : index
      %c0_50 = arith.constant 0 : index
      %c0_51 = arith.constant 0 : index
      %48 = vector.load %arg5[%c0_49, %c0_50, %c0_51] : memref<1x8x1xf32, #tpu.memory_space<vmem>>, vector<1x8x1xf32>
      %49 = vector.shape_cast %48 : vector<1x8x1xf32> to vector<8x1xf32>
      %50 = vector.broadcast %45 : vector<1x1920xf32> to vector<8x1920xf32>
      %51 = arith.mulf %43, %50 : vector<8x1920xf32>
      %cst_52 = arith.constant dense<0.000000e+00> : vector<8xf32>
      %52 = vector.multi_reduction <add>, %51, %cst_52 [1] : vector<8x1920xf32> to vector<8xf32>
      %53 = vector.shape_cast %52 : vector<8xf32> to vector<8x1xf32>
      %cst_53 = arith.constant 0.00104166672 : f32
      %54 = vector.broadcast %cst_53 : f32 to vector<8x1xf32>
      %55 = arith.mulf %53, %54 : vector<8x1xf32>
      %56 = arith.mulf %51, %43 : vector<8x1920xf32>
      %cst_54 = arith.constant dense<0.000000e+00> : vector<8xf32>
      %57 = vector.multi_reduction <add>, %56, %cst_54 [1] : vector<8x1920xf32> to vector<8xf32>
      %58 = vector.shape_cast %57 : vector<8xf32> to vector<8x1xf32>
      %cst_55 = arith.constant 0.00104166672 : f32
      %59 = vector.broadcast %cst_55 : f32 to vector<8x1xf32>
      %60 = arith.mulf %58, %59 : vector<8x1xf32>
      %61 = arith.mulf %55, %55 : vector<8x1xf32>
      %62 = arith.subf %60, %61 : vector<8x1xf32>
      %cst_56 = arith.constant 9.99999974E-6 : f32
      %63 = vector.broadcast %cst_56 : f32 to vector<8x1xf32>
      %64 = arith.addf %62, %63 : vector<8x1xf32>
      %65 = math.rsqrt %64 : vector<8x1xf32>
      %66 = arith.mulf %47, %65 : vector<8x1xf32>
      %67 = arith.mulf %55, %66 : vector<8x1xf32>
      %68 = arith.subf %49, %67 : vector<8x1xf32>
      %69 = vector.broadcast %66 : vector<8x1xf32> to vector<8x1920xf32>
      %70 = arith.mulf %43, %69 : vector<8x1920xf32>
      %71 = vector.broadcast %68 : vector<8x1xf32> to vector<8x1920xf32>
      %72 = arith.addf %70, %71 : vector<8x1920xf32>
      %cst_57 = arith.constant 0.000000e+00 : f32
      %73 = vector.broadcast %cst_57 : f32 to vector<8x1920xf32>
      %74 = arith.maximumf %72, %73 : vector<8x1920xf32>
      %c0_58 = arith.constant 0 : index
      %c0_59 = arith.constant 0 : index
      %75 = vector.load %arg14[%c0_58, %c0_59] : memref<8x2340xf32, #tpu.memory_space<vmem>>, vector<8x1920xf32>
      tpu.vector_store %arg14[%c0_58, %c0_59], %74 {strides = array<i32>} : memref<8x2340xf32, #tpu.memory_space<vmem>>, vector<8x1920xf32>,
      %c0_60 = arith.constant 0 : index
      %c0_61 = arith.constant 0 : index
      %76 = vector.load %arg14[%c0_60, %c0_61] : memref<8x2340xf32, #tpu.memory_space<vmem>>, vector<8x1920xf32>
      %c0_62 = arith.constant 0 : index
      %c0_63 = arith.constant 0 : index
      %77 = vector.load %arg13[%c0_62, %c0_63] : memref<128x1920xf32, #tpu.memory_space<vmem>>, vector<8x1920xf32>
      tpu.vector_store %arg13[%c0_62, %c0_63], %76 {strides = array<i32>} : memref<128x1920xf32, #tpu.memory_space<vmem>>, vector<8x1920xf32>,
      %c0_64 = arith.constant 0 : index
      %c1 = arith.constant 1 : index
      %78 = vector.load %arg14[%c0_64, %c1] : memref<8x2340xf32, #tpu.memory_space<vmem>>, vector<8x1920xf32>
      %c8_65 = arith.constant 8 : index
      %c0_66 = arith.constant 0 : index
      %79 = vector.load %arg13[%c8_65, %c0_66] : memref<128x1920xf32, #tpu.memory_space<vmem>>, vector<8x1920xf32>
      tpu.vector_store %arg13[%c8_65, %c0_66], %78 {strides = array<i32>} : memref<128x1920xf32, #tpu.memory_space<vmem>>, vector<8x1920xf32>,
      %c0_67 = arith.constant 0 : index
      %c2 = arith.constant 2 : index
      %80 = vector.load %arg14[%c0_67, %c2] : memref<8x2340xf32, #tpu.memory_space<vmem>>, vector<8x1920xf32>
      %c16_68 = arith.constant 16 : index
      %c0_69 = arith.constant 0 : index
      %81 = vector.load %arg13[%c16_68, %c0_69] : memref<128x1920xf32, #tpu.memory_space<vmem>>, vector<8x1920xf32>
      tpu.vector_store %arg13[%c16_68, %c0_69], %80 {strides = array<i32>} : memref<128x1920xf32, #tpu.memory_space<vmem>>, vector<8x1920xf32>,
      %c0_70 = arith.constant 0 : index
      %c3 = arith.constant 3 : index
      %82 = vector.load %arg14[%c0_70, %c3] : memref<8x2340xf32, #tpu.memory_space<vmem>>, vector<8x1920xf32>
      %c24_71 = arith.constant 24 : index
      %c0_72 = arith.constant 0 : index
      %83 = vector.load %arg13[%c24_71, %c0_72] : memref<128x1920xf32, #tpu.memory_space<vmem>>, vector<8x1920xf32>
      tpu.vector_store %arg13[%c24_71, %c0_72], %82 {strides = array<i32>} : memref<128x1920xf32, #tpu.memory_space<vmem>>, vector<8x1920xf32>,
      %c0_73 = arith.constant 0 : index
      %c4 = arith.constant 4 : index
      %84 = vector.load %arg14[%c0_73, %c4] : memref<8x2340xf32, #tpu.memory_space<vmem>>, vector<8x1920xf32>
      %c32_74 = arith.constant 32 : index
      %c0_75 = arith.constant 0 : index
      %85 = vector.load %arg13[%c32_74, %c0_75] : memref<128x1920xf32, #tpu.memory_space<vmem>>, vector<8x1920xf32>
      tpu.vector_store %arg13[%c32_74, %c0_75], %84 {strides = array<i32>} : memref<128x1920xf32, #tpu.memory_space<vmem>>, vector<8x1920xf32>,
      %c0_76 = arith.constant 0 : index
      %c5 = arith.constant 5 : index
      %86 = vector.load %arg14[%c0_76, %c5] : memref<8x2340xf32, #tpu.memory_space<vmem>>, vector<8x1920xf32>
      %c40_77 = arith.constant 40 : index
      %c0_78 = arith.constant 0 : index
      %87 = vector.load %arg13[%c40_77, %c0_78] : memref<128x1920xf32, #tpu.memory_space<vmem>>, vector<8x1920xf32>
      tpu.vector_store %arg13[%c40_77, %c0_78], %86 {strides = array<i32>} : memref<128x1920xf32, #tpu.memory_space<vmem>>, vector<8x1920xf32>,
      %c0_79 = arith.constant 0 : index
      %c6 = arith.constant 6 : index
      %88 = vector.load %arg14[%c0_79, %c6] : memref<8x2340xf32, #tpu.memory_space<vmem>>, vector<8x1920xf32>
      %c48_80 = arith.constant 48 : index
      %c0_81 = arith.constant 0 : index
      %89 = vector.load %arg13[%c48_80, %c0_81] : memref<128x1920xf32, #tpu.memory_space<vmem>>, vector<8x1920xf32>
      tpu.vector_store %arg13[%c48_80, %c0_81], %88 {strides = array<i32>} : memref<128x1920xf32, #tpu.memory_space<vmem>>, vector<8x1920xf32>,
      %c0_82 = arith.constant 0 : index
      %c7 = arith.constant 7 : index
      %90 = vector.load %arg14[%c0_82, %c7] : memref<8x2340xf32, #tpu.memory_space<vmem>>, vector<8x1920xf32>
      %c56_83 = arith.constant 56 : index
      %c0_84 = arith.constant 0 : index
      %91 = vector.load %arg13[%c56_83, %c0_84] : memref<128x1920xf32, #tpu.memory_space<vmem>>, vector<8x1920xf32>
      tpu.vector_store %arg13[%c56_83, %c0_84], %90 {strides = array<i32>} : memref<128x1920xf32, #tpu.memory_space<vmem>>, vector<8x1920xf32>,
      %c0_85 = arith.constant 0 : index
      %c8_86 = arith.constant 8 : index
      %92 = vector.load %arg14[%c0_85, %c8_86] : memref<8x2340xf32, #tpu.memory_space<vmem>>, vector<8x1920xf32>
      %c64_87 = arith.constant 64 : index
      %c0_88 = arith.constant 0 : index
      %93 = vector.load %arg13[%c64_87, %c0_88] : memref<128x1920xf32, #tpu.memory_space<vmem>>, vector<8x1920xf32>
      tpu.vector_store %arg13[%c64_87, %c0_88], %92 {strides = array<i32>} : memref<128x1920xf32, #tpu.memory_space<vmem>>, vector<8x1920xf32>,
      %c0_89 = arith.constant 0 : index
      %c9 = arith.constant 9 : index
      %94 = vector.load %arg14[%c0_89, %c9] : memref<8x2340xf32, #tpu.memory_space<vmem>>, vector<8x1920xf32>
      %c72_90 = arith.constant 72 : index
      %c0_91 = arith.constant 0 : index
      %95 = vector.load %arg13[%c72_90, %c0_91] : memref<128x1920xf32, #tpu.memory_space<vmem>>, vector<8x1920xf32>
      tpu.vector_store %arg13[%c72_90, %c0_91], %94 {strides = array<i32>} : memref<128x1920xf32, #tpu.memory_space<vmem>>, vector<8x1920xf32>,
      %c0_92 = arith.constant 0 : index
      %c10 = arith.constant 10 : index
      %96 = vector.load %arg14[%c0_92, %c10] : memref<8x2340xf32, #tpu.memory_space<vmem>>, vector<8x1920xf32>
      %c80_93 = arith.constant 80 : index
      %c0_94 = arith.constant 0 : index
      %97 = vector.load %arg13[%c80_93, %c0_94] : memref<128x1920xf32, #tpu.memory_space<vmem>>, vector<8x1920xf32>
      tpu.vector_store %arg13[%c80_93, %c0_94], %96 {strides = array<i32>} : memref<128x1920xf32, #tpu.memory_space<vmem>>, vector<8x1920xf32>,
      %c0_95 = arith.constant 0 : index
      %c11 = arith.constant 11 : index
      %98 = vector.load %arg14[%c0_95, %c11] : memref<8x2340xf32, #tpu.memory_space<vmem>>, vector<8x1920xf32>
      %c88_96 = arith.constant 88 : index
      %c0_97 = arith.constant 0 : index
      %99 = vector.load %arg13[%c88_96, %c0_97] : memref<128x1920xf32, #tpu.memory_space<vmem>>, vector<8x1920xf32>
      tpu.vector_store %arg13[%c88_96, %c0_97], %98 {strides = array<i32>} : memref<128x1920xf32, #tpu.memory_space<vmem>>, vector<8x1920xf32>,
      %c0_98 = arith.constant 0 : index
      %c12 = arith.constant 12 : index
      %100 = vector.load %arg14[%c0_98, %c12] : memref<8x2340xf32, #tpu.memory_space<vmem>>, vector<8x1920xf32>
      %c96_99 = arith.constant 96 : index
      %c0_100 = arith.constant 0 : index
      %101 = vector.load %arg13[%c96_99, %c0_100] : memref<128x1920xf32, #tpu.memory_space<vmem>>, vector<8x1920xf32>
      tpu.vector_store %arg13[%c96_99, %c0_100], %100 {strides = array<i32>} : memref<128x1920xf32, #tpu.memory_space<vmem>>, vector<8x1920xf32>,
      %c0_101 = arith.constant 0 : index
      %c13 = arith.constant 13 : index
      %102 = vector.load %arg14[%c0_101, %c13] : memref<8x2340xf32, #tpu.memory_space<vmem>>, vector<8x1920xf32>
      %c104_102 = arith.constant 104 : index
      %c0_103 = arith.constant 0 : index
      %103 = vector.load %arg13[%c104_102, %c0_103] : memref<128x1920xf32, #tpu.memory_space<vmem>>, vector<8x1920xf32>
      tpu.vector_store %arg13[%c104_102, %c0_103], %102 {strides = array<i32>} : memref<128x1920xf32, #tpu.memory_space<vmem>>, vector<8x1920xf32>,
      %c0_104 = arith.constant 0 : index
      %c14 = arith.constant 14 : index
      %104 = vector.load %arg14[%c0_104, %c14] : memref<8x2340xf32, #tpu.memory_space<vmem>>, vector<8x1920xf32>
      %c112_105 = arith.constant 112 : index
      %c0_106 = arith.constant 0 : index
      %105 = vector.load %arg13[%c112_105, %c0_106] : memref<128x1920xf32, #tpu.memory_space<vmem>>, vector<8x1920xf32>
      tpu.vector_store %arg13[%c112_105, %c0_106], %104 {strides = array<i32>} : memref<128x1920xf32, #tpu.memory_space<vmem>>, vector<8x1920xf32>,
      %c0_107 = arith.constant 0 : index
      %c0_108 = arith.constant 0 : index
      %c0_109 = arith.constant 0 : index
      %106 = vector.load %arg3[%c0_107, %c0_108, %c0_109] : memref<1x8x128xf32, #tpu.memory_space<vmem>>, vector<1x8x128xf32>
      %107 = vector.shape_cast %106 : vector<1x8x128xf32> to vector<8x128xf32>
      %c0_110 = arith.constant 0 : index
      %c0_111 = arith.constant 0 : index
      %108 = vector.load %arg13[%c0_110, %c0_111] : memref<128x1920xf32, #tpu.memory_space<vmem>>, vector<128x1920xf32>
      %cst_112 = arith.constant dense<0.000000e+00> : vector<8x1920xf32>
      %109 = tpu.matmul %107, %108, %cst_112 {dimension_numbers = #tpu.dot_dimension_numbers<[1], [0], [0], [1], [0, 0, 1, 1], [], []>} : vector<8x128xf32>, vector<128x1920xf32>, vector<8x1920xf32> -> vector<8x1920xf32>
      %c0_113 = arith.constant 0 : index
      %c0_114 = arith.constant 0 : index
      %110 = vector.load %arg11[%c0_113, %c0_114] : memref<1x1920xf32, #tpu.memory_space<vmem>>, vector<1x1920xf32>
      %c0_115 = arith.constant 0 : index
      %c0_116 = arith.constant 0 : index
      %c0_117 = arith.constant 0 : index
      %111 = vector.load %arg6[%c0_115, %c0_116, %c0_117] : memref<1x8x1xf32, #tpu.memory_space<vmem>>, vector<1x8x1xf32>
      %112 = vector.shape_cast %111 : vector<1x8x1xf32> to vector<8x1xf32>
      %c0_118 = arith.constant 0 : index
      %c0_119 = arith.constant 0 : index
      %c0_120 = arith.constant 0 : index
      %113 = vector.load %arg7[%c0_118, %c0_119, %c0_120] : memref<1x8x1xf32, #tpu.memory_space<vmem>>, vector<1x8x1xf32>
      %114 = vector.shape_cast %113 : vector<1x8x1xf32> to vector<8x1xf32>
      %115 = vector.broadcast %110 : vector<1x1920xf32> to vector<8x1920xf32>
      %116 = arith.mulf %109, %115 : vector<8x1920xf32>
      %cst_121 = arith.constant dense<0.000000e+00> : vector<8xf32>
      %117 = vector.multi_reduction <add>, %116, %cst_121 [1] : vector<8x1920xf32> to vector<8xf32>
      %118 = vector.shape_cast %117 : vector<8xf32> to vector<8x1xf32>
      %cst_122 = arith.constant 0.001953125 : f32
      %119 = vector.broadcast %cst_122 : f32 to vector<8x1xf32>
      %120 = arith.mulf %118, %119 : vector<8x1xf32>
      %121 = arith.mulf %116, %109 : vector<8x1920xf32>
      %cst_123 = arith.constant dense<0.000000e+00> : vector<8xf32>
      %122 = vector.multi_reduction <add>, %121, %cst_123 [1] : vector<8x1920xf32> to vector<8xf32>
      %123 = vector.shape_cast %122 : vector<8xf32> to vector<8x1xf32>
      %cst_124 = arith.constant 0.001953125 : f32
      %124 = vector.broadcast %cst_124 : f32 to vector<8x1xf32>
      %125 = arith.mulf %123, %124 : vector<8x1xf32>
      %126 = arith.mulf %120, %120 : vector<8x1xf32>
      %127 = arith.subf %125, %126 : vector<8x1xf32>
      %cst_125 = arith.constant 9.99999974E-6 : f32
      %128 = vector.broadcast %cst_125 : f32 to vector<8x1xf32>
      %129 = arith.addf %127, %128 : vector<8x1xf32>
      %130 = math.rsqrt %129 : vector<8x1xf32>
      %131 = arith.mulf %112, %130 : vector<8x1xf32>
      %132 = arith.mulf %120, %131 : vector<8x1xf32>
      %133 = arith.subf %114, %132 : vector<8x1xf32>
      %134 = vector.broadcast %131 : vector<8x1xf32> to vector<8x1920xf32>
      %135 = arith.mulf %109, %134 : vector<8x1920xf32>
      %136 = vector.broadcast %133 : vector<8x1xf32> to vector<8x1920xf32>
      %137 = arith.addf %135, %136 : vector<8x1920xf32>
      %cst_126 = arith.constant 0.000000e+00 : f32
      %138 = vector.broadcast %cst_126 : f32 to vector<8x1920xf32>
      %139 = arith.maximumf %137, %138 : vector<8x1920xf32>
      %c0_127 = arith.constant 0 : index
      %c0_128 = arith.constant 0 : index
      %140 = vector.load %arg11[%c0_127, %c0_128] : memref<1x1920xf32, #tpu.memory_space<vmem>>, vector<1x1920xf32>
      %c0_129 = arith.constant 0 : index
      %c0_130 = arith.constant 0 : index
      %c0_131 = arith.constant 0 : index
      %141 = vector.load %arg8[%c0_129, %c0_130, %c0_131] : memref<1x8x1xf32, #tpu.memory_space<vmem>>, vector<1x8x1xf32>
      %142 = vector.shape_cast %141 : vector<1x8x1xf32> to vector<8x1xf32>
      %c0_132 = arith.constant 0 : index
      %c0_133 = arith.constant 0 : index
      %c0_134 = arith.constant 0 : index
      %143 = vector.load %arg9[%c0_132, %c0_133, %c0_134] : memref<1x8x1xf32, #tpu.memory_space<vmem>>, vector<1x8x1xf32>
      %144 = vector.shape_cast %143 : vector<1x8x1xf32> to vector<8x1xf32>
      %145 = vector.broadcast %140 : vector<1x1920xf32> to vector<8x1920xf32>
      %146 = arith.mulf %139, %145 : vector<8x1920xf32>
      %cst_135 = arith.constant dense<0.000000e+00> : vector<8xf32>
      %147 = vector.multi_reduction <add>, %146, %cst_135 [1] : vector<8x1920xf32> to vector<8xf32>
      %148 = vector.shape_cast %147 : vector<8xf32> to vector<8x1xf32>
      %cst_136 = arith.constant 0.001953125 : f32
      %149 = vector.broadcast %cst_136 : f32 to vector<8x1xf32>
      %150 = arith.mulf %148, %149 : vector<8x1xf32>
      %151 = arith.mulf %146, %139 : vector<8x1920xf32>
      %cst_137 = arith.constant dense<0.000000e+00> : vector<8xf32>
      %152 = vector.multi_reduction <add>, %151, %cst_137 [1] : vector<8x1920xf32> to vector<8xf32>
      %153 = vector.shape_cast %152 : vector<8xf32> to vector<8x1xf32>
      %cst_138 = arith.constant 0.001953125 : f32
      %154 = vector.broadcast %cst_138 : f32 to vector<8x1xf32>
      %155 = arith.mulf %153, %154 : vector<8x1xf32>
      %156 = arith.mulf %150, %150 : vector<8x1xf32>
      %157 = arith.subf %155, %156 : vector<8x1xf32>
      %cst_139 = arith.constant 9.99999974E-6 : f32
      %158 = vector.broadcast %cst_139 : f32 to vector<8x1xf32>
      %159 = arith.addf %157, %158 : vector<8x1xf32>
      %160 = math.rsqrt %159 : vector<8x1xf32>
      %161 = arith.mulf %142, %160 : vector<8x1xf32>
      %162 = arith.mulf %150, %161 : vector<8x1xf32>
      %163 = arith.subf %144, %162 : vector<8x1xf32>
      %164 = vector.broadcast %161 : vector<8x1xf32> to vector<8x1920xf32>
      %165 = arith.mulf %139, %164 : vector<8x1920xf32>
      %166 = vector.broadcast %163 : vector<8x1xf32> to vector<8x1920xf32>
      %167 = arith.addf %165, %166 : vector<8x1920xf32>
      %cst_140 = arith.constant 0.000000e+00 : f32
      %168 = vector.broadcast %cst_140 : f32 to vector<8x1920xf32>
      %169 = arith.maximumf %167, %168 : vector<8x1920xf32>
      %c0_141 = arith.constant 0 : index
      %c0_142 = arith.constant 0 : index
      %c0_143 = arith.constant 0 : index
      %170 = vector.load %arg12[%c0_141, %c0_142, %c0_143] : memref<1x8x1920xf32, #tpu.memory_space<vmem>>, vector<1x8x1920xf32>
      %171 = vector.shape_cast %170 : vector<1x8x1920xf32> to vector<8x1920xf32>
      %172 = vector.shape_cast %169 : vector<8x1920xf32> to vector<1x8x1920xf32>
      tpu.vector_store %arg12[%c0_141, %c0_142, %c0_143], %172 {strides = array<i32>} : memref<1x8x1920xf32, #tpu.memory_space<vmem>>, vector<1x8x1920xf32>,
    } else {
    }
    %c1_i32 = arith.constant 1 : i32
    %7 = arith.cmpi eq, %arg0, %c1_i32 : i32
    %8 = arith.extui %7 : i1 to i32
    %c0_i32_3 = arith.constant 0 : i32
    %9 = arith.cmpi ne, %8, %c0_i32_3 : i32
    scf.if %9 {
      %c0_4 = arith.constant 0 : index
      %c0_5 = arith.constant 0 : index
      %10 = vector.load %arg1[%c0_4, %c0_5] : memref<8x2340xf32, #tpu.memory_space<vmem>>, vector<8x1920xf32>
      %c0_6 = arith.constant 0 : index
      %c0_7 = arith.constant 0 : index
      %11 = vector.load %arg13[%c0_6, %c0_7] : memref<128x1920xf32, #tpu.memory_space<vmem>>, vector<8x1920xf32>
      tpu.vector_store %arg13[%c0_6, %c0_7], %10 {strides = array<i32>} : memref<128x1920xf32, #tpu.memory_space<vmem>>, vector<8x1920xf32>,
      %c0_8 = arith.constant 0 : index
      %c1 = arith.constant 1 : index
      %12 = vector.load %arg1[%c0_8, %c1] : memref<8x2340xf32, #tpu.memory_space<vmem>>, vector<8x1920xf32>
      %c8 = arith.constant 8 : index
      %c0_9 = arith.constant 0 : index
      %13 = vector.load %arg13[%c8, %c0_9] : memref<128x1920xf32, #tpu.memory_space<vmem>>, vector<8x1920xf32>
      tpu.vector_store %arg13[%c8, %c0_9], %12 {strides = array<i32>} : memref<128x1920xf32, #tpu.memory_space<vmem>>, vector<8x1920xf32>,
      %c0_10 = arith.constant 0 : index
      %c2 = arith.constant 2 : index
      %14 = vector.load %arg1[%c0_10, %c2] : memref<8x2340xf32, #tpu.memory_space<vmem>>, vector<8x1920xf32>
      %c16 = arith.constant 16 : index
      %c0_11 = arith.constant 0 : index
      %15 = vector.load %arg13[%c16, %c0_11] : memref<128x1920xf32, #tpu.memory_space<vmem>>, vector<8x1920xf32>
      tpu.vector_store %arg13[%c16, %c0_11], %14 {strides = array<i32>} : memref<128x1920xf32, #tpu.memory_space<vmem>>, vector<8x1920xf32>,
      %c0_12 = arith.constant 0 : index
      %c3 = arith.constant 3 : index
      %16 = vector.load %arg1[%c0_12, %c3] : memref<8x2340xf32, #tpu.memory_space<vmem>>, vector<8x1920xf32>
      %c24 = arith.constant 24 : index
      %c0_13 = arith.constant 0 : index
      %17 = vector.load %arg13[%c24, %c0_13] : memref<128x1920xf32, #tpu.memory_space<vmem>>, vector<8x1920xf32>
      tpu.vector_store %arg13[%c24, %c0_13], %16 {strides = array<i32>} : memref<128x1920xf32, #tpu.memory_space<vmem>>, vector<8x1920xf32>,
      %c0_14 = arith.constant 0 : index
      %c4 = arith.constant 4 : index
      %18 = vector.load %arg1[%c0_14, %c4] : memref<8x2340xf32, #tpu.memory_space<vmem>>, vector<8x1920xf32>
      %c32 = arith.constant 32 : index
      %c0_15 = arith.constant 0 : index
      %19 = vector.load %arg13[%c32, %c0_15] : memref<128x1920xf32, #tpu.memory_space<vmem>>, vector<8x1920xf32>
      tpu.vector_store %arg13[%c32, %c0_15], %18 {strides = array<i32>} : memref<128x1920xf32, #tpu.memory_space<vmem>>, vector<8x1920xf32>,
      %c0_16 = arith.constant 0 : index
      %c5 = arith.constant 5 : index
      %20 = vector.load %arg1[%c0_16, %c5] : memref<8x2340xf32, #tpu.memory_space<vmem>>, vector<8x1920xf32>
      %c40 = arith.constant 40 : index
      %c0_17 = arith.constant 0 : index
      %21 = vector.load %arg13[%c40, %c0_17] : memref<128x1920xf32, #tpu.memory_space<vmem>>, vector<8x1920xf32>
      tpu.vector_store %arg13[%c40, %c0_17], %20 {strides = array<i32>} : memref<128x1920xf32, #tpu.memory_space<vmem>>, vector<8x1920xf32>,
      %c0_18 = arith.constant 0 : index
      %c6 = arith.constant 6 : index
      %22 = vector.load %arg1[%c0_18, %c6] : memref<8x2340xf32, #tpu.memory_space<vmem>>, vector<8x1920xf32>
      %c48 = arith.constant 48 : index
      %c0_19 = arith.constant 0 : index
      %23 = vector.load %arg13[%c48, %c0_19] : memref<128x1920xf32, #tpu.memory_space<vmem>>, vector<8x1920xf32>
      tpu.vector_store %arg13[%c48, %c0_19], %22 {strides = array<i32>} : memref<128x1920xf32, #tpu.memory_space<vmem>>, vector<8x1920xf32>,
      %c0_20 = arith.constant 0 : index
      %c7 = arith.constant 7 : index
      %24 = vector.load %arg1[%c0_20, %c7] : memref<8x2340xf32, #tpu.memory_space<vmem>>, vector<8x1920xf32>
      %c56 = arith.constant 56 : index
      %c0_21 = arith.constant 0 : index
      %25 = vector.load %arg13[%c56, %c0_21] : memref<128x1920xf32, #tpu.memory_space<vmem>>, vector<8x1920xf32>
      tpu.vector_store %arg13[%c56, %c0_21], %24 {strides = array<i32>} : memref<128x1920xf32, #tpu.memory_space<vmem>>, vector<8x1920xf32>,
      %c0_22 = arith.constant 0 : index
      %c8_23 = arith.constant 8 : index
      %26 = vector.load %arg1[%c0_22, %c8_23] : memref<8x2340xf32, #tpu.memory_space<vmem>>, vector<8x1920xf32>
      %c64 = arith.constant 64 : index
      %c0_24 = arith.constant 0 : index
      %27 = vector.load %arg13[%c64, %c0_24] : memref<128x1920xf32, #tpu.memory_space<vmem>>, vector<8x1920xf32>
      tpu.vector_store %arg13[%c64, %c0_24], %26 {strides = array<i32>} : memref<128x1920xf32, #tpu.memory_space<vmem>>, vector<8x1920xf32>,
      %c0_25 = arith.constant 0 : index
      %c9 = arith.constant 9 : index
      %28 = vector.load %arg1[%c0_25, %c9] : memref<8x2340xf32, #tpu.memory_space<vmem>>, vector<8x1920xf32>
      %c72 = arith.constant 72 : index
      %c0_26 = arith.constant 0 : index
      %29 = vector.load %arg13[%c72, %c0_26] : memref<128x1920xf32, #tpu.memory_space<vmem>>, vector<8x1920xf32>
      tpu.vector_store %arg13[%c72, %c0_26], %28 {strides = array<i32>} : memref<128x1920xf32, #tpu.memory_space<vmem>>, vector<8x1920xf32>,
      %c0_27 = arith.constant 0 : index
      %c10 = arith.constant 10 : index
      %30 = vector.load %arg1[%c0_27, %c10] : memref<8x2340xf32, #tpu.memory_space<vmem>>, vector<8x1920xf32>
      %c80 = arith.constant 80 : index
      %c0_28 = arith.constant 0 : index
      %31 = vector.load %arg13[%c80, %c0_28] : memref<128x1920xf32, #tpu.memory_space<vmem>>, vector<8x1920xf32>
      tpu.vector_store %arg13[%c80, %c0_28], %30 {strides = array<i32>} : memref<128x1920xf32, #tpu.memory_space<vmem>>, vector<8x1920xf32>,
      %c0_29 = arith.constant 0 : index
      %c11 = arith.constant 11 : index
      %32 = vector.load %arg1[%c0_29, %c11] : memref<8x2340xf32, #tpu.memory_space<vmem>>, vector<8x1920xf32>
      %c88 = arith.constant 88 : index
      %c0_30 = arith.constant 0 : index
      %33 = vector.load %arg13[%c88, %c0_30] : memref<128x1920xf32, #tpu.memory_space<vmem>>, vector<8x1920xf32>
      tpu.vector_store %arg13[%c88, %c0_30], %32 {strides = array<i32>} : memref<128x1920xf32, #tpu.memory_space<vmem>>, vector<8x1920xf32>,
      %c0_31 = arith.constant 0 : index
      %c12 = arith.constant 12 : index
      %34 = vector.load %arg1[%c0_31, %c12] : memref<8x2340xf32, #tpu.memory_space<vmem>>, vector<8x1920xf32>
      %c96 = arith.constant 96 : index
      %c0_32 = arith.constant 0 : index
      %35 = vector.load %arg13[%c96, %c0_32] : memref<128x1920xf32, #tpu.memory_space<vmem>>, vector<8x1920xf32>
      tpu.vector_store %arg13[%c96, %c0_32], %34 {strides = array<i32>} : memref<128x1920xf32, #tpu.memory_space<vmem>>, vector<8x1920xf32>,
      %c0_33 = arith.constant 0 : index
      %c13 = arith.constant 13 : index
      %36 = vector.load %arg1[%c0_33, %c13] : memref<8x2340xf32, #tpu.memory_space<vmem>>, vector<8x1920xf32>
      %c104 = arith.constant 104 : index
      %c0_34 = arith.constant 0 : index
      %37 = vector.load %arg13[%c104, %c0_34] : memref<128x1920xf32, #tpu.memory_space<vmem>>, vector<8x1920xf32>
      tpu.vector_store %arg13[%c104, %c0_34], %36 {strides = array<i32>} : memref<128x1920xf32, #tpu.memory_space<vmem>>, vector<8x1920xf32>,
      %c0_35 = arith.constant 0 : index
      %c14 = arith.constant 14 : index
      %38 = vector.load %arg1[%c0_35, %c14] : memref<8x2340xf32, #tpu.memory_space<vmem>>, vector<8x1920xf32>
      %c112 = arith.constant 112 : index
      %c0_36 = arith.constant 0 : index
      %39 = vector.load %arg13[%c112, %c0_36] : memref<128x1920xf32, #tpu.memory_space<vmem>>, vector<8x1920xf32>
      tpu.vector_store %arg13[%c112, %c0_36], %38 {strides = array<i32>} : memref<128x1920xf32, #tpu.memory_space<vmem>>, vector<8x1920xf32>,
      %c0_37 = arith.constant 0 : index
      %c0_38 = arith.constant 0 : index
      %c0_39 = arith.constant 0 : index
      %40 = vector.load %arg2[%c0_37, %c0_38, %c0_39] : memref<1x8x128xf32, #tpu.memory_space<vmem>>, vector<1x8x128xf32>
      %41 = vector.shape_cast %40 : vector<1x8x128xf32> to vector<8x128xf32>
      %c0_40 = arith.constant 0 : index
      %c0_41 = arith.constant 0 : index
      %42 = vector.load %arg13[%c0_40, %c0_41] : memref<128x1920xf32, #tpu.memory_space<vmem>>, vector<128x1920xf32>
      %cst_42 = arith.constant dense<0.000000e+00> : vector<8x1920xf32>
      %43 = tpu.matmul %41, %42, %cst_42 {dimension_numbers = #tpu.dot_dimension_numbers<[1], [0], [0], [1], [0, 0, 1, 1], [], []>} : vector<8x128xf32>, vector<128x1920xf32>, vector<8x1920xf32> -> vector<8x1920xf32>
      %c0_43 = arith.constant 0 : index
      %c0_44 = arith.constant 0 : index
      %c0_45 = arith.constant 0 : index
      %44 = vector.load %arg10[%c0_43, %c0_44, %c0_45] : memref<1x1x1920xf32, #tpu.memory_space<vmem>>, vector<1x1x1920xf32>
      %45 = vector.shape_cast %44 : vector<1x1x1920xf32> to vector<1x1920xf32>
      %c0_46 = arith.constant 0 : index
      %c0_47 = arith.constant 0 : index
      %c0_48 = arith.constant 0 : index
      %46 = vector.load %arg4[%c0_46, %c0_47, %c0_48] : memref<1x8x1xf32, #tpu.memory_space<vmem>>, vector<1x8x1xf32>
      %47 = vector.shape_cast %46 : vector<1x8x1xf32> to vector<8x1xf32>
      %c0_49 = arith.constant 0 : index
      %c0_50 = arith.constant 0 : index
      %c0_51 = arith.constant 0 : index
      %48 = vector.load %arg5[%c0_49, %c0_50, %c0_51] : memref<1x8x1xf32, #tpu.memory_space<vmem>>, vector<1x8x1xf32>
      %49 = vector.shape_cast %48 : vector<1x8x1xf32> to vector<8x1xf32>
      %50 = vector.broadcast %45 : vector<1x1920xf32> to vector<8x1920xf32>
      %51 = arith.mulf %43, %50 : vector<8x1920xf32>
      %cst_52 = arith.constant dense<0.000000e+00> : vector<8xf32>
      %52 = vector.multi_reduction <add>, %51, %cst_52 [1] : vector<8x1920xf32> to vector<8xf32>
      %53 = vector.shape_cast %52 : vector<8xf32> to vector<8x1xf32>
      %cst_53 = arith.constant 0.00104166672 : f32
      %54 = vector.broadcast %cst_53 : f32 to vector<8x1xf32>
      %55 = arith.mulf %53, %54 : vector<8x1xf32>
      %56 = arith.mulf %51, %43 : vector<8x1920xf32>
      %cst_54 = arith.constant dense<0.000000e+00> : vector<8xf32>
      %57 = vector.multi_reduction <add>, %56, %cst_54 [1] : vector<8x1920xf32> to vector<8xf32>
      %58 = vector.shape_cast %57 : vector<8xf32> to vector<8x1xf32>
      %cst_55 = arith.constant 0.00104166672 : f32
      %59 = vector.broadcast %cst_55 : f32 to vector<8x1xf32>
      %60 = arith.mulf %58, %59 : vector<8x1xf32>
      %61 = arith.mulf %55, %55 : vector<8x1xf32>
      %62 = arith.subf %60, %61 : vector<8x1xf32>
      %cst_56 = arith.constant 9.99999974E-6 : f32
      %63 = vector.broadcast %cst_56 : f32 to vector<8x1xf32>
      %64 = arith.addf %62, %63 : vector<8x1xf32>
      %65 = math.rsqrt %64 : vector<8x1xf32>
      %66 = arith.mulf %47, %65 : vector<8x1xf32>
      %67 = arith.mulf %55, %66 : vector<8x1xf32>
      %68 = arith.subf %49, %67 : vector<8x1xf32>
      %69 = vector.broadcast %66 : vector<8x1xf32> to vector<8x1920xf32>
      %70 = arith.mulf %43, %69 : vector<8x1920xf32>
      %71 = vector.broadcast %68 : vector<8x1xf32> to vector<8x1920xf32>
      %72 = arith.addf %70, %71 : vector<8x1920xf32>
      %cst_57 = arith.constant 0.000000e+00 : f32
      %73 = vector.broadcast %cst_57 : f32 to vector<8x1920xf32>
      %74 = arith.maximumf %72, %73 : vector<8x1920xf32>
      %c0_58 = arith.constant 0 : index
      %c0_59 = arith.constant 0 : index
      %75 = vector.load %arg14[%c0_58, %c0_59] : memref<8x2340xf32, #tpu.memory_space<vmem>>, vector<8x1920xf32>
      tpu.vector_store %arg14[%c0_58, %c0_59], %74 {strides = array<i32>} : memref<8x2340xf32, #tpu.memory_space<vmem>>, vector<8x1920xf32>,
      %c0_60 = arith.constant 0 : index
      %c0_61 = arith.constant 0 : index
      %76 = vector.load %arg14[%c0_60, %c0_61] : memref<8x2340xf32, #tpu.memory_space<vmem>>, vector<8x1920xf32>
      %c0_62 = arith.constant 0 : index
      %c0_63 = arith.constant 0 : index
      %77 = vector.load %arg13[%c0_62, %c0_63] : memref<128x1920xf32, #tpu.memory_space<vmem>>, vector<8x1920xf32>
      tpu.vector_store %arg13[%c0_62, %c0_63], %76 {strides = array<i32>} : memref<128x1920xf32, #tpu.memory_space<vmem>>, vector<8x1920xf32>,
      %c0_64 = arith.constant 0 : index
      %c30 = arith.constant 30 : index
      %78 = vector.load %arg14[%c0_64, %c30] : memref<8x2340xf32, #tpu.memory_space<vmem>>, vector<8x1920xf32>
      %c8_65 = arith.constant 8 : index
      %c0_66 = arith.constant 0 : index
      %79 = vector.load %arg13[%c8_65, %c0_66] : memref<128x1920xf32, #tpu.memory_space<vmem>>, vector<8x1920xf32>
      tpu.vector_store %arg13[%c8_65, %c0_66], %78 {strides = array<i32>} : memref<128x1920xf32, #tpu.memory_space<vmem>>, vector<8x1920xf32>,
      %c0_67 = arith.constant 0 : index
      %c60 = arith.constant 60 : index
      %80 = vector.load %arg14[%c0_67, %c60] : memref<8x2340xf32, #tpu.memory_space<vmem>>, vector<8x1920xf32>
      %c16_68 = arith.constant 16 : index
      %c0_69 = arith.constant 0 : index
      %81 = vector.load %arg13[%c16_68, %c0_69] : memref<128x1920xf32, #tpu.memory_space<vmem>>, vector<8x1920xf32>
      tpu.vector_store %arg13[%c16_68, %c0_69], %80 {strides = array<i32>} : memref<128x1920xf32, #tpu.memory_space<vmem>>, vector<8x1920xf32>,
      %c0_70 = arith.constant 0 : index
      %c90 = arith.constant 90 : index
      %82 = vector.load %arg14[%c0_70, %c90] : memref<8x2340xf32, #tpu.memory_space<vmem>>, vector<8x1920xf32>
      %c24_71 = arith.constant 24 : index
      %c0_72 = arith.constant 0 : index
      %83 = vector.load %arg13[%c24_71, %c0_72] : memref<128x1920xf32, #tpu.memory_space<vmem>>, vector<8x1920xf32>
      tpu.vector_store %arg13[%c24_71, %c0_72], %82 {strides = array<i32>} : memref<128x1920xf32, #tpu.memory_space<vmem>>, vector<8x1920xf32>,
      %c0_73 = arith.constant 0 : index
      %c120_74 = arith.constant 120 : index
      %84 = vector.load %arg14[%c0_73, %c120_74] : memref<8x2340xf32, #tpu.memory_space<vmem>>, vector<8x1920xf32>
      %c32_75 = arith.constant 32 : index
      %c0_76 = arith.constant 0 : index
      %85 = vector.load %arg13[%c32_75, %c0_76] : memref<128x1920xf32, #tpu.memory_space<vmem>>, vector<8x1920xf32>
      tpu.vector_store %arg13[%c32_75, %c0_76], %84 {strides = array<i32>} : memref<128x1920xf32, #tpu.memory_space<vmem>>, vector<8x1920xf32>,
      %c0_77 = arith.constant 0 : index
      %c150 = arith.constant 150 : index
      %86 = vector.load %arg14[%c0_77, %c150] : memref<8x2340xf32, #tpu.memory_space<vmem>>, vector<8x1920xf32>
      %c40_78 = arith.constant 40 : index
      %c0_79 = arith.constant 0 : index
      %87 = vector.load %arg13[%c40_78, %c0_79] : memref<128x1920xf32, #tpu.memory_space<vmem>>, vector<8x1920xf32>
      tpu.vector_store %arg13[%c40_78, %c0_79], %86 {strides = array<i32>} : memref<128x1920xf32, #tpu.memory_space<vmem>>, vector<8x1920xf32>,
      %c0_80 = arith.constant 0 : index
      %c180 = arith.constant 180 : index
      %88 = vector.load %arg14[%c0_80, %c180] : memref<8x2340xf32, #tpu.memory_space<vmem>>, vector<8x1920xf32>
      %c48_81 = arith.constant 48 : index
      %c0_82 = arith.constant 0 : index
      %89 = vector.load %arg13[%c48_81, %c0_82] : memref<128x1920xf32, #tpu.memory_space<vmem>>, vector<8x1920xf32>
      tpu.vector_store %arg13[%c48_81, %c0_82], %88 {strides = array<i32>} : memref<128x1920xf32, #tpu.memory_space<vmem>>, vector<8x1920xf32>,
      %c0_83 = arith.constant 0 : index
      %c210 = arith.constant 210 : index
      %90 = vector.load %arg14[%c0_83, %c210] : memref<8x2340xf32, #tpu.memory_space<vmem>>, vector<8x1920xf32>
      %c56_84 = arith.constant 56 : index
      %c0_85 = arith.constant 0 : index
      %91 = vector.load %arg13[%c56_84, %c0_85] : memref<128x1920xf32, #tpu.memory_space<vmem>>, vector<8x1920xf32>
      tpu.vector_store %arg13[%c56_84, %c0_85], %90 {strides = array<i32>} : memref<128x1920xf32, #tpu.memory_space<vmem>>, vector<8x1920xf32>,
      %c0_86 = arith.constant 0 : index
      %c240 = arith.constant 240 : index
      %92 = vector.load %arg14[%c0_86, %c240] : memref<8x2340xf32, #tpu.memory_space<vmem>>, vector<8x1920xf32>
      %c64_87 = arith.constant 64 : index
      %c0_88 = arith.constant 0 : index
      %93 = vector.load %arg13[%c64_87, %c0_88] : memref<128x1920xf32, #tpu.memory_space<vmem>>, vector<8x1920xf32>
      tpu.vector_store %arg13[%c64_87, %c0_88], %92 {strides = array<i32>} : memref<128x1920xf32, #tpu.memory_space<vmem>>, vector<8x1920xf32>,
      %c0_89 = arith.constant 0 : index
      %c270 = arith.constant 270 : index
      %94 = vector.load %arg14[%c0_89, %c270] : memref<8x2340xf32, #tpu.memory_space<vmem>>, vector<8x1920xf32>
      %c72_90 = arith.constant 72 : index
      %c0_91 = arith.constant 0 : index
      %95 = vector.load %arg13[%c72_90, %c0_91] : memref<128x1920xf32, #tpu.memory_space<vmem>>, vector<8x1920xf32>
      tpu.vector_store %arg13[%c72_90, %c0_91], %94 {strides = array<i32>} : memref<128x1920xf32, #tpu.memory_space<vmem>>, vector<8x1920xf32>,
      %c0_92 = arith.constant 0 : index
      %c300 = arith.constant 300 : index
      %96 = vector.load %arg14[%c0_92, %c300] : memref<8x2340xf32, #tpu.memory_space<vmem>>, vector<8x1920xf32>
      %c80_93 = arith.constant 80 : index
      %c0_94 = arith.constant 0 : index
      %97 = vector.load %arg13[%c80_93, %c0_94] : memref<128x1920xf32, #tpu.memory_space<vmem>>, vector<8x1920xf32>
      tpu.vector_store %arg13[%c80_93, %c0_94], %96 {strides = array<i32>} : memref<128x1920xf32, #tpu.memory_space<vmem>>, vector<8x1920xf32>,
      %c0_95 = arith.constant 0 : index
      %c330 = arith.constant 330 : index
      %98 = vector.load %arg14[%c0_95, %c330] : memref<8x2340xf32, #tpu.memory_space<vmem>>, vector<8x1920xf32>
      %c88_96 = arith.constant 88 : index
      %c0_97 = arith.constant 0 : index
      %99 = vector.load %arg13[%c88_96, %c0_97] : memref<128x1920xf32, #tpu.memory_space<vmem>>, vector<8x1920xf32>
      tpu.vector_store %arg13[%c88_96, %c0_97], %98 {strides = array<i32>} : memref<128x1920xf32, #tpu.memory_space<vmem>>, vector<8x1920xf32>,
      %c0_98 = arith.constant 0 : index
      %c360 = arith.constant 360 : index
      %100 = vector.load %arg14[%c0_98, %c360] : memref<8x2340xf32, #tpu.memory_space<vmem>>, vector<8x1920xf32>
      %c96_99 = arith.constant 96 : index
      %c0_100 = arith.constant 0 : index
      %101 = vector.load %arg13[%c96_99, %c0_100] : memref<128x1920xf32, #tpu.memory_space<vmem>>, vector<8x1920xf32>
      tpu.vector_store %arg13[%c96_99, %c0_100], %100 {strides = array<i32>} : memref<128x1920xf32, #tpu.memory_space<vmem>>, vector<8x1920xf32>,
      %c0_101 = arith.constant 0 : index
      %c390 = arith.constant 390 : index
      %102 = vector.load %arg14[%c0_101, %c390] : memref<8x2340xf32, #tpu.memory_space<vmem>>, vector<8x1920xf32>
      %c104_102 = arith.constant 104 : index
      %c0_103 = arith.constant 0 : index
      %103 = vector.load %arg13[%c104_102, %c0_103] : memref<128x1920xf32, #tpu.memory_space<vmem>>, vector<8x1920xf32>
      tpu.vector_store %arg13[%c104_102, %c0_103], %102 {strides = array<i32>} : memref<128x1920xf32, #tpu.memory_space<vmem>>, vector<8x1920xf32>,
      %c0_104 = arith.constant 0 : index
      %c420 = arith.constant 420 : index
      %104 = vector.load %arg14[%c0_104, %c420] : memref<8x2340xf32, #tpu.memory_space<vmem>>, vector<8x1920xf32>
      %c112_105 = arith.constant 112 : index
      %c0_106 = arith.constant 0 : index
      %105 = vector.load %arg13[%c112_105, %c0_106] : memref<128x1920xf32, #tpu.memory_space<vmem>>, vector<8x1920xf32>
      tpu.vector_store %arg13[%c112_105, %c0_106], %104 {strides = array<i32>} : memref<128x1920xf32, #tpu.memory_space<vmem>>, vector<8x1920xf32>,
      %c0_107 = arith.constant 0 : index
      %c0_108 = arith.constant 0 : index
      %c0_109 = arith.constant 0 : index
      %106 = vector.load %arg3[%c0_107, %c0_108, %c0_109] : memref<1x8x128xf32, #tpu.memory_space<vmem>>, vector<1x8x128xf32>
      %107 = vector.shape_cast %106 : vector<1x8x128xf32> to vector<8x128xf32>
      %c0_110 = arith.constant 0 : index
      %c0_111 = arith.constant 0 : index
      %108 = vector.load %arg13[%c0_110, %c0_111] : memref<128x1920xf32, #tpu.memory_space<vmem>>, vector<128x1920xf32>
      %cst_112 = arith.constant dense<0.000000e+00> : vector<8x1920xf32>
      %109 = tpu.matmul %107, %108, %cst_112 {dimension_numbers = #tpu.dot_dimension_numbers<[1], [0], [0], [1], [0, 0, 1, 1], [], []>} : vector<8x128xf32>, vector<128x1920xf32>, vector<8x1920xf32> -> vector<8x1920xf32>
      %c0_113 = arith.constant 0 : index
      %c0_114 = arith.constant 0 : index
      %110 = vector.load %arg11[%c0_113, %c0_114] : memref<1x1920xf32, #tpu.memory_space<vmem>>, vector<1x1920xf32>
      %c0_115 = arith.constant 0 : index
      %c0_116 = arith.constant 0 : index
      %c0_117 = arith.constant 0 : index
      %111 = vector.load %arg6[%c0_115, %c0_116, %c0_117] : memref<1x8x1xf32, #tpu.memory_space<vmem>>, vector<1x8x1xf32>
      %112 = vector.shape_cast %111 : vector<1x8x1xf32> to vector<8x1xf32>
      %c0_118 = arith.constant 0 : index
      %c0_119 = arith.constant 0 : index
      %c0_120 = arith.constant 0 : index
      %113 = vector.load %arg7[%c0_118, %c0_119, %c0_120] : memref<1x8x1xf32, #tpu.memory_space<vmem>>, vector<1x8x1xf32>
      %114 = vector.shape_cast %113 : vector<1x8x1xf32> to vector<8x1xf32>
      %115 = vector.broadcast %110 : vector<1x1920xf32> to vector<8x1920xf32>
      %116 = arith.mulf %109, %115 : vector<8x1920xf32>
      %cst_121 = arith.constant dense<0.000000e+00> : vector<8xf32>
      %117 = vector.multi_reduction <add>, %116, %cst_121 [1] : vector<8x1920xf32> to vector<8xf32>
      %118 = vector.shape_cast %117 : vector<8xf32> to vector<8x1xf32>
      %cst_122 = arith.constant 0.001953125 : f32
      %119 = vector.broadcast %cst_122 : f32 to vector<8x1xf32>
      %120 = arith.mulf %118, %119 : vector<8x1xf32>
      %121 = arith.mulf %116, %109 : vector<8x1920xf32>
      %cst_123 = arith.constant dense<0.000000e+00> : vector<8xf32>
      %122 = vector.multi_reduction <add>, %121, %cst_123 [1] : vector<8x1920xf32> to vector<8xf32>
      %123 = vector.shape_cast %122 : vector<8xf32> to vector<8x1xf32>
      %cst_124 = arith.constant 0.001953125 : f32
      %124 = vector.broadcast %cst_124 : f32 to vector<8x1xf32>
      %125 = arith.mulf %123, %124 : vector<8x1xf32>
      %126 = arith.mulf %120, %120 : vector<8x1xf32>
      %127 = arith.subf %125, %126 : vector<8x1xf32>
      %cst_125 = arith.constant 9.99999974E-6 : f32
      %128 = vector.broadcast %cst_125 : f32 to vector<8x1xf32>
      %129 = arith.addf %127, %128 : vector<8x1xf32>
      %130 = math.rsqrt %129 : vector<8x1xf32>
      %131 = arith.mulf %112, %130 : vector<8x1xf32>
      %132 = arith.mulf %120, %131 : vector<8x1xf32>
      %133 = arith.subf %114, %132 : vector<8x1xf32>
      %134 = vector.broadcast %131 : vector<8x1xf32> to vector<8x1920xf32>
      %135 = arith.mulf %109, %134 : vector<8x1920xf32>
      %136 = vector.broadcast %133 : vector<8x1xf32> to vector<8x1920xf32>
      %137 = arith.addf %135, %136 : vector<8x1920xf32>
      %cst_126 = arith.constant 0.000000e+00 : f32
      %138 = vector.broadcast %cst_126 : f32 to vector<8x1920xf32>
      %139 = arith.maximumf %137, %138 : vector<8x1920xf32>
      %c0_127 = arith.constant 0 : index
      %c0_128 = arith.constant 0 : index
      %140 = vector.load %arg11[%c0_127, %c0_128] : memref<1x1920xf32, #tpu.memory_space<vmem>>, vector<1x1920xf32>
      %c0_129 = arith.constant 0 : index
      %c0_130 = arith.constant 0 : index
      %c0_131 = arith.constant 0 : index
      %141 = vector.load %arg8[%c0_129, %c0_130, %c0_131] : memref<1x8x1xf32, #tpu.memory_space<vmem>>, vector<1x8x1xf32>
      %142 = vector.shape_cast %141 : vector<1x8x1xf32> to vector<8x1xf32>
      %c0_132 = arith.constant 0 : index
      %c0_133 = arith.constant 0 : index
      %c0_134 = arith.constant 0 : index
      %143 = vector.load %arg9[%c0_132, %c0_133, %c0_134] : memref<1x8x1xf32, #tpu.memory_space<vmem>>, vector<1x8x1xf32>
      %144 = vector.shape_cast %143 : vector<1x8x1xf32> to vector<8x1xf32>
      %145 = vector.broadcast %140 : vector<1x1920xf32> to vector<8x1920xf32>
      %146 = arith.mulf %139, %145 : vector<8x1920xf32>
      %cst_135 = arith.constant dense<0.000000e+00> : vector<8xf32>
      %147 = vector.multi_reduction <add>, %146, %cst_135 [1] : vector<8x1920xf32> to vector<8xf32>
      %148 = vector.shape_cast %147 : vector<8xf32> to vector<8x1xf32>
      %cst_136 = arith.constant 0.001953125 : f32
      %149 = vector.broadcast %cst_136 : f32 to vector<8x1xf32>
      %150 = arith.mulf %148, %149 : vector<8x1xf32>
      %151 = arith.mulf %146, %139 : vector<8x1920xf32>
      %cst_137 = arith.constant dense<0.000000e+00> : vector<8xf32>
      %152 = vector.multi_reduction <add>, %151, %cst_137 [1] : vector<8x1920xf32> to vector<8xf32>
      %153 = vector.shape_cast %152 : vector<8xf32> to vector<8x1xf32>
      %cst_138 = arith.constant 0.001953125 : f32
      %154 = vector.broadcast %cst_138 : f32 to vector<8x1xf32>
      %155 = arith.mulf %153, %154 : vector<8x1xf32>
      %156 = arith.mulf %150, %150 : vector<8x1xf32>
      %157 = arith.subf %155, %156 : vector<8x1xf32>
      %cst_139 = arith.constant 9.99999974E-6 : f32
      %158 = vector.broadcast %cst_139 : f32 to vector<8x1xf32>
      %159 = arith.addf %157, %158 : vector<8x1xf32>
      %160 = math.rsqrt %159 : vector<8x1xf32>
      %161 = arith.mulf %142, %160 : vector<8x1xf32>
      %162 = arith.mulf %150, %161 : vector<8x1xf32>
      %163 = arith.subf %144, %162 : vector<8x1xf32>
      %164 = vector.broadcast %161 : vector<8x1xf32> to vector<8x1920xf32>
      %165 = arith.mulf %139, %164 : vector<8x1920xf32>
      %166 = vector.broadcast %163 : vector<8x1xf32> to vector<8x1920xf32>
      %167 = arith.addf %165, %166 : vector<8x1920xf32>
      %cst_140 = arith.constant 0.000000e+00 : f32
      %168 = vector.broadcast %cst_140 : f32 to vector<8x1920xf32>
      %169 = arith.maximumf %167, %168 : vector<8x1920xf32>
      %c0_141 = arith.constant 0 : index
      %c0_142 = arith.constant 0 : index
      %c0_143 = arith.constant 0 : index
      %170 = vector.load %arg12[%c0_141, %c0_142, %c0_143] : memref<1x8x1920xf32, #tpu.memory_space<vmem>>, vector<1x8x1920xf32>
      %171 = vector.shape_cast %170 : vector<1x8x1920xf32> to vector<8x1920xf32>
      %172 = vector.shape_cast %169 : vector<8x1920xf32> to vector<1x8x1920xf32>
      tpu.vector_store %arg12[%c0_141, %c0_142, %c0_143], %172 {strides = array<i32>} : memref<1x8x1920xf32, #tpu.memory_space<vmem>>, vector<1x8x1920xf32>,
    } else {
    }
    return
  }
  func.func @transform_0(%arg0: i32) -> (i32, i32) {
    %c0_i32 = arith.constant 0 : i32
    %c0_i32_0 = arith.constant 0 : i32
    %c0_i32_1 = arith.constant 0 : i32
    return %c0_i32, %c0_i32_0 : i32, i32
  }
  func.func @transform_1(%arg0: i32) -> (i32, i32, i32) {
    %c0_i32 = arith.constant 0 : i32
    %c0_i32_0 = arith.constant 0 : i32
    %c0_i32_1 = arith.constant 0 : i32
    return %arg0, %c0_i32, %c0_i32_0 : i32, i32, i32
  }
  func.func @transform_2(%arg0: i32) -> (i32, i32, i32) {
    %c0_i32 = arith.constant 0 : i32
    %c0_i32_0 = arith.constant 0 : i32
    %c0_i32_1 = arith.constant 0 : i32
    return %arg0, %c0_i32, %c0_i32_0 : i32, i32, i32
  }
  func.func @transform_3(%arg0: i32) -> (i32, i32, i32) {
    %c0_i32 = arith.constant 0 : i32
    %c0_i32_0 = arith.constant 0 : i32
    %c0_i32_1 = arith.constant 0 : i32
    return %arg0, %c0_i32, %c0_i32_0 : i32, i32, i32
  }
  func.func @transform_4(%arg0: i32) -> (i32, i32, i32) {
    %c0_i32 = arith.constant 0 : i32
    %c0_i32_0 = arith.constant 0 : i32
    %c0_i32_1 = arith.constant 0 : i32
    return %arg0, %c0_i32, %c0_i32_0 : i32, i32, i32
  }
  func.func @transform_5(%arg0: i32) -> (i32, i32, i32) {
    %c0_i32 = arith.constant 0 : i32
    %c0_i32_0 = arith.constant 0 : i32
    %c0_i32_1 = arith.constant 0 : i32
    return %arg0, %c0_i32, %c0_i32_0 : i32, i32, i32
  }
  func.func @transform_6(%arg0: i32) -> (i32, i32, i32) {
    %c0_i32 = arith.constant 0 : i32
    %c0_i32_0 = arith.constant 0 : i32
    %c0_i32_1 = arith.constant 0 : i32
    return %arg0, %c0_i32, %c0_i32_0 : i32, i32, i32
  }
  func.func @transform_7(%arg0: i32) -> (i32, i32, i32) {
    %c0_i32 = arith.constant 0 : i32
    %c0_i32_0 = arith.constant 0 : i32
    %c0_i32_1 = arith.constant 0 : i32
    return %arg0, %c0_i32, %c0_i32_0 : i32, i32, i32
  }
  func.func @transform_8(%arg0: i32) -> (i32, i32, i32) {
    %c0_i32 = arith.constant 0 : i32
    %c0_i32_0 = arith.constant 0 : i32
    %c0_i32_1 = arith.constant 0 : i32
    return %arg0, %c0_i32, %c0_i32_0 : i32, i32, i32
  }
  func.func @transform_9(%arg0: i32) -> (i32, i32, i32) {
    %c0_i32 = arith.constant 0 : i32
    %c0_i32_0 = arith.constant 0 : i32
    %c0_i32_1 = arith.constant 0 : i32
    return %arg0, %c0_i32, %c0_i32_0 : i32, i32, i32
  }
  func.func @transform_10(%arg0: i32) -> (i32, i32) {
    %c0_i32 = arith.constant 0 : i32
    %c0_i32_0 = arith.constant 0 : i32
    %c0_i32_1 = arith.constant 0 : i32
    return %c0_i32, %c0_i32_0 : i32, i32
  }
  func.func @transform_11(%arg0: i32) -> (i32, i32, i32) {
    %c0_i32 = arith.constant 0 : i32
    %c0_i32_0 = arith.constant 0 : i32
    %c0_i32_1 = arith.constant 0 : i32
    return %arg0, %c0_i32, %c0_i32_0 : i32, i32, i32
  }
}

</mosaic_0001>

<bundles_post_ra>
// kernel: tpu_custom_call.1
= control target key start
LH: loop header
LB: loop body
LE: loop exit
PB: predicated region body
PF: predicated region fallthrough
CT: control target
= control target key end

     0   :  { %s17940_s0 = inlined_call_operand.hbm [shape: f32[8,2340], index: 0, kind: input, shape index: {}]   ;;  %s17941_s1 = inlined_call_operand.vmem [shape: f32[2,8,128], index: 1, kind: input, shape index: {}]   ;;  %s17942_s2 = inlined_call_operand.vmem [shape: f32[2,8,128], index: 2, kind: input, shape index: {}]   ;;  %s17943_s3 = inlined_call_operand.vmem [shape: f32[2,8,1], index: 3, kind: input, shape index: {}]   ;;  %s17944_s4 = inlined_call_operand.vmem [shape: f32[2,8,1], index: 4, kind: input, shape index: {}]   ;;  %s17945_s5 = inlined_call_operand.vmem [shape: f32[2,8,1], index: 5, kind: input, shape index: {}]   ;;  %s17946_s6 = inlined_call_operand.vmem [shape: f32[2,8,1], index: 6, kind: input, shape index: {}]   ;;  %s17947_s7 = inlined_call_operand.vmem [shape: f32[2,8,1], index: 7, kind: input, shape index: {}]   ;;  %s17948_s8 = inlined_call_operand.vmem [shape: f32[2,8,1], index: 8, kind: input, shape index: {}]   ;;  %s17949_s9 = inlined_call_operand.vmem [shape: f32[2,1,1920], index: 9, kind: input, shape index: {}]   ;;  %s17950_s10 = inlined_call_operand.vmem [shape: f32[1,1920], index: 10, kind: input, shape index: {}]   ;;  %s17951_s11 = inlined_call_operand.hbm [shape: f32[2,8,1920], index: 11, kind: output, shape index: {}]  }
   0x1   :  { %18010 = sst [smem:[#allocation16_spill]] %s17940_s0 }
   0x2   :  { %18011 = sst [smem:[#allocation17_spill]] %s17941_s1 }
   0x3   :  { %18012 = sst [smem:[#allocation18_spill]] %s17942_s2 }
   0x4   :  { %18013 = sst [smem:[#allocation19_spill]] %s17943_s3 }
   0x5   :  { %18014 = sst [smem:[#allocation20_spill]] %s17944_s4 }
   0x6   :  { %18015 = sst [smem:[#allocation21_spill]] %s17945_s5 }
   0x7   :  { %18016 = sst [smem:[#allocation22_spill]] %s17946_s6 }
   0x8   :  { %18017 = sst [smem:[#allocation23_spill]] %s17947_s7 }
   0x9   :  { %16 = vsyncpa [#allocation5], 0 }
   0xa   :  { %17 = vsyncpa [#allocation6], 0 }
   0xb   :  { %19 = vsyncpa [#allocation6 + $0x1], 0  ;;  %s12988_s17 = smov 0   ;;  %s12990_s18 = smov 0  }
   0xc   :  { %s12992_s19 = smov 0   ;;  %s12994_s20 = smov 0  }
   0xd LB: > { %18018 = sst [smem:[#allocation10_spill]] %s12851_s17  ;;  %s13009_s21 = sadd.s32 4294967295, %s12863_s20   ;;  %s12863_s20 = sphi %s12994_s20, %s18070_s20   ;;  %s12859_s19 = sphi %s12992_s19, %s18072_s19   ;;  %s12855_s18 = sphi %s12990_s18, %s18074_s18   ;;  %s12851_s17 = sphi %s12988_s17, %s18073_s17  }
   0xe   : > { %18019 = sst [smem:[#allocation11_spill]] %s12859_s19  ;;  %s11393_s22 = sadd.s32 4294967294, %s12863_s20  }
   0xf   : > { %18020 = sst [smem:[#allocation12_spill]] %s12863_s20  ;;  %s13013_s23 = sadd.s32 1, %s12863_s20  }
  0x10   : > { %18021 = sst [smem:[#allocation13_spill]] %s13013_s23  ;;  %s308_s24 = sadd.s32 1, %s12859_s19 }
  0x11   : > { %s305_s25 = ssub.s32 %s12863_s20, %s13013_s23  ;;  %p318_p0 = scmp.ne.s32.totalorder %s12859_s19, %s12855_s18 }
  0x12   : > { %p306_p1 = scmp.eq.s32.totalorder %s305_s25, 0  ;;  %p319_p2 = scmp.eq.s32.totalorder %s13009_s21, 1 }
  0x13   : > { %p324_p3 = scmp.ne.s32.totalorder %s12855_s18, %s12851_s17  ;;  %p325_p4 = scmp.eq.s32.totalorder %s11393_s22, 1 }
  0x14   : > { %s13024_s26 = scalar_select %p306_p1, %s12859_s19, %s308_s24  }
  0x15   : > { %p13026_p5 = por %p319_p2, %p318_p0  ;;  %p13030_p6 = por %p325_p4, %p324_p3 }
  0x16   : > { %18022 = sst [smem:[#allocation14_spill]] %s13024_s26  ;;  %p11394_p7 = scmp.ge.s32.totalorder %s12863_s20, 1 }
  0x17   : > { %s18023_s27 = scalar_select %p13026_p5, 1, 0 }
  0x18   : > { %s18024_s28 = scalar_select %p13030_p6, 1, 0 }
  0x19   : > { %p332_p8 = scmp.lt.s32.totalorder %s12863_s20, 3  ;;  %p17952_p10 = scmp.eq.s32.totalorder %s13009_s21, 0 }
  0x1a   : > { %18025 = sst [smem:[#allocation15_spill]] %s18024_s28  ;;  %s12865_s30 = smov [#allocation4]  }
  0x1b   : > { %p13038_p11 = pnand %p11394_p7, %p332_p8  ;;  %s345_s12 = sshll.u32 %s12865_s30, 4  ;;  %s346_s12 = int_to_ptr.vmem [resolvable:$true] %s345_s12 }
  0x1c   : > { %s18028_s0 = sld [smem:[#allocation16_spill]] }
  0x1d   : > { %s18026_s29 = scalar_select %p13038_p11, 1, 0 }
  0x1e   : > { %p12621_p12 = pneg %p13038_p11 }
  0x20   : > { %p13046_p13 = pnand %p17952_p10, %p12621_p12 }
  0x22   : > { %s12769_s16 = scalar_lea.hbm %s18028_s0, 2432  ;;  %p12771_p1 = pneg %p13046_p13 }
  0x23   : > { %p12770_p0 = scmp.ne.s32.totalorder %s18028_s0, %s12769_s16  ;;  %p12776_p4 = scmp.lt.u32.totalorder %s12769_s16, %s18028_s0 }
  0x25   : > { %p12772_p2 = pnand %p12771_p1, %p12770_p0 }
  0x27   : > { %p12773_p3 = pneg %p12772_p2 }
  0x29   : > { %p12778_p7 = pnand %p12776_p4, %p12773_p3 }
  0x2b   : > { %12781 = shalt.err (!%p12778_p7)
}
  0x2c   : > { %s12782_s26 = scalar_lea.vmem %s346_s12, 2432  ;;  %p12790_p10 = scmp.lt.s32.totalorder %s346_s12, %s346_s12 }
  0x2d   : > { %p12783_p8 = scmp.ne.s32.totalorder %s346_s12, %s12782_s26  ;;  %p12791_p6 = scmp.lt.s32.totalorder %s12782_s26, %s12782_s26 }
  0x2f   : > { %p12785_p12 = pnand %p12783_p8, %p12771_p1  ;;  %p12792_p5 = por %p12791_p6, %p12790_p10 }
  0x31   : > { %p12786_p9 = pneg %p12785_p12 }
  0x33   : > { %p12793_p11 = pnand %p12792_p5, %p12786_p9 }
  0x35   : > { %12796 = shalt.err (!%p12793_p11)
}
  0x36   : > { %12624 = dma.hbm_to_vmem [thread:$0]  (!%p13046_p13), %s18028_s0, 2432, %s346_s12, [#allocation5]  }
  0x37   : > { %p18029_p0 = scmp.ne.s32.totalorder %s18026_s29, 0 }
  0x38   : > { %p18030_p2 = scmp.eq.s32.totalorder (!%p18029_p0), %s13009_s21, 0 }
  0x39   : > { %424 = sbr.rel (%p18029_p0) target bundleno = 5135 (0x140f), region = 64 }
  0x40   : > { %12842 = dma.done.wait (%p18030_p2), [#allocation5], 2432   ;;  %p18031_p1 = pmov %p18030_p2 }
  0x41   : > { %s17955_s26 = sand.u32 1, %s12855_s18   ;;  %p495_p5 = scmp.lt.s32.totalorder %s13009_s21, 1  ;;  %vm549_vm0 = vcmask 293888   ;;  %v12866_v0 = vmov 0.0  }
  0x42   : > { %12844 = vsyncadd (%p18031_p1), [#allocation5], 4294964864  ;;  %s13076_s13 = smul.u32 120, %s17955_s26  ;;  %531 = vst [vmem:[#allocation2 + $0x708] sm:$0xff] %v12866_v0  ;;  %s18032_s1 = sld [smem:[#allocation17_spill]] }
  0x43   : > { %532 = vst [vmem:[#allocation2 + $0x710] sm:$0xff] %v12866_v0  ;;  %533 = vst [vmem:[#allocation2 + $0x718] sm:$0xff] %v12866_v0  ;;  %s496_s29 = scalar_select %p495_p5, %s13009_s21, 1 }
  0x44   : > { %534 = vst [vmem:[#allocation2 + $0x720] sm:$0xff] %v12866_v0  ;;  %535 = vst [vmem:[#allocation2 + $0x728] sm:$0xff] %v12866_v0  ;;  %s18033_s2 = sld [smem:[#allocation18_spill]]  ;;  %s18034_s3 = sld [smem:[#allocation19_spill]] }
  0x45   : > { %536 = vst [vmem:[#allocation2 + $0x730] sm:$0xff] %v12866_v0  ;;  %537 = vst [vmem:[#allocation2 + $0x738] sm:$0xff] %v12866_v0  ;;  %s11399_s12 = sshll.u32 %s496_s29, 3  ;;  %s12613_s16 = smul.u32 15, %s496_s29 }
  0x46   : > { %538 = vst [vmem:[#allocation2 + $0x740] sm:$0xff] %v12866_v0  ;;  %539 = vst [vmem:[#allocation2 + $0x748] sm:$0xff] %v12866_v0  ;;  %s18035_s4 = sld [smem:[#allocation20_spill]]  ;;  %s18036_s5 = sld [smem:[#allocation21_spill]] }
  0x47   : > { %540 = vst [vmem:[#allocation2 + $0x750] sm:$0xff] %v12866_v0  ;;  %541 = vst [vmem:[#allocation2 + $0x758] sm:$0xff] %v12866_v0  ;;  %s18037_s6 = sld [smem:[#allocation22_spill]]  ;;  %s18038_s7 = sld [smem:[#allocation23_spill]] }
  0x48   : > { %542 = vst [vmem:[#allocation2 + $0x760] sm:$0xff] %v12866_v0  ;;  %543 = vst [vmem:[#allocation2 + $0x768] sm:$0xff] %v12866_v0  ;;  %s13085_s25 = scalar_lea.vmem %s18032_s1, %s11399_s12  ;;  %s13120_s23 = scalar_lea.vmem %s17948_s8, %s11399_s12 }
  0x49   : > { %544 = vst [vmem:[#allocation2 + $0x770] sm:$0xff] %v12866_v0  ;;  %545 = vst [vmem:[#allocation2 + $0x778] sm:$0xff] %v12866_v0  ;;  %s13125_s20 = scalar_lea.vmem %s17949_s9, %s12613_s16  ;;  %s13128_s29 = scalar_lea.vmem [#allocation7], %s13076_s13 }
  0x4a   : > { %546 = vst [vmem:[#allocation3 + $0x78] sm:$0xff] %v12866_v0  ;;  %547 = vst [vmem:[#allocation3 + $0x80] sm:$0xff] %v12866_v0  ;;  %s13090_s15 = scalar_lea.vmem %s18033_s2, %s11399_s12  ;;  %s13095_s19 = scalar_lea.vmem %s18034_s3, %s11399_s12 }
  0x4b   : > { %548 = vst [vmem:[#allocation3 + $0x88] sm:$0xff] %v12866_v0  ;;  %550 = vst.msk [vmem:[#allocation3 + $0x90] sm:$0xff] %vm549_vm0, %v12866_v0  ;;  %p18039_p6 = scmp.ne.s32.totalorder %s13009_s21, 0 }
  0x4c   : > { %s13100_s17 = scalar_lea.vmem %s18035_s4, %s11399_s12  ;;  %s13105_s22 = scalar_lea.vmem %s18036_s5, %s11399_s12  ;;  %v13132_v1 = vld [vmem:[#allocation4 + $0x8] sm:$0xff] (!%p18039_p6)  ;;  %v13134_v2 = vld [vmem:[#allocation4] sm:$0xff] (!%p18039_p6)  ;;  %v13140_v3 = vld [vmem:[#allocation4 + $0x10] sm:$0xff] (!%p18039_p6)  ;;  %vm649_vm1 = vcmask (!%p18039_p6), 801792   ;;  %v12880_v25 = vmov (!%p18039_p6), 0.0   ;;  %vm759_vm2 = vcmask (!%p18039_p6), 556032  }
  0x4d   : > { %s13110_s30 = scalar_lea.vmem %s18037_s6, %s11399_s12  ;;  %s13115_s0 = scalar_lea.vmem %s18038_s7, %s11399_s12  ;;  %v13142_v4 = vld [vmem:[#allocation4 + $0x18] sm:$0xff] (!%p18039_p6)  ;;  %v13148_v5 = vld [vmem:[#allocation4 + $0x20] sm:$0xff] (!%p18039_p6)  ;;  %v13190_v6 = vld [vmem:[#allocation4 + $0x28] sm:$0xff] (!%p18039_p6)  ;;  %2430 = vmatprep.mubr.f32.mxu0 (!%p18039_p6), %v12880_v25  ;;  %2501 = vmatprep.mubr.f32.mxu1 (!%p18039_p6), %v12880_v25  ;;  %vm869_vm3 = vcmask (!%p18039_p6), 310272   ;;  %vm979_vm4 = vcmask (!%p18039_p6), 64512   ;;  %vm1089_vm5 = vcmask (!%p18039_p6), 867328  }
  0x4e   : > { %554 = sbr.rel (%p18039_p6) target bundleno = 2593 (0xa21), region = 72  ;;  %s12867_s1 = smov (!%p18039_p6), 98   ;;  %v13232_v7 = vld [vmem:[#allocation4 + $0x30] sm:$0xff] (!%p18039_p6)  ;;  %v13284_v21 = vld [vmem:[#allocation4 + $0x38] sm:$0xff] (!%p18039_p6)  ;;  %v13311_v38 = vld [vmem:[#allocation4 + $0x40] sm:$0xff] (!%p18039_p6)  ;;  %vm1199_vm6 = vcmask (!%p18039_p6), 621568  }
  0x4f   : > { %619 = vrot.lane.b32.xlu0 (!%p18039_p6), %v13132_v1, %s12867_s1  ;;  %617 = vrot.lane.b32.xlu1 (!%p18039_p6), %v13134_v2, %s12867_s1  ;;  %s12868_s2 = smov (!%p18039_p6), 68   ;;  %s17978_s3 = smov (!%p18039_p6), 38   ;;  %vm1309_vm7 = vcmask (!%p18039_p6), 375808   ;;  %vm1419_vm8 = vcmask (!%p18039_p6), 130048   ;;  %vm1529_vm9 = vcmask (!%p18039_p6), 932864   ;;  %vm1639_vm10 = vcmask (!%p18039_p6), 687104  }
  0x50   : > { %s17974_s4 = smov (!%p18039_p6), 8   ;;  %s17976_s13 = smov (!%p18039_p6), 106   ;;  %vm1749_vm11 = vcmask (!%p18039_p6), 441344   ;;  %vm1859_vm12 = vcmask (!%p18039_p6), 195584   ;;  %vm1969_vm13 = vcmask (!%p18039_p6), 998400   ;;  %vm2079_vm14 = vcmask (!%p18039_p6), 752640  }
  0x51   : > { %s17968_s12 = smov (!%p18039_p6), 76   ;;  %s17970_s16 = smov (!%p18039_p6), 46   ;;  %vm12883_vm15 = vmmov (!%p18039_p6), 0   ;;  %vm3249_vm0 = vcmask (!%p18039_p6), 1039360  }
  0x52   : > { %s17964_s24 = smov (!%p18039_p6), 16   ;;  %s17962_s14 = smov (!%p18039_p6), 114  }
  0x53   : > { %621 = vrot.lane.b32.xlu0 (!%p18039_p6), %v13140_v3, %s12867_s1  ;;  %623 = vrot.lane.b32.xlu1 (!%p18039_p6), %v13142_v4, %s12867_s1  ;;  %s17972_s26 = smov (!%p18039_p6), 84   ;;  %s17984_s28 = smov (!%p18039_p6), 54  }
  0x54   : > { %s18061_s5 = smov (!%p18039_p6), 120   ;;  %s18062_s6 = smov (!%p18039_p6), 118  }
  0x55   : > { %s18063_s7 = smov 117  }
  0x57   : > { %625 = vrot.lane.b32.xlu0 %v13148_v5, %s12867_s1  ;;  %729 = vrot.lane.b32.xlu1 %v13132_v1, %s12868_s2 }
  0x5b   : > { %731 = vrot.lane.b32.xlu0 %v13140_v3, %s12868_s2  ;;  %839 = vrot.lane.b32.xlu1 %v13132_v1, %s17978_s3 }
  0x5f   : > { %841 = vrot.lane.b32.xlu0 %v13140_v3, %s17978_s3  ;;  %727 = vrot.lane.b32.xlu1 %v13134_v2, %s12868_s2 }
  0x63   : > { %837 = vrot.lane.b32.xlu0 %v13134_v2, %s17978_s3  ;;  %733 = vrot.lane.b32.xlu1 %v13142_v4, %s12868_s2 }
  0x67   : > { %735 = vrot.lane.b32.xlu0 %v13148_v5, %s12868_s2  ;;  %843 = vrot.lane.b32.xlu1 %v13142_v4, %s17978_s3 }
  0x6b   : > { %845 = vrot.lane.b32.xlu0 %v13148_v5, %s17978_s3  ;;  %949 = vrot.lane.b32.xlu1 %v13132_v1, %s17974_s4 }
  0x6f   : > { %951 = vrot.lane.b32.xlu0 %v13140_v3, %s17974_s4  ;;  %1059 = vrot.lane.b32.xlu1 %v13140_v3, %s17976_s13 }
  0x73   : > { %1061 = vrot.lane.b32.xlu0 %v13142_v4, %s17976_s13  ;;  %947 = vrot.lane.b32.xlu1 %v13134_v2, %s17974_s4 }
  0x77   : > { %1057 = vrot.lane.b32.xlu0 %v13132_v1, %s17976_s13  ;;  %953 = vrot.lane.b32.xlu1 %v13142_v4, %s17974_s4 }
  0x7b   : > { %955 = vrot.lane.b32.xlu0 %v13148_v5, %s17974_s4  ;;  %1063 = vrot.lane.b32.xlu1 %v13148_v5, %s17976_s13 }
  0x7f   : > { %1065 = vrot.lane.b32.xlu0 %v13190_v6, %s17976_s13  ;;  %1169 = vrot.lane.b32.xlu1 %v13140_v3, %s17968_s12 }
  0x83   : > { %1171 = vrot.lane.b32.xlu0 %v13142_v4, %s17968_s12  ;;  %1279 = vrot.lane.b32.xlu1 %v13140_v3, %s17970_s16 }
  0x87   : > { %1281 = vrot.lane.b32.xlu0 %v13142_v4, %s17970_s16  ;;  %1167 = vrot.lane.b32.xlu1 %v13132_v1, %s17968_s12 }
  0x8b   : > { %1277 = vrot.lane.b32.xlu0 %v13132_v1, %s17970_s16  ;;  %1173 = vrot.lane.b32.xlu1 %v13148_v5, %s17968_s12 }
  0x8f   : > { %1175 = vrot.lane.b32.xlu0 %v13190_v6, %s17968_s12  ;;  %1283 = vrot.lane.b32.xlu1 %v13148_v5, %s17970_s16 }
  0x93   : > { %1285 = vrot.lane.b32.xlu0 %v13190_v6, %s17970_s16  ;;  %1389 = vrot.lane.b32.xlu1 %v13140_v3, %s17964_s24 }
  0x97   : > { %1391 = vrot.lane.b32.xlu0 %v13142_v4, %s17964_s24  ;;  %1499 = vrot.lane.b32.xlu1 %v13142_v4, %s17962_s14 }
  0x9b   : > { %1501 = vrot.lane.b32.xlu0 %v13148_v5, %s17962_s14  ;;  %1387 = vrot.lane.b32.xlu1 %v13132_v1, %s17964_s24 }
  0x9f   : > { %1497 = vrot.lane.b32.xlu0 %v13140_v3, %s17962_s14  ;;  %1393 = vrot.lane.b32.xlu1 %v13148_v5, %s17964_s24 }
  0xa3   : > { %1395 = vrot.lane.b32.xlu0 %v13190_v6, %s17964_s24  ;;  %1503 = vrot.lane.b32.xlu1 %v13190_v6, %s17962_s14  ;;  %s17982_s24 = smov 122  }
  0xa7   : > { %1505 = vrot.lane.b32.xlu0 %v13232_v7, %s17962_s14  ;;  %1609 = vrot.lane.b32.xlu1 %v13142_v4, %s17972_s26  ;;  %s17966_s14 = smov 24  }
  0xab   : > { %1611 = vrot.lane.b32.xlu0 %v13148_v5, %s17972_s26  ;;  %1719 = vrot.lane.b32.xlu1 %v13142_v4, %s17984_s28 }
  0xaf   : > { %1721 = vrot.lane.b32.xlu0 %v13148_v5, %s17984_s28  ;;  %1607 = vrot.lane.b32.xlu1 %v13140_v3, %s17972_s26 }
  0xb3   : > { %1717 = vrot.lane.b32.xlu0 %v13140_v3, %s17984_s28  ;;  %1613 = vrot.lane.b32.xlu1 %v13190_v6, %s17972_s26 }
  0xb7   : > { %1615 = vrot.lane.b32.xlu0 %v13232_v7, %s17972_s26  ;;  %1723 = vrot.lane.b32.xlu1 %v13190_v6, %s17984_s28 }
  0xbb   : > { %1725 = vrot.lane.b32.xlu0 %v13232_v7, %s17984_s28  ;;  %1829 = vrot.lane.b32.xlu1 %v13142_v4, %s17966_s14 }
  0xbf   : > { %1831 = vrot.lane.b32.xlu0 %v13148_v5, %s17966_s14  ;;  %1939 = vrot.lane.b32.xlu1 %v13148_v5, %s17982_s24 }
  0xc1   : > { %v620_v8 = vpop.permute.xlu0 %619  ;;  %v618_v9 = vpop.permute.xlu1 %617 }
  0xc2   : > { %v650_v10 = vsel %vm649_vm1, %v618_v9, %v620_v8 }
  0xc3   : > { %1941 = vrot.lane.b32.xlu0 %v13190_v6, %s17982_s24  ;;  %1827 = vrot.lane.b32.xlu1 %v13140_v3, %s17966_s14  ;;  %v11622_v15 = vpack.c.bf16 %v650_v10, %v13134_v2 }
  0xc5   : > { %v622_v11 = vpop.permute.xlu0 %621  ;;  %v624_v12 = vpop.permute.xlu1 %623 }
  0xc6   : > { %v651_v13 = vsel %vm649_vm1, %v620_v8, %v622_v11  ;;  %v652_v16 = vsel %vm649_vm1, %v622_v11, %v624_v12 }
  0xc7   : > { %1937 = vrot.lane.b32.xlu0 %v13142_v4, %s17982_s24  ;;  %1833 = vrot.lane.b32.xlu1 %v13190_v6, %s17966_s14  ;;  %v11620_v14 = vpack.c.bf16 %v651_v13, %v13132_v1  ;;  %v11654_v22 = vpack.c.bf16 %v652_v16, %v13140_v3  ;;  %v13369_v13 = vld [vmem:[#allocation4 + $0x48] sm:$0xff] }
  0xc9   : > { %v13275_v17 = vpop.permute.xlu0 %625  ;;  %v730_v18 = vpop.permute.xlu1 %729  ;;  %11621 = vmatprep.subr.bf16.mxu0 %v11620_v14 }
  0xca   : > { %v653_v19 = vsel %vm649_vm1, %v624_v12, %v13275_v17  ;;  %11623 = vmatpush1.bf16.msra.mxu0 %v11622_v15 }
  0xcb   : > { %1835 = vrot.lane.b32.xlu0 %v13232_v7, %s17966_s14  ;;  %1943 = vrot.lane.b32.xlu1 %v13232_v7, %s17982_s24  ;;  %v11652_v20 = vpack.c.bf16 %v653_v19, %v13142_v4  ;;  %s17980_s14 = smov 92  }
  0xcd   : > { %v732_v23 = vpop.permute.xlu0 %731  ;;  %v840_v24 = vpop.permute.xlu1 %839  ;;  %11653 = vmatprep.subr.bf16.mxu1 %v11652_v20 }
  0xce   : > { %11655 = vmatpush1.bf16.msra.mxu1 %v11654_v22  ;;  %v761_v28 = vsel %vm759_vm2, %v730_v18, %v732_v23 }
  0xcf   : > { %1945 = vrot.lane.b32.xlu0 %v13284_v21, %s17982_s24  ;;  %2049 = vrot.lane.b32.xlu1 %v13148_v5, %s17980_s14 }
  0xd1   : > { %v842_v26 = vpop.permute.xlu0 %841  ;;  %v728_v27 = vpop.permute.xlu1 %727 }
  0xd2   : > { %v871_v29 = vsel %vm869_vm3, %v840_v24, %v842_v26  ;;  %v760_v33 = vsel %vm759_vm2, %v728_v27, %v730_v18 }
  0xd3   : > { %2051 = vrot.lane.b32.xlu0 %v13190_v6, %s17980_s14  ;;  %2047 = vrot.lane.b32.xlu1 %v13142_v4, %s17980_s14  ;;  %v11624_v30 = vpack.c.bf16 %v871_v29, %v761_v28 }
  0xd5   : > { %v838_v31 = vpop.permute.xlu0 %837  ;;  %v734_v32 = vpop.permute.xlu1 %733  ;;  %11625 = vmatprep.subr.bf16.mxu0 %v11624_v30 }
  0xd6   : > { %v870_v34 = vsel %vm869_vm3, %v838_v31, %v840_v24  ;;  %v762_v44 = vsel %vm759_vm2, %v732_v23, %v734_v32 }
  0xd7   : > { %627 = vrot.lane.b32.xlu0 %v13190_v6, %s12867_s1  ;;  %629 = vrot.lane.b32.xlu1 %v13232_v7, %s12867_s1  ;;  %v11626_v35 = vpack.c.bf16 %v870_v34, %v760_v33 }
  0xd9   : > { %v13305_v36 = vpop.permute.xlu0 %735  ;;  %v844_v37 = vpop.permute.xlu1 %843  ;;  %11627 = vmatpush1.bf16.msra.mxu0 %v11626_v35 }
  0xda   : > { %v872_v39 = vsel %vm869_vm3, %v842_v26, %v844_v37  ;;  %v763_v42 = vsel %vm759_vm2, %v734_v32, %v13305_v36 }
  0xdb   : > { %2053 = vrot.lane.b32.xlu0 %v13232_v7, %s17980_s14  ;;  %2055 = vrot.lane.b32.xlu1 %v13284_v21, %s17980_s14  ;;  %v11658_v46 = vpack.c.bf16 %v872_v39, %v762_v44 }
  0xdd   : > { %v13314_v40 = vpop.permute.xlu0 %845  ;;  %v950_v41 = vpop.permute.xlu1 %949 }
  0xde   : > { %v873_v43 = vsel %vm869_vm3, %v844_v37, %v13314_v40 }
  0xdf   : > { %631 = vrot.lane.b32.xlu0 %v13284_v21, %s12867_s1  ;;  %633 = vrot.lane.b32.xlu1 %v13311_v38, %s12867_s1  ;;  %v11656_v45 = vpack.c.bf16 %v873_v43, %v763_v42 }
  0xe1   : > { %v952_v47 = vpop.permute.xlu0 %951  ;;  %v1060_v48 = vpop.permute.xlu1 %1059  ;;  %11657 = vmatprep.subr.bf16.mxu1 %v11656_v45 }
  0xe2   : > { %11659 = vmatpush1.bf16.msra.mxu1 %v11658_v46  ;;  %v981_v51 = vsel %vm979_vm4, %v950_v41, %v952_v47 }
  0xe3   : > { %737 = vrot.lane.b32.xlu0 %v13190_v6, %s12868_s2  ;;  %739 = vrot.lane.b32.xlu1 %v13232_v7, %s12868_s2 }
  0xe5   : > { %v1062_v49 = vpop.permute.xlu0 %1061  ;;  %v948_v50 = vpop.permute.xlu1 %947 }
  0xe6   : > { %v1091_v52 = vsel %vm1089_vm5, %v1060_v48, %v1062_v49  ;;  %v980_v56 = vsel %vm979_vm4, %v948_v50, %v950_v41 }
  0xe7   : > { %847 = vrot.lane.b32.xlu0 %v13190_v6, %s17978_s3  ;;  %849 = vrot.lane.b32.xlu1 %v13232_v7, %s17978_s3  ;;  %v11628_v53 = vpack.c.bf16 %v1091_v52, %v981_v51 }
  0xe9   : > { %v1058_v54 = vpop.permute.xlu0 %1057  ;;  %v954_v55 = vpop.permute.xlu1 %953  ;;  %11629 = vmatprep.subr.bf16.mxu0 %v11628_v53 }
  0xea   : > { %v1090_v57 = vsel %vm1089_vm5, %v1058_v54, %v1060_v48  ;;  %v982_v2 = vsel %vm979_vm4, %v952_v47, %v954_v55 }
  0xeb   : > { %741 = vrot.lane.b32.xlu0 %v13284_v21, %s12868_s2  ;;  %743 = vrot.lane.b32.xlu1 %v13311_v38, %s12868_s2  ;;  %v11630_v58 = vpack.c.bf16 %v1090_v57, %v980_v56 }
  0xed   : > { %v13341_v59 = vpop.permute.xlu0 %955  ;;  %v1064_v60 = vpop.permute.xlu1 %1063  ;;  %11631 = vmatpush1.bf16.msra.mxu0 %v11630_v58 }
  0xee   : > { %v1092_v61 = vsel %vm1089_vm5, %v1062_v49, %v1064_v60  ;;  %v983_v0 = vsel %vm979_vm4, %v954_v55, %v13341_v59  ;;  %v13429_v55 = vld [vmem:[#allocation4 + $0x50] sm:$0xff] }
  0xef   : > { %851 = vrot.lane.b32.xlu0 %v13284_v21, %s17978_s3  ;;  %853 = vrot.lane.b32.xlu1 %v13311_v38, %s17978_s3  ;;  %v11662_v4 = vpack.c.bf16 %v1092_v61, %v982_v2 }
  0xf1   : > { %v13348_v62 = vpop.permute.xlu0 %1065  ;;  %v1170_v63 = vpop.permute.xlu1 %1169 }
  0xf2   : > { %v1093_v1 = vsel %vm1089_vm5, %v1064_v60, %v13348_v62 }
  0xf3   : > { %957 = vrot.lane.b32.xlu0 %v13190_v6, %s17974_s4  ;;  %959 = vrot.lane.b32.xlu1 %v13232_v7, %s17974_s4  ;;  %v11660_v3 = vpack.c.bf16 %v1093_v1, %v983_v0 }
  0xf5   : > { %v1172_v5 = vpop.permute.xlu0 %1171  ;;  %v1280_v8 = vpop.permute.xlu1 %1279  ;;  %11661 = vmatprep.subr.bf16.mxu1 %v11660_v3 }
  0xf6   : > { %11663 = vmatpush1.bf16.msra.mxu1 %v11662_v4  ;;  %v1201_v6 = vsel %vm1199_vm6, %v1170_v63, %v1172_v5 }
  0xf7   : > { %1067 = vrot.lane.b32.xlu0 %v13232_v7, %s17976_s13  ;;  %1069 = vrot.lane.b32.xlu1 %v13284_v21, %s17976_s13 }
  0xf9   : > { %v1282_v9 = vpop.permute.xlu0 %1281  ;;  %v1168_v10 = vpop.permute.xlu1 %1167 }
  0xfa   : > { %v1311_v11 = vsel %vm1309_vm7, %v1280_v8, %v1282_v9  ;;  %v1200_v16 = vsel %vm1199_vm6, %v1168_v10, %v1170_v63 }
  0xfb   : > { %961 = vrot.lane.b32.xlu0 %v13284_v21, %s17974_s4  ;;  %963 = vrot.lane.b32.xlu1 %v13311_v38, %s17974_s4  ;;  %v11632_v12 = vpack.c.bf16 %v1311_v11, %v1201_v6 }
  0xfd   : > { %v1278_v14 = vpop.permute.xlu0 %1277  ;;  %v1174_v15 = vpop.permute.xlu1 %1173  ;;  %11633 = vmatprep.subr.bf16.mxu0 %v11632_v12 }
  0xfe   : > { %v1310_v18 = vsel %vm1309_vm7, %v1278_v14, %v1280_v8  ;;  %v1202_v29 = vsel %vm1199_vm6, %v1172_v5, %v1174_v15 }
  0xff   : > { %1071 = vrot.lane.b32.xlu0 %v13311_v38, %s17976_s13  ;;  %1073 = vrot.lane.b32.xlu1 %v13369_v13, %s17976_s13  ;;  %v11634_v19 = vpack.c.bf16 %v1310_v18, %v1200_v16 }
 0x101   : > { %v13377_v20 = vpop.permute.xlu0 %1175  ;;  %v1284_v22 = vpop.permute.xlu1 %1283  ;;  %11635 = vmatpush1.bf16.msra.mxu0 %v11634_v19 }
 0x102   : > { %v1312_v23 = vsel %vm1309_vm7, %v1282_v9, %v1284_v22  ;;  %v1203_v27 = vsel %vm1199_vm6, %v1174_v15, %v13377_v20 }
 0x103   : > { %1177 = vrot.lane.b32.xlu0 %v13232_v7, %s17968_s12  ;;  %1179 = vrot.lane.b32.xlu1 %v13284_v21, %s17968_s12  ;;  %v11666_v31 = vpack.c.bf16 %v1312_v23, %v1202_v29 }
 0x105   : > { %v13384_v24 = vpop.permute.xlu0 %1285  ;;  %v1390_v26 = vpop.permute.xlu1 %1389 }
 0x106   : > { %v1313_v28 = vsel %vm1309_vm7, %v1284_v22, %v13384_v24 }
 0x107   : > { %1287 = vrot.lane.b32.xlu0 %v13232_v7, %s17970_s16  ;;  %1289 = vrot.lane.b32.xlu1 %v13284_v21, %s17970_s16  ;;  %v11664_v30 = vpack.c.bf16 %v1313_v28, %v1203_v27 }
 0x109   : > { %v1392_v32 = vpop.permute.xlu0 %1391  ;;  %v1500_v33 = vpop.permute.xlu1 %1499  ;;  %11665 = vmatprep.subr.bf16.mxu1 %v11664_v30 }
 0x10a   : > { %11667 = vmatpush1.bf16.msra.mxu1 %v11666_v31  ;;  %v1421_v37 = vsel %vm1419_vm8, %v1390_v26, %v1392_v32 }
 0x10b   : > { %1181 = vrot.lane.b32.xlu0 %v13311_v38, %s17968_s12  ;;  %1183 = vrot.lane.b32.xlu1 %v13369_v13, %s17968_s12  ;;  %s18040_s12 = smov 16  }
 0x10d   : > { %v1502_v34 = vpop.permute.xlu0 %1501  ;;  %v1388_v35 = vpop.permute.xlu1 %1387 }
 0x10e   : > { %v1531_v39 = vsel %vm1529_vm9, %v1500_v33, %v1502_v34  ;;  %v1420_v44 = vsel %vm1419_vm8, %v1388_v35, %v1390_v26 }
 0x10f   : > { %1291 = vrot.lane.b32.xlu0 %v13311_v38, %s17970_s16  ;;  %1293 = vrot.lane.b32.xlu1 %v13369_v13, %s17970_s16  ;;  %v11636_v41 = vpack.c.bf16 %v1531_v39, %v1421_v37  ;;  %s18041_s16 = smov 114   ;;  %v13481_v37 = vld [vmem:[#allocation4 + $0x58] sm:$0xff] }
 0x111   : > { %v1498_v42 = vpop.permute.xlu0 %1497  ;;  %v1394_v43 = vpop.permute.xlu1 %1393  ;;  %11637 = vmatprep.subr.bf16.mxu0 %v11636_v41 }
 0x112   : > { %v1530_v45 = vsel %vm1529_vm9, %v1498_v42, %v1500_v33  ;;  %v1422_v53 = vsel %vm1419_vm8, %v1392_v32, %v1394_v43 }
 0x113   : > { %1397 = vrot.lane.b32.xlu0 %v13232_v7, %s18040_s12  ;;  %1399 = vrot.lane.b32.xlu1 %v13284_v21, %s18040_s12  ;;  %v11638_v46 = vpack.c.bf16 %v1530_v45, %v1420_v44 }
 0x115   : > { %v13411_v47 = vpop.permute.xlu0 %1395  ;;  %v1504_v48 = vpop.permute.xlu1 %1503  ;;  %11639 = vmatpush1.bf16.msra.mxu0 %v11638_v46 }
 0x116   : > { %v1532_v49 = vsel %vm1529_vm9, %v1502_v34, %v1504_v48  ;;  %v1423_v7 = vsel %vm1419_vm8, %v1394_v43, %v13411_v47 }
 0x117   : > { %1507 = vrot.lane.b32.xlu0 %v13284_v21, %s18041_s16  ;;  %1509 = vrot.lane.b32.xlu1 %v13311_v38, %s18041_s16  ;;  %v11670_v56 = vpack.c.bf16 %v1532_v49, %v1422_v53 }
 0x119   : > { %v13418_v50 = vpop.permute.xlu0 %1505  ;;  %v1610_v51 = vpop.permute.xlu1 %1609 }
 0x11a   : > { %v1533_v52 = vsel %vm1529_vm9, %v1504_v48, %v13418_v50 }
 0x11b   : > { %1401 = vrot.lane.b32.xlu0 %v13311_v38, %s18040_s12  ;;  %1403 = vrot.lane.b32.xlu1 %v13369_v13, %s18040_s12  ;;  %v11668_v54 = vpack.c.bf16 %v1533_v52, %v1423_v7  ;;  %v2352_v7 = vld [vmem:[#allocation2 + $0x710] sm:$0xff]  ;;  %v2351_v52 = vld [vmem:[#allocation2 + $0x708] sm:$0xff] }
 0x11d   : > { %v1612_v57 = vpop.permute.xlu0 %1611  ;;  %v1720_v58 = vpop.permute.xlu1 %1719  ;;  %11669 = vmatprep.subr.bf16.mxu1 %v11668_v54 }
 0x11e   : > { %11671 = vmatpush1.bf16.msra.mxu1 %v11670_v56  ;;  %v1641_v63 = vsel %vm1639_vm10, %v1610_v51, %v1612_v57 }
 0x11f   : > { %1511 = vrot.lane.b32.xlu0 %v13369_v13, %s18041_s16  ;;  %1513 = vrot.lane.b32.xlu1 %v13429_v55, %s18041_s16 }
 0x121   : > { %v1722_v60 = vpop.permute.xlu0 %1721  ;;  %v1608_v61 = vpop.permute.xlu1 %1607 }
 0x122   : > { %v1751_v0 = vsel %vm1749_vm11, %v1720_v58, %v1722_v60  ;;  %v1640_v4 = vsel %vm1639_vm10, %v1608_v61, %v1610_v51  ;;  %v559_v61 = vld [vmem:[#allocation4 + $0x20] sm:$0xff] }
 0x123   : > { %1617 = vrot.lane.b32.xlu0 %v13284_v21, %s17972_s26  ;;  %1619 = vrot.lane.b32.xlu1 %v13311_v38, %s17972_s26  ;;  %v11640_v1 = vpack.c.bf16 %v1751_v0, %v1641_v63 }
 0x125   : > { %v1718_v2 = vpop.permute.xlu0 %1717  ;;  %v1614_v3 = vpop.permute.xlu1 %1613  ;;  %11641 = vmatprep.subr.bf16.mxu0 %v11640_v1 }
 0x126   : > { %v1750_v5 = vsel %vm1749_vm11, %v1718_v2, %v1720_v58  ;;  %v1642_v16 = vsel %vm1639_vm10, %v1612_v57, %v1614_v3 }
 0x127   : > { %1727 = vrot.lane.b32.xlu0 %v13284_v21, %s17984_s28  ;;  %1729 = vrot.lane.b32.xlu1 %v13311_v38, %s17984_s28  ;;  %v11642_v8 = vpack.c.bf16 %v1750_v5, %v1640_v4 }
 0x129   : > { %v13447_v9 = vpop.permute.xlu0 %1615  ;;  %v1724_v10 = vpop.permute.xlu1 %1723  ;;  %11643 = vmatpush1.bf16.msra.mxu0 %v11642_v8  ;;  %v13517_v8 = vld [vmem:[#allocation4 + $0x60] sm:$0xff] }
 0x12a   : > { %v1752_v6 = vsel %vm1749_vm11, %v1722_v60, %v1724_v10  ;;  %v1643_v14 = vsel %vm1639_vm10, %v1614_v3, %v13447_v9  ;;  %v560_v60 = vld [vmem:[#allocation4 + $0x28] sm:$0xff] }
 0x12b   : > { %1621 = vrot.lane.b32.xlu0 %v13369_v13, %s17972_s26  ;;  %1623 = vrot.lane.b32.xlu1 %v13429_v55, %s17972_s26  ;;  %v11674_v19 = vpack.c.bf16 %v1752_v6, %v1642_v16  ;;  %s18042_s26 = smov 24   ;;  %v13511_v3 = vld [vmem:[%s13085_s25] sm:$0xff]  ;;  %v2353_v6 = vld [vmem:[#allocation2 + $0x718] sm:$0xff] }
 0x12d   : > { %v13454_v11 = vpop.permute.xlu0 %1725  ;;  %v1830_v12 = vpop.permute.xlu1 %1829 }
 0x12e   : > { %v1753_v15 = vsel %vm1749_vm11, %v1724_v10, %v13454_v11  ;;  %v2354_v10 = vld [vmem:[#allocation2 + $0x720] sm:$0xff] }
 0x12f   : > { %1731 = vrot.lane.b32.xlu0 %v13369_v13, %s17984_s28  ;;  %1733 = vrot.lane.b32.xlu1 %v13429_v55, %s17984_s28  ;;  %v11672_v18 = vpack.c.bf16 %v1753_v15, %v1643_v14 }
 0x131   : > { %v1832_v22 = vpop.permute.xlu0 %1831  ;;  %v1940_v23 = vpop.permute.xlu1 %1939  ;;  %11673 = vmatprep.subr.bf16.mxu1 %v11672_v18 }
 0x132   : > { %11675 = vmatpush1.bf16.msra.mxu1 %v11674_v19  ;;  %v1861_v28 = vsel %vm1859_vm12, %v1830_v12, %v1832_v22  ;;  %v561_v19 = vld [vmem:[#allocation4 + $0x30] sm:$0xff] }
 0x133   : > { %1837 = vrot.lane.b32.xlu0 %v13284_v21, %s18042_s26  ;;  %1839 = vrot.lane.b32.xlu1 %v13311_v38, %s18042_s26 }
 0x135   : > { %v1942_v26 = vpop.permute.xlu0 %1941  ;;  %v1828_v27 = vpop.permute.xlu1 %1827 }
 0x136   : > { %v1971_v29 = vsel %vm1969_vm13, %v1940_v23, %v1942_v26  ;;  %v1860_v33 = vsel %vm1859_vm12, %v1828_v27, %v1830_v12 }
 0x137   : > { %1947 = vrot.lane.b32.xlu0 %v13311_v38, %s17982_s24  ;;  %1949 = vrot.lane.b32.xlu1 %v13369_v13, %s17982_s24  ;;  %v11644_v30 = vpack.c.bf16 %v1971_v29, %v1861_v28 }
 0x139   : > { %v1938_v31 = vpop.permute.xlu0 %1937  ;;  %v1834_v32 = vpop.permute.xlu1 %1833  ;;  %11645 = vmatprep.subr.bf16.mxu0 %v11644_v30 }
 0x13a   : > { %v1970_v34 = vsel %vm1969_vm13, %v1938_v31, %v1940_v23  ;;  %v1862_v48 = vsel %vm1859_vm12, %v1832_v22, %v1834_v32 }
 0x13b   : > { %1841 = vrot.lane.b32.xlu0 %v13369_v13, %s18042_s26  ;;  %1843 = vrot.lane.b32.xlu1 %v13429_v55, %s18042_s26  ;;  %v11646_v35 = vpack.c.bf16 %v1970_v34, %v1860_v33 }
 0x13d   : > { %v13483_v39 = vpop.permute.xlu0 %1835  ;;  %v1944_v41 = vpop.permute.xlu1 %1943  ;;  %11647 = vmatpush1.bf16.msra.mxu0 %v11646_v35 }
 0x13e   : > { %v1972_v42 = vsel %vm1969_vm13, %v1942_v26, %v1944_v41  ;;  %v1863_v45 = vsel %vm1859_vm12, %v1834_v32, %v13483_v39 }
 0x13f   : > { %1951 = vrot.lane.b32.xlu0 %v13429_v55, %s17982_s24  ;;  %1953 = vrot.lane.b32.xlu1 %v13481_v37, %s17982_s24  ;;  %v11678_v51 = vpack.c.bf16 %v1972_v42, %v1862_v48 }
 0x141   : > { %v13490_v43 = vpop.permute.xlu0 %1945  ;;  %v2050_v44 = vpop.permute.xlu1 %2049 }
 0x142   : > { %v1973_v46 = vsel %vm1969_vm13, %v1944_v41, %v13490_v43 }
 0x143   : > { %2057 = vrot.lane.b32.xlu0 %v13311_v38, %s17980_s14  ;;  %2059 = vrot.lane.b32.xlu1 %v13369_v13, %s17980_s14  ;;  %v11676_v49 = vpack.c.bf16 %v1973_v46, %v1863_v45 }
 0x145   : > { %v2052_v53 = vpop.permute.xlu0 %2051  ;;  %v2048_v54 = vpop.permute.xlu1 %2047  ;;  %11677 = vmatprep.subr.bf16.mxu1 %v11676_v49 }
 0x146   : > { %v2081_v56 = vsel %vm2079_vm14, %v2050_v44, %v2052_v53  ;;  %v2080_v57 = vsel %vm2079_vm14, %v2048_v54, %v2050_v44  ;;  %11679 = vmatpush1.bf16.msra.mxu1 %v11678_v51 }
 0x147   : > { %635 = vrot.lane.b32.xlu0 %v13369_v13, %s12867_s1  ;;  %637 = vrot.lane.b32.xlu1 %v13429_v55, %s12867_s1  ;;  %v11648_v38 = vpack.c.bf16 %v2352_v7, %v2081_v56  ;;  %v11650_v58 = vpack.c.bf16 %v2351_v52, %v2080_v57 }
 0x149   : > { %v628_v63 = vpop.permute.xlu0 %627  ;;  %v630_v0 = vpop.permute.xlu1 %629  ;;  %11649 = vmatprep.subr.bf16.mxu0 %v11648_v38 }
 0x14a   : > { %v654_v1 = vsel %vm649_vm1, %v13275_v17, %v628_v63  ;;  %v655_v2 = vsel %vm649_vm1, %v628_v63, %v630_v0  ;;  %11651 = vmatpush1.bf16.msra.mxu0 %v11650_v58 }
 0x14b   : > { %2061 = vrot.lane.b32.xlu0 %v13429_v55, %s17980_s14  ;;  %2063 = vrot.lane.b32.xlu1 %v13481_v37, %s17980_s14  ;;  %v11684_v4 = vpack.c.bf16 %v655_v2, %v560_v60  ;;  %v11686_v5 = vpack.c.bf16 %v654_v1, %v559_v61  ;;  %v13588_v1 = vld [vmem:[#allocation4 + $0x68] sm:$0xff] }
 0x14d   : > { %v2054_v12 = vpop.permute.xlu0 %2053  ;;  %v13519_v14 = vpop.permute.xlu1 %2055  ;;  %11685 = vmatprep.subr.bf16.mxu0 %v11684_v4  ;;  %2431 = vmatmul.mubr.f32.vlgmr.msra.gmra.mrb[0].mxu0 %v13511_v3 }
 0x14e   : > { %v2082_v17 = vsel %vm2079_vm14, %v2052_v53, %v2054_v12  ;;  %v2083_v15 = vsel %vm2079_vm14, %v2054_v12, %v13519_v14  ;;  %11687 = vmatpush1.bf16.msra.mxu0 %v11686_v5  ;;  %2572 = vmatprep.mubr.f32.mxu0 %v12880_v25 }
 0x14f   : > { %639 = vrot.lane.b32.xlu0 %v13481_v37, %s12867_s1  ;;  %641 = vrot.lane.b32.xlu1 %v13517_v8, %s12867_s1  ;;  %v11680_v16 = vpack.c.bf16 %v2354_v10, %v2083_v15  ;;  %v11682_v18 = vpack.c.bf16 %v2353_v6, %v2082_v17 }
 0x151   : > { %v632_v22 = vpop.permute.xlu0 %631  ;;  %v13530_v23 = vpop.permute.xlu1 %633  ;;  %11681 = vmatprep.subr.bf16.mxu1 %v11680_v16 }
 0x152   : > { %v656_v26 = vsel %vm649_vm1, %v630_v0, %v632_v22  ;;  %v657_v27 = vsel %vm649_vm1, %v632_v22, %v13530_v23  ;;  %11683 = vmatpush1.bf16.msra.mxu1 %v11682_v18 }
 0x153   : > { %745 = vrot.lane.b32.xlu0 %v13369_v13, %s12868_s2  ;;  %747 = vrot.lane.b32.xlu1 %v13429_v55, %s12868_s2  ;;  %v11716_v28 = vpack.c.bf16 %v657_v27, %v13284_v21  ;;  %v11718_v29 = vpack.c.bf16 %v656_v26, %v561_v19 }
 0x155   : > { %v738_v30 = vpop.permute.xlu0 %737  ;;  %v740_v31 = vpop.permute.xlu1 %739  ;;  %11717 = vmatprep.subr.bf16.mxu1 %v11716_v28  ;;  %2502 = vmatmul.mubr.f32.vlgmr.msra.gmra.mrb[0].mxu1 %v13511_v3 }
 0x156   : > { %11719 = vmatpush1.bf16.msra.mxu1 %v11718_v29  ;;  %2643 = vmatprep.mubr.f32.mxu1 %v12880_v25  ;;  %v764_v21 = vsel %vm759_vm2, %v13305_v36, %v738_v30  ;;  %v765_v34 = vsel %vm759_vm2, %v738_v30, %v740_v31 }
 0x157   : > { %855 = vrot.lane.b32.xlu0 %v13369_v13, %s17978_s3  ;;  %857 = vrot.lane.b32.xlu1 %v13429_v55, %s17978_s3 }
 0x159   : > { %v848_v32 = vpop.permute.xlu0 %847  ;;  %v850_v33 = vpop.permute.xlu1 %849 }
 0x15a   : > { %v874_v35 = vsel %vm869_vm3, %v13314_v40, %v848_v32  ;;  %v875_v41 = vsel %vm869_vm3, %v848_v32, %v850_v33 }
 0x15b   : > { %749 = vrot.lane.b32.xlu0 %v13481_v37, %s12868_s2  ;;  %751 = vrot.lane.b32.xlu1 %v13517_v8, %s12868_s2  ;;  %v11688_v42 = vpack.c.bf16 %v875_v41, %v765_v34  ;;  %v11690_v44 = vpack.c.bf16 %v874_v35, %v764_v21 }
 0x15d   : > { %v742_v45 = vpop.permute.xlu0 %741  ;;  %v13556_v46 = vpop.permute.xlu1 %743  ;;  %11689 = vmatprep.subr.bf16.mxu0 %v11688_v42 }
 0x15e   : > { %11691 = vmatpush1.bf16.msra.mxu0 %v11690_v44  ;;  %v766_v48 = vsel %vm759_vm2, %v740_v31, %v742_v45  ;;  %v767_v49 = vsel %vm759_vm2, %v742_v45, %v13556_v46 }
 0x15f   : > { %859 = vrot.lane.b32.xlu0 %v13481_v37, %s17978_s3  ;;  %861 = vrot.lane.b32.xlu1 %v13517_v8, %s17978_s3  ;;  %s18045_s3 = smov 84  }
 0x161   : > { %v852_v36 = vpop.permute.xlu0 %851  ;;  %v13562_v40 = vpop.permute.xlu1 %853 }
 0x162   : > { %v876_v51 = vsel %vm869_vm3, %v850_v33, %v852_v36  ;;  %v877_v7 = vsel %vm869_vm3, %v852_v36, %v13562_v40 }
 0x163   : > { %965 = vrot.lane.b32.xlu0 %v13369_v13, %s17974_s4  ;;  %967 = vrot.lane.b32.xlu1 %v13429_v55, %s17974_s4  ;;  %v11720_v52 = vpack.c.bf16 %v877_v7, %v767_v49  ;;  %v11722_v53 = vpack.c.bf16 %v876_v51, %v766_v48 }
 0x165   : > { %v958_v54 = vpop.permute.xlu0 %957  ;;  %v960_v56 = vpop.permute.xlu1 %959  ;;  %11721 = vmatprep.subr.bf16.mxu1 %v11720_v52 }
 0x166   : > { %11723 = vmatpush1.bf16.msra.mxu1 %v11722_v53  ;;  %v984_v13 = vsel %vm979_vm4, %v13341_v59, %v958_v54  ;;  %v985_v58 = vsel %vm979_vm4, %v958_v54, %v960_v56 }
 0x167   : > { %1075 = vrot.lane.b32.xlu0 %v13429_v55, %s17976_s13  ;;  %1077 = vrot.lane.b32.xlu1 %v13481_v37, %s17976_s13 }
 0x169   : > { %v1068_v57 = vpop.permute.xlu0 %1067  ;;  %v1070_v38 = vpop.permute.xlu1 %1069 }
 0x16a   : > { %v1094_v60 = vsel %vm1089_vm5, %v13348_v62, %v1068_v57  ;;  %v1095_v61 = vsel %vm1089_vm5, %v1068_v57, %v1070_v38 }
 0x16b   : > { %969 = vrot.lane.b32.xlu0 %v13481_v37, %s17974_s4  ;;  %971 = vrot.lane.b32.xlu1 %v13517_v8, %s17974_s4  ;;  %v11692_v63 = vpack.c.bf16 %v1095_v61, %v985_v58  ;;  %v11694_v0 = vpack.c.bf16 %v1094_v60, %v984_v13  ;;  %s18043_s4 = smov 76  }
 0x16d   : > { %v962_v2 = vpop.permute.xlu0 %961  ;;  %v13590_v4 = vpop.permute.xlu1 %963  ;;  %11693 = vmatprep.subr.bf16.mxu0 %v11692_v63 }
 0x16e   : > { %11695 = vmatpush1.bf16.msra.mxu0 %v11694_v0  ;;  %v986_v5 = vsel %vm979_vm4, %v960_v56, %v962_v2  ;;  %v987_v10 = vsel %vm979_vm4, %v962_v2, %v13590_v4  ;;  %v13654_v56 = vld [vmem:[#allocation4 + $0x70] sm:$0xff] }
 0x16f   : > { %1079 = vrot.lane.b32.xlu0 %v13517_v8, %s17976_s13  ;;  %1081 = vrot.lane.b32.xlu1 %v13588_v1, %s17976_s13  ;;  %s18044_s13 = smov 46  }
 0x171   : > { %v1072_v59 = vpop.permute.xlu0 %1071  ;;  %v13596_v62 = vpop.permute.xlu1 %1073 }
 0x172   : > { %v1096_v6 = vsel %vm1089_vm5, %v1070_v38, %v1072_v59  ;;  %v1097_v12 = vsel %vm1089_vm5, %v1072_v59, %v13596_v62 }
 0x173   : > { %1185 = vrot.lane.b32.xlu0 %v13429_v55, %s18043_s4  ;;  %1187 = vrot.lane.b32.xlu1 %v13481_v37, %s18043_s4  ;;  %v11724_v17 = vpack.c.bf16 %v1097_v12, %v987_v10  ;;  %v11726_v15 = vpack.c.bf16 %v1096_v6, %v986_v5 }
 0x175   : > { %v1178_v16 = vpop.permute.xlu0 %1177  ;;  %v1180_v18 = vpop.permute.xlu1 %1179  ;;  %11725 = vmatprep.subr.bf16.mxu1 %v11724_v17 }
 0x176   : > { %11727 = vmatpush1.bf16.msra.mxu1 %v11726_v15  ;;  %v1204_v26 = vsel %vm1199_vm6, %v13377_v20, %v1178_v16  ;;  %v1205_v27 = vsel %vm1199_vm6, %v1178_v16, %v1180_v18 }
 0x177   : > { %1295 = vrot.lane.b32.xlu0 %v13429_v55, %s18044_s13  ;;  %1297 = vrot.lane.b32.xlu1 %v13481_v37, %s18044_s13 }
 0x179   : > { %v1288_v19 = vpop.permute.xlu0 %1287  ;;  %v1290_v22 = vpop.permute.xlu1 %1289 }
 0x17a   : > { %v1314_v28 = vsel %vm1309_vm7, %v13384_v24, %v1288_v19  ;;  %v1315_v29 = vsel %vm1309_vm7, %v1288_v19, %v1290_v22 }
 0x17b   : > { %1189 = vrot.lane.b32.xlu0 %v13517_v8, %s18043_s4  ;;  %1191 = vrot.lane.b32.xlu1 %v13588_v1, %s18043_s4  ;;  %v11696_v30 = vpack.c.bf16 %v1315_v29, %v1205_v27  ;;  %v11698_v31 = vpack.c.bf16 %v1314_v28, %v1204_v26 }
 0x17d   : > { %v1182_v32 = vpop.permute.xlu0 %1181  ;;  %v13622_v33 = vpop.permute.xlu1 %1183  ;;  %11697 = vmatprep.subr.bf16.mxu0 %v11696_v30 }
 0x17e   : > { %11699 = vmatpush1.bf16.msra.mxu0 %v11698_v31  ;;  %v1206_v21 = vsel %vm1199_vm6, %v1180_v18, %v1182_v32  ;;  %v1207_v34 = vsel %vm1199_vm6, %v1182_v32, %v13622_v33 }
 0x17f   : > { %1299 = vrot.lane.b32.xlu0 %v13517_v8, %s18044_s13  ;;  %1301 = vrot.lane.b32.xlu1 %v13588_v1, %s18044_s13 }
 0x181   : > { %v1292_v20 = vpop.permute.xlu0 %1291  ;;  %v13628_v24 = vpop.permute.xlu1 %1293 }
 0x182   : > { %v1316_v35 = vsel %vm1309_vm7, %v1290_v22, %v1292_v20  ;;  %v1317_v41 = vsel %vm1309_vm7, %v1292_v20, %v13628_v24 }
 0x183   : > { %1405 = vrot.lane.b32.xlu0 %v13429_v55, %s18040_s12  ;;  %1407 = vrot.lane.b32.xlu1 %v13481_v37, %s18040_s12  ;;  %v11728_v42 = vpack.c.bf16 %v1317_v41, %v1207_v34  ;;  %v11730_v44 = vpack.c.bf16 %v1316_v35, %v1206_v21 }
 0x185   : > { %v1398_v45 = vpop.permute.xlu0 %1397  ;;  %v1400_v36 = vpop.permute.xlu1 %1399  ;;  %11729 = vmatprep.subr.bf16.mxu1 %v11728_v42 }
 0x186   : > { %11731 = vmatpush1.bf16.msra.mxu1 %v11730_v44  ;;  %v1424_v55 = vsel %vm1419_vm8, %v13411_v47, %v1398_v45  ;;  %v1425_v51 = vsel %vm1419_vm8, %v1398_v45, %v1400_v36 }
 0x187   : > { %1515 = vrot.lane.b32.xlu0 %v13481_v37, %s18041_s16  ;;  %1517 = vrot.lane.b32.xlu1 %v13517_v8, %s18041_s16 }
 0x189   : > { %v1508_v48 = vpop.permute.xlu0 %1507  ;;  %v1510_v49 = vpop.permute.xlu1 %1509 }
 0x18a   : > { %v1534_v7 = vsel %vm1529_vm9, %v13418_v50, %v1508_v48  ;;  %v1535_v52 = vsel %vm1529_vm9, %v1508_v48, %v1510_v49 }
 0x18b   : > { %1409 = vrot.lane.b32.xlu0 %v13517_v8, %s18040_s12  ;;  %1411 = vrot.lane.b32.xlu1 %v13588_v1, %s18040_s12  ;;  %v11700_v53 = vpack.c.bf16 %v1535_v52, %v1425_v51  ;;  %v11702_v54 = vpack.c.bf16 %v1534_v7, %v1424_v55 }
 0x18d   : > { %v1402_v57 = vpop.permute.xlu0 %1401  ;;  %v13656_v38 = vpop.permute.xlu1 %1403  ;;  %11701 = vmatprep.subr.bf16.mxu0 %v11700_v53 }
 0x18e   : > { %11703 = vmatpush1.bf16.msra.mxu0 %v11702_v54  ;;  %v1426_v13 = vsel %vm1419_vm8, %v1400_v36, %v1402_v57  ;;  %v1427_v58 = vsel %vm1419_vm8, %v1402_v57, %v13656_v38  ;;  %v13720_v36 = vld [vmem:[#allocation4 + $0x78] sm:$0xff] }
 0x18f   : > { %1519 = vrot.lane.b32.xlu0 %v13588_v1, %s18041_s16  ;;  %1521 = vrot.lane.b32.xlu1 %v13654_v56, %s18041_s16  ;;  %v2356_v57 = vld [vmem:[#allocation2 + $0x730] sm:$0xff] }
 0x191   : > { %v1512_v47 = vpop.permute.xlu0 %1511  ;;  %v13662_v50 = vpop.permute.xlu1 %1513 }
 0x192   : > { %v1536_v60 = vsel %vm1529_vm9, %v1510_v49, %v1512_v47  ;;  %v1537_v61 = vsel %vm1529_vm9, %v1512_v47, %v13662_v50  ;;  %v2355_v47 = vld [vmem:[#allocation2 + $0x728] sm:$0xff] }
 0x193   : > { %1625 = vrot.lane.b32.xlu0 %v13481_v37, %s18045_s3  ;;  %1627 = vrot.lane.b32.xlu1 %v13517_v8, %s18045_s3  ;;  %v11732_v63 = vpack.c.bf16 %v1537_v61, %v1427_v58  ;;  %v11734_v0 = vpack.c.bf16 %v1536_v60, %v1426_v13 }
 0x195   : > { %v1618_v2 = vpop.permute.xlu0 %1617  ;;  %v1620_v59 = vpop.permute.xlu1 %1619  ;;  %11733 = vmatprep.subr.bf16.mxu1 %v11732_v63 }
 0x196   : > { %11735 = vmatpush1.bf16.msra.mxu1 %v11734_v0  ;;  %v1644_v6 = vsel %vm1639_vm10, %v13447_v9, %v1618_v2  ;;  %v1645_v12 = vsel %vm1639_vm10, %v1618_v2, %v1620_v59  ;;  %v564_v0 = vld [vmem:[#allocation4 + $0x48] sm:$0xff]  ;;  %v563_v2 = vld [vmem:[#allocation4 + $0x40] sm:$0xff] }
 0x197   : > { %1735 = vrot.lane.b32.xlu0 %v13481_v37, %s17984_s28  ;;  %1737 = vrot.lane.b32.xlu1 %v13517_v8, %s17984_s28 }
 0x199   : > { %v1728_v5 = vpop.permute.xlu0 %1727  ;;  %v1730_v10 = vpop.permute.xlu1 %1729 }
 0x19a   : > { %v1754_v17 = vsel %vm1749_vm11, %v13454_v11, %v1728_v5  ;;  %v1755_v15 = vsel %vm1749_vm11, %v1728_v5, %v1730_v10 }
 0x19b   : > { %1629 = vrot.lane.b32.xlu0 %v13588_v1, %s18045_s3  ;;  %1631 = vrot.lane.b32.xlu1 %v13654_v56, %s18045_s3  ;;  %v11704_v16 = vpack.c.bf16 %v1755_v15, %v1645_v12  ;;  %v11706_v18 = vpack.c.bf16 %v1754_v17, %v1644_v6  ;;  %v2358_v17 = vld [vmem:[#allocation2 + $0x740] sm:$0xff]  ;;  %v2357_v15 = vld [vmem:[#allocation2 + $0x738] sm:$0xff] }
 0x19d   : > { %v1622_v19 = vpop.permute.xlu0 %1621  ;;  %v13688_v22 = vpop.permute.xlu1 %1623  ;;  %11705 = vmatprep.subr.bf16.mxu0 %v11704_v16 }
 0x19e   : > { %11707 = vmatpush1.bf16.msra.mxu0 %v11706_v18  ;;  %v1646_v26 = vsel %vm1639_vm10, %v1620_v59, %v1622_v19  ;;  %v1647_v27 = vsel %vm1639_vm10, %v1622_v19, %v13688_v22 }
 0x19f   : > { %1739 = vrot.lane.b32.xlu0 %v13588_v1, %s17984_s28  ;;  %1741 = vrot.lane.b32.xlu1 %v13654_v56, %s17984_s28  ;;  %s18048_s28 = smov 106  }
 0x1a1   : > { %v1732_v9 = vpop.permute.xlu0 %1731  ;;  %v13694_v11 = vpop.permute.xlu1 %1733 }
 0x1a2   : > { %v1756_v28 = vsel %vm1749_vm11, %v1730_v10, %v1732_v9  ;;  %v1757_v29 = vsel %vm1749_vm11, %v1732_v9, %v13694_v11 }
 0x1a3   : > { %1845 = vrot.lane.b32.xlu0 %v13481_v37, %s18042_s26  ;;  %1847 = vrot.lane.b32.xlu1 %v13517_v8, %s18042_s26  ;;  %v11736_v30 = vpack.c.bf16 %v1757_v29, %v1647_v27  ;;  %v11738_v31 = vpack.c.bf16 %v1756_v28, %v1646_v26  ;;  %v566_v27 = vld [vmem:[#allocation4 + $0x58] sm:$0xff]  ;;  %v565_v28 = vld [vmem:[#allocation4 + $0x50] sm:$0xff] }
 0x1a5   : > { %v1838_v32 = vpop.permute.xlu0 %1837  ;;  %v1840_v20 = vpop.permute.xlu1 %1839  ;;  %11737 = vmatprep.subr.bf16.mxu1 %v11736_v30 }
 0x1a6   : > { %11739 = vmatpush1.bf16.msra.mxu1 %v11738_v31  ;;  %v1864_v37 = vsel %vm1859_vm12, %v13483_v39, %v1838_v32  ;;  %v1865_v35 = vsel %vm1859_vm12, %v1838_v32, %v1840_v20 }
 0x1a7   : > { %1955 = vrot.lane.b32.xlu0 %v13517_v8, %s17982_s24  ;;  %1957 = vrot.lane.b32.xlu1 %v13588_v1, %s17982_s24 }
 0x1a9   : > { %v1948_v21 = vpop.permute.xlu0 %1947  ;;  %v1950_v34 = vpop.permute.xlu1 %1949 }
 0x1aa   : > { %v1974_v41 = vsel %vm1969_vm13, %v13490_v43, %v1948_v21  ;;  %v1975_v42 = vsel %vm1969_vm13, %v1948_v21, %v1950_v34 }
 0x1ab   : > { %1849 = vrot.lane.b32.xlu0 %v13588_v1, %s18042_s26  ;;  %1851 = vrot.lane.b32.xlu1 %v13654_v56, %s18042_s26  ;;  %v11708_v44 = vpack.c.bf16 %v1975_v42, %v1865_v35  ;;  %v11710_v45 = vpack.c.bf16 %v1974_v41, %v1864_v37 }
 0x1ad   : > { %v1842_v48 = vpop.permute.xlu0 %1841  ;;  %v13722_v49 = vpop.permute.xlu1 %1843  ;;  %11709 = vmatprep.subr.bf16.mxu0 %v11708_v44 }
 0x1ae   : > { %11711 = vmatpush1.bf16.msra.mxu0 %v11710_v45  ;;  %v1866_v55 = vsel %vm1859_vm12, %v1840_v20, %v1842_v48  ;;  %v1867_v51 = vsel %vm1859_vm12, %v1842_v48, %v13722_v49 }
 0x1af   : > { %1959 = vrot.lane.b32.xlu0 %v13654_v56, %s17982_s24  ;;  %1961 = vrot.lane.b32.xlu1 %v13720_v36, %s17982_s24  ;;  %s18047_s24 = smov 8  }
 0x1b1   : > { %v1952_v39 = vpop.permute.xlu0 %1951  ;;  %v13728_v43 = vpop.permute.xlu1 %1953 }
 0x1b2   : > { %v1976_v7 = vsel %vm1969_vm13, %v1950_v34, %v1952_v39  ;;  %v1977_v52 = vsel %vm1969_vm13, %v1952_v39, %v13728_v43 }
 0x1b3   : > { %2065 = vrot.lane.b32.xlu0 %v13517_v8, %s17980_s14  ;;  %2067 = vrot.lane.b32.xlu1 %v13588_v1, %s17980_s14  ;;  %v11740_v53 = vpack.c.bf16 %v1977_v52, %v1867_v51  ;;  %v11742_v54 = vpack.c.bf16 %v1976_v7, %v1866_v55 }
 0x1b5   : > { %v2058_v13 = vpop.permute.xlu0 %2057  ;;  %v2060_v58 = vpop.permute.xlu1 %2059  ;;  %11741 = vmatprep.subr.bf16.mxu1 %v11740_v53 }
 0x1b6   : > { %v2084_v60 = vsel %vm2079_vm14, %v13519_v14, %v2058_v13  ;;  %v2085_v61 = vsel %vm2079_vm14, %v2058_v13, %v2060_v58  ;;  %11743 = vmatpush1.bf16.msra.mxu1 %v11742_v54 }
 0x1b7   : > { %643 = vrot.lane.b32.xlu0 %v13588_v1, %s12867_s1  ;;  %645 = vrot.lane.b32.xlu1 %v13654_v56, %s12867_s1  ;;  %v11712_v8 = vpack.c.bf16 %v2356_v57, %v2085_v61  ;;  %v11714_v63 = vpack.c.bf16 %v2355_v47, %v2084_v60 }
 0x1b9   : > { %v636_v59 = vpop.permute.xlu0 %635  ;;  %v638_v5 = vpop.permute.xlu1 %637  ;;  %11713 = vmatprep.subr.bf16.mxu0 %v11712_v8 }
 0x1ba   : > { %v658_v10 = vsel %vm649_vm1, %v13530_v23, %v636_v59  ;;  %v659_v14 = vsel %vm649_vm1, %v636_v59, %v638_v5  ;;  %11715 = vmatpush1.bf16.msra.mxu0 %v11714_v63 }
 0x1bb   : > { %2069 = vrot.lane.b32.xlu0 %v13654_v56, %s17980_s14  ;;  %2071 = vrot.lane.b32.xlu1 %v13720_v36, %s17980_s14  ;;  %v11748_v6 = vpack.c.bf16 %v659_v14, %v564_v0  ;;  %v11750_v12 = vpack.c.bf16 %v658_v10, %v563_v2  ;;  %s18046_s14 = smov 38  }
 0x1bd   : > { %v2062_v16 = vpop.permute.xlu0 %2061  ;;  %v13754_v18 = vpop.permute.xlu1 %2063  ;;  %11749 = vmatprep.subr.bf16.mxu0 %v11748_v6  ;;  %2573 = vmatmul.mubr.f32.vlgmr.msra.gmra.mrb[2].mxu0 %v13511_v3 }
 0x1be   : > { %v2086_v23 = vsel %vm2079_vm14, %v2060_v58, %v2062_v16  ;;  %v2087_v19 = vsel %vm2079_vm14, %v2062_v16, %v13754_v18  ;;  %11751 = vmatpush1.bf16.msra.mxu0 %v11750_v12  ;;  %2714 = vmatprep.mubr.f32.mxu0 %v12880_v25 }
 0x1bf   : > { %753 = vrot.lane.b32.xlu0 %v13588_v1, %s12868_s2  ;;  %755 = vrot.lane.b32.xlu1 %v13654_v56, %s12868_s2  ;;  %v11744_v9 = vpack.c.bf16 %v2358_v17, %v2087_v19  ;;  %v11746_v26 = vpack.c.bf16 %v2357_v15, %v2086_v23 }
 0x1c1   : > { %v640_v29 = vpop.permute.xlu0 %639  ;;  %v13765_v30 = vpop.permute.xlu1 %641  ;;  %11745 = vmatprep.subr.bf16.mxu1 %v11744_v9 }
 0x1c2   : > { %v660_v31 = vsel %vm649_vm1, %v638_v5, %v640_v29  ;;  %v661_v32 = vsel %vm649_vm1, %v640_v29, %v13765_v30  ;;  %11747 = vmatpush1.bf16.msra.mxu1 %v11746_v26  ;;  %v13822_v5 = vld [vmem:[#allocation4 + $0x80] sm:$0xff] }
 0x1c3   : > { %863 = vrot.lane.b32.xlu0 %v13588_v1, %s18046_s14  ;;  %865 = vrot.lane.b32.xlu1 %v13654_v56, %s18046_s14  ;;  %v11780_v20 = vpack.c.bf16 %v661_v32, %v566_v27  ;;  %v11782_v21 = vpack.c.bf16 %v660_v31, %v565_v28 }
 0x1c5   : > { %v746_v34 = vpop.permute.xlu0 %745  ;;  %v748_v37 = vpop.permute.xlu1 %747  ;;  %11781 = vmatprep.subr.bf16.mxu1 %v11780_v20  ;;  %2644 = vmatmul.mubr.f32.vlgmr.msra.gmra.mrb[2].mxu1 %v13511_v3 }
 0x1c6   : > { %11783 = vmatpush1.bf16.msra.mxu1 %v11782_v21  ;;  %2785 = vmatprep.mubr.f32.mxu1 %v12880_v25  ;;  %v768_v42 = vsel %vm759_vm2, %v13556_v46, %v746_v34  ;;  %v769_v44 = vsel %vm759_vm2, %v746_v34, %v748_v37 }
 0x1c7   : > { %647 = vrot.lane.b32.xlu0 %v13720_v36, %s12867_s1  ;;  %973 = vrot.lane.b32.xlu1 %v13588_v1, %s18047_s24  ;;  %s18049_s1 = smov 54  }
 0x1c9   : > { %v856_v35 = vpop.permute.xlu0 %855  ;;  %v858_v41 = vpop.permute.xlu1 %857 }
 0x1ca   : > { %v878_v45 = vsel %vm869_vm3, %v13562_v40, %v856_v35  ;;  %v879_v3 = vsel %vm869_vm3, %v856_v35, %v858_v41 }
 0x1cb   : > { %975 = vrot.lane.b32.xlu0 %v13654_v56, %s18047_s24  ;;  %1083 = vrot.lane.b32.xlu1 %v13654_v56, %s18048_s28  ;;  %v11752_v48 = vpack.c.bf16 %v879_v3, %v769_v44  ;;  %v11754_v1 = vpack.c.bf16 %v878_v45, %v768_v42  ;;  %v1480_v3 = vld [vmem:[#allocation4 + $0x88] sm:$0xff] }
 0x1cd   : > { %v750_v39 = vpop.permute.xlu0 %749  ;;  %v13790_v55 = vpop.permute.xlu1 %751  ;;  %11753 = vmatprep.subr.bf16.mxu0 %v11752_v48 }
 0x1ce   : > { %11755 = vmatpush1.bf16.msra.mxu0 %v11754_v1  ;;  %v770_v51 = vsel %vm759_vm2, %v748_v37, %v750_v39  ;;  %v771_v7 = vsel %vm759_vm2, %v750_v39, %v13790_v55 }
 0x1cf   : > { %1085 = vrot.lane.b32.xlu0 %v13720_v36, %s18048_s28  ;;  %757 = vrot.lane.b32.xlu1 %v13720_v36, %s12868_s2  ;;  %s18050_s2 = smov 122  }
 0x1d1   : > { %v860_v46 = vpop.permute.xlu0 %859  ;;  %v13796_v40 = vpop.permute.xlu1 %861 }
 0x1d2   : > { %v880_v52 = vsel %vm869_vm3, %v858_v41, %v860_v46  ;;  %v881_v53 = vsel %vm869_vm3, %v860_v46, %v13796_v40 }
 0x1d3   : > { %867 = vrot.lane.b32.xlu0 %v13720_v36, %s18046_s14  ;;  %1193 = vrot.lane.b32.xlu1 %v13654_v56, %s18043_s4  ;;  %v11784_v54 = vpack.c.bf16 %v881_v53, %v771_v7  ;;  %v11786_v57 = vpack.c.bf16 %v880_v52, %v770_v51  ;;  %s17986_s14 = smov 123  }
 0x1d5   : > { %v966_v47 = vpop.permute.xlu0 %965  ;;  %v968_v13 = vpop.permute.xlu1 %967  ;;  %11785 = vmatprep.subr.bf16.mxu1 %v11784_v54 }
 0x1d6   : > { %11787 = vmatpush1.bf16.msra.mxu1 %v11786_v57  ;;  %v988_v61 = vsel %vm979_vm4, %v13590_v4, %v966_v47  ;;  %v989_v8 = vsel %vm979_vm4, %v966_v47, %v968_v13 }
 0x1d7   : > { %1195 = vrot.lane.b32.xlu0 %v13720_v36, %s18043_s4  ;;  %1303 = vrot.lane.b32.xlu1 %v13654_v56, %s18044_s13 }
 0x1d9   : > { %v1076_v58 = vpop.permute.xlu0 %1075  ;;  %v1078_v60 = vpop.permute.xlu1 %1077 }
 0x1da   : > { %v1098_v63 = vsel %vm1089_vm5, %v13596_v62, %v1076_v58  ;;  %v1099_v0 = vsel %vm1089_vm5, %v1076_v58, %v1078_v60 }
 0x1db   : > { %1305 = vrot.lane.b32.xlu0 %v13720_v36, %s18044_s13  ;;  %977 = vrot.lane.b32.xlu1 %v13720_v36, %s18047_s24  ;;  %v11756_v2 = vpack.c.bf16 %v1099_v0, %v989_v8  ;;  %v11758_v59 = vpack.c.bf16 %v1098_v63, %v988_v61  ;;  %s17990_s24 = smov 124  }
 0x1dd   : > { %v970_v10 = vpop.permute.xlu0 %969  ;;  %v13824_v14 = vpop.permute.xlu1 %971  ;;  %11757 = vmatprep.subr.bf16.mxu0 %v11756_v2 }
 0x1de   : > { %11759 = vmatpush1.bf16.msra.mxu0 %v11758_v59  ;;  %v990_v6 = vsel %vm979_vm4, %v968_v13, %v970_v10  ;;  %v991_v12 = vsel %vm979_vm4, %v970_v10, %v13824_v14  ;;  %v1920_v59 = vld [vmem:[#allocation4 + $0x90] sm:$0xff] }
 0x1df   : > { %1087 = vrot.lane.b32.xlu0 %v13822_v5, %s18048_s28  ;;  %1413 = vrot.lane.b32.xlu1 %v13654_v56, %s18040_s12  ;;  %s18008_s28 = smov 120  }
 0x1e1   : > { %v1080_v4 = vpop.permute.xlu0 %1079  ;;  %v13830_v62 = vpop.permute.xlu1 %1081 }
 0x1e2   : > { %v1100_v17 = vsel %vm1089_vm5, %v1078_v60, %v1080_v4  ;;  %v1101_v15 = vsel %vm1089_vm5, %v1080_v4, %v13830_v62 }
 0x1e3   : > { %1415 = vrot.lane.b32.xlu0 %v13720_v36, %s18040_s12  ;;  %1523 = vrot.lane.b32.xlu1 %v13720_v36, %s18041_s16  ;;  %v11788_v56 = vpack.c.bf16 %v1101_v15, %v991_v12  ;;  %v11790_v16 = vpack.c.bf16 %v1100_v17, %v990_v6 }
 0x1e5   : > { %v1186_v23 = vpop.permute.xlu0 %1185  ;;  %v1188_v19 = vpop.permute.xlu1 %1187  ;;  %11789 = vmatprep.subr.bf16.mxu1 %v11788_v56 }
 0x1e6   : > { %11791 = vmatpush1.bf16.msra.mxu1 %v11790_v16  ;;  %v1208_v27 = vsel %vm1199_vm6, %v13622_v33, %v1186_v23  ;;  %v1209_v28 = vsel %vm1199_vm6, %v1186_v23, %v1188_v19 }
 0x1e7   : > { %1525 = vrot.lane.b32.xlu0 %v13822_v5, %s18041_s16  ;;  %1197 = vrot.lane.b32.xlu1 %v13822_v5, %s18043_s4  ;;  %s18051_s4 = smov 92  }
 0x1e9   : > { %v1296_v9 = vpop.permute.xlu0 %1295  ;;  %v1298_v26 = vpop.permute.xlu1 %1297 }
 0x1ea   : > { %v1318_v29 = vsel %vm1309_vm7, %v13628_v24, %v1296_v9  ;;  %v1319_v31 = vsel %vm1309_vm7, %v1296_v9, %v1298_v26  ;;  %v2939_v9 = vlaneseq }
 0x1eb   : > { %1307 = vrot.lane.b32.xlu0 %v13822_v5, %s18044_s13  ;;  %1633 = vrot.lane.b32.xlu1 %v13720_v36, %s18045_s3  ;;  %v11760_v32 = vpack.c.bf16 %v1319_v31, %v1209_v28  ;;  %v11762_v20 = vpack.c.bf16 %v1318_v29, %v1208_v27  ;;  %s17996_s13 = smov 127  }
 0x1ed   : > { %v1190_v21 = vpop.permute.xlu0 %1189  ;;  %v13856_v34 = vpop.permute.xlu1 %1191  ;;  %11761 = vmatprep.subr.bf16.mxu0 %v11760_v32 }
 0x1ee   : > { %11763 = vmatpush1.bf16.msra.mxu0 %v11762_v20  ;;  %v1210_v37 = vsel %vm1199_vm6, %v1188_v19, %v1190_v21  ;;  %v1211_v35 = vsel %vm1199_vm6, %v1190_v21, %v13856_v34  ;;  %v13922_v21 = vshrl.u32 %v2939_v9, 7 }
 0x1ef   : > { %1635 = vrot.lane.b32.xlu0 %v13822_v5, %s18045_s3  ;;  %1743 = vrot.lane.b32.xlu1 %v13720_v36, %s18049_s1 }
 0x1f1   : > { %v1300_v33 = vpop.permute.xlu0 %1299  ;;  %v13862_v24 = vpop.permute.xlu1 %1301 }
 0x1f2   : > { %v1320_v41 = vsel %vm1309_vm7, %v1298_v26, %v1300_v33  ;;  %v1321_v42 = vsel %vm1309_vm7, %v1300_v33, %v13862_v24 }
 0x1f3   : > { %1745 = vrot.lane.b32.xlu0 %v13822_v5, %s18049_s1  ;;  %1417 = vrot.lane.b32.xlu1 %v13822_v5, %s18040_s12  ;;  %v11792_v44 = vpack.c.bf16 %v1321_v42, %v1211_v35  ;;  %v11794_v45 = vpack.c.bf16 %v1320_v41, %v1210_v37  ;;  %v13925_v35 = vsub.s32 0, %v13922_v21  ;;  %s17998_s12 = smov 125  }
 0x1f5   : > { %v1406_v48 = vpop.permute.xlu0 %1405  ;;  %v1408_v1 = vpop.permute.xlu1 %1407  ;;  %11793 = vmatprep.subr.bf16.mxu1 %v11792_v44 }
 0x1f6   : > { %11795 = vmatpush1.bf16.msra.mxu1 %v11794_v45  ;;  %v1428_v51 = vsel %vm1419_vm8, %v13656_v38, %v1406_v48  ;;  %v1429_v7 = vsel %vm1419_vm8, %v1406_v48, %v1408_v1 }
 0x1f7   : > { %1527 = vrot.lane.b32.xlu0 %v1480_v3, %s18041_s16  ;;  %1853 = vrot.lane.b32.xlu1 %v13720_v36, %s18042_s26 }
 0x1f9   : > { %v1516_v39 = vpop.permute.xlu0 %1515  ;;  %v1518_v46 = vpop.permute.xlu1 %1517 }
 0x1fa   : > { %v1538_v52 = vsel %vm1529_vm9, %v13662_v50, %v1516_v39  ;;  %v1539_v53 = vsel %vm1529_vm9, %v1516_v39, %v1518_v46  ;;  %v13937_v39 = vsub.s32 1, %v13922_v21 }
 0x1fb   : > { %1855 = vrot.lane.b32.xlu0 %v13822_v5, %s18042_s26  ;;  %1963 = vrot.lane.b32.xlu1 %v13822_v5, %s18050_s2  ;;  %v11764_v54 = vpack.c.bf16 %v1539_v53, %v1429_v7  ;;  %v11766_v36 = vpack.c.bf16 %v1538_v52, %v1428_v51 }
 0x1fd   : > { %v1410_v57 = vpop.permute.xlu0 %1409  ;;  %v13887_v47 = vpop.permute.xlu1 %1411  ;;  %11765 = vmatprep.subr.bf16.mxu0 %v11764_v54 }
 0x1fe   : > { %11767 = vmatpush1.bf16.msra.mxu0 %v11766_v36  ;;  %v1430_v13 = vsel %vm1419_vm8, %v1408_v1, %v1410_v57  ;;  %v1431_v58 = vsel %vm1419_vm8, %v1410_v57, %v13887_v47  ;;  %v13951_v36 = vsub.s32 2, %v13922_v21 }
 0x1ff   : > { %1965 = vrot.lane.b32.xlu0 %v1480_v3, %s18050_s2  ;;  %1637 = vrot.lane.b32.xlu1 %v1480_v3, %s18045_s3  ;;  %s18000_s3 = smov 126  }
 0x201   : > { %v1520_v38 = vpop.permute.xlu0 %1519  ;;  %v13891_v50 = vpop.permute.xlu1 %1521 }
 0x202   : > { %v1540_v60 = vsel %vm1529_vm9, %v1518_v46, %v1520_v38  ;;  %v1541_v61 = vsel %vm1529_vm9, %v1520_v38, %v13891_v50 }
 0x203   : > { %1747 = vrot.lane.b32.xlu0 %v1480_v3, %s18049_s1  ;;  %2073 = vrot.lane.b32.xlu1 %v13822_v5, %s18051_s4  ;;  %v11796_v8 = vpack.c.bf16 %v1541_v61, %v1431_v58  ;;  %v11798_v63 = vpack.c.bf16 %v1540_v60, %v1430_v13  ;;  %s18002_s1 = smov 119  }
 0x205   : > { %v1626_v0 = vpop.permute.xlu0 %1625  ;;  %v1628_v2 = vpop.permute.xlu1 %1627  ;;  %11797 = vmatprep.subr.bf16.mxu1 %v11796_v8 }
 0x206   : > { %11799 = vmatpush1.bf16.msra.mxu1 %v11798_v63  ;;  %v1648_v6 = vsel %vm1639_vm10, %v13688_v22, %v1626_v0  ;;  %v1649_v12 = vsel %vm1639_vm10, %v1626_v0, %v1628_v2 }
 0x207   : > { %2075 = vrot.lane.b32.xlu0 %v1480_v3, %s18051_s4  ;;  %1857 = vrot.lane.b32.xlu1 %v1480_v3, %s18042_s26  ;;  %v13934_v3 = vld [vmem:[%s13125_s20] sm:$0xff]  ;;  %s17988_s26 = smov 121  }
 0x209   : > { %v1736_v10 = vpop.permute.xlu0 %1735  ;;  %v1738_v4 = vpop.permute.xlu1 %1737 }
 0x20a   : > { %v1758_v5 = vsel %vm1749_vm11, %v13694_v11, %v1736_v10  ;;  %v1759_v17 = vsel %vm1749_vm11, %v1736_v10, %v1738_v4  ;;  %v13964_v10 = vsub.s32 3, %v13922_v21 }
 0x20b   : > { %1967 = vrot.lane.b32.xlu0 %v1920_v59, %s18050_s2  ;;  %2077 = vrot.lane.b32.xlu1 %v1920_v59, %s18051_s4  ;;  %v11768_v15 = vpack.c.bf16 %v1759_v17, %v1649_v12  ;;  %v11770_v56 = vpack.c.bf16 %v1758_v5, %v1648_v6  ;;  %v2359_v59 = vld [vmem:[#allocation2 + $0x748] sm:$0xff]  ;;  %v2950_v17 = vrot.slane %v13934_v3, %v13951_v36  ;;  %s18006_s4 = smov 118  }
 0x20d   : > { %v1630_v16 = vpop.permute.xlu0 %1629  ;;  %v13912_v23 = vpop.permute.xlu1 %1631  ;;  %11769 = vmatprep.subr.bf16.mxu0 %v11768_v15 }
 0x20e   : > { %11771 = vmatpush1.bf16.msra.mxu0 %v11770_v56  ;;  %v1650_v26 = vsel %vm1639_vm10, %v1628_v2, %v1630_v16  ;;  %v1651_v11 = vsel %vm1639_vm10, %v1630_v16, %v13912_v23  ;;  %v2360_v2 = vld [vmem:[#allocation2 + $0x750] sm:$0xff] }
 0x211   : > { %v1740_v19 = vpop.permute.xlu0 %1739  ;;  %v13914_v22 = vpop.permute.xlu1 %1741 }
 0x212   : > { %v1760_v27 = vsel %vm1749_vm11, %v1738_v4, %v1740_v19  ;;  %v1761_v28 = vsel %vm1749_vm11, %v1740_v19, %v13914_v22 }
 0x213   : > { %v11800_v29 = vpack.c.bf16 %v1761_v28, %v1651_v11  ;;  %v11802_v31 = vpack.c.bf16 %v1760_v27, %v1650_v26  ;;  %v568_v26 = vld [vmem:[#allocation4 + $0x68] sm:$0xff]  ;;  %v567_v11 = vld [vmem:[#allocation4 + $0x60] sm:$0xff]  ;;  %v2954_v28 = vrot.slane %v13934_v3, %v13964_v10 }
 0x215   : > { %v1846_v32 = vpop.permute.xlu0 %1845  ;;  %v1848_v20 = vpop.permute.xlu1 %1847  ;;  %11801 = vmatprep.subr.bf16.mxu1 %v11800_v29 }
 0x216   : > { %11803 = vmatpush1.bf16.msra.mxu1 %v11802_v31  ;;  %v1868_v41 = vsel %vm1859_vm12, %v13722_v49, %v1846_v32  ;;  %v1869_v42 = vsel %vm1859_vm12, %v1846_v32, %v1848_v20  ;;  %v2942_v49 = vrot.slane %v13934_v3, %v13925_v35 }
 0x219   : > { %v1956_v33 = vpop.permute.xlu0 %1955  ;;  %v1958_v37 = vpop.permute.xlu1 %1957 }
 0x21a   : > { %v1978_v44 = vsel %vm1969_vm13, %v13728_v43, %v1956_v33  ;;  %v1979_v45 = vsel %vm1969_vm13, %v1956_v33, %v1958_v37  ;;  %v2946_v43 = vrot.slane %v13934_v3, %v13937_v39 }
 0x21b   : > { %v11772_v48 = vpack.c.bf16 %v1979_v45, %v1869_v42  ;;  %v11774_v1 = vpack.c.bf16 %v1978_v44, %v1868_v41  ;;  %v2362_v45 = vld [vmem:[#allocation2 + $0x760] sm:$0xff] }
 0x21d   : > { %v1850_v46 = vpop.permute.xlu0 %1849  ;;  %v13939_v51 = vpop.permute.xlu1 %1851  ;;  %11773 = vmatprep.subr.bf16.mxu0 %v11772_v48  ;;  %v2361_v48 = vld [vmem:[#allocation2 + $0x758] sm:$0xff] }
 0x21e   : > { %11775 = vmatpush1.bf16.msra.mxu0 %v11774_v1  ;;  %v1870_v57 = vsel %vm1859_vm12, %v1848_v20, %v1850_v46  ;;  %v1871_v38 = vsel %vm1859_vm12, %v1850_v46, %v13939_v51 }
 0x220   : > { %v13945_v7 = vpop.f32.mrb[0].mxu0 }
 0x221   : > { %v1960_v52 = vpop.permute.xlu0 %1959  ;;  %v13947_v53 = vpop.permute.xlu1 %1961  ;;  %v3014_v54 = vmul.f32 %v2942_v49, %v13945_v7 }
 0x222   : > { %v1980_v13 = vsel %vm1969_vm13, %v1958_v37, %v1960_v52  ;;  %v1981_v58 = vsel %vm1969_vm13, %v1960_v52, %v13947_v53  ;;  %v13959_v60 = vpop.f32.mrb[1].mxu0 }
 0x223   : > { %v11804_v61 = vpack.c.bf16 %v1981_v58, %v1871_v38  ;;  %v11806_v8 = vpack.c.bf16 %v1980_v13, %v1870_v57  ;;  %v3046_v63 = vmul.f32 %v3014_v54, %v13945_v7  ;;  %v3015_v0 = vmul.f32 %v2946_v43, %v13959_v60  ;;  %v13987_v43 = vld [vmem:[%s13085_s25] sm:$0xff] }
 0x225   : > { %v2066_v4 = vpop.permute.xlu0 %2065  ;;  %v2068_v6 = vpop.permute.xlu1 %2067  ;;  %11805 = vmatprep.subr.bf16.mxu1 %v11804_v61  ;;  %v3029_v12 = vadd.f32 %v3015_v0, %v3014_v54  ;;  %v3047_v5 = vmul.f32 %v3015_v0, %v13959_v60  ;;  %v12882_v0 = vmov 0.0|0.0  }
 0x226   : > { %v2088_v15 = vsel %vm2079_vm14, %v13754_v18, %v2066_v4  ;;  %v2089_v56 = vsel %vm2079_vm14, %v2066_v4, %v2068_v6  ;;  %11807 = vmatpush1.bf16.msra.mxu1 %v11806_v8 }
 0x227   : > { %v11776_v16 = vpack.c.bf16 %v2360_v2, %v2089_v56  ;;  %v11778_v19 = vpack.c.bf16 %v2359_v59, %v2088_v15  ;;  %v3061_v9 = vadd.f32 %v3047_v5, %v3046_v63  ;;  %v569_v56 = vld [vmem:[#allocation4 + $0x70] sm:$0xff] }
 0x228   : > { %v13972_v27 = vpop.f32.mrb[0].mxu1 }
 0x229   : > { %v644_v29 = vpop.permute.xlu0 %643  ;;  %v646_v31 = vpop.permute.xlu1 %645  ;;  %11777 = vmatprep.subr.bf16.mxu0 %v11776_v16  ;;  %v3016_v32 = vmul.f32 %v2950_v17, %v13972_v27 }
 0x22a   : > { %v662_v18 = vsel %vm649_vm1, %v13765_v30, %v644_v29  ;;  %v663_v20 = vsel %vm649_vm1, %v644_v29, %v646_v31  ;;  %11779 = vmatpush1.bf16.msra.mxu0 %v11778_v19  ;;  %v13980_v33 = vpop.f32.mrb[1].mxu1 }
 0x22b   : > { %v11812_v37 = vpack.c.bf16 %v663_v20, %v568_v26  ;;  %v11814_v41 = vpack.c.bf16 %v662_v18, %v567_v11  ;;  %v3030_v42 = vadd.f32 %v3029_v12, %v3016_v32  ;;  %v3048_v44 = vmul.f32 %v3016_v32, %v13972_v27 }
 0x22c   : > { %v3017_v1 = vmul.f32 %v2954_v28, %v13980_v33 }
 0x22d   : > { %v2070_v46 = vpop.permute.xlu0 %2069  ;;  %v13984_v49 = vpop.permute.xlu1 %2071  ;;  %11813 = vmatprep.subr.bf16.mxu0 %v11812_v37  ;;  %2715 = vmatmul.mubr.f32.vlgmr.msra.gmra.mrb[4].mxu0 %v13987_v43  ;;  %v3062_v30 = vadd.f32 %v3061_v9, %v3048_v44 }
 0x22e   : > { %v2090_v52 = vsel %vm2079_vm14, %v2068_v6, %v2070_v46  ;;  %v2091_v54 = vsel %vm2079_vm14, %v2070_v46, %v13984_v49  ;;  %11815 = vmatpush1.bf16.msra.mxu0 %v11814_v41  ;;  %2856 = vmatprep.mubr.f32.mxu0 %v12880_v25  ;;  %v13994_v57 = vadd.f32 %v3030_v42, %v3017_v1 }
 0x22f   : > { %v11808_v38 = vpack.c.bf16 %v2362_v45, %v2091_v54  ;;  %v11810_v13 = vpack.c.bf16 %v2361_v48, %v2090_v52  ;;  %v3049_v58 = vmul.f32 %v3017_v1, %v13980_v33 }
 0x231   : > { %v754_v61 = vpop.permute.xlu0 %753  ;;  %v756_v8 = vpop.permute.xlu1 %755  ;;  %11809 = vmatprep.subr.bf16.mxu1 %v11808_v38  ;;  %v13997_v63 = vadd.f32 %v3062_v30, %v3049_v58 }
 0x232   : > { %11811 = vmatpush1.bf16.msra.mxu1 %v11810_v13  ;;  %v772_v4 = vsel %vm759_vm2, %v13790_v55, %v754_v61  ;;  %v773_v6 = vsel %vm759_vm2, %v754_v61, %v756_v8 }
 0x233   : > { %11844 = vmatprep.subr.bf16.mxu1 %v12882_v0 }
 0x235   : > { %v864_v2 = vpop.permute.xlu0 %863  ;;  %v866_v59 = vpop.permute.xlu1 %865  ;;  %2786 = vmatmul.mubr.f32.vlgmr.msra.gmra.mrb[4].mxu1 %v13987_v43 }
 0x236   : > { %v882_v12 = vsel %vm869_vm3, %v13796_v40, %v864_v2  ;;  %v883_v5 = vsel %vm869_vm3, %v864_v2, %v866_v59  ;;  %11512 = vmatprep.mubr.msk.f32.mxu1 %vm12883_vm15, %v12880_v25 }
 0x237   : > { %v11816_v17 = vpack.c.bf16 %v883_v5, %v773_v6  ;;  %v11818_v15 = vpack.c.bf16 %v882_v12, %v772_v4 }
 0x239   : > { %v648_v16 = vpop.permute.xlu0 %647  ;;  %v974_v19 = vpop.permute.xlu1 %973  ;;  %11817 = vmatprep.subr.bf16.mxu0 %v11816_v17 }
 0x23a   : > { %v664_v9 = vsel %vm649_vm1, %v646_v31, %v648_v16  ;;  %11819 = vmatpush1.bf16.msra.mxu0 %v11818_v15  ;;  %v992_v20 = vsel %vm979_vm4, %v13824_v14, %v974_v19  ;;  %vm3359_vm1 = vcmask 1031168  }
 0x23b   : > { %v11845_v55 = vpack.c.bf16 %v664_v9, %v569_v56 }
 0x23d   : > { %v976_v26 = vpop.permute.xlu0 %975  ;;  %v1084_v11 = vpop.permute.xlu1 %1083  ;;  %11846 = vmatpush3.bf16.msra.mxu1 %v11845_v55 }
 0x23e   : > { %11847 = vmatprep.subr.bf16.mxu1 %v12882_v0  ;;  %v1102_v40 = vsel %vm1089_vm5, %v13830_v62, %v1084_v11  ;;  %v993_v32 = vsel %vm979_vm4, %v974_v19, %v976_v26 }
 0x23f   : > { %v11822_v37 = vpack.c.bf16 %v1102_v40, %v992_v20 }
 0x241   : > { %v1086_v28 = vpop.permute.xlu0 %1085  ;;  %v758_v29 = vpop.permute.xlu1 %757 }
 0x242   : > { %v1103_v18 = vsel %vm1089_vm5, %v1084_v11, %v1086_v28  ;;  %v774_v44 = vsel %vm759_vm2, %v756_v8, %v758_v29  ;;  %vm3469_vm2 = vcmask 1022976  }
 0x243   : > { %v11820_v31 = vpack.c.bf16 %v1103_v18, %v993_v32 }
 0x245   : > { %v868_v41 = vpop.permute.xlu0 %867  ;;  %v1194_v42 = vpop.permute.xlu1 %1193  ;;  %11821 = vmatprep.subr.bf16.mxu0 %v11820_v31 }
 0x246   : > { %v884_v45 = vsel %vm869_vm3, %v866_v59, %v868_v41  ;;  %11823 = vmatpush1.bf16.msra.mxu0 %v11822_v37  ;;  %v1212_v38 = vsel %vm1199_vm6, %v13856_v34, %v1194_v42  ;;  %vm3579_vm3 = vcmask 1014784  }
 0x247   : > { %v11848_v62 = vpack.c.bf16 %v884_v45, %v774_v44 }
 0x249   : > { %v1196_v48 = vpop.permute.xlu0 %1195  ;;  %v1304_v1 = vpop.permute.xlu1 %1303  ;;  %11849 = vmatpush3.bf16.msra.mxu1 %v11848_v62 }
 0x24a   : > { %11850 = vmatprep.subr.bf16.mxu1 %v12882_v0  ;;  %v1322_v46 = vsel %vm1309_vm7, %v13862_v24, %v1304_v1  ;;  %v1213_v52 = vsel %vm1199_vm6, %v1194_v42, %v1196_v48 }
 0x24b   : > { %v11826_v58 = vpack.c.bf16 %v1322_v46, %v1212_v38 }
 0x24d   : > { %v1306_v14 = vpop.permute.xlu0 %1305  ;;  %v978_v30 = vpop.permute.xlu1 %977 }
 0x24e   : > { %v1323_v54 = vsel %vm1309_vm7, %v1304_v1, %v1306_v14  ;;  %v994_v2 = vsel %vm979_vm4, %v976_v26, %v978_v30  ;;  %vm3689_vm4 = vcmask 1006592  }
 0x24f   : > { %v11824_v13 = vpack.c.bf16 %v1323_v54, %v1213_v52 }
 0x251   : > { %v1088_v61 = vpop.permute.xlu0 %1087  ;;  %v1414_v8 = vpop.permute.xlu1 %1413  ;;  %11825 = vmatprep.subr.bf16.mxu0 %v11824_v13 }
 0x252   : > { %v1104_v59 = vsel %vm1089_vm5, %v1086_v28, %v1088_v61  ;;  %11827 = vmatpush1.bf16.msra.mxu0 %v11826_v58  ;;  %v1432_v56 = vsel %vm1419_vm8, %v13887_v47, %v1414_v8  ;;  %vm3908_vm5 = vcmask 990208  }
 0x253   : > { %v11851_v24 = vpack.c.bf16 %v1104_v59, %v994_v2  ;;  %v2364_v59 = vld [vmem:[#allocation2 + $0x770] sm:$0xff] }
 0x255   : > { %v1416_v4 = vpop.permute.xlu0 %1415  ;;  %v1524_v6 = vpop.permute.xlu1 %1523  ;;  %11852 = vmatpush3.bf16.msra.mxu1 %v11851_v24 }
 0x256   : > { %11853 = vmatprep.subr.bf16.mxu1 %v12882_v0  ;;  %v1542_v12 = vsel %vm1529_vm9, %v13891_v50, %v1524_v6  ;;  %v1433_v17 = vsel %vm1419_vm8, %v1414_v8, %v1416_v4 }
 0x257   : > { %v11830_v19 = vpack.c.bf16 %v1542_v12, %v1432_v56  ;;  %v2363_v12 = vld [vmem:[#allocation2 + $0x768] sm:$0xff] }
 0x259   : > { %v1526_v34 = vpop.permute.xlu0 %1525  ;;  %v1198_v5 = vpop.permute.xlu1 %1197 }
 0x25a   : > { %v1543_v15 = vsel %vm1529_vm9, %v1524_v6, %v1526_v34  ;;  %v1214_v26 = vsel %vm1199_vm6, %v1196_v48, %v1198_v5  ;;  %vm4018_vm6 = vcmask 982016  }
 0x25b   : > { %v11828_v16 = vpack.c.bf16 %v1543_v15, %v1433_v17 }
 0x25d   : > { %v1308_v9 = vpop.permute.xlu0 %1307  ;;  %v1634_v55 = vpop.permute.xlu1 %1633  ;;  %11829 = vmatprep.subr.bf16.mxu0 %v11828_v16 }
 0x25e   : > { %v1324_v11 = vsel %vm1309_vm7, %v1306_v14, %v1308_v9  ;;  %11831 = vmatpush1.bf16.msra.mxu0 %v11830_v19  ;;  %v1652_v31 = vsel %vm1639_vm10, %v13912_v23, %v1634_v55  ;;  %v2365_v9 = vld [vmem:[#allocation2 + $0x778] sm:$0xff]  ;;  %vm4128_vm7 = vcmask 973824  }
 0x25f   : > { %v11854_v50 = vpack.c.bf16 %v1324_v11, %v1214_v26  ;;  %v14067_v26 = vsub.s32 4, %v13922_v21  ;;  %v14071_v11 = vsub.s32 5, %v13922_v21 }
 0x261   : > { %v1636_v40 = vpop.permute.xlu0 %1635  ;;  %v1744_v28 = vpop.permute.xlu1 %1743  ;;  %11855 = vmatpush3.bf16.msra.mxu1 %v11854_v50  ;;  %v2958_v50 = vrot.slane %v13934_v3, %v14067_v26 }
 0x262   : > { %11856 = vmatprep.subr.bf16.mxu1 %v12882_v0  ;;  %v1762_v29 = vsel %vm1749_vm11, %v13914_v22, %v1744_v28  ;;  %v1653_v18 = vsel %vm1639_vm10, %v1634_v55, %v1636_v40 }
 0x263   : > { %v11834_v41 = vpack.c.bf16 %v1762_v29, %v1652_v31 }
 0x265   : > { %v1746_v47 = vpop.permute.xlu0 %1745  ;;  %v1418_v32 = vpop.permute.xlu1 %1417 }
 0x266   : > { %v1763_v20 = vsel %vm1749_vm11, %v1744_v28, %v1746_v47  ;;  %v1434_v45 = vsel %vm1419_vm8, %v1416_v4, %v1418_v32  ;;  %vm4238_vm8 = vcmask 965632  }
 0x267   : > { %v11832_v37 = vpack.c.bf16 %v1763_v20, %v1653_v18  ;;  %v2969_v18 = vsub.s32 7, %v13922_v21 }
 0x269   : > { %v1528_v42 = vpop.permute.xlu0 %1527  ;;  %v1854_v44 = vpop.permute.xlu1 %1853  ;;  %11833 = vmatprep.subr.bf16.mxu0 %v11832_v37 }
 0x26a   : > { %v1544_v62 = vsel %vm1529_vm9, %v1526_v34, %v1528_v42  ;;  %11835 = vmatpush1.bf16.msra.mxu0 %v11834_v41  ;;  %v1872_v54 = vsel %vm1859_vm12, %v13939_v51, %v1854_v44 }
 0x26b   : > { %v11857_v22 = vpack.c.bf16 %v1544_v62, %v1434_v45  ;;  %v2970_v45 = vrot.slane %v13934_v3, %v2969_v18 }
 0x26d   : > { %v1856_v48 = vpop.permute.xlu0 %1855  ;;  %v1964_v1 = vpop.permute.xlu1 %1963  ;;  %11858 = vmatpush3.bf16.msra.mxu1 %v11857_v22 }
 0x26e   : > { %11859 = vmatprep.subr.bf16.mxu1 %v12882_v0  ;;  %v1982_v46 = vsel %vm1969_vm13, %v13947_v53, %v1964_v1  ;;  %v1873_v30 = vsel %vm1859_vm12, %v1854_v44, %v1856_v48 }
 0x26f   : > { %v11838_v13 = vpack.c.bf16 %v1982_v46, %v1872_v54  ;;  %v2934_v54 = vld [vmem:[%s13125_s20 + $0x8] sm:$0xff] }
 0x271   : > { %v1966_v23 = vpop.permute.xlu0 %1965  ;;  %v1638_v14 = vpop.permute.xlu1 %1637 }
 0x272   : > { %v1983_v52 = vsel %vm1969_vm13, %v1964_v1, %v1966_v23  ;;  %v1654_v8 = vsel %vm1639_vm10, %v1636_v40, %v1638_v14  ;;  %v2962_v40 = vrot.slane %v13934_v3, %v14071_v11  ;;  %vm4348_vm10 = vcmask 957440  }
 0x273   : > { %v11836_v38 = vpack.c.bf16 %v1983_v52, %v1873_v30 }
 0x275   : > { %v1748_v58 = vpop.permute.xlu0 %1747  ;;  %v2074_v61 = vpop.permute.xlu1 %2073  ;;  %11837 = vmatprep.subr.bf16.mxu0 %v11836_v38  ;;  %v2978_v38 = vrot.slane %v2934_v54, %v13937_v39 }
 0x276   : > { %v1764_v2 = vsel %vm1749_vm11, %v1746_v47, %v1748_v58  ;;  %11839 = vmatpush1.bf16.msra.mxu0 %v11838_v13  ;;  %v2092_v24 = vsel %vm2079_vm14, %v13984_v49, %v2074_v61  ;;  %vm4458_vm11 = vcmask 949248  }
 0x277   : > { %v11860_v53 = vpack.c.bf16 %v1764_v2, %v1654_v8  ;;  %v11842_v5 = vpack.c.bf16 %v2363_v12, %v2092_v24  ;;  %v2986_v12 = vrot.slane %v2934_v54, %v13964_v10 }
 0x279   : > { %v2076_v4 = vpop.permute.xlu0 %2075  ;;  %v1858_v6 = vpop.permute.xlu1 %1857  ;;  %11861 = vmatpush3.bf16.msra.mxu1 %v11860_v53 }
 0x27a   : > { %v2093_v51 = vsel %vm2079_vm14, %v2074_v61, %v2076_v4  ;;  %11862 = vmatprep.subr.bf16.mxu1 %v12882_v0  ;;  %v1874_v56 = vsel %vm1859_vm12, %v1856_v48, %v1858_v6  ;;  %v2982_v6 = vrot.slane %v2934_v54, %v13951_v36  ;;  %vm4568_vm12 = vcmask 941056  }
 0x27b   : > { %v11840_v34 = vpack.c.bf16 %v2364_v59, %v2093_v51 }
 0x27d   : > { %v1968_v17 = vpop.permute.xlu0 %1967  ;;  %v2078_v15 = vpop.permute.xlu1 %2077  ;;  %11841 = vmatprep.subr.bf16.mxu0 %v11840_v34 }
 0x27e   : > { %v1984_v16 = vsel %vm1969_vm13, %v1966_v23, %v1968_v17  ;;  %11843 = vmatpush1.bf16.msra.mxu0 %v11842_v5  ;;  %v2094_v49 = vsel %vm2079_vm14, %v2076_v4, %v2078_v15 }
 0x27f   : > { %v11863_v19 = vpack.c.bf16 %v1984_v16, %v1874_v56  ;;  %v11866_v55 = vpack.c.bf16 %v2365_v9, %v2094_v49 }
 0x281   : > { %2857 = vmatmul.mubr.f32.vlgmr.msra.gmra.mrb[6].mxu0 %v13987_v43  ;;  %11864 = vmatpush3.bf16.msra.mxu1 %v11863_v19 }
 0x282   : > { %11865 = vmatprep.subr.bf16.mxu1 %v12882_v0  ;;  %5028 = vmatprep.mubr.f32.mxu0 %v12880_v25 }
 0x285   : > { %11867 = vmatpush3.bf16.msra.mxu1 %v11866_v55 }
 0x288   : > { %11513 = vmatmul.mubr.f32.vlgmr.msra.gmra.mrb[6].mxu1 %v13987_v43  ;;  %v14083_v43 = vsub.s32 6, %v13922_v21 }
 0x289   : > { %5099 = vmatprep.mubr.f32.mxu1 %v12880_v25 }
 0x28a   : > { %v2966_v44 = vrot.slane %v13934_v3, %v14083_v43  ;;  %v2974_v3 = vrot.slane %v2934_v54, %v13925_v35 }
 0x290   : > { %v14077_v28 = vpop.f32.mrb[2].mxu0 }
 0x291   : > { %v3018_v29 = vmul.f32 %v2958_v50, %v14077_v28  ;;  %v14080_v47 = vpop.f32.mrb[3].mxu0  ;;  %v2990_v50 = vrot.slane %v2934_v54, %v14067_v26 }
 0x292   : > { %v3019_v32 = vmul.f32 %v2962_v40, %v14080_v47  ;;  %v2994_v40 = vrot.slane %v2934_v54, %v14071_v11 }
 0x293   : > { %v3032_v20 = vadd.f32 %v13994_v57, %v3018_v29  ;;  %v3050_v31 = vmul.f32 %v3018_v29, %v14077_v28 }
 0x294   : > { %v3051_v37 = vmul.f32 %v3019_v32, %v14080_v47 }
 0x295   : > { %v3064_v41 = vadd.f32 %v13997_v63, %v3050_v31  ;;  %v3033_v42 = vadd.f32 %v3032_v20, %v3019_v32 }
 0x297   : > { %v3065_v62 = vadd.f32 %v3064_v41, %v3051_v37 }
 0x298   : > { %v14096_v22 = vpop.f32.mrb[2].mxu1 }
 0x299   : > { %v3020_v57 = vmul.f32 %v2966_v44, %v14096_v22  ;;  %v14099_v48 = vpop.f32.mrb[3].mxu1  ;;  %v2998_v44 = vrot.slane %v2934_v54, %v14083_v43 }
 0x29a   : > { %v3021_v1 = vmul.f32 %v2970_v45, %v14099_v48 }
 0x29b   : > { %v3034_v46 = vadd.f32 %v3033_v42, %v3020_v57  ;;  %v3052_v63 = vmul.f32 %v3020_v57, %v14096_v22 }
 0x29c   : > { %v3053_v23 = vmul.f32 %v3021_v1, %v14099_v48 }
 0x29d   : > { %v3066_v14 = vadd.f32 %v3065_v62, %v3052_v63  ;;  %v3035_v30 = vadd.f32 %v3034_v46, %v3021_v1 }
 0x29f   : > { %v3067_v52 = vadd.f32 %v3066_v14, %v3053_v23 }
 0x300   : > { %v14107_v13 = vpop.f32.mrb[4].mxu0 }
 0x301   : > { %v3022_v58 = vmul.f32 %v2974_v3, %v14107_v13  ;;  %v14110_v61 = vpop.f32.mrb[5].mxu0 }
 0x302   : > { %v3023_v8 = vmul.f32 %v2978_v38, %v14110_v61 }
 0x303   : > { %v3036_v2 = vadd.f32 %v3035_v30, %v3022_v58  ;;  %v3054_v53 = vmul.f32 %v3022_v58, %v14107_v13 }
 0x304   : > { %v3055_v59 = vmul.f32 %v3023_v8, %v14110_v61 }
 0x305   : > { %v3068_v24 = vadd.f32 %v3067_v52, %v3054_v53  ;;  %v3037_v4 = vadd.f32 %v3036_v2, %v3023_v8  ;;  %v12884_v52 = vmov 0  }
 0x306   : > { %12726 = vset.pattern.permute.xlu0 %v12884_v52  ;;  %12727 = vset.pattern.permute.xlu1 %v12884_v52 }
 0x307   : > { %v3069_v51 = vadd.f32 %v3068_v24, %v3055_v59  ;;  %v2935_v59 = vld [vmem:[%s13095_s19] sm:$0xff] }
 0x308   : > { %v14117_v34 = vpop.f32.mrb[4].mxu1 }
 0x309   : > { %v3024_v5 = vmul.f32 %v2982_v6, %v14117_v34  ;;  %v2789_v17 = vpop.f32.mrb[5].mxu1  ;;  %v2936_v6 = vld [vmem:[%s13100_s17] sm:$0xff] }
 0x30a   : > { %v3025_v15 = vmul.f32 %v2986_v12, %v2789_v17 }
 0x30b   : > { %v3038_v56 = vadd.f32 %v3037_v4, %v3024_v5  ;;  %v3056_v16 = vmul.f32 %v3024_v5, %v14117_v34 }
 0x30c   : > { %v3057_v19 = vmul.f32 %v3025_v15, %v2789_v17 }
 0x30d   : > { %v3070_v49 = vadd.f32 %v3069_v51, %v3056_v16  ;;  %v3039_v9 = vadd.f32 %v3038_v56, %v3025_v15 }
 0x30f   : > { %v3071_v55 = vadd.f32 %v3070_v49, %v3057_v19 }
 0x354   : > { %v2858_v29 = vpop.f32.mrb[6].mxu0 }
 0x355   : > { %v3026_v32 = vmul.f32 %v2990_v50, %v2858_v29  ;;  %v2860_v20 = vpop.f32.mrb[7].mxu0 }
 0x356   : > { %v3027_v31 = vmul.f32 %v2994_v40, %v2860_v20 }
 0x357   : > { %v3040_v37 = vadd.f32 %v3039_v9, %v3026_v32  ;;  %v3058_v41 = vmul.f32 %v3026_v32, %v2858_v29 }
 0x358   : > { %v3059_v42 = vmul.f32 %v3027_v31, %v2860_v20 }
 0x359   : > { %v3072_v45 = vadd.f32 %v3071_v55, %v3058_v41  ;;  %v3041_v62 = vadd.f32 %v3040_v37, %v3027_v31 }
 0x35b   : > { %v3073_v57 = vadd.f32 %v3072_v45, %v3059_v42  ;;  %v2929_v1 = vpop.f32.mrb[6].mxu1 }
 0x35c   : > { %v3028_v46 = vmul.f32 %v2998_v44, %v2929_v1  ;;  %v11514_v63 = vpop.f32.mrb[7].mxu1 }
 0x35e   : > { %v3060_v23 = vmul.f32 %v3028_v46, %v2929_v1  ;;  %v3042_v14 = vadd.f32 %v3041_v62, %v3028_v46 }
 0x360   : > { %3043 = vadd.xlane.f32.xlu0 %v3042_v14  ;;  %v3074_v30 = vadd.f32 %v3073_v57, %v3060_v23 }
 0x362   : > { %3075 = vadd.xlane.f32.xlu1 %v3074_v30 }
 0x3ed   : > { %v3044_v3 = vpop.xlane.xlu0 %3043 }
 0x3ee   : > { %v3045_v38 = vmul.f32 0.0010416667, %v3044_v3 }
 0x3ef   : > { %v3076_v58 = vpop.xlane.xlu1 %3075 }
 0x3f0   : > { %v3078_v54 = vmul.f32 %v3045_v38, %v3045_v38  ;;  %v3077_v8 = vmul.f32 0.0010416667, %v3076_v58 }
 0x3f2   : > { %v3079_v2 = vsub.f32 %v3077_v8, %v3078_v54 }
 0x3f4   : > { %v3080_v53 = vadd.f32 1e-05, %v3079_v2 }
 0x3f6   : > { %12728 = vrsqrt.f32 %v3080_v53 }
 0x400   : > { %v12729_v24 = vpop.eup %12728 }
 0x401   : > { %v3082_v4 = vmul.f32 %v12729_v24, %v2935_v59 }
 0x403   : > { %3087 = vperm.xlu0 %12726, %v3082_v4   ;;  %v3083_v12 = vmul.f32 %v3082_v4, %v3045_v38 }
 0x405   : > { %v3084_v51 = vsub.f32 %v2936_v6, %v3083_v12 }
 0x407   : > { %3107 = vperm.xlu1 %12727, %v3084_v51  }
 0x482   : > { %v3088_v5 = vpop.permute.xlu0 %3087 }
 0x483   : > { %v3092_v15 = vmul.f32 %v3088_v5, %v13972_v27  ;;  %v3091_v56 = vmul.f32 %v3088_v5, %v13959_v60  ;;  %v3090_v16 = vmul.f32 %v3088_v5, %v13945_v7  ;;  %v3094_v19 = vmul.f32 %v3088_v5, %v14077_v28 }
 0x484   : > { %v3093_v49 = vmul.f32 %v3088_v5, %v13980_v33  ;;  %v3095_v9 = vmul.f32 %v3088_v5, %v14080_v47  ;;  %v3097_v55 = vmul.f32 %v3088_v5, %v14099_v48  ;;  %v3096_v50 = vmul.f32 %v3088_v5, %v14096_v22 }
 0x485   : > { %v3098_v40 = vmul.f32 %v3088_v5, %v14107_v13  ;;  %v3099_v32 = vmul.f32 %v3088_v5, %v14110_v61  ;;  %v3101_v31 = vmul.f32 %v3088_v5, %v2789_v17  ;;  %v3100_v60 = vmul.f32 %v3088_v5, %v14117_v34 }
 0x486   : > { %v3108_v27 = vpop.permute.xlu1 %3107  ;;  %v3102_v37 = vmul.f32 %v3088_v5, %v2858_v29  ;;  %v3103_v7 = vmul.f32 %v3088_v5, %v2860_v20  ;;  %v3104_v41 = vmul.f32 %v3088_v5, %v2929_v1 }
 0x487   : > { %v3112_v28 = vadd.f32 %v3108_v27, %v3092_v15  ;;  %v3111_v42 = vadd.f32 %v3108_v27, %v3091_v56  ;;  %v3110_v33 = vadd.f32 %v3108_v27, %v3090_v16  ;;  %v3114_v44 = vadd.f32 %v3108_v27, %v3094_v19 }
 0x488   : > { %v3113_v47 = vadd.f32 %v3108_v27, %v3093_v49  ;;  %v3115_v45 = vadd.f32 %v3108_v27, %v3095_v9  ;;  %v3117_v48 = vadd.f32 %v3108_v27, %v3097_v55  ;;  %v3116_v62 = vadd.f32 %v3108_v27, %v3096_v50 }
 0x489   : > { %v14137_v22 = vmax.f32 %v3112_v28, 0.0  ;;  %v14139_v13 = vmax.f32 %v3111_v42, 0.0  ;;  %v14141_v61 = vmax.f32 %v3110_v33, 0.0  ;;  %v14143_v17 = vmax.f32 %v3114_v44, 0.0 }
 0x48a   : > { %v14145_v34 = vmax.f32 %v3113_v47, 0.0  ;;  %v14147_v29 = vmax.f32 %v3115_v45, 0.0  ;;  %v14149_v20 = vmax.f32 %v3117_v48, 0.0  ;;  %v14151_v57 = vmax.f32 %v3116_v62, 0.0 }
 0x48b   : > { %3331 = vrot.lane.b32.xlu0 %v14137_v22, %s18000_s3  ;;  %3219 = vrot.lane.b32.xlu1 %v14139_v13, %s17996_s13  ;;  %3144 = vst [vmem:[#allocation3 + $0x20] sm:$0xff] %v14143_v17  ;;  %v3118_v1 = vadd.f32 %v3108_v27, %v3098_v40  ;;  %v3119_v46 = vadd.f32 %v3108_v27, %v3099_v32 }
 0x48c   : > { %v3121_v63 = vadd.f32 %v3108_v27, %v3101_v31  ;;  %3145 = vst [vmem:[#allocation3 + $0x28] sm:$0xff] %v14147_v29  ;;  %3147 = vst [vmem:[#allocation3 + $0x38] sm:$0xff] %v14149_v20  ;;  %v3120_v23 = vadd.f32 %v3108_v27, %v3100_v60  ;;  %v3122_v14 = vadd.f32 %v3108_v27, %v3102_v37 }
 0x48d   : > { %3146 = vst [vmem:[#allocation3 + $0x30] sm:$0xff] %v14151_v57  ;;  %v3123_v30 = vadd.f32 %v3108_v27, %v3103_v7  ;;  %v3124_v52 = vadd.f32 %v3108_v27, %v3104_v41  ;;  %v14161_v3 = vmax.f32 %v3118_v1, 0.0  ;;  %v14163_v38 = vmax.f32 %v3119_v46, 0.0 }
 0x48e   : > { %v14165_v58 = vmax.f32 %v3121_v63, 0.0  ;;  %v14167_v54 = vmax.f32 %v3120_v23, 0.0  ;;  %v14169_v8 = vmax.f32 %v3122_v14, 0.0 }
 0x48f   : > { %v3138_v2 = vmax.f32 %v3123_v30, 0.0  ;;  %v3139_v53 = vmax.f32 %v3124_v52, 0.0  ;;  %3441 = vrot.lane.b32.xlu0 %v14137_v22, %s17998_s12  ;;  %3221 = vrot.lane.b32.xlu1 %v14137_v22, %s17996_s13  ;;  %3148 = vst [vmem:[#allocation3 + $0x40] sm:$0xff] %v14161_v3  ;;  %3149 = vst [vmem:[#allocation3 + $0x48] sm:$0xff] %v14163_v38 }
 0x490   : > { %3151 = vst [vmem:[#allocation3 + $0x58] sm:$0xff] %v14165_v58  ;;  %3150 = vst [vmem:[#allocation3 + $0x50] sm:$0xff] %v14167_v54 }
 0x491   : > { %3152 = vst [vmem:[#allocation3 + $0x60] sm:$0xff] %v14169_v8  ;;  %3153 = vst [vmem:[#allocation3 + $0x68] sm:$0xff] %v3138_v2 }
 0x492   : > { %3154 = vst [vmem:[#allocation3 + $0x70] sm:$0xff] %v3139_v53  ;;  %3183 = vst [vmem:[#allocation2 + $0x68] sm:$0xff] %v3138_v2  ;;  %v14180_v59 = vld [vmem:[#allocation3 + $0x20] sm:$0xff] }
 0x493   : > { %3184 = vst [vmem:[#allocation2 + $0x70] sm:$0xff] %v3139_v53  ;;  %3437 = vrot.lane.b32.xlu0 %v14141_v61, %s17998_s12  ;;  %3217 = vrot.lane.b32.xlu1 %v14141_v61, %s17996_s13  ;;  %v14186_v24 = vld [vmem:[#allocation3 + $0x28] sm:$0xff]  ;;  %v14188_v4 = vld [vmem:[#allocation3 + $0x38] sm:$0xff] }
 0x496   : > { %v3164_v6 = vld [vmem:[#allocation3 + $0x48] sm:$0xff]  ;;  %v3163_v12 = vld [vmem:[#allocation3 + $0x40] sm:$0xff] }
 0x497   : > { %v3166_v51 = vld [vmem:[#allocation3 + $0x58] sm:$0xff]  ;;  %3335 = vrot.lane.b32.xlu0 %v14143_v17, %s18000_s3  ;;  %3223 = vrot.lane.b32.xlu1 %v14145_v34, %s17996_s13  ;;  %3179 = vst [vmem:[#allocation2 + $0x48] sm:$0xff] %v3164_v6  ;;  %3178 = vst [vmem:[#allocation2 + $0x40] sm:$0xff] %v3163_v12  ;;  %v3165_v5 = vld [vmem:[#allocation3 + $0x50] sm:$0xff] }
 0x498   : > { %3181 = vst [vmem:[#allocation2 + $0x58] sm:$0xff] %v3166_v51  ;;  %v3167_v15 = vld [vmem:[#allocation3 + $0x60] sm:$0xff]  ;;  %3180 = vst [vmem:[#allocation2 + $0x50] sm:$0xff] %v3165_v5 }
 0x499   : > { %3182 = vst [vmem:[#allocation2 + $0x60] sm:$0xff] %v3167_v15 }
 0x49b   : > { %3445 = vrot.lane.b32.xlu0 %v14143_v17, %s17998_s12  ;;  %3225 = vrot.lane.b32.xlu1 %v14143_v17, %s17996_s13 }
 0x49f   : > { %3551 = vrot.lane.b32.xlu0 %v14137_v22, %s17990_s24  ;;  %3329 = vrot.lane.b32.xlu1 %v14139_v13, %s18000_s3 }
 0x4a3   : > { %3661 = vrot.lane.b32.xlu0 %v14137_v22, %s17986_s14  ;;  %3439 = vrot.lane.b32.xlu1 %v14139_v13, %s17998_s12 }
 0x4a7   : > { %3657 = vrot.lane.b32.xlu0 %v14141_v61, %s17986_s14  ;;  %3327 = vrot.lane.b32.xlu1 %v14141_v61, %s18000_s3 }
 0x4ab   : > { %3555 = vrot.lane.b32.xlu0 %v14143_v17, %s17990_s24  ;;  %3333 = vrot.lane.b32.xlu1 %v14145_v34, %s18000_s3 }
 0x4af   : > { %3665 = vrot.lane.b32.xlu0 %v14143_v17, %s17986_s14  ;;  %3443 = vrot.lane.b32.xlu1 %v14145_v34, %s17998_s12 }
 0x4b3   : > { %3771 = vrot.lane.b32.xlu0 %v14137_v22, %s18050_s2  ;;  %3549 = vrot.lane.b32.xlu1 %v14139_v13, %s17990_s24 }
 0x4b7   : > { %3880 = vrot.lane.b32.xlu0 %v14137_v22, %s17988_s26  ;;  %3659 = vrot.lane.b32.xlu1 %v14139_v13, %s17986_s14 }
 0x4bb   : > { %3876 = vrot.lane.b32.xlu0 %v14141_v61, %s17988_s26  ;;  %3547 = vrot.lane.b32.xlu1 %v14141_v61, %s17990_s24 }
 0x4bf   : > { %3775 = vrot.lane.b32.xlu0 %v14143_v17, %s18050_s2  ;;  %3553 = vrot.lane.b32.xlu1 %v14145_v34, %s17990_s24  ;;  %s17992_s24 = smov 115  }
 0x4c3   : > { %3884 = vrot.lane.b32.xlu0 %v14143_v17, %s17988_s26  ;;  %3663 = vrot.lane.b32.xlu1 %v14145_v34, %s17986_s14  ;;  %s18004_s14 = smov 117  }
 0x4c7   : > { %3990 = vrot.lane.b32.xlu0 %v14137_v22, %s18008_s28  ;;  %3769 = vrot.lane.b32.xlu1 %v14139_v13, %s18050_s2 }
 0x4cb   : > { %4100 = vrot.lane.b32.xlu0 %v14137_v22, %s18002_s1  ;;  %3878 = vrot.lane.b32.xlu1 %v14139_v13, %s17988_s26 }
 0x4cf   : > { %4096 = vrot.lane.b32.xlu0 %v14141_v61, %s18002_s1  ;;  %3767 = vrot.lane.b32.xlu1 %v14141_v61, %s18050_s2 }
 0x4d3   : > { %3994 = vrot.lane.b32.xlu0 %v14143_v17, %s18008_s28  ;;  %3773 = vrot.lane.b32.xlu1 %v14145_v34, %s18050_s2 }
 0x4d7   : > { %4104 = vrot.lane.b32.xlu0 %v14143_v17, %s18002_s1  ;;  %3882 = vrot.lane.b32.xlu1 %v14145_v34, %s17988_s26  ;;  %s17994_s26 = smov 116  }
 0x4db   : > { %4210 = vrot.lane.b32.xlu0 %v14137_v22, %s18006_s4  ;;  %3988 = vrot.lane.b32.xlu1 %v14139_v13, %s18008_s28 }
 0x4df   : > { %4320 = vrot.lane.b32.xlu0 %v14137_v22, %s18004_s14  ;;  %4098 = vrot.lane.b32.xlu1 %v14139_v13, %s18002_s1 }
 0x4e3   : > { %4316 = vrot.lane.b32.xlu0 %v14141_v61, %s18004_s14  ;;  %3986 = vrot.lane.b32.xlu1 %v14141_v61, %s18008_s28 }
 0x4e7   : > { %4214 = vrot.lane.b32.xlu0 %v14143_v17, %s18006_s4  ;;  %3992 = vrot.lane.b32.xlu1 %v14145_v34, %s18008_s28 }
 0x4eb   : > { %4324 = vrot.lane.b32.xlu0 %v14143_v17, %s18004_s14  ;;  %4102 = vrot.lane.b32.xlu1 %v14145_v34, %s18002_s1 }
 0x4ef   : > { %4430 = vrot.lane.b32.xlu0 %v14137_v22, %s17994_s26  ;;  %4208 = vrot.lane.b32.xlu1 %v14139_v13, %s18006_s4 }
 0x4f3   : > { %4540 = vrot.lane.b32.xlu0 %v14137_v22, %s17992_s24  ;;  %4318 = vrot.lane.b32.xlu1 %v14139_v13, %s18004_s14 }
 0x4f7   : > { %4536 = vrot.lane.b32.xlu0 %v14141_v61, %s17992_s24  ;;  %4206 = vrot.lane.b32.xlu1 %v14141_v61, %s18006_s4 }
 0x4fb   : > { %4434 = vrot.lane.b32.xlu0 %v14143_v17, %s17994_s26  ;;  %4212 = vrot.lane.b32.xlu1 %v14145_v34, %s18006_s4 }
 0x4fd   : > { %v3332_v56 = vpop.permute.xlu0 %3331  ;;  %v3220_v16 = vpop.permute.xlu1 %3219 }
 0x4ff   : > { %4544 = vrot.lane.b32.xlu0 %v14143_v17, %s17992_s24  ;;  %4322 = vrot.lane.b32.xlu1 %v14145_v34, %s18004_s14 }
 0x501   : > { %v3442_v19 = vpop.permute.xlu0 %3441  ;;  %v3222_v49 = vpop.permute.xlu1 %3221 }
 0x502   : > { %v3251_v9 = vsel %vm3249_vm0, %v3220_v16, %v3222_v49 }
 0x503   : > { %4650 = vrot.lane.b32.xlu0 %v14137_v22, %s18041_s16  ;;  %4428 = vrot.lane.b32.xlu1 %v14139_v13, %s17994_s26  ;;  %v11868_v55 = vpack.c.bf16 %v3251_v9, %v14139_v13 }
 0x505   : > { %v3438_v50 = vpop.permute.xlu0 %3437  ;;  %v3218_v40 = vpop.permute.xlu1 %3217  ;;  %11869 = vmatprep.subr.bf16.mxu0 %v11868_v55 }
 0x506   : > { %v3250_v32 = vsel %vm3249_vm0, %v3218_v40, %v3220_v16 }
 0x507   : > { %3227 = vrot.lane.b32.xlu0 %v14147_v29, %s17996_s13  ;;  %4538 = vrot.lane.b32.xlu1 %v14139_v13, %s17992_s24  ;;  %v11870_v31 = vpack.c.bf16 %v3250_v32, %v14141_v61 }
 0x509   : > { %v14310_v27 = vpop.permute.xlu0 %3335  ;;  %v3224_v60 = vpop.permute.xlu1 %3223  ;;  %11871 = vmatpush1.bf16.msra.mxu0 %v11870_v31 }
 0x50a   : > { %v3252_v37 = vsel %vm3249_vm0, %v3222_v49, %v3224_v60 }
 0x50b   : > { %4652 = vrot.lane.b32.xlu0 %v14145_v34, %s18041_s16  ;;  %4426 = vrot.lane.b32.xlu1 %v14141_v61, %s17994_s26  ;;  %v11902_v33 = vpack.c.bf16 %v3252_v37, %v14137_v22 }
 0x50d   : > { %v14317_v7 = vpop.permute.xlu0 %3445  ;;  %v14319_v41 = vpop.permute.xlu1 %3225 }
 0x50e   : > { %v3253_v28 = vsel %vm3249_vm0, %v3224_v60, %v14319_v41 }
 0x50f   : > { %3231 = vrot.lane.b32.xlu0 %v14149_v20, %s17996_s13  ;;  %4432 = vrot.lane.b32.xlu1 %v14145_v34, %s17994_s26  ;;  %v11900_v42 = vpack.c.bf16 %v3253_v28, %v14145_v34  ;;  %s18053_s26 = smov 123  }
 0x511   : > { %v14329_v44 = vpop.permute.xlu0 %3551  ;;  %v3330_v47 = vpop.permute.xlu1 %3329  ;;  %11901 = vmatprep.subr.bf16.mxu1 %v11900_v42 }
 0x512   : > { %v3361_v45 = vsel %vm3359_vm1, %v3330_v47, %v3332_v56  ;;  %11903 = vmatpush1.bf16.msra.mxu1 %v11902_v33 }
 0x513   : > { %3337 = vrot.lane.b32.xlu0 %v14147_v29, %s18000_s3  ;;  %4542 = vrot.lane.b32.xlu1 %v14145_v34, %s17992_s24  ;;  %s18052_s24 = smov 124  }
 0x515   : > { %v3662_v48 = vpop.permute.xlu0 %3661  ;;  %v3440_v62 = vpop.permute.xlu1 %3439 }
 0x516   : > { %v3470_v1 = vsel %vm3469_vm2, %v3438_v50, %v3440_v62  ;;  %v3471_v22 = vsel %vm3469_vm2, %v3440_v62, %v3442_v19 }
 0x517   : > { %3447 = vrot.lane.b32.xlu0 %v14147_v29, %s17998_s12  ;;  %4648 = vrot.lane.b32.xlu1 %v14139_v13, %s18041_s16  ;;  %v11872_v46 = vpack.c.bf16 %v3471_v22, %v3361_v45 }
 0x519   : > { %v3658_v63 = vpop.permute.xlu0 %3657  ;;  %v3328_v23 = vpop.permute.xlu1 %3327  ;;  %11873 = vmatprep.subr.bf16.mxu0 %v11872_v46 }
 0x51a   : > { %v3360_v14 = vsel %vm3359_vm1, %v3328_v23, %v3330_v47 }
 0x51b   : > { %3341 = vrot.lane.b32.xlu0 %v14149_v20, %s18000_s3  ;;  %4646 = vrot.lane.b32.xlu1 %v14141_v61, %s18041_s16  ;;  %v11874_v34 = vpack.c.bf16 %v3470_v1, %v3360_v14 }
 0x51d   : > { %v14347_v30 = vpop.permute.xlu0 %3555  ;;  %v3334_v52 = vpop.permute.xlu1 %3333  ;;  %11875 = vmatpush1.bf16.msra.mxu0 %v11874_v34 }
 0x51e   : > { %v3362_v2 = vsel %vm3359_vm1, %v3332_v56, %v3334_v52  ;;  %v3363_v13 = vsel %vm3359_vm1, %v3334_v52, %v14310_v27 }
 0x51f   : > { %3451 = vrot.lane.b32.xlu0 %v14149_v20, %s17998_s12  ;;  %3229 = vrot.lane.b32.xlu1 %v14151_v57, %s17996_s13 }
 0x521   : > { %v14356_v53 = vpop.permute.xlu0 %3665  ;;  %v3444_v6 = vpop.permute.xlu1 %3443 }
 0x522   : > { %v3472_v61 = vsel %vm3469_vm2, %v3442_v19, %v3444_v6  ;;  %v3473_v12 = vsel %vm3469_vm2, %v3444_v6, %v14317_v7 }
 0x523   : > { %3557 = vrot.lane.b32.xlu0 %v14147_v29, %s18052_s24  ;;  %4654 = vrot.lane.b32.xlu1 %v14143_v17, %s18041_s16  ;;  %v11904_v51 = vpack.c.bf16 %v3473_v12, %v3363_v13  ;;  %v11906_v5 = vpack.c.bf16 %v3472_v61, %v3362_v2 }
 0x525   : > { %v14365_v15 = vpop.permute.xlu0 %3771  ;;  %v3550_v56 = vpop.permute.xlu1 %3549  ;;  %11905 = vmatprep.subr.bf16.mxu1 %v11904_v51 }
 0x526   : > { %v3581_v16 = vsel %vm3579_vm3, %v3550_v56, %v14329_v44  ;;  %11907 = vmatpush1.bf16.msra.mxu1 %v11906_v5 }
 0x527   : > { %3667 = vrot.lane.b32.xlu0 %v14147_v29, %s18053_s26  ;;  %3233 = vrot.lane.b32.xlu1 %v14161_v3, %s17996_s13  ;;  %s18054_s13 = smov 121  }
 0x529   : > { %v3881_v19 = vpop.permute.xlu0 %3880  ;;  %v3660_v17 = vpop.permute.xlu1 %3659 }
 0x52a   : > { %v3690_v49 = vsel %vm3689_vm4, %v3658_v63, %v3660_v17  ;;  %v3691_v9 = vsel %vm3689_vm4, %v3660_v17, %v3662_v48 }
 0x52b   : > { %3561 = vrot.lane.b32.xlu0 %v14149_v20, %s18052_s24  ;;  %3339 = vrot.lane.b32.xlu1 %v14151_v57, %s18000_s3  ;;  %v11876_v55 = vpack.c.bf16 %v3691_v9, %v3581_v16 }
 0x52d   : > { %v3877_v50 = vpop.permute.xlu0 %3876  ;;  %v3548_v40 = vpop.permute.xlu1 %3547  ;;  %11877 = vmatprep.subr.bf16.mxu0 %v11876_v55 }
 0x52e   : > { %v3580_v32 = vsel %vm3579_vm3, %v3548_v40, %v3550_v56 }
 0x52f   : > { %3671 = vrot.lane.b32.xlu0 %v14149_v20, %s18053_s26  ;;  %3449 = vrot.lane.b32.xlu1 %v14151_v57, %s17998_s12  ;;  %v11878_v31 = vpack.c.bf16 %v3690_v49, %v3580_v32 }
 0x531   : > { %v14384_v60 = vpop.permute.xlu0 %3775  ;;  %v3554_v37 = vpop.permute.xlu1 %3553  ;;  %11879 = vmatpush1.bf16.msra.mxu0 %v11878_v31 }
 0x532   : > { %v3582_v28 = vsel %vm3579_vm3, %v14329_v44, %v3554_v37  ;;  %v3583_v42 = vsel %vm3579_vm3, %v3554_v37, %v14347_v30 }
 0x533   : > { %3777 = vrot.lane.b32.xlu0 %v14147_v29, %s18050_s2  ;;  %3343 = vrot.lane.b32.xlu1 %v14161_v3, %s18000_s3  ;;  %s18056_s3 = smov 115  }
 0x535   : > { %v14394_v33 = vpop.permute.xlu0 %3884  ;;  %v3664_v47 = vpop.permute.xlu1 %3663 }
 0x536   : > { %v3692_v45 = vsel %vm3689_vm4, %v3662_v48, %v3664_v47  ;;  %v3693_v62 = vsel %vm3689_vm4, %v3664_v47, %v14356_v53 }
 0x537   : > { %3886 = vrot.lane.b32.xlu0 %v14147_v29, %s18054_s13  ;;  %3453 = vrot.lane.b32.xlu1 %v14161_v3, %s17998_s12  ;;  %v11908_v44 = vpack.c.bf16 %v3693_v62, %v3583_v42  ;;  %v11910_v1 = vpack.c.bf16 %v3692_v45, %v3582_v28  ;;  %s18055_s12 = smov 116  }
 0x539   : > { %v14403_v22 = vpop.permute.xlu0 %3990  ;;  %v3770_v46 = vpop.permute.xlu1 %3769  ;;  %11909 = vmatprep.subr.bf16.mxu1 %v11908_v44 }
 0x53a   : > { %v3800_v63 = vsel %vm1969_vm13, %v3770_v46, %v14365_v15  ;;  %11911 = vmatpush1.bf16.msra.mxu1 %v11910_v1 }
 0x53b   : > { %3781 = vrot.lane.b32.xlu0 %v14149_v20, %s18050_s2  ;;  %3559 = vrot.lane.b32.xlu1 %v14151_v57, %s18052_s24 }
 0x53d   : > { %v4101_v48 = vpop.permute.xlu0 %4100  ;;  %v3879_v23 = vpop.permute.xlu1 %3878 }
 0x53e   : > { %v3909_v14 = vsel %vm3908_vm5, %v3877_v50, %v3879_v23  ;;  %v3910_v34 = vsel %vm3908_vm5, %v3879_v23, %v3881_v19 }
 0x53f   : > { %3890 = vrot.lane.b32.xlu0 %v14149_v20, %s18054_s13  ;;  %3669 = vrot.lane.b32.xlu1 %v14151_v57, %s18053_s26  ;;  %v11880_v52 = vpack.c.bf16 %v3910_v34, %v3800_v63 }
 0x541   : > { %v4097_v2 = vpop.permute.xlu0 %4096  ;;  %v3768_v13 = vpop.permute.xlu1 %3767  ;;  %11881 = vmatprep.subr.bf16.mxu0 %v11880_v52 }
 0x542   : > { %v3799_v6 = vsel %vm1969_vm13, %v3768_v13, %v3770_v46 }
 0x543   : > { %3996 = vrot.lane.b32.xlu0 %v14147_v29, %s18008_s28  ;;  %3563 = vrot.lane.b32.xlu1 %v14161_v3, %s18052_s24  ;;  %v11882_v61 = vpack.c.bf16 %v3909_v14, %v3799_v6 }
 0x545   : > { %v14422_v12 = vpop.permute.xlu0 %3994  ;;  %v3774_v51 = vpop.permute.xlu1 %3773  ;;  %11883 = vmatpush1.bf16.msra.mxu0 %v11882_v61 }
 0x546   : > { %v3801_v5 = vsel %vm1969_vm13, %v14365_v15, %v3774_v51  ;;  %v3802_v56 = vsel %vm1969_vm13, %v3774_v51, %v14384_v60 }
 0x547   : > { %4106 = vrot.lane.b32.xlu0 %v14147_v29, %s18002_s1  ;;  %3673 = vrot.lane.b32.xlu1 %v14161_v3, %s18053_s26 }
 0x549   : > { %v14432_v16 = vpop.permute.xlu0 %4104  ;;  %v3883_v17 = vpop.permute.xlu1 %3882 }
 0x54a   : > { %v3911_v49 = vsel %vm3908_vm5, %v3881_v19, %v3883_v17  ;;  %v3912_v9 = vsel %vm3908_vm5, %v3883_v17, %v14394_v33 }
 0x54b   : > { %4000 = vrot.lane.b32.xlu0 %v14149_v20, %s18008_s28  ;;  %3779 = vrot.lane.b32.xlu1 %v14151_v57, %s18050_s2  ;;  %v11912_v15 = vpack.c.bf16 %v3912_v9, %v3802_v56  ;;  %v11914_v55 = vpack.c.bf16 %v3911_v49, %v3801_v5 }
 0x54d   : > { %v14441_v50 = vpop.permute.xlu0 %4210  ;;  %v3989_v40 = vpop.permute.xlu1 %3988  ;;  %11913 = vmatprep.subr.bf16.mxu1 %v11912_v15 }
 0x54e   : > { %v4020_v32 = vsel %vm4018_vm6, %v3989_v40, %v14403_v22  ;;  %11915 = vmatpush1.bf16.msra.mxu1 %v11914_v55 }
 0x54f   : > { %4110 = vrot.lane.b32.xlu0 %v14149_v20, %s18002_s1  ;;  %3888 = vrot.lane.b32.xlu1 %v14151_v57, %s18054_s13 }
 0x551   : > { %v4321_v19 = vpop.permute.xlu0 %4320  ;;  %v4099_v31 = vpop.permute.xlu1 %4098 }
 0x552   : > { %v4129_v37 = vsel %vm4128_vm7, %v4097_v2, %v4099_v31  ;;  %v4130_v28 = vsel %vm4128_vm7, %v4099_v31, %v4101_v48 }
 0x553   : > { %4216 = vrot.lane.b32.xlu0 %v14147_v29, %s18006_s4  ;;  %3783 = vrot.lane.b32.xlu1 %v14161_v3, %s18050_s2  ;;  %v11884_v42 = vpack.c.bf16 %v4130_v28, %v4020_v32 }
 0x555   : > { %v4317_v47 = vpop.permute.xlu0 %4316  ;;  %v3987_v45 = vpop.permute.xlu1 %3986  ;;  %11885 = vmatprep.subr.bf16.mxu0 %v11884_v42 }
 0x556   : > { %v4019_v62 = vsel %vm4018_vm6, %v3987_v45, %v3989_v40 }
 0x557   : > { %4326 = vrot.lane.b32.xlu0 %v14147_v29, %s18004_s14  ;;  %3892 = vrot.lane.b32.xlu1 %v14161_v3, %s18054_s13  ;;  %v11886_v44 = vpack.c.bf16 %v4129_v37, %v4019_v62 }
 0x559   : > { %v14460_v1 = vpop.permute.xlu0 %4214  ;;  %v3993_v46 = vpop.permute.xlu1 %3992  ;;  %11887 = vmatpush1.bf16.msra.mxu0 %v11886_v44 }
 0x55a   : > { %v4021_v63 = vsel %vm4018_vm6, %v14403_v22, %v3993_v46  ;;  %v4022_v23 = vsel %vm4018_vm6, %v3993_v46, %v14422_v12 }
 0x55b   : > { %4220 = vrot.lane.b32.xlu0 %v14149_v20, %s18006_s4  ;;  %3998 = vrot.lane.b32.xlu1 %v14151_v57, %s18008_s28 }
 0x55d   : > { %v14470_v14 = vpop.permute.xlu0 %4324  ;;  %v4103_v34 = vpop.permute.xlu1 %4102 }
 0x55e   : > { %v4131_v52 = vsel %vm4128_vm7, %v4101_v48, %v4103_v34  ;;  %v4132_v2 = vsel %vm4128_vm7, %v4103_v34, %v14432_v16 }
 0x55f   : > { %4330 = vrot.lane.b32.xlu0 %v14149_v20, %s18004_s14  ;;  %4108 = vrot.lane.b32.xlu1 %v14151_v57, %s18002_s1  ;;  %v11916_v22 = vpack.c.bf16 %v4132_v2, %v4022_v23  ;;  %v11918_v13 = vpack.c.bf16 %v4131_v52, %v4021_v63 }
 0x561   : > { %v14479_v6 = vpop.permute.xlu0 %4430  ;;  %v4209_v61 = vpop.permute.xlu1 %4208  ;;  %11917 = vmatprep.subr.bf16.mxu1 %v11916_v22 }
 0x562   : > { %v4240_v51 = vsel %vm4238_vm8, %v4209_v61, %v14441_v50  ;;  %11919 = vmatpush1.bf16.msra.mxu1 %v11918_v13 }
 0x563   : > { %4436 = vrot.lane.b32.xlu0 %v14147_v29, %s18055_s12  ;;  %4002 = vrot.lane.b32.xlu1 %v14161_v3, %s18008_s28 }
 0x565   : > { %v14487_v48 = vpop.permute.xlu0 %4540  ;;  %v4319_v5 = vpop.permute.xlu1 %4318 }
 0x566   : > { %v4349_v56 = vsel %vm4348_vm10, %v4317_v47, %v4319_v5  ;;  %v4350_v17 = vsel %vm4348_vm10, %v4319_v5, %v4321_v19 }
 0x567   : > { %4546 = vrot.lane.b32.xlu0 %v14147_v29, %s18056_s3  ;;  %4112 = vrot.lane.b32.xlu1 %v14161_v3, %s18002_s1  ;;  %v11888_v49 = vpack.c.bf16 %v4350_v17, %v4240_v51  ;;  %s18057_s1 = smov 127  }
 0x569   : > { %v4537_v9 = vpop.permute.xlu0 %4536  ;;  %v4207_v15 = vpop.permute.xlu1 %4206  ;;  %11889 = vmatprep.subr.bf16.mxu0 %v11888_v49 }
 0x56a   : > { %v4239_v55 = vsel %vm4238_vm8, %v4207_v15, %v4209_v61 }
 0x56b   : > { %4440 = vrot.lane.b32.xlu0 %v14149_v20, %s18055_s12  ;;  %4218 = vrot.lane.b32.xlu1 %v14151_v57, %s18006_s4  ;;  %v11890_v40 = vpack.c.bf16 %v4349_v56, %v4239_v55 }
 0x56d   : > { %v14500_v32 = vpop.permute.xlu0 %4434  ;;  %v4213_v31 = vpop.permute.xlu1 %4212  ;;  %11891 = vmatpush1.bf16.msra.mxu0 %v11890_v40 }
 0x56e   : > { %v4241_v37 = vsel %vm4238_vm8, %v14441_v50, %v4213_v31  ;;  %v4242_v28 = vsel %vm4238_vm8, %v4213_v31, %v14460_v1 }
 0x56f   : > { %4550 = vrot.lane.b32.xlu0 %v14149_v20, %s18056_s3  ;;  %4328 = vrot.lane.b32.xlu1 %v14151_v57, %s18004_s14 }
 0x571   : > { %v14510_v42 = vpop.permute.xlu0 %4544  ;;  %v4323_v47 = vpop.permute.xlu1 %4322 }
 0x572   : > { %v4351_v45 = vsel %vm4348_vm10, %v4321_v19, %v4323_v47  ;;  %v4352_v62 = vsel %vm4348_vm10, %v4323_v47, %v14470_v14 }
 0x573   : > { %4656 = vrot.lane.b32.xlu0 %v14147_v29, %s18041_s16  ;;  %4222 = vrot.lane.b32.xlu1 %v14161_v3, %s18006_s4  ;;  %v11920_v50 = vpack.c.bf16 %v4352_v62, %v4242_v28  ;;  %v11922_v44 = vpack.c.bf16 %v4351_v45, %v4241_v37  ;;  %s18059_s4 = smov 125   ;;  %v4950_v28 = vld [vmem:[#allocation2 + $0x710] sm:$0xff] }
 0x575   : > { %v4651_v46 = vpop.permute.xlu0 %4650  ;;  %v4429_v63 = vpop.permute.xlu1 %4428  ;;  %11921 = vmatprep.subr.bf16.mxu1 %v11920_v50  ;;  %v4949_v50 = vld [vmem:[#allocation2 + $0x708] sm:$0xff] }
 0x576   : > { %v4460_v23 = vsel %vm4458_vm11, %v4429_v63, %v14479_v6  ;;  %11923 = vmatpush1.bf16.msra.mxu1 %v11922_v44 }
 0x577   : > { %3235 = vrot.lane.b32.xlu0 %v14163_v38, %s18057_s1  ;;  %4332 = vrot.lane.b32.xlu1 %v14161_v3, %s18004_s14  ;;  %s18058_s14 = smov 126  }
 0x579   : > { %v3228_v29 = vpop.permute.xlu0 %3227  ;;  %v4539_v19 = vpop.permute.xlu1 %4538 }
 0x57a   : > { %v14527_v34 = vsel %vm3249_vm0, %v14319_v41, %v3228_v29  ;;  %v4569_v52 = vsel %vm4568_vm12, %v4537_v9, %v4539_v19  ;;  %v4570_v2 = vsel %vm4568_vm12, %v4539_v19, %v14487_v48 }
 0x57b   : > { %4660 = vrot.lane.b32.xlu0 %v14149_v20, %s18041_s16  ;;  %4438 = vrot.lane.b32.xlu1 %v14151_v57, %s18055_s12  ;;  %v11892_v22 = vpack.c.bf16 %v4570_v2, %v4460_v23 }
 0x57d   : > { %v4653_v13 = vpop.permute.xlu0 %4652  ;;  %v4427_v61 = vpop.permute.xlu1 %4426  ;;  %11893 = vmatprep.subr.bf16.mxu0 %v11892_v22 }
 0x57e   : > { %v14537_v51 = vsel %vm1529_vm9, %v4651_v46, %v4653_v13  ;;  %v4459_v41 = vsel %vm4458_vm11, %v4427_v61, %v4429_v63 }
 0x57f   : > { %3239 = vrot.lane.b32.xlu0 %v14165_v58, %s18057_s1  ;;  %4548 = vrot.lane.b32.xlu1 %v14151_v57, %s18056_s3  ;;  %v11894_v5 = vpack.c.bf16 %v4569_v52, %v4459_v41  ;;  %v14591_v52 = vld [vmem:[%s13090_s15] sm:$0xff]  ;;  %v11934_v41 = vpack.c.bf16 %v14527_v34, %v14180_v59 }
 0x581   : > { %v14544_v20 = vpop.permute.xlu0 %3231  ;;  %v4433_v56 = vpop.permute.xlu1 %4432  ;;  %11895 = vmatpush1.bf16.msra.mxu0 %v11894_v5  ;;  %v4952_v5 = vld [vmem:[#allocation2 + $0x720] sm:$0xff] }
 0x582   : > { %v4461_v17 = vsel %vm4458_vm11, %v14479_v6, %v4433_v56  ;;  %v4462_v49 = vsel %vm4458_vm11, %v4433_v56, %v14500_v32 }
 0x583   : > { %3345 = vrot.lane.b32.xlu0 %v14163_v38, %s18058_s14  ;;  %4442 = vrot.lane.b32.xlu1 %v14161_v3, %s18055_s12 }
 0x585   : > { %v14554_v9 = vpop.permute.xlu0 %3337  ;;  %v4543_v15 = vpop.permute.xlu1 %4542 }
 0x586   : > { %v14559_v55 = vsel %vm3359_vm1, %v14310_v27, %v14554_v9  ;;  %v4571_v6 = vsel %vm4568_vm12, %v14487_v48, %v4543_v15  ;;  %v4572_v40 = vsel %vm4568_vm12, %v4543_v15, %v14510_v42 }
 0x587   : > { %3455 = vrot.lane.b32.xlu0 %v14163_v38, %s18059_s4  ;;  %4552 = vrot.lane.b32.xlu1 %v14161_v3, %s18056_s3  ;;  %v11924_v31 = vpack.c.bf16 %v4572_v40, %v4462_v49  ;;  %v11926_v37 = vpack.c.bf16 %v4571_v6, %v4461_v17 }
 0x589   : > { %v14569_v47 = vpop.permute.xlu0 %3447  ;;  %v4649_v45 = vpop.permute.xlu1 %4648  ;;  %11925 = vmatprep.subr.bf16.mxu1 %v11924_v31 }
 0x58a   : > { %v14574_v27 = vsel %vm3469_vm2, %v14317_v7, %v14569_v47  ;;  %v4679_v48 = vsel %vm1529_vm9, %v4649_v45, %v4651_v46  ;;  %11927 = vmatpush1.bf16.msra.mxu1 %v11926_v37 }
 0x58b   : > { %3349 = vrot.lane.b32.xlu0 %v14165_v58, %s18058_s14  ;;  %4658 = vrot.lane.b32.xlu1 %v14151_v57, %s18041_s16  ;;  %v11896_v62 = vpack.c.bf16 %v4950_v28, %v4679_v48 }
 0x58d   : > { %v14581_v44 = vpop.permute.xlu0 %3341  ;;  %v4647_v63 = vpop.permute.xlu1 %4646  ;;  %11897 = vmatprep.subr.bf16.mxu0 %v11896_v62 }
 0x58e   : > { %v4678_v23 = vsel %vm1529_vm9, %v4647_v63, %v4649_v45  ;;  %v11938_v45 = vpack.c.bf16 %v14574_v27, %v14559_v55 }
 0x58f   : > { %3459 = vrot.lane.b32.xlu0 %v14165_v58, %s18059_s4  ;;  %3237 = vrot.lane.b32.xlu1 %v14167_v54, %s18057_s1  ;;  %v11898_v7 = vpack.c.bf16 %v4949_v50, %v4678_v23 }
 0x591   : > { %v14588_v46 = vpop.permute.xlu0 %3451  ;;  %v3230_v19 = vpop.permute.xlu1 %3229  ;;  %11899 = vmatpush1.bf16.msra.mxu0 %v11898_v7 }
 0x592   : > { %v3255_v2 = vsel %vm3249_vm0, %v3228_v29, %v3230_v19  ;;  %v3256_v22 = vsel %vm3249_vm0, %v3230_v19, %v14544_v20  ;;  %v4951_v29 = vld [vmem:[#allocation2 + $0x718] sm:$0xff] }
 0x593   : > { %3565 = vrot.lane.b32.xlu0 %v14163_v38, %s18052_s24  ;;  %4662 = vrot.lane.b32.xlu1 %v14161_v3, %s18041_s16  ;;  %v11932_v61 = vpack.c.bf16 %v3255_v2, %v14186_v24  ;;  %v11930_v24 = vpack.c.bf16 %v4951_v29, %v14537_v51  ;;  %v11966_v6 = vpack.c.bf16 %v3256_v22, %v14151_v57  ;;  %v14681_v19 = vld [vmem:[#allocation3 + $0x58] sm:$0xff] }
 0x594   : > { %5029 = vmatmul.mubr.f32.vlgmr.msra.gmra.mrb[8].mxu0 %v14591_v52 }
 0x595   : > { %v3558_v56 = vpop.permute.xlu0 %3557  ;;  %v14604_v17 = vpop.permute.xlu1 %4654  ;;  %11933 = vmatprep.subr.bf16.mxu0 %v11932_v61  ;;  %5170 = vmatprep.mubr.f32.mxu0 %v12880_v25  ;;  %v14691_v61 = vld [vmem:[#allocation3 + $0x48] sm:$0xff] }
 0x596   : > { %v14609_v49 = vsel %vm3579_vm3, %v14347_v30, %v3558_v56  ;;  %v4681_v3 = vsel %vm1529_vm9, %v4653_v13, %v14604_v17  ;;  %11935 = vmatpush1.bf16.msra.mxu0 %v11934_v41  ;;  %v14695_v41 = vld [vmem:[#allocation3 + $0x60] sm:$0xff] }
 0x597   : > { %3675 = vrot.lane.b32.xlu0 %v14163_v38, %s18053_s26  ;;  %3241 = vrot.lane.b32.xlu1 %v14169_v8, %s18057_s1  ;;  %v11928_v59 = vpack.c.bf16 %v4952_v5, %v4681_v3 }
 0x599   : > { %v3668_v34 = vpop.permute.xlu0 %3667  ;;  %v14618_v15 = vpop.permute.xlu1 %3233  ;;  %11929 = vmatprep.subr.bf16.mxu1 %v11928_v59 }
 0x59a   : > { %v14622_v30 = vsel %vm3689_vm4, %v14356_v53, %v3668_v34  ;;  %v3257_v13 = vsel %vm3249_vm0, %v14544_v20, %v14618_v15  ;;  %11931 = vmatpush1.bf16.msra.mxu1 %v11930_v24 }
 0x59b   : > { %3569 = vrot.lane.b32.xlu0 %v14165_v58, %s18052_s24  ;;  %3347 = vrot.lane.b32.xlu1 %v14167_v54, %s18058_s14  ;;  %v11964_v51 = vpack.c.bf16 %v3257_v13, %v14188_v4 }
 0x59d   : > { %v3562_v40 = vpop.permute.xlu0 %3561  ;;  %v3340_v31 = vpop.permute.xlu1 %3339  ;;  %11965 = vmatprep.subr.bf16.mxu1 %v11964_v51  ;;  %5100 = vmatmul.mubr.f32.vlgmr.msra.gmra.mrb[8].mxu1 %v14591_v52 }
 0x59e   : > { %v3365_v53 = vsel %vm3359_vm1, %v14554_v9, %v3340_v31  ;;  %v3366_v20 = vsel %vm3359_vm1, %v3340_v31, %v14581_v44  ;;  %11967 = vmatpush1.bf16.msra.mxu1 %v11966_v6  ;;  %5241 = vmatprep.mubr.f32.mxu1 %v12880_v25 }
 0x59f   : > { %3679 = vrot.lane.b32.xlu0 %v14165_v58, %s18053_s26  ;;  %3457 = vrot.lane.b32.xlu1 %v14167_v54, %s18059_s4 }
 0x5a1   : > { %v3672_v57 = vpop.permute.xlu0 %3671  ;;  %v3450_v4 = vpop.permute.xlu1 %3449 }
 0x5a2   : > { %v3475_v37 = vsel %vm3469_vm2, %v14569_v47, %v3450_v4  ;;  %v3476_v9 = vsel %vm3469_vm2, %v3450_v4, %v14588_v46 }
 0x5a3   : > { %3785 = vrot.lane.b32.xlu0 %v14163_v38, %s18050_s2  ;;  %3351 = vrot.lane.b32.xlu1 %v14169_v8, %s18058_s14  ;;  %v11936_v28 = vpack.c.bf16 %v3475_v37, %v3365_v53 }
 0x5a5   : > { %v3778_v48 = vpop.permute.xlu0 %3777  ;;  %v14653_v62 = vpop.permute.xlu1 %3343  ;;  %11937 = vmatprep.subr.bf16.mxu0 %v11936_v28 }
 0x5a6   : > { %v14657_v47 = vsel %vm1969_vm13, %v14384_v60, %v3778_v48  ;;  %v3367_v50 = vsel %vm3359_vm1, %v14581_v44, %v14653_v62  ;;  %11939 = vmatpush1.bf16.msra.mxu0 %v11938_v45  ;;  %v11970_v44 = vpack.c.bf16 %v3476_v9, %v3366_v20 }
 0x5a7   : > { %3894 = vrot.lane.b32.xlu0 %v14163_v38, %s18054_s13  ;;  %3461 = vrot.lane.b32.xlu1 %v14169_v8, %s18059_s4 }
 0x5a9   : > { %v3887_v55 = vpop.permute.xlu0 %3886  ;;  %v14666_v27 = vpop.permute.xlu1 %3453 }
 0x5aa   : > { %v14670_v63 = vsel %vm3908_vm5, %v14394_v33, %v3887_v55  ;;  %v3477_v60 = vsel %vm3469_vm2, %v14588_v46, %v14666_v27  ;;  %v14685_v46 = vld [vmem:[#allocation3 + $0x50] sm:$0xff] }
 0x5ab   : > { %3789 = vrot.lane.b32.xlu0 %v14165_v58, %s18050_s2  ;;  %3567 = vrot.lane.b32.xlu1 %v14167_v54, %s18052_s24  ;;  %v11968_v38 = vpack.c.bf16 %v3477_v60, %v3367_v50  ;;  %v11946_v9 = vpack.c.bf16 %v14670_v63, %v14657_v47 }
 0x5ad   : > { %v3782_v8 = vpop.permute.xlu0 %3781  ;;  %v3560_v23 = vpop.permute.xlu1 %3559  ;;  %11969 = vmatprep.subr.bf16.mxu1 %v11968_v38 }
 0x5ae   : > { %v3585_v7 = vsel %vm3579_vm3, %v3558_v56, %v3560_v23  ;;  %v3586_v33 = vsel %vm3579_vm3, %v3560_v23, %v3562_v40  ;;  %11971 = vmatpush1.bf16.msra.mxu1 %v11970_v44  ;;  %v11942_v56 = vpack.c.bf16 %v14622_v30, %v14609_v49 }
 0x5af   : > { %3898 = vrot.lane.b32.xlu0 %v14681_v19, %s18054_s13  ;;  %3677 = vrot.lane.b32.xlu1 %v14685_v46, %s18053_s26 }
 0x5b1   : > { %v3891_v58 = vpop.permute.xlu0 %3890  ;;  %v3670_v54 = vpop.permute.xlu1 %3669 }
 0x5b2   : > { %v3695_v2 = vsel %vm3689_vm4, %v3668_v34, %v3670_v54  ;;  %v3696_v22 = vsel %vm3689_vm4, %v3670_v54, %v3672_v57 }
 0x5b3   : > { %4004 = vrot.lane.b32.xlu0 %v14691_v61, %s18008_s28  ;;  %3571 = vrot.lane.b32.xlu1 %v14695_v41, %s18052_s24  ;;  %v11940_v5 = vpack.c.bf16 %v3695_v2, %v3585_v7  ;;  %s18060_s28 = smov 119   ;;  %v11974_v51 = vpack.c.bf16 %v3696_v22, %v3586_v33 }
 0x5b5   : > { %v3997_v29 = vpop.permute.xlu0 %3996  ;;  %v14701_v3 = vpop.permute.xlu1 %3563  ;;  %11941 = vmatprep.subr.bf16.mxu0 %v11940_v5 }
 0x5b6   : > { %v14705_v59 = vsel %vm4018_vm6, %v14422_v12, %v3997_v29  ;;  %v3587_v24 = vsel %vm3579_vm3, %v3562_v40, %v14701_v3  ;;  %11943 = vmatpush1.bf16.msra.mxu0 %v11942_v56 }
 0x5b7   : > { %4114 = vrot.lane.b32.xlu0 %v14691_v61, %s18060_s28  ;;  %3681 = vrot.lane.b32.xlu1 %v14695_v41, %s18053_s26 }
 0x5b9   : > { %v4107_v34 = vpop.permute.xlu0 %4106  ;;  %v14713_v49 = vpop.permute.xlu1 %3673 }
 0x5ba   : > { %v4133_v30 = vsel %vm4128_vm7, %v14432_v16, %v4107_v34  ;;  %v3697_v12 = vsel %vm3689_vm4, %v3672_v57, %v14713_v49 }
 0x5bb   : > { %4008 = vrot.lane.b32.xlu0 %v14681_v19, %s18061_s5  ;;  %3787 = vrot.lane.b32.xlu1 %v14685_v46, %s18050_s2  ;;  %v11972_v13 = vpack.c.bf16 %v3697_v12, %v3587_v24  ;;  %v11950_v22 = vpack.c.bf16 %v4133_v30, %v14705_v59 }
 0x5bd   : > { %v4001_v6 = vpop.permute.xlu0 %4000  ;;  %v3780_v40 = vpop.permute.xlu1 %3779  ;;  %11973 = vmatprep.subr.bf16.mxu1 %v11972_v13 }
 0x5be   : > { %v3804_v31 = vsel %vm1969_vm13, %v3778_v48, %v3780_v40  ;;  %v3805_v53 = vsel %vm1969_vm13, %v3780_v40, %v3782_v8  ;;  %11975 = vmatpush1.bf16.msra.mxu1 %v11974_v51 }
 0x5bf   : > { %4118 = vrot.lane.b32.xlu0 %v14681_v19, %s18060_s28  ;;  %3896 = vrot.lane.b32.xlu1 %v14685_v46, %s18054_s13 }
 0x5c1   : > { %v4111_v16 = vpop.permute.xlu0 %4110  ;;  %v3889_v20 = vpop.permute.xlu1 %3888 }
 0x5c2   : > { %v3914_v57 = vsel %vm3908_vm5, %v3887_v55, %v3889_v20  ;;  %v3915_v4 = vsel %vm3908_vm5, %v3889_v20, %v3891_v58 }
 0x5c3   : > { %4224 = vrot.lane.b32.xlu0 %v14691_v61, %s18062_s6  ;;  %3791 = vrot.lane.b32.xlu1 %v14695_v41, %s18050_s2  ;;  %v11944_v37 = vpack.c.bf16 %v3914_v57, %v3804_v31  ;;  %v11978_v38 = vpack.c.bf16 %v3915_v4, %v3805_v53 }
 0x5c5   : > { %v4217_v28 = vpop.permute.xlu0 %4216  ;;  %v14737_v45 = vpop.permute.xlu1 %3783  ;;  %11945 = vmatprep.subr.bf16.mxu0 %v11944_v37 }
 0x5c6   : > { %v14741_v48 = vsel %vm4238_vm8, %v14460_v1, %v4217_v28  ;;  %v3806_v50 = vsel %vm1969_vm13, %v3782_v8, %v14737_v45  ;;  %11947 = vmatpush1.bf16.msra.mxu0 %v11946_v9 }
 0x5c7   : > { %4334 = vrot.lane.b32.xlu0 %v14691_v61, %s18063_s7  ;;  %3900 = vrot.lane.b32.xlu1 %v14695_v41, %s18054_s13 }
 0x5c9   : > { %v4327_v55 = vpop.permute.xlu0 %4326  ;;  %v14749_v47 = vpop.permute.xlu1 %3892 }
 0x5ca   : > { %v4353_v63 = vsel %vm4348_vm10, %v14470_v14, %v4327_v55  ;;  %v3916_v1 = vsel %vm3908_vm5, %v3891_v58, %v14749_v47 }
 0x5cb   : > { %4228 = vrot.lane.b32.xlu0 %v14681_v19, %s18062_s6  ;;  %4006 = vrot.lane.b32.xlu1 %v14685_v46, %s18061_s5  ;;  %v11976_v60 = vpack.c.bf16 %v3916_v1, %v3806_v50  ;;  %v11954_v4 = vpack.c.bf16 %v4353_v63, %v14741_v48 }
 0x5cd   : > { %v4221_v44 = vpop.permute.xlu0 %4220  ;;  %v3999_v8 = vpop.permute.xlu1 %3998  ;;  %11977 = vmatprep.subr.bf16.mxu1 %v11976_v60 }
 0x5ce   : > { %v4024_v23 = vsel %vm4018_vm6, %v3997_v29, %v3999_v8  ;;  %v4025_v7 = vsel %vm4018_vm6, %v3999_v8, %v4001_v6  ;;  %11979 = vmatpush1.bf16.msra.mxu1 %v11978_v38 }
 0x5cf   : > { %4338 = vrot.lane.b32.xlu0 %v14681_v19, %s18063_s7  ;;  %4116 = vrot.lane.b32.xlu1 %v14685_v46, %s18060_s28 }
 0x5d1   : > { %v4331_v14 = vpop.permute.xlu0 %4330  ;;  %v4109_v33 = vpop.permute.xlu1 %4108 }
 0x5d2   : > { %v4134_v58 = vsel %vm4128_vm7, %v4107_v34, %v4109_v33  ;;  %v4135_v54 = vsel %vm4128_vm7, %v4109_v33, %v4111_v16 }
 0x5d3   : > { %4444 = vrot.lane.b32.xlu0 %v14691_v61, %s18055_s12  ;;  %4010 = vrot.lane.b32.xlu1 %v14695_v41, %s18061_s5  ;;  %v11948_v2 = vpack.c.bf16 %v4134_v58, %v4024_v23  ;;  %v11982_v13 = vpack.c.bf16 %v4135_v54, %v4025_v7  ;;  %v14849_v58 = vld [vmem:[#allocation3 + $0x78] sm:$0xff] }
 0x5d5   : > { %v4437_v5 = vpop.permute.xlu0 %4436  ;;  %v14772_v56 = vpop.permute.xlu1 %4002  ;;  %11949 = vmatprep.subr.bf16.mxu0 %v11948_v2 }
 0x5d6   : > { %v14776_v29 = vsel %vm4458_vm11, %v14500_v32, %v4437_v5  ;;  %v4026_v24 = vsel %vm4018_vm6, %v4001_v6, %v14772_v56  ;;  %11951 = vmatpush1.bf16.msra.mxu0 %v11950_v22 }
 0x5d7   : > { %4554 = vrot.lane.b32.xlu0 %v14691_v61, %s18056_s3  ;;  %4120 = vrot.lane.b32.xlu1 %v14695_v41, %s18060_s28 }
 0x5d9   : > { %v4547_v34 = vpop.permute.xlu0 %4546  ;;  %v14784_v59 = vpop.permute.xlu1 %4112 }
 0x5da   : > { %v4573_v30 = vsel %vm4568_vm12, %v14510_v42, %v4547_v34  ;;  %v4136_v32 = vsel %vm4128_vm7, %v4111_v16, %v14784_v59 }
 0x5db   : > { %4448 = vrot.lane.b32.xlu0 %v14681_v19, %s18055_s12  ;;  %4226 = vrot.lane.b32.xlu1 %v14685_v46, %s18062_s6  ;;  %v11980_v12 = vpack.c.bf16 %v4136_v32, %v4026_v24  ;;  %v11958_v54 = vpack.c.bf16 %v4573_v30, %v14776_v29  ;;  %v14878_v32 = vld [vmem:[#allocation3 + $0x70] sm:$0xff] }
 0x5dd   : > { %v4441_v51 = vpop.permute.xlu0 %4440  ;;  %v4219_v6 = vpop.permute.xlu1 %4218  ;;  %11981 = vmatprep.subr.bf16.mxu1 %v11980_v12 }
 0x5de   : > { %v4244_v40 = vsel %vm4238_vm8, %v4217_v28, %v4219_v6  ;;  %v4245_v31 = vsel %vm4238_vm8, %v4219_v6, %v4221_v44  ;;  %11983 = vmatpush1.bf16.msra.mxu1 %v11982_v13 }
 0x5df   : > { %4558 = vrot.lane.b32.xlu0 %v14681_v19, %s18056_s3  ;;  %4336 = vrot.lane.b32.xlu1 %v14685_v46, %s18063_s7 }
 0x5e1   : > { %v4551_v42 = vpop.permute.xlu0 %4550  ;;  %v4329_v53 = vpop.permute.xlu1 %4328 }
 0x5e2   : > { %v4354_v16 = vsel %vm4348_vm10, %v4327_v55, %v4329_v53  ;;  %v4355_v20 = vsel %vm4348_vm10, %v4329_v53, %v4331_v14  ;;  %v14815_v55 = vld [vmem:[#allocation3 + $0x68] sm:$0xff] }
 0x5e3   : > { %4664 = vrot.lane.b32.xlu0 %v14691_v61, %s18041_s16  ;;  %4230 = vrot.lane.b32.xlu1 %v14695_v41, %s18062_s6  ;;  %v11952_v57 = vpack.c.bf16 %v4354_v16, %v4244_v40  ;;  %v11986_v60 = vpack.c.bf16 %v4355_v20, %v4245_v31 }
 0x5e5   : > { %v4657_v37 = vpop.permute.xlu0 %4656  ;;  %v14807_v9 = vpop.permute.xlu1 %4222  ;;  %11953 = vmatprep.subr.bf16.mxu0 %v11952_v57 }
 0x5e6   : > { %v14811_v28 = vsel %vm1529_vm9, %v14604_v17, %v4657_v37  ;;  %v4246_v50 = vsel %vm4238_vm8, %v4221_v44, %v14807_v9  ;;  %11955 = vmatpush1.bf16.msra.mxu0 %v11954_v4 }
 0x5e7   : > { %3243 = vrot.lane.b32.xlu0 %v14815_v55, %s18057_s1  ;;  %4340 = vrot.lane.b32.xlu1 %v14695_v41, %s18063_s7 }
 0x5e9   : > { %v3236_v61 = vpop.permute.xlu0 %3235  ;;  %v14821_v48 = vpop.permute.xlu1 %4332 }
 0x5ea   : > { %v14825_v63 = vsel %vm3249_vm0, %v14618_v15, %v3236_v61  ;;  %v4356_v17 = vsel %vm4348_vm10, %v4331_v14, %v14821_v48 }
 0x5eb   : > { %4668 = vrot.lane.b32.xlu0 %v14681_v19, %s18041_s16  ;;  %4446 = vrot.lane.b32.xlu1 %v14685_v46, %s18055_s12  ;;  %v11984_v1 = vpack.c.bf16 %v4356_v17, %v4246_v50  ;;  %v12742_v17 = vld [vmem:[#allocation2 + $0x40] sm:$0xff] }
 0x5ed   : > { %v14833_v38 = vpop.permute.xlu0 %4660  ;;  %v4439_v44 = vpop.permute.xlu1 %4438  ;;  %11985 = vmatprep.subr.bf16.mxu1 %v11984_v1  ;;  %v4956_v1 = vld [vmem:[#allocation2 + $0x740] sm:$0xff] }
 0x5ee   : > { %v4464_v8 = vsel %vm4458_vm11, %v4437_v5, %v4439_v44  ;;  %v4465_v15 = vsel %vm4458_vm11, %v4439_v44, %v4441_v51  ;;  %11987 = vmatpush1.bf16.msra.mxu1 %v11986_v60 }
 0x5ef   : > { %3353 = vrot.lane.b32.xlu0 %v14815_v55, %s18058_s14  ;;  %4556 = vrot.lane.b32.xlu1 %v14685_v46, %s18056_s3 }
 0x5f1   : > { %v14841_v19 = vpop.permute.xlu0 %3239  ;;  %v4549_v23 = vpop.permute.xlu1 %4548 }
 0x5f2   : > { %v4574_v7 = vsel %vm4568_vm12, %v4547_v34, %v4549_v23  ;;  %v4575_v14 = vsel %vm4568_vm12, %v4549_v23, %v4551_v42 }
 0x5f3   : > { %3463 = vrot.lane.b32.xlu0 %v14815_v55, %s18059_s4  ;;  %4450 = vrot.lane.b32.xlu1 %v14695_v41, %s18055_s12  ;;  %v11956_v33 = vpack.c.bf16 %v4574_v7, %v4464_v8  ;;  %v11990_v13 = vpack.c.bf16 %v4575_v14, %v4465_v15  ;;  %v12743_v14 = vld [vmem:[#allocation2 + $0x58] sm:$0xff] }
 0x5f5   : > { %v14852_v2 = vpop.permute.xlu0 %3345  ;;  %v14854_v22 = vpop.permute.xlu1 %4442  ;;  %11957 = vmatprep.subr.bf16.mxu0 %v11956_v33 }
 0x5f6   : > { %v14859_v5 = vsel %vm3359_vm1, %v14653_v62, %v14852_v2  ;;  %v4466_v24 = vsel %vm4458_vm11, %v4441_v51, %v14854_v22  ;;  %11959 = vmatpush1.bf16.msra.mxu0 %v11958_v54  ;;  %v4954_v51 = vld [vmem:[#allocation2 + $0x730] sm:$0xff] }
 0x5f7   : > { %3247 = vrot.lane.b32.xlu0 %v14849_v58, %s18057_s1  ;;  %4560 = vrot.lane.b32.xlu1 %v14695_v41, %s18056_s3  ;;  %v12744_v54 = vld [vmem:[#allocation2 + $0x50] sm:$0xff] }
 0x5f9   : > { %v14867_v29 = vpop.permute.xlu0 %3455  ;;  %v14869_v34 = vpop.permute.xlu1 %4552 }
 0x5fa   : > { %v14874_v30 = vsel %vm3469_vm2, %v14666_v27, %v14867_v29  ;;  %v4576_v62 = vsel %vm4568_vm12, %v4551_v42, %v14869_v34  ;;  %v4953_v27 = vld [vmem:[#allocation2 + $0x728] sm:$0xff] }
 0x5fb   : > { %3575 = vrot.lane.b32.xlu0 %v14878_v32, %s18052_s24  ;;  %4666 = vrot.lane.b32.xlu1 %v14685_v46, %s18041_s16  ;;  %v11988_v12 = vpack.c.bf16 %v4576_v62, %v4466_v24  ;;  %v11962_v53 = vpack.c.bf16 %v4953_v27, %v14811_v28  ;;  %v11998_v28 = vpack.c.bf16 %v14825_v63, %v12742_v17 }
 0x5fc   : > { %v12002_v27 = vpack.c.bf16 %v14874_v30, %v14859_v5 }
 0x5fd   : > { %v14884_v6 = vpop.permute.xlu0 %3349  ;;  %v4659_v40 = vpop.permute.xlu1 %4658  ;;  %11989 = vmatprep.subr.bf16.mxu1 %v11988_v12 }
 0x5fe   : > { %v4683_v31 = vsel %vm1529_vm9, %v4657_v37, %v4659_v40  ;;  %v4684_v42 = vsel %vm1529_vm9, %v4659_v40, %v14833_v38  ;;  %11991 = vmatpush1.bf16.msra.mxu1 %v11990_v13  ;;  %v12741_v37 = vld [vmem:[#allocation2 + $0x48] sm:$0xff] }
 0x5ff   : > { %3685 = vrot.lane.b32.xlu0 %v14878_v32, %s18053_s26  ;;  %3245 = vrot.lane.b32.xlu1 %v14878_v32, %s18057_s1  ;;  %v11960_v46 = vpack.c.bf16 %v4954_v51, %v4683_v31 }
 0x601   : > { %v14894_v16 = vpop.permute.xlu0 %3459  ;;  %v3238_v20 = vpop.permute.xlu1 %3237  ;;  %11961 = vmatprep.subr.bf16.mxu0 %v11960_v46 }
 0x602   : > { %v3259_v57 = vsel %vm3249_vm0, %v3236_v61, %v3238_v20  ;;  %v3260_v4 = vsel %vm3249_vm0, %v3238_v20, %v14841_v19  ;;  %11963 = vmatpush1.bf16.msra.mxu0 %v11962_v53  ;;  %v4955_v61 = vld [vmem:[#allocation2 + $0x738] sm:$0xff] }
 0x603   : > { %3467 = vrot.lane.b32.xlu0 %v14849_v58, %s18059_s4  ;;  %4670 = vrot.lane.b32.xlu1 %v14695_v41, %s18041_s16  ;;  %v11996_v50 = vpack.c.bf16 %v3259_v57, %v12741_v37  ;;  %v11994_v15 = vpack.c.bf16 %v4955_v61, %v4684_v42  ;;  %v12030_v24 = vpack.c.bf16 %v3260_v4, %v12744_v54 }
 0x605   : > { %v14904_v60 = vpop.permute.xlu0 %3565  ;;  %v14906_v44 = vpop.permute.xlu1 %4662  ;;  %11997 = vmatprep.subr.bf16.mxu0 %v11996_v50  ;;  %5171 = vmatmul.mubr.f32.vlgmr.msra.gmra.mrb[10].mxu0 %v14591_v52 }
 0x606   : > { %v14912_v8 = vsel %vm3579_vm3, %v14701_v3, %v14904_v60  ;;  %v4685_v41 = vsel %vm1529_vm9, %v14833_v38, %v14906_v44  ;;  %11999 = vmatpush1.bf16.msra.mxu0 %v11998_v28  ;;  %5312 = vmatprep.mubr.f32.mxu0 %v12880_v25 }
 0x607   : > { %3795 = vrot.lane.b32.xlu0 %v14878_v32, %s18050_s2  ;;  %3355 = vrot.lane.b32.xlu1 %v14878_v32, %s18058_s14  ;;  %v11992_v63 = vpack.c.bf16 %v4956_v1, %v4685_v41 }
 0x609   : > { %v3676_v23 = vpop.permute.xlu0 %3675  ;;  %v14922_v7 = vpop.permute.xlu1 %3241  ;;  %11993 = vmatprep.subr.bf16.mxu1 %v11992_v63 }
 0x60a   : > { %v14926_v3 = vsel %vm3689_vm4, %v14713_v49, %v3676_v23  ;;  %v3261_v38 = vsel %vm3249_vm0, %v14841_v19, %v14922_v7  ;;  %11995 = vmatpush1.bf16.msra.mxu1 %v11994_v15 }
 0x60b   : > { %3904 = vrot.lane.b32.xlu0 %v14878_v32, %s18054_s13  ;;  %3465 = vrot.lane.b32.xlu1 %v14878_v32, %s18059_s4  ;;  %v12028_v33 = vpack.c.bf16 %v3261_v38, %v12743_v14 }
 0x60d   : > { %v3570_v62 = vpop.permute.xlu0 %3569  ;;  %v3348_v12 = vpop.permute.xlu1 %3347  ;;  %12029 = vmatprep.subr.bf16.mxu1 %v12028_v33  ;;  %5242 = vmatmul.mubr.f32.vlgmr.msra.gmra.mrb[10].mxu1 %v14591_v52 }
 0x60e   : > { %v3369_v49 = vsel %vm3359_vm1, %v14852_v2, %v3348_v12  ;;  %v3370_v19 = vsel %vm3359_vm1, %v3348_v12, %v14884_v6  ;;  %12031 = vmatpush1.bf16.msra.mxu1 %v12030_v24  ;;  %5383 = vmatprep.mubr.f32.mxu1 %v12880_v25 }
 0x60f   : > { %3687 = vrot.lane.b32.xlu0 %v14849_v58, %s18053_s26  ;;  %3573 = vrot.lane.b32.xlu1 %v14815_v55, %s18052_s24 }
 0x611   : > { %v3680_v13 = vpop.permute.xlu0 %3679  ;;  %v3458_v51 = vpop.permute.xlu1 %3457 }
 0x612   : > { %v3479_v52 = vsel %vm3469_vm2, %v14867_v29, %v3458_v51  ;;  %v3480_v2 = vsel %vm3469_vm2, %v3458_v51, %v14894_v16 }
 0x613   : > { %4014 = vrot.lane.b32.xlu0 %v14878_v32, %s18061_s5  ;;  %3683 = vrot.lane.b32.xlu1 %v14815_v55, %s18053_s26  ;;  %v12000_v40 = vpack.c.bf16 %v3479_v52, %v3369_v49  ;;  %v12034_v20 = vpack.c.bf16 %v3480_v2, %v3370_v19 }
 0x615   : > { %v3786_v31 = vpop.permute.xlu0 %3785  ;;  %v14955_v42 = vpop.permute.xlu1 %3351  ;;  %12001 = vmatprep.subr.bf16.mxu0 %v12000_v40 }
 0x616   : > { %v14959_v29 = vsel %vm1969_vm13, %v14737_v45, %v3786_v31  ;;  %v3371_v46 = vsel %vm3359_vm1, %v14884_v6, %v14955_v42  ;;  %12003 = vmatpush1.bf16.msra.mxu0 %v12002_v27 }
 0x617   : > { %4124 = vrot.lane.b32.xlu0 %v14878_v32, %s18060_s28  ;;  %3357 = vrot.lane.b32.xlu1 %v14849_v58, %s18058_s14 }
 0x619   : > { %v3895_v5 = vpop.permute.xlu0 %3894  ;;  %v14968_v30 = vpop.permute.xlu1 %3461 }
 0x61a   : > { %v3917_v53 = vsel %vm3908_vm5, %v14749_v47, %v3895_v5  ;;  %v3481_v45 = vsel %vm3469_vm2, %v14894_v16, %v14968_v30 }
 0x61b   : > { %3906 = vrot.lane.b32.xlu0 %v14849_v58, %s18054_s13  ;;  %3793 = vrot.lane.b32.xlu1 %v14815_v55, %s18050_s2  ;;  %v12032_v6 = vpack.c.bf16 %v3481_v45, %v3371_v46  ;;  %v12010_v51 = vpack.c.bf16 %v3917_v53, %v14959_v29 }
 0x61d   : > { %v3790_v57 = vpop.permute.xlu0 %3789  ;;  %v3568_v4 = vpop.permute.xlu1 %3567  ;;  %12033 = vmatprep.subr.bf16.mxu1 %v12032_v6 }
 0x61e   : > { %v3589_v37 = vsel %vm3579_vm3, %v14904_v60, %v3568_v4  ;;  %v3590_v47 = vsel %vm3579_vm3, %v3568_v4, %v3570_v62  ;;  %12035 = vmatpush1.bf16.msra.mxu1 %v12034_v20  ;;  %v12006_v60 = vpack.c.bf16 %v14926_v3, %v14912_v8 }
 0x61f   : > { %4234 = vrot.lane.b32.xlu0 %v14878_v32, %s18062_s6  ;;  %3902 = vrot.lane.b32.xlu1 %v14815_v55, %s18054_s13 }
 0x621   : > { %v3899_v16 = vpop.permute.xlu0 %3898  ;;  %v3678_v50 = vpop.permute.xlu1 %3677 }
 0x622   : > { %v3699_v17 = vsel %vm3689_vm4, %v3676_v23, %v3678_v50  ;;  %v3700_v28 = vsel %vm3689_vm4, %v3678_v50, %v3680_v13 }
 0x623   : > { %4344 = vrot.lane.b32.xlu0 %v14878_v32, %s18063_s7  ;;  %3577 = vrot.lane.b32.xlu1 %v14849_v58, %s18052_s24  ;;  %v12004_v1 = vpack.c.bf16 %v3699_v17, %v3589_v37  ;;  %v12038_v14 = vpack.c.bf16 %v3700_v28, %v3590_v47 }
 0x625   : > { %v4005_v61 = vpop.permute.xlu0 %4004  ;;  %v14994_v41 = vpop.permute.xlu1 %3571  ;;  %12005 = vmatprep.subr.bf16.mxu0 %v12004_v1 }
 0x626   : > { %v14998_v63 = vsel %vm4018_vm6, %v14772_v56, %v4005_v61  ;;  %v3591_v15 = vsel %vm3579_vm3, %v3570_v62, %v14994_v41  ;;  %12007 = vmatpush1.bf16.msra.mxu0 %v12006_v60 }
 0x627   : > { %4126 = vrot.lane.b32.xlu0 %v14849_v58, %s18060_s28  ;;  %4012 = vrot.lane.b32.xlu1 %v14815_v55, %s18061_s5 }
 0x629   : > { %v4115_v23 = vpop.permute.xlu0 %4114  ;;  %v15006_v8 = vpop.permute.xlu1 %3681 }
 0x62a   : > { %v4137_v3 = vsel %vm4128_vm7, %v14784_v59, %v4115_v23  ;;  %v3701_v56 = vsel %vm3689_vm4, %v3680_v13, %v15006_v8 }
 0x62b   : > { %4454 = vrot.lane.b32.xlu0 %v14878_v32, %s18055_s12  ;;  %4122 = vrot.lane.b32.xlu1 %v14815_v55, %s18060_s28  ;;  %v12036_v38 = vpack.c.bf16 %v3701_v56, %v3591_v15  ;;  %v12014_v50 = vpack.c.bf16 %v4137_v3, %v14998_v63 }
 0x62d   : > { %v4009_v33 = vpop.permute.xlu0 %4008  ;;  %v3788_v54 = vpop.permute.xlu1 %3787  ;;  %12037 = vmatprep.subr.bf16.mxu1 %v12036_v38 }
 0x62e   : > { %v3808_v24 = vsel %vm1969_vm13, %v3786_v31, %v3788_v54  ;;  %v3809_v62 = vsel %vm1969_vm13, %v3788_v54, %v3790_v57  ;;  %12039 = vmatpush1.bf16.msra.mxu1 %v12038_v14 }
 0x62f   : > { %4564 = vrot.lane.b32.xlu0 %v14878_v32, %s18056_s3  ;;  %3797 = vrot.lane.b32.xlu1 %v14849_v58, %s18050_s2 }
 0x631   : > { %v4119_v59 = vpop.permute.xlu0 %4118  ;;  %v3897_v12 = vpop.permute.xlu1 %3896 }
 0x632   : > { %v3918_v49 = vsel %vm3908_vm5, %v3895_v5, %v3897_v12  ;;  %v3919_v19 = vsel %vm3908_vm5, %v3897_v12, %v3899_v16 }
 0x633   : > { %4346 = vrot.lane.b32.xlu0 %v14849_v58, %s18063_s7  ;;  %4232 = vrot.lane.b32.xlu1 %v14815_v55, %s18062_s6  ;;  %v12008_v13 = vpack.c.bf16 %v3918_v49, %v3808_v24  ;;  %v12042_v53 = vpack.c.bf16 %v3919_v19, %v3809_v62 }
 0x635   : > { %v4225_v52 = vpop.permute.xlu0 %4224  ;;  %v15029_v2 = vpop.permute.xlu1 %3791  ;;  %12009 = vmatprep.subr.bf16.mxu0 %v12008_v13 }
 0x636   : > { %v4247_v40 = vsel %vm4238_vm8, %v14807_v9, %v4225_v52  ;;  %v3810_v27 = vsel %vm1969_vm13, %v3790_v57, %v15029_v2  ;;  %12011 = vmatpush1.bf16.msra.mxu0 %v12010_v51 }
 0x637   : > { %4674 = vrot.lane.b32.xlu0 %v14878_v32, %s18041_s16  ;;  %4342 = vrot.lane.b32.xlu1 %v14815_v55, %s18063_s7 }
 0x639   : > { %v4335_v31 = vpop.permute.xlu0 %4334  ;;  %v15039_v46 = vpop.permute.xlu1 %3900 }
 0x63a   : > { %v4357_v29 = vsel %vm4348_vm10, %v14821_v48, %v4335_v31  ;;  %v3920_v5 = vsel %vm3908_vm5, %v3899_v16, %v15039_v46 }
 0x63b   : > { %4566 = vrot.lane.b32.xlu0 %v14849_v58, %s18056_s3  ;;  %4016 = vrot.lane.b32.xlu1 %v14849_v58, %s18061_s5  ;;  %v12040_v9 = vpack.c.bf16 %v3920_v5, %v3810_v27  ;;  %v12018_v12 = vpack.c.bf16 %v4357_v29, %v4247_v40 }
 0x63d   : > { %v4229_v45 = vpop.permute.xlu0 %4228  ;;  %v4007_v6 = vpop.permute.xlu1 %4006  ;;  %12041 = vmatprep.subr.bf16.mxu1 %v12040_v9 }
 0x63e   : > { %v4028_v20 = vsel %vm4018_vm6, %v4005_v61, %v4007_v6  ;;  %v4029_v57 = vsel %vm4018_vm6, %v4007_v6, %v4009_v33  ;;  %12043 = vmatpush1.bf16.msra.mxu1 %v12042_v53 }
 0x63f   : > { %4452 = vrot.lane.b32.xlu1 %v14815_v55, %s18055_s12 }
 0x641   : > { %v4339_v48 = vpop.permute.xlu0 %4338  ;;  %v4117_v4 = vpop.permute.xlu1 %4116 }
 0x642   : > { %v4138_v37 = vsel %vm4128_vm7, %v4115_v23, %v4117_v4  ;;  %v4139_v47 = vsel %vm4128_vm7, %v4117_v4, %v4119_v59 }
 0x643   : > { %4562 = vrot.lane.b32.xlu1 %v14815_v55, %s18056_s3  ;;  %v12012_v16 = vpack.c.bf16 %v4138_v37, %v4028_v20  ;;  %v12046_v3 = vpack.c.bf16 %v4139_v47, %v4029_v57 }
 0x645   : > { %v4445_v17 = vpop.permute.xlu0 %4444  ;;  %v15058_v28 = vpop.permute.xlu1 %4010  ;;  %12013 = vmatprep.subr.bf16.mxu0 %v12012_v16 }
 0x646   : > { %v4467_v1 = vsel %vm4458_vm11, %v14854_v22, %v4445_v17  ;;  %v4030_v60 = vsel %vm4018_vm6, %v4009_v33, %v15058_v28  ;;  %12015 = vmatpush1.bf16.msra.mxu0 %v12014_v50 }
 0x647   : > { %4236 = vrot.lane.b32.xlu1 %v14849_v58, %s18062_s6 }
 0x649   : > { %v4555_v61 = vpop.permute.xlu0 %4554  ;;  %v15066_v15 = vpop.permute.xlu1 %4120 }
 0x64a   : > { %v4577_v63 = vsel %vm4568_vm12, %v14869_v34, %v4555_v61  ;;  %v4140_v23 = vsel %vm4128_vm7, %v4119_v59, %v15066_v15 }
 0x64b   : > { %4672 = vrot.lane.b32.xlu1 %v14815_v55, %s18041_s16  ;;  %v12044_v22 = vpack.c.bf16 %v4140_v23, %v4030_v60  ;;  %v12022_v37 = vpack.c.bf16 %v4577_v63, %v4467_v1 }
 0x64d   : > { %v4449_v56 = vpop.permute.xlu0 %4448  ;;  %v4227_v38 = vpop.permute.xlu1 %4226  ;;  %12045 = vmatprep.subr.bf16.mxu1 %v12044_v22 }
 0x64e   : > { %v4248_v14 = vsel %vm4238_vm8, %v4225_v52, %v4227_v38  ;;  %v4249_v33 = vsel %vm4238_vm8, %v4227_v38, %v4229_v45  ;;  %12047 = vmatpush1.bf16.msra.mxu1 %v12046_v3 }
 0x64f   : > { %4456 = vrot.lane.b32.xlu1 %v14849_v58, %s18055_s12 }
 0x651   : > { %v4559_v34 = vpop.permute.xlu0 %4558  ;;  %v4337_v54 = vpop.permute.xlu1 %4336 }
 0x652   : > { %v4358_v24 = vsel %vm4348_vm10, %v4335_v31, %v4337_v54  ;;  %v4359_v62 = vsel %vm4348_vm10, %v4337_v54, %v4339_v48 }
 0x653   : > { %4676 = vrot.lane.b32.xlu1 %v14849_v58, %s18041_s16  ;;  %v12016_v59 = vpack.c.bf16 %v4358_v24, %v4248_v14  ;;  %v12050_v29 = vpack.c.bf16 %v4359_v62, %v4249_v33  ;;  %v4958_v24 = vld [vmem:[#allocation2 + $0x750] sm:$0xff] }
 0x655   : > { %v4665_v49 = vpop.permute.xlu0 %4664  ;;  %v15082_v19 = vpop.permute.xlu1 %4230  ;;  %12017 = vmatprep.subr.bf16.mxu0 %v12016_v59 }
 0x656   : > { %v15086_v13 = vsel %vm1529_vm9, %v14906_v44, %v4665_v49  ;;  %v4250_v51 = vsel %vm4238_vm8, %v4229_v45, %v15082_v19  ;;  %12019 = vmatpush1.bf16.msra.mxu0 %v12018_v12  ;;  %v4957_v12 = vld [vmem:[#allocation2 + $0x748] sm:$0xff] }
 0x659   : > { %v3244_v52 = vpop.permute.xlu0 %3243  ;;  %v15090_v27 = vpop.permute.xlu1 %4340 }
 0x65a   : > { %v15094_v58 = vsel %vm3249_vm0, %v14922_v7, %v3244_v52  ;;  %v4360_v40 = vsel %vm4348_vm10, %v4339_v48, %v15090_v27  ;;  %v15107_v7 = vld [vmem:[%s17950_s10] sm:$0xff] }
 0x65b   : > { %v12048_v31 = vpack.c.bf16 %v4360_v40, %v4250_v51  ;;  %v15118_v47 = vrot.slane %v15107_v7, %v13925_v35  ;;  %v15153_v40 = vrot.slane %v15107_v7, %v13951_v36 }
 0x65d   : > { %v15098_v5 = vpop.permute.xlu0 %4668  ;;  %v4447_v44 = vpop.permute.xlu1 %4446  ;;  %12049 = vmatprep.subr.bf16.mxu1 %v12048_v31 }
 0x65e   : > { %v4468_v9 = vsel %vm4458_vm11, %v4445_v17, %v4447_v44  ;;  %v4469_v53 = vsel %vm4458_vm11, %v4447_v44, %v4449_v56  ;;  %12051 = vmatpush1.bf16.msra.mxu1 %v12050_v29  ;;  %v15126_v17 = vrot.slane %v15107_v7, %v13937_v39  ;;  %v12026_v44 = vpack.c.bf16 %v4957_v12, %v15086_v13 }
 0x661   : > { %v15102_v45 = vpop.permute.xlu0 %3353  ;;  %v4557_v6 = vpop.permute.xlu1 %4556 }
 0x662   : > { %v15112_v20 = vsel %vm3359_vm1, %v14955_v42, %v15102_v45  ;;  %v4578_v57 = vsel %vm4568_vm12, %v4555_v61, %v4557_v6  ;;  %v4579_v48 = vsel %vm4568_vm12, %v4557_v6, %v4559_v34 }
 0x663   : > { %v12020_v4 = vpack.c.bf16 %v4578_v57, %v4468_v9  ;;  %v12054_v54 = vpack.c.bf16 %v4579_v48, %v4469_v53  ;;  %v15163_v53 = vrot.slane %v15107_v7, %v13964_v10 }
 0x665   : > { %v15120_v16 = vpop.permute.xlu0 %3463  ;;  %v15122_v50 = vpop.permute.xlu1 %4450  ;;  %12021 = vmatprep.subr.bf16.mxu0 %v12020_v4 }
 0x666   : > { %v15131_v42 = vsel %vm3469_vm2, %v14968_v30, %v15120_v16  ;;  %v4470_v1 = vsel %vm4458_vm11, %v4449_v56, %v15122_v50  ;;  %12023 = vmatpush1.bf16.msra.mxu0 %v12022_v37 }
 0x667   : > { %v15135_v60 = vpop.f32.mrb[8].mxu0 }
 0x668   : > { %v5612_v61 = vmul.f32 %v15118_v47, %v15135_v60  ;;  %v15139_v63 = vpop.f32.mrb[9].mxu0 }
 0x669   : > { %v3248_v23 = vpop.permute.xlu0 %3247  ;;  %v15141_v22 = vpop.permute.xlu1 %4560  ;;  %v5613_v3 = vmul.f32 %v15126_v17, %v15139_v63 }
 0x66a   : > { %v4580_v30 = vsel %vm4568_vm12, %v4559_v34, %v15141_v22  ;;  %v5644_v38 = vmul.f32 %v5612_v61, %v15135_v60 }
 0x66b   : > { %v12052_v56 = vpack.c.bf16 %v4580_v30, %v4470_v1  ;;  %v5627_v14 = vadd.f32 %v5613_v3, %v5612_v61  ;;  %v5645_v33 = vmul.f32 %v5613_v3, %v15139_v63  ;;  %v12745_v3 = vld [vmem:[#allocation2 + $0x60] sm:$0xff] }
 0x66c   : > { %v12062_v30 = vpack.c.bf16 %v15094_v58, %v12745_v3 }
 0x66d   : > { %v15149_v62 = vpop.permute.xlu0 %3575  ;;  %v4667_v59 = vpop.permute.xlu1 %4666  ;;  %12053 = vmatprep.subr.bf16.mxu1 %v12052_v56  ;;  %v5659_v51 = vadd.f32 %v5645_v33, %v5644_v38  ;;  %v4960_v38 = vld [vmem:[#allocation2 + $0x760] sm:$0xff] }
 0x66e   : > { %v4687_v34 = vsel %vm1529_vm9, %v4665_v49, %v4667_v59  ;;  %v4688_v31 = vsel %vm1529_vm9, %v4667_v59, %v15098_v5  ;;  %12055 = vmatpush1.bf16.msra.mxu1 %v12054_v54 }
 0x66f   : > { %v12024_v29 = vpack.c.bf16 %v4958_v24, %v4687_v34 }
 0x670   : > { %v15159_v9 = vpop.f32.mrb[8].mxu1 }
 0x671   : > { %v3686_v6 = vpop.permute.xlu0 %3685  ;;  %v3246_v57 = vpop.permute.xlu1 %3245  ;;  %12025 = vmatprep.subr.bf16.mxu0 %v12024_v29  ;;  %v5614_v49 = vmul.f32 %v15153_v40, %v15159_v9 }
 0x672   : > { %v3263_v48 = vsel %vm3249_vm0, %v3244_v52, %v3246_v57  ;;  %v3264_v4 = vsel %vm3249_vm0, %v3246_v57, %v3248_v23  ;;  %12027 = vmatpush1.bf16.msra.mxu0 %v12026_v44  ;;  %v15169_v37 = vpop.f32.mrb[9].mxu1  ;;  %v15179_v52 = vld [vmem:[%s13090_s15] sm:$0xff]  ;;  %v4959_v23 = vld [vmem:[#allocation2 + $0x758] sm:$0xff] }
 0x673   : > { %v12060_v13 = vpack.c.bf16 %v3263_v48, %v14815_v55  ;;  %v5628_v1 = vadd.f32 %v5627_v14, %v5614_v49  ;;  %v5646_v61 = vmul.f32 %v5614_v49, %v15159_v9  ;;  %v5615_v56 = vmul.f32 %v15163_v53, %v15169_v37 }
 0x674   : > { %v12058_v12 = vpack.c.bf16 %v4959_v23, %v4688_v31 }
 0x675   : > { %v3468_v33 = vpop.permute.xlu0 %3467  ;;  %v15176_v54 = vpop.permute.xlu1 %4670  ;;  %5313 = vmatmul.mubr.f32.vlgmr.msra.gmra.mrb[12].mxu0 %v15179_v52  ;;  %12061 = vmatprep.subr.bf16.mxu0 %v12060_v13  ;;  %v5660_v55 = vadd.f32 %v5659_v51, %v5646_v61  ;;  %v15186_v58 = vadd.f32 %v5628_v1, %v5615_v56  ;;  %v5647_v24 = vmul.f32 %v5615_v56, %v15169_v37 }
 0x676   : > { %v4689_v14 = vsel %vm1529_vm9, %v15098_v5, %v15176_v54  ;;  %12063 = vmatpush1.bf16.msra.mxu0 %v12062_v30  ;;  %5454 = vmatprep.mubr.f32.mxu0 %v12880_v25  ;;  %v12093_v5 = vpack.c.bf16 %v3264_v4, %v14878_v32 }
 0x677   : > { %v12056_v59 = vpack.c.bf16 %v4960_v38, %v4689_v14  ;;  %v15189_v34 = vadd.f32 %v5660_v55, %v5647_v24 }
 0x679   : > { %v15191_v29 = vpop.permute.xlu0 %3795  ;;  %v3356_v44 = vpop.permute.xlu1 %3355  ;;  %12057 = vmatprep.subr.bf16.mxu1 %v12056_v59 }
 0x67a   : > { %v3373_v51 = vsel %vm3359_vm1, %v15102_v45, %v3356_v44  ;;  %12059 = vmatpush1.bf16.msra.mxu1 %v12058_v12  ;;  %v12066_v45 = vpack.c.bf16 %v15131_v42, %v15112_v20 }
 0x67b   : > { %12092 = vmatprep.subr.bf16.mxu1 %v12882_v0 }
 0x67d   : > { %v3905_v57 = vpop.permute.xlu0 %3904  ;;  %v3466_v49 = vpop.permute.xlu1 %3465  ;;  %5384 = vmatmul.mubr.f32.vlgmr.msra.gmra.mrb[12].mxu1 %v15179_v52 }
 0x67e   : > { %v3483_v31 = vsel %vm3469_vm2, %v15120_v16, %v3466_v49  ;;  %v3484_v48 = vsel %vm3469_vm2, %v3466_v49, %v3468_v33  ;;  %12094 = vmatpush3.bf16.msra.mxu1 %v12093_v5  ;;  %11547 = vmatprep.mubr.msk.f32.mxu1 %vm12883_vm15, %v12880_v25 }
 0x67f   : > { %v12064_v13 = vpack.c.bf16 %v3483_v31, %v3373_v51  ;;  %12095 = vmatprep.subr.bf16.mxu1 %v12882_v0 }
 0x681   : > { %v3688_v32 = vpop.permute.xlu0 %3687  ;;  %v3574_v4 = vpop.permute.xlu1 %3573  ;;  %12065 = vmatprep.subr.bf16.mxu0 %v12064_v13 }
 0x682   : > { %v3704_v1 = vsel %vm3689_vm4, %v3686_v6, %v3688_v32  ;;  %v3592_v16 = vsel %vm3579_vm3, %v14994_v41, %v3574_v4  ;;  %v3593_v61 = vsel %vm3579_vm3, %v3574_v4, %v15149_v62  ;;  %12067 = vmatpush1.bf16.msra.mxu0 %v12066_v45 }
 0x685   : > { %v15211_v3 = vpop.permute.xlu0 %4014  ;;  %v3684_v25 = vpop.permute.xlu1 %3683 }
 0x686   : > { %v3702_v30 = vsel %vm3689_vm4, %v15006_v8, %v3684_v25  ;;  %v3703_v20 = vsel %vm3689_vm4, %v3684_v25, %v3686_v6 }
 0x687   : > { %v12068_v42 = vpack.c.bf16 %v3703_v20, %v3593_v61  ;;  %v12070_v38 = vpack.c.bf16 %v3702_v30, %v3592_v16 }
 0x689   : > { %v4125_v56 = vpop.permute.xlu0 %4124  ;;  %v3358_v33 = vpop.permute.xlu1 %3357  ;;  %12069 = vmatprep.subr.bf16.mxu0 %v12068_v42 }
 0x68a   : > { %v3374_v23 = vsel %vm3359_vm1, %v3356_v44, %v3358_v33  ;;  %12071 = vmatpush1.bf16.msra.mxu0 %v12070_v38 }
 0x68b   : > { %v12096_v41 = vpack.c.bf16 %v3484_v48, %v3374_v23 }
 0x68d   : > { %v3907_v55 = vpop.permute.xlu0 %3906  ;;  %v3794_v14 = vpop.permute.xlu1 %3793  ;;  %12097 = vmatpush3.bf16.msra.mxu1 %v12096_v41 }
 0x68e   : > { %v3923_v24 = vsel %vm3908_vm5, %v3905_v57, %v3907_v55  ;;  %v3811_v59 = vsel %vm1969_vm13, %v15029_v2, %v3794_v14  ;;  %v3812_v8 = vsel %vm1969_vm13, %v3794_v14, %v15191_v29  ;;  %12098 = vmatprep.subr.bf16.mxu1 %v12882_v0 }
 0x691   : > { %v15223_v6 = vpop.permute.xlu0 %4234  ;;  %v3903_v12 = vpop.permute.xlu1 %3902 }
 0x692   : > { %v3921_v44 = vsel %vm3908_vm5, %v15039_v46, %v3903_v12  ;;  %v3922_v51 = vsel %vm3908_vm5, %v3903_v12, %v3905_v57 }
 0x693   : > { %v12072_v5 = vpack.c.bf16 %v3922_v51, %v3812_v8  ;;  %v12074_v49 = vpack.c.bf16 %v3921_v44, %v3811_v59 }
 0x695   : > { %v4345_v31 = vpop.permute.xlu0 %4344  ;;  %v3578_v48 = vpop.permute.xlu1 %3577  ;;  %12073 = vmatprep.subr.bf16.mxu0 %v12072_v5 }
 0x696   : > { %v3594_v2 = vsel %vm3579_vm3, %v15149_v62, %v3578_v48  ;;  %12075 = vmatpush1.bf16.msra.mxu0 %v12074_v49 }
 0x697   : > { %v12099_v13 = vpack.c.bf16 %v3704_v1, %v3594_v2 }
 0x699   : > { %v4127_v45 = vpop.permute.xlu0 %4126  ;;  %v4013_v32 = vpop.permute.xlu1 %4012  ;;  %12100 = vmatpush3.bf16.msra.mxu1 %v12099_v13 }
 0x69a   : > { %v4143_v4 = vsel %vm4128_vm7, %v4125_v56, %v4127_v45  ;;  %v4031_v46 = vsel %vm4018_vm6, %v15058_v28, %v4013_v32  ;;  %v4032_v57 = vsel %vm4018_vm6, %v4013_v32, %v15211_v3  ;;  %12101 = vmatprep.subr.bf16.mxu1 %v12882_v0 }
 0x69d   : > { %v4455_v16 = vpop.permute.xlu0 %4454  ;;  %v4123_v61 = vpop.permute.xlu1 %4122 }
 0x69e   : > { %v4141_v62 = vsel %vm4128_vm7, %v15066_v15, %v4123_v61  ;;  %v4142_v1 = vsel %vm4128_vm7, %v4123_v61, %v4125_v56 }
 0x69f   : > { %v12076_v25 = vpack.c.bf16 %v4142_v1, %v4032_v57  ;;  %v12078_v30 = vpack.c.bf16 %v4141_v62, %v4031_v46  ;;  %v4961_v57 = vld [vmem:[#allocation2 + $0x768] sm:$0xff] }
 0x6a1   : > { %v4565_v20 = vpop.permute.xlu0 %4564  ;;  %v3798_v42 = vpop.permute.xlu1 %3797  ;;  %12077 = vmatprep.subr.bf16.mxu0 %v12076_v25 }
 0x6a2   : > { %v3813_v28 = vsel %vm1969_vm13, %v15191_v29, %v3798_v42  ;;  %12079 = vmatpush1.bf16.msra.mxu0 %v12078_v30  ;;  %v4963_v42 = vld [vmem:[#allocation2 + $0x778] sm:$0xff] }
 0x6a3   : > { %v12102_v38 = vpack.c.bf16 %v3923_v24, %v3813_v28 }
 0x6a5   : > { %v4347_v33 = vpop.permute.xlu0 %4346  ;;  %v4233_v23 = vpop.permute.xlu1 %4232  ;;  %12103 = vmatpush3.bf16.msra.mxu1 %v12102_v38 }
 0x6a6   : > { %v4363_v41 = vsel %vm4348_vm10, %v4345_v31, %v4347_v33  ;;  %v4251_v15 = vsel %vm4238_vm8, %v15082_v19, %v4233_v23  ;;  %v4252_v56 = vsel %vm4238_vm8, %v4233_v23, %v15223_v6  ;;  %12104 = vmatprep.subr.bf16.mxu1 %v12882_v0  ;;  %v15273_v33 = vrot.slane %v15107_v7, %v14067_v26 }
 0x6a9   : > { %v4675_v55 = vpop.permute.xlu0 %4674  ;;  %v4343_v14 = vpop.permute.xlu1 %4342 }
 0x6aa   : > { %v4361_v29 = vsel %vm4348_vm10, %v15090_v27, %v4343_v14  ;;  %v4362_v24 = vsel %vm4348_vm10, %v4343_v14, %v4345_v31 }
 0x6ab   : > { %v12080_v59 = vpack.c.bf16 %v4362_v24, %v4252_v56  ;;  %v12082_v8 = vpack.c.bf16 %v4361_v29, %v4251_v15  ;;  %v15293_v24 = vrot.slane %v15107_v7, %v14083_v43 }
 0x6ad   : > { %v4567_v12 = vpop.permute.xlu0 %4566  ;;  %v4017_v44 = vpop.permute.xlu1 %4016  ;;  %12081 = vmatprep.subr.bf16.mxu0 %v12080_v59  ;;  %v15298_v59 = vrot.slane %v15107_v7, %v2969_v18 }
 0x6ae   : > { %v4583_v51 = vsel %vm4568_vm12, %v4565_v20, %v4567_v12  ;;  %v4033_v19 = vsel %vm4018_vm6, %v15211_v3, %v4017_v44  ;;  %12083 = vmatpush1.bf16.msra.mxu0 %v12082_v8 }
 0x6af   : > { %v12105_v5 = vpack.c.bf16 %v4143_v4, %v4033_v19 }
 0x6b1   : > { %v4453_v49 = vpop.permute.xlu1 %4452  ;;  %12106 = vmatpush3.bf16.msra.mxu1 %v12105_v5 }
 0x6b2   : > { %v4471_v48 = vsel %vm4458_vm11, %v15122_v50, %v4453_v49  ;;  %v4472_v27 = vsel %vm4458_vm11, %v4453_v49, %v4455_v16  ;;  %12107 = vmatprep.subr.bf16.mxu1 %v12882_v0  ;;  %v4962_v50 = vld [vmem:[#allocation2 + $0x770] sm:$0xff] }
 0x6b5   : > { %v4563_v31 = vpop.permute.xlu1 %4562 }
 0x6b6   : > { %v4581_v2 = vsel %vm4568_vm12, %v15141_v22, %v4563_v31  ;;  %v4582_v13 = vsel %vm4568_vm12, %v4563_v31, %v4565_v20 }
 0x6b7   : > { %v12084_v45 = vpack.c.bf16 %v4582_v13, %v4472_v27  ;;  %v12086_v32 = vpack.c.bf16 %v4581_v2, %v4471_v48 }
 0x6b9   : > { %v4237_v3 = vpop.permute.xlu1 %4236  ;;  %12085 = vmatprep.subr.bf16.mxu0 %v12084_v45 }
 0x6ba   : > { %v4253_v4 = vsel %vm4238_vm8, %v15223_v6, %v4237_v3  ;;  %12087 = vmatpush1.bf16.msra.mxu0 %v12086_v32 }
 0x6bb   : > { %v12108_v46 = vpack.c.bf16 %v4363_v41, %v4253_v4 }
 0x6bd   : > { %v4673_v61 = vpop.permute.xlu1 %4672  ;;  %12109 = vmatpush3.bf16.msra.mxu1 %v12108_v46 }
 0x6be   : > { %v4690_v62 = vsel %vm1529_vm9, %v15176_v54, %v4673_v61  ;;  %v4691_v22 = vsel %vm1529_vm9, %v4673_v61, %v4675_v55  ;;  %12110 = vmatprep.subr.bf16.mxu1 %v12882_v0 }
 0x6bf   : > { %v12088_v1 = vpack.c.bf16 %v4962_v50, %v4691_v22  ;;  %v12090_v25 = vpack.c.bf16 %v4961_v57, %v4690_v62 }
 0x6c1   : > { %v4457_v30 = vpop.permute.xlu1 %4456  ;;  %12089 = vmatprep.subr.bf16.mxu0 %v12088_v1 }
 0x6c2   : > { %v4473_v20 = vsel %vm4458_vm11, %v4455_v16, %v4457_v30  ;;  %12091 = vmatpush1.bf16.msra.mxu0 %v12090_v25  ;;  %v15277_v16 = vrot.slane %v15107_v7, %v14071_v11  ;;  %v5532_v7 = vld [vmem:[%s17950_s10 + $0x8] sm:$0xff] }
 0x6c3   : > { %v12111_v6 = vpack.c.bf16 %v4583_v51, %v4473_v20  ;;  %v15314_v48 = vrot.slane %v5532_v7, %v13925_v35  ;;  %v15317_v27 = vrot.slane %v5532_v7, %v13937_v39  ;;  %v15330_v39 = vrot.slane %v5532_v7, %v13951_v36 }
 0x6c4   : > { %v15333_v50 = vrot.slane %v5532_v7, %v13964_v10 }
 0x6c5   : > { %v4677_v28 = vpop.permute.xlu1 %4676  ;;  %5455 = vmatmul.mubr.f32.vlgmr.msra.gmra.mrb[14].mxu0 %v15179_v52  ;;  %12112 = vmatpush3.bf16.msra.mxu1 %v12111_v6 }
 0x6c6   : > { %v4692_v38 = vsel %vm1529_vm9, %v4675_v55, %v4677_v28  ;;  %12113 = vmatprep.subr.bf16.mxu1 %v12882_v0  ;;  %v15349_v28 = vrot.slane %v5532_v7, %v14071_v11 }
 0x6c7   : > { %v12114_v54 = vpack.c.bf16 %v4963_v42, %v4692_v38  ;;  %v15346_v42 = vrot.slane %v5532_v7, %v14067_v26  ;;  %v15362_v26 = vrot.slane %v5532_v7, %v14083_v43 }
 0x6c9   : > { %12115 = vmatpush3.bf16.msra.mxu1 %v12114_v54 }
 0x6cc   : > { %11548 = vmatmul.mubr.f32.vlgmr.msra.gmra.mrb[14].mxu1 %v15179_v52 }
 0x6d8   : > { %v15279_v23 = vpop.f32.mrb[10].mxu0 }
 0x6d9   : > { %v5616_v41 = vmul.f32 %v15273_v33, %v15279_v23  ;;  %v15283_v15 = vpop.f32.mrb[11].mxu0 }
 0x6da   : > { %v5617_v0 = vmul.f32 %v15277_v16, %v15283_v15 }
 0x6db   : > { %v5630_v52 = vadd.f32 %v15186_v58, %v5616_v41  ;;  %v5648_v56 = vmul.f32 %v5616_v41, %v15279_v23 }
 0x6dc   : > { %v5649_v55 = vmul.f32 %v5617_v0, %v15283_v15 }
 0x6dd   : > { %v5662_v14 = vadd.f32 %v15189_v34, %v5648_v56  ;;  %v5631_v29 = vadd.f32 %v5630_v52, %v5617_v0 }
 0x6df   : > { %v5663_v8 = vadd.f32 %v5662_v14, %v5649_v55 }
 0x6e0   : > { %v15300_v12 = vpop.f32.mrb[10].mxu1 }
 0x6e1   : > { %v5618_v58 = vmul.f32 %v15293_v24, %v15300_v12  ;;  %v15304_v44 = vpop.f32.mrb[11].mxu1 }
 0x6e2   : > { %v5619_v34 = vmul.f32 %v15298_v59, %v15304_v44 }
 0x6e3   : > { %v5632_v51 = vadd.f32 %v5631_v29, %v5618_v58  ;;  %v5650_v19 = vmul.f32 %v5618_v58, %v15300_v12 }
 0x6e4   : > { %v5651_v5 = vmul.f32 %v5619_v34, %v15304_v44 }
 0x6e5   : > { %v5664_v21 = vadd.f32 %v5663_v8, %v5650_v19  ;;  %v5633_v49 = vadd.f32 %v5632_v51, %v5619_v34 }
 0x6e7   : > { %v5665_v18 = vadd.f32 %v5664_v21, %v5651_v5 }
 0x748   : > { %v15319_v31 = vpop.f32.mrb[12].mxu0 }
 0x749   : > { %v5620_v2 = vmul.f32 %v15314_v48, %v15319_v31  ;;  %v15323_v13 = vpop.f32.mrb[13].mxu0 }
 0x74a   : > { %v5621_v45 = vmul.f32 %v15317_v27, %v15323_v13 }
 0x74b   : > { %v5634_v32 = vadd.f32 %v5633_v49, %v5620_v2  ;;  %v5652_v3 = vmul.f32 %v5620_v2, %v15319_v31 }
 0x74c   : > { %v5653_v4 = vmul.f32 %v5621_v45, %v15323_v13 }
 0x74d   : > { %v5666_v35 = vadd.f32 %v5665_v18, %v5652_v3  ;;  %v5635_v46 = vadd.f32 %v5634_v32, %v5621_v45  ;;  %v5533_v32 = vld [vmem:[%s13105_s22] sm:$0xff] }
 0x74f   : > { %v5667_v57 = vadd.f32 %v5666_v35, %v5653_v4  ;;  %v5534_v35 = vld [vmem:[%s13110_s30] sm:$0xff] }
 0x750   : > { %v15335_v61 = vpop.f32.mrb[12].mxu1 }
 0x751   : > { %v5622_v62 = vmul.f32 %v15330_v39, %v15335_v61  ;;  %v15339_v22 = vpop.f32.mrb[13].mxu1 }
 0x752   : > { %v5623_v1 = vmul.f32 %v15333_v50, %v15339_v22 }
 0x753   : > { %v5636_v25 = vadd.f32 %v5635_v46, %v5622_v62  ;;  %v5654_v30 = vmul.f32 %v5622_v62, %v15335_v61 }
 0x754   : > { %v5655_v36 = vmul.f32 %v5623_v1, %v15339_v22 }
 0x755   : > { %v5668_v20 = vadd.f32 %v5667_v57, %v5654_v30  ;;  %v5637_v6 = vadd.f32 %v5636_v25, %v5623_v1 }
 0x757   : > { %v5669_v10 = vadd.f32 %v5668_v20, %v5655_v36 }
 0x798   : > { %v15351_v38 = vpop.f32.mrb[14].mxu0 }
 0x799   : > { %v5624_v54 = vmul.f32 %v15346_v42, %v15351_v38  ;;  %v15355_v41 = vpop.f32.mrb[15].mxu0 }
 0x79a   : > { %v5625_v0 = vmul.f32 %v15349_v28, %v15355_v41 }
 0x79b   : > { %v5638_v52 = vadd.f32 %v5637_v6, %v5624_v54  ;;  %v5656_v56 = vmul.f32 %v5624_v54, %v15351_v38 }
 0x79c   : > { %v5657_v55 = vmul.f32 %v5625_v0, %v15355_v41 }
 0x79d   : > { %v5670_v11 = vadd.f32 %v5669_v10, %v5656_v56  ;;  %v5639_v14 = vadd.f32 %v5638_v52, %v5625_v0 }
 0x79f   : > { %v5671_v29 = vadd.f32 %v5670_v11, %v5657_v55  ;;  %v15364_v8 = vpop.f32.mrb[14].mxu1 }
 0x7a0   : > { %v5626_v58 = vmul.f32 %v15362_v26, %v15364_v8  ;;  %v11549_v34 = vpop.f32.mrb[15].mxu1 }
 0x7a2   : > { %v5658_v51 = vmul.f32 %v5626_v58, %v15364_v8  ;;  %v5640_v19 = vadd.f32 %v5639_v14, %v5626_v58 }
 0x7a4   : > { %5641 = vadd.xlane.f32.xlu0 %v5640_v19  ;;  %v5672_v5 = vadd.f32 %v5671_v29, %v5658_v51 }
 0x7a6   : > { %5673 = vadd.xlane.f32.xlu1 %v5672_v5 }
 0x831   : > { %v5642_v21 = vpop.xlane.xlu0 %5641 }
 0x832   : > { %v5643_v43 = vmul.f32 0.001953125, %v5642_v21 }
 0x833   : > { %v5674_v49 = vpop.xlane.xlu1 %5673 }
 0x834   : > { %v5676_v18 = vmul.f32 %v5643_v43, %v5643_v43  ;;  %v5675_v7 = vmul.f32 0.001953125, %v5674_v49 }
 0x836   : > { %v5677_v2 = vsub.f32 %v5675_v7, %v5676_v18 }
 0x838   : > { %v5678_v45 = vadd.f32 1e-05, %v5677_v2 }
 0x83a   : > { %12730 = vrsqrt.f32 %v5678_v45 }
 0x844   : > { %v12731_v3 = vpop.eup %12730 }
 0x845   : > { %v5680_v4 = vmul.f32 %v12731_v3, %v5533_v32 }
 0x847   : > { %5685 = vperm.xlu0 %12726, %v5680_v4   ;;  %v5681_v46 = vmul.f32 %v5680_v4, %v5643_v43 }
 0x849   : > { %v5682_v57 = vsub.f32 %v5534_v35, %v5681_v46 }
 0x84b   : > { %5705 = vperm.xlu1 %12727, %v5682_v57  }
 0x8c6   : > { %v15371_v62 = vpop.permute.xlu0 %5685 }
 0x8c7   : > { %v5688_v1 = vmul.f32 %v15371_v62, %v15135_v60  ;;  %v5689_v25 = vmul.f32 %v15371_v62, %v15139_v63  ;;  %v5690_v6 = vmul.f32 %v15371_v62, %v15159_v9  ;;  %v5691_v10 = vmul.f32 %v15371_v62, %v15169_v37 }
 0x8c8   : > { %v5692_v60 = vmul.f32 %v15371_v62, %v15279_v23  ;;  %v5693_v55 = vmul.f32 %v15371_v62, %v15283_v15  ;;  %v5694_v23 = vmul.f32 %v15371_v62, %v15300_v12  ;;  %v5695_v58 = vmul.f32 %v15371_v62, %v15304_v44 }
 0x8c9   : > { %v5696_v12 = vmul.f32 %v15371_v62, %v15319_v31  ;;  %v5697_v49 = vmul.f32 %v15371_v62, %v15323_v13  ;;  %v5698_v32 = vmul.f32 %v15371_v62, %v15335_v61 }
 0x8ca   : > { %v15377_v30 = vpop.permute.xlu1 %5705 }
 0x8cb   : > { %v5708_v36 = vadd.f32 %v15377_v30, %v5688_v1  ;;  %v5709_v20 = vadd.f32 %v15377_v30, %v5689_v25  ;;  %v5710_v54 = vadd.f32 %v15377_v30, %v5690_v6  ;;  %v5711_v52 = vadd.f32 %v15377_v30, %v5691_v10 }
 0x8cc   : > { %v5712_v56 = vadd.f32 %v15377_v30, %v5692_v60  ;;  %v5713_v14 = vadd.f32 %v15377_v30, %v5693_v55  ;;  %v5714_v15 = vadd.f32 %v15377_v30, %v5694_v23  ;;  %v5715_v5 = vadd.f32 %v15377_v30, %v5695_v58 }
 0x8cd   : > { %v15386_v0 = vmax.f32 %v5708_v36, 0.0  ;;  %v15390_v63 = vmax.f32 %v5709_v20, 0.0  ;;  %v15396_v9 = vmax.f32 %v5710_v54, 0.0  ;;  %v15405_v29 = vmax.f32 %v5711_v52, 0.0 }
 0x8ce   : > { %v15410_v34 = vmax.f32 %v5712_v56, 0.0  ;;  %v15419_v21 = vmax.f32 %v5713_v14, 0.0  ;;  %v15426_v18 = vmax.f32 %v5714_v15, 0.0  ;;  %v15434_v3 = vmax.f32 %v5715_v5, 0.0 }
 0x8cf   : > { %v5740_v37 = vmul.f32 %v15386_v0, %v15118_v47  ;;  %v5741_v11 = vmul.f32 %v15390_v63, %v15126_v17  ;;  %v5742_v47 = vmul.f32 %v15396_v9, %v15153_v40  ;;  %v5743_v44 = vmul.f32 %v15405_v29, %v15163_v53 }
 0x8d0   : > { %v5716_v40 = vadd.f32 %v15377_v30, %v5696_v12  ;;  %v5744_v7 = vmul.f32 %v15410_v34, %v15273_v33  ;;  %v5717_v53 = vadd.f32 %v15377_v30, %v5697_v49  ;;  %v5745_v13 = vmul.f32 %v15419_v21, %v15277_v16 }
 0x8d1   : > { %v5755_v51 = vadd.f32 %v5741_v11, %v5740_v37  ;;  %v5772_v17 = vmul.f32 %v5740_v37, %v15386_v0  ;;  %v5773_v19 = vmul.f32 %v5741_v11, %v15390_v63  ;;  %v5774_v31 = vmul.f32 %v5742_v47, %v15396_v9 }
 0x8d2   : > { %v5775_v35 = vmul.f32 %v5743_v44, %v15405_v29  ;;  %v5699_v33 = vmul.f32 %v15371_v62, %v15339_v22  ;;  %v5718_v57 = vadd.f32 %v15377_v30, %v5698_v32  ;;  %v15442_v1 = vmax.f32 %v5716_v40, 0.0 }
 0x8d3   : > { %v5756_v43 = vadd.f32 %v5755_v51, %v5742_v47  ;;  %v5787_v45 = vadd.f32 %v5773_v19, %v5772_v17  ;;  %v5746_v61 = vmul.f32 %v15426_v18, %v15293_v24  ;;  %v5776_v36 = vmul.f32 %v5744_v7, %v15410_v34 }
 0x8d4   : > { %v5700_v16 = vmul.f32 %v15371_v62, %v15351_v38  ;;  %v5719_v6 = vadd.f32 %v15377_v30, %v5699_v33  ;;  %v15450_v10 = vmax.f32 %v5717_v53, 0.0  ;;  %v5747_v22 = vmul.f32 %v15434_v3, %v15298_v59 }
 0x8d5   : > { %v5757_v2 = vadd.f32 %v5756_v43, %v5743_v44  ;;  %v5788_v46 = vadd.f32 %v5787_v45, %v5774_v31  ;;  %v5777_v60 = vmul.f32 %v5745_v13, %v15419_v21  ;;  %v5701_v24 = vmul.f32 %v15371_v62, %v15355_v41 }
 0x8d6   : > { %v5720_v56 = vadd.f32 %v15377_v30, %v5700_v16  ;;  %v15458_v55 = vmax.f32 %v5718_v57, 0.0  ;;  %v5748_v38 = vmul.f32 %v15442_v1, %v15314_v48  ;;  %v5778_v11 = vmul.f32 %v5746_v61, %v15426_v18 }
 0x8d7   : > { %v5758_v4 = vadd.f32 %v5757_v2, %v5744_v7  ;;  %v5789_v20 = vadd.f32 %v5788_v46, %v5775_v35  ;;  %v5702_v59 = vmul.f32 %v15371_v62, %v15364_v8  ;;  %v5721_v14 = vadd.f32 %v15377_v30, %v5701_v24  ;;  %v5739_v24 = vld [vmem:[%s13120_s23] sm:$0xff] }
 0x8d8   : > { %v15466_v58 = vmax.f32 %v5719_v6, 0.0  ;;  %v5749_v41 = vmul.f32 %v15450_v10, %v15317_v27  ;;  %v5779_v47 = vmul.f32 %v5747_v22, %v15434_v3  ;;  %v5735_v17 = vmax.f32 %v5720_v56, 0.0 }
 0x8d9   : > { %v5759_v25 = vadd.f32 %v5758_v4, %v5745_v13  ;;  %v5790_v52 = vadd.f32 %v5789_v20, %v5776_v36  ;;  %v5722_v48 = vadd.f32 %v15377_v30, %v5702_v59  ;;  %v5750_v19 = vmul.f32 %v15458_v55, %v15330_v39 }
 0x8da   : > { %v5780_v8 = vmul.f32 %v5748_v38, %v15442_v1  ;;  %v5736_v5 = vmax.f32 %v5721_v14, 0.0  ;;  %v5751_v44 = vmul.f32 %v15466_v58, %v15333_v50  ;;  %v5781_v27 = vmul.f32 %v5749_v41, %v15450_v10 }
 0x8db   : > { %v5760_v54 = vadd.f32 %v5759_v25, %v5746_v61  ;;  %v5791_v23 = vadd.f32 %v5790_v52, %v5777_v60  ;;  %v5737_v40 = vmax.f32 %v5722_v48, 0.0  ;;  %v5752_v7 = vmul.f32 %v5735_v17, %v15346_v42 }
 0x8dc   : > { %v5782_v2 = vmul.f32 %v5750_v19, %v15458_v55  ;;  %v5753_v39 = vmul.f32 %v5736_v5, %v15349_v28  ;;  %v5783_v32 = vmul.f32 %v5751_v44, %v15466_v58 }
 0x8dd   : > { %v5761_v37 = vadd.f32 %v5760_v54, %v5747_v22  ;;  %v5792_v51 = vadd.f32 %v5791_v23, %v5778_v11  ;;  %v5754_v13 = vmul.f32 %v5737_v40, %v15362_v26  ;;  %v5784_v4 = vmul.f32 %v5752_v7, %v5735_v17  ;;  %v5738_v54 = vld [vmem:[%s13115_s0] sm:$0xff] }
 0x8de   : > { %v5785_v33 = vmul.f32 %v5753_v39, %v5736_v5 }
 0x8df   : > { %v5762_v15 = vadd.f32 %v5761_v37, %v5748_v38  ;;  %v5793_v62 = vadd.f32 %v5792_v51, %v5779_v47  ;;  %v5786_v42 = vmul.f32 %v5754_v13, %v5737_v40 }
 0x8e1   : > { %v5763_v12 = vadd.f32 %v5762_v15, %v5749_v41  ;;  %v5794_v49 = vadd.f32 %v5793_v62, %v5780_v8 }
 0x8e3   : > { %v5764_v43 = vadd.f32 %v5763_v12, %v5750_v19  ;;  %v5795_v31 = vadd.f32 %v5794_v49, %v5781_v27 }
 0x8e5   : > { %v5765_v30 = vadd.f32 %v5764_v43, %v5751_v44  ;;  %v5796_v53 = vadd.f32 %v5795_v31, %v5782_v2 }
 0x8e7   : > { %v5766_v45 = vadd.f32 %v5765_v30, %v5752_v7  ;;  %v5797_v35 = vadd.f32 %v5796_v53, %v5783_v32 }
 0x8e9   : > { %v5767_v50 = vadd.f32 %v5766_v45, %v5753_v39  ;;  %v5798_v57 = vadd.f32 %v5797_v35, %v5784_v4 }
 0x8eb   : > { %v5768_v46 = vadd.f32 %v5767_v50, %v5754_v13  ;;  %v5799_v61 = vadd.f32 %v5798_v57, %v5785_v33 }
 0x8ed   : > { %5769 = vadd.xlane.f32.xlu0 %v5768_v46  ;;  %v5800_v25 = vadd.f32 %v5799_v61, %v5786_v42 }
 0x8ef   : > { %5801 = vadd.xlane.f32.xlu1 %v5800_v25 }
 0x97a   : > { %v5770_v28 = vpop.xlane.xlu0 %5769 }
 0x97b   : > { %v5771_v36 = vmul.f32 0.001953125, %v5770_v28 }
 0x97c   : > { %v5802_v16 = vpop.xlane.xlu1 %5801 }
 0x97d   : > { %v5804_v20 = vmul.f32 %v5771_v36, %v5771_v36  ;;  %v5803_v6 = vmul.f32 0.001953125, %v5802_v16 }
 0x97f   : > { %v5805_v22 = vsub.f32 %v5803_v6, %v5804_v20 }
 0x981   : > { %v5806_v26 = vadd.f32 1e-05, %v5805_v22 }
 0x983   : > { %12732 = vrsqrt.f32 %v5806_v26 }
 0x98d   : > { %v12733_v60 = vpop.eup %12732 }
 0x98e   : > { %v5808_v52 = vmul.f32 %v12733_v60, %v5738_v54 }
 0x990   : > { %5813 = vperm.xlu0 %12726, %v5808_v52   ;;  %v5809_v56 = vmul.f32 %v5808_v52, %v5771_v36 }
 0x992   : > { %v5810_v38 = vsub.f32 %v5739_v24, %v5809_v56 }
 0x994   : > { %5833 = vperm.xlu1 %12727, %v5810_v38  }
 0xa0f   : > { %v5814_v37 = vpop.permute.xlu0 %5813 }
 0xa10   : > { %v5816_v11 = vmul.f32 %v5814_v37, %v15386_v0  ;;  %v5817_v23 = vmul.f32 %v5814_v37, %v15390_v63  ;;  %v5818_v59 = vmul.f32 %v5814_v37, %v15396_v9  ;;  %v5819_v14 = vmul.f32 %v5814_v37, %v15405_v29 }
 0xa11   : > { %v5820_v41 = vmul.f32 %v5814_v37, %v15410_v34  ;;  %v5821_v15 = vmul.f32 %v5814_v37, %v15419_v21  ;;  %v5822_v47 = vmul.f32 %v5814_v37, %v15426_v18  ;;  %v5823_v51 = vmul.f32 %v5814_v37, %v15434_v3 }
 0xa12   : > { %v5824_v48 = vmul.f32 %v5814_v37, %v15442_v1  ;;  %v5825_v19 = vmul.f32 %v5814_v37, %v15450_v10  ;;  %v5826_v0 = vmul.f32 %v5814_v37, %v15458_v55  ;;  %v5827_v63 = vmul.f32 %v5814_v37, %v15466_v58 }
 0xa13   : > { %v5828_v12 = vmul.f32 %v5814_v37, %v5735_v17  ;;  %v5829_v9 = vmul.f32 %v5814_v37, %v5736_v5  ;;  %v5830_v8 = vmul.f32 %v5814_v37, %v5737_v40  ;;  %v5834_v29 = vpop.permute.xlu1 %5833 }
 0xa14   : > { %v5836_v62 = vadd.f32 %v5834_v29, %v5816_v11  ;;  %v5837_v34 = vadd.f32 %v5834_v29, %v5817_v23  ;;  %v5838_v44 = vadd.f32 %v5834_v29, %v5818_v59  ;;  %v5839_v21 = vadd.f32 %v5834_v29, %v5819_v14 }
 0xa15   : > { %v5840_v43 = vadd.f32 %v5834_v29, %v5820_v41  ;;  %v5841_v18 = vadd.f32 %v5834_v29, %v5821_v15  ;;  %v5842_v27 = vadd.f32 %v5834_v29, %v5822_v47  ;;  %v5843_v3 = vadd.f32 %v5834_v29, %v5823_v51 }
 0xa16   : > { %v5844_v49 = vadd.f32 %v5834_v29, %v5824_v48  ;;  %v5845_v1 = vadd.f32 %v5834_v29, %v5825_v19  ;;  %v5846_v10 = vadd.f32 %v5834_v29, %v5826_v0  ;;  %v5847_v7 = vadd.f32 %v5834_v29, %v5827_v63 }
 0xa17   : > { %v5848_v55 = vadd.f32 %v5834_v29, %v5828_v12  ;;  %v5849_v30 = vadd.f32 %v5834_v29, %v5829_v9  ;;  %v5850_v58 = vadd.f32 %v5834_v29, %v5830_v8  ;;  %v5851_v17 = vmax.f32 %v5836_v62, 0.0 }
 0xa18   : > { %v5852_v5 = vmax.f32 %v5837_v34, 0.0  ;;  %v5853_v40 = vmax.f32 %v5838_v44, 0.0  ;;  %v5854_v2 = vmax.f32 %v5839_v21, 0.0  ;;  %v5855_v31 = vmax.f32 %v5840_v43, 0.0 }
 0xa19   : > { %v5856_v39 = vmax.f32 %v5841_v18, 0.0  ;;  %v5857_v45 = vmax.f32 %v5842_v27, 0.0  ;;  %v5858_v32 = vmax.f32 %v5843_v3, 0.0  ;;  %v5859_v53 = vmax.f32 %v5844_v49, 0.0  ;;  %5866 = vst [vmem:[%s13128_s29] sm:$0xff] %v5851_v17 }
 0xa1a   : > { %v5860_v13 = vmax.f32 %v5845_v1, 0.0  ;;  %v5861_v50 = vmax.f32 %v5846_v10, 0.0  ;;  %v5862_v4 = vmax.f32 %v5847_v7, 0.0  ;;  %v5863_v35 = vmax.f32 %v5848_v55, 0.0  ;;  %5867 = vst [vmem:[%s13128_s29 + $0x8] sm:$0xff] %v5852_v5  ;;  %5868 = vst [vmem:[%s13128_s29 + $0x10] sm:$0xff] %v5853_v40 }
 0xa1b   : > { %5869 = vst [vmem:[%s13128_s29 + $0x18] sm:$0xff] %v5854_v2  ;;  %5870 = vst [vmem:[%s13128_s29 + $0x20] sm:$0xff] %v5855_v31  ;;  %v5864_v46 = vmax.f32 %v5849_v30, 0.0  ;;  %v5865_v33 = vmax.f32 %v5850_v58, 0.0 }
 0xa1c   : > { %5871 = vst [vmem:[%s13128_s29 + $0x28] sm:$0xff] %v5856_v39  ;;  %5872 = vst [vmem:[%s13128_s29 + $0x30] sm:$0xff] %v5857_v45 }
 0xa1d   : > { %5873 = vst [vmem:[%s13128_s29 + $0x38] sm:$0xff] %v5858_v32  ;;  %5874 = vst [vmem:[%s13128_s29 + $0x40] sm:$0xff] %v5859_v53 }
 0xa1e   : > { %5875 = vst [vmem:[%s13128_s29 + $0x48] sm:$0xff] %v5860_v13  ;;  %5876 = vst [vmem:[%s13128_s29 + $0x50] sm:$0xff] %v5861_v50 }
 0xa1f   : > { %5877 = vst [vmem:[%s13128_s29 + $0x58] sm:$0xff] %v5862_v4  ;;  %5878 = vst [vmem:[%s13128_s29 + $0x60] sm:$0xff] %v5863_v35 }
 0xa20   : > { %5879 = vst [vmem:[%s13128_s29 + $0x68] sm:$0xff] %v5864_v46  ;;  %5880 = vst [vmem:[%s13128_s29 + $0x70] sm:$0xff] %v5865_v33 }
 0xa21 PF: > { %p11408_p9 = scmp.ne.s32.totalorder %s13009_s21, 1 }
 0xa22   : > { %v15513_v57 = vld [vmem:[#allocation4 + $0x8] sm:$0xff] (!%p11408_p9)  ;;  %v15515_v42 = vld [vmem:[#allocation4] sm:$0xff] (!%p11408_p9)  ;;  %s12897_s2 = smov (!%p11408_p9), 127   ;;  %v15521_v61 = vld [vmem:[#allocation4 + $0x10] sm:$0xff] (!%p11408_p9)  ;;  %s12898_s3 = smov (!%p11408_p9), 126   ;;  %vm5979_vm9 = vcmask (!%p11408_p9), 1039360  }
 0xa23   : > { %5884 = sbr.rel (%p11408_p9) target bundleno = 5109 (0x13f5), region = 76  ;;  %5949 = vrot.lane.b32.xlu0 (!%p11408_p9), %v15513_v57, %s12897_s2  ;;  %5947 = vrot.lane.b32.xlu1 (!%p11408_p9), %v15515_v42, %s12897_s2  ;;  %v15523_v25 = vld [vmem:[#allocation4 + $0x18] sm:$0xff] (!%p11408_p9)  ;;  %v15529_v28 = vld [vmem:[#allocation4 + $0x20] sm:$0xff] (!%p11408_p9)  ;;  %s12899_s13 = smov (!%p11408_p9), 125   ;;  %v12910_v14 = vmov (!%p11408_p9), 0.0   ;;  %vm6089_vm13 = vcmask (!%p11408_p9), 1031168  }
 0xa24   : > { %s12900_s12 = smov (!%p11408_p9), 124   ;;  %s12901_s24 = smov (!%p11408_p9), 123   ;;  %7760 = vmatprep.mubr.f32.mxu0 (!%p11408_p9), %v12910_v14  ;;  %7831 = vmatprep.mubr.f32.mxu1 (!%p11408_p9), %v12910_v14  ;;  %vm6199_vm14 = vcmask (!%p11408_p9), 1022976   ;;  %v15674_v19 = vld [vmem:[#allocation4 + $0x28] sm:$0xff] (!%p11408_p9)  ;;  %v15676_v0 = vld [vmem:[#allocation4 + $0x30] sm:$0xff] (!%p11408_p9)  ;;  %v15690_v44 = vld [vmem:[#allocation4 + $0x38] sm:$0xff] (!%p11408_p9) }
 0xa25   : > { %s12902_s14 = smov (!%p11408_p9), 122   ;;  %s12903_s26 = smov (!%p11408_p9), 121   ;;  %v15692_v21 = vld [vmem:[#allocation4 + $0x40] sm:$0xff] (!%p11408_p9)  ;;  %vm6309_vm15 = vcmask (!%p11408_p9), 1014784   ;;  %vm6419_vm0 = vcmask (!%p11408_p9), 1006592   ;;  %vm6529_vm1 = vcmask (!%p11408_p9), 998400  }
 0xa26   : > { %s12904_s28 = smov (!%p11408_p9), 120   ;;  %s12905_s1 = smov (!%p11408_p9), 119   ;;  %vm6639_vm2 = vcmask (!%p11408_p9), 990208   ;;  %vm6749_vm3 = vcmask (!%p11408_p9), 982016   ;;  %vm6859_vm4 = vcmask (!%p11408_p9), 973824   ;;  %vm6969_vm5 = vcmask (!%p11408_p9), 965632  }
 0xa27   : > { %5951 = vrot.lane.b32.xlu0 (!%p11408_p9), %v15521_v61, %s12897_s2  ;;  %5953 = vrot.lane.b32.xlu1 (!%p11408_p9), %v15523_v25, %s12897_s2  ;;  %s12906_s4 = smov (!%p11408_p9), 118   ;;  %s12907_s5 = smov (!%p11408_p9), 117   ;;  %vm7079_vm6 = vcmask (!%p11408_p9), 957440   ;;  %vm7189_vm7 = vcmask (!%p11408_p9), 949248   ;;  %vm7299_vm8 = vcmask (!%p11408_p9), 941056   ;;  %vm7409_vm10 = vcmask (!%p11408_p9), 932864  }
 0xa28   : > { %s12908_s6 = smov (!%p11408_p9), 116   ;;  %s12909_s7 = smov (!%p11408_p9), 115   ;;  %vm12913_vm11 = vmmov (!%p11408_p9), 0   ;;  %vm8579_vm12 = vcmask (!%p11408_p9), 801792  }
 0xa29   : > { %s12911_s16 = smov (!%p11408_p9), 114  }
 0xa2b   : > { %5955 = vrot.lane.b32.xlu0 %v15529_v28, %s12897_s2  ;;  %6059 = vrot.lane.b32.xlu1 %v15513_v57, %s12898_s3 }
 0xa2f   : > { %6061 = vrot.lane.b32.xlu0 %v15521_v61, %s12898_s3  ;;  %6169 = vrot.lane.b32.xlu1 %v15513_v57, %s12899_s13 }
 0xa33   : > { %6171 = vrot.lane.b32.xlu0 %v15521_v61, %s12899_s13  ;;  %6057 = vrot.lane.b32.xlu1 %v15515_v42, %s12898_s3 }
 0xa37   : > { %6167 = vrot.lane.b32.xlu0 %v15515_v42, %s12899_s13  ;;  %6063 = vrot.lane.b32.xlu1 %v15523_v25, %s12898_s3 }
 0xa3b   : > { %6065 = vrot.lane.b32.xlu0 %v15529_v28, %s12898_s3  ;;  %6173 = vrot.lane.b32.xlu1 %v15523_v25, %s12899_s13 }
 0xa3f   : > { %6175 = vrot.lane.b32.xlu0 %v15529_v28, %s12899_s13  ;;  %6279 = vrot.lane.b32.xlu1 %v15513_v57, %s12900_s12 }
 0xa43   : > { %6281 = vrot.lane.b32.xlu0 %v15521_v61, %s12900_s12  ;;  %6389 = vrot.lane.b32.xlu1 %v15513_v57, %s12901_s24 }
 0xa47   : > { %6391 = vrot.lane.b32.xlu0 %v15521_v61, %s12901_s24  ;;  %6277 = vrot.lane.b32.xlu1 %v15515_v42, %s12900_s12 }
 0xa4b   : > { %6387 = vrot.lane.b32.xlu0 %v15515_v42, %s12901_s24  ;;  %6283 = vrot.lane.b32.xlu1 %v15523_v25, %s12900_s12 }
 0xa4f   : > { %6285 = vrot.lane.b32.xlu0 %v15529_v28, %s12900_s12  ;;  %6393 = vrot.lane.b32.xlu1 %v15523_v25, %s12901_s24 }
 0xa53   : > { %6395 = vrot.lane.b32.xlu0 %v15529_v28, %s12901_s24  ;;  %6499 = vrot.lane.b32.xlu1 %v15513_v57, %s12902_s14 }
 0xa57   : > { %6501 = vrot.lane.b32.xlu0 %v15521_v61, %s12902_s14  ;;  %6609 = vrot.lane.b32.xlu1 %v15513_v57, %s12903_s26 }
 0xa5b   : > { %6611 = vrot.lane.b32.xlu0 %v15521_v61, %s12903_s26  ;;  %6497 = vrot.lane.b32.xlu1 %v15515_v42, %s12902_s14 }
 0xa5f   : > { %6607 = vrot.lane.b32.xlu0 %v15515_v42, %s12903_s26  ;;  %6503 = vrot.lane.b32.xlu1 %v15523_v25, %s12902_s14 }
 0xa63   : > { %6505 = vrot.lane.b32.xlu0 %v15529_v28, %s12902_s14  ;;  %6613 = vrot.lane.b32.xlu1 %v15523_v25, %s12903_s26 }
 0xa67   : > { %6615 = vrot.lane.b32.xlu0 %v15529_v28, %s12903_s26  ;;  %6719 = vrot.lane.b32.xlu1 %v15513_v57, %s12904_s28 }
 0xa6b   : > { %6721 = vrot.lane.b32.xlu0 %v15521_v61, %s12904_s28  ;;  %6829 = vrot.lane.b32.xlu1 %v15513_v57, %s12905_s1 }
 0xa6f   : > { %6831 = vrot.lane.b32.xlu0 %v15521_v61, %s12905_s1  ;;  %6717 = vrot.lane.b32.xlu1 %v15515_v42, %s12904_s28 }
 0xa73   : > { %6827 = vrot.lane.b32.xlu0 %v15515_v42, %s12905_s1  ;;  %6723 = vrot.lane.b32.xlu1 %v15523_v25, %s12904_s28 }
 0xa77   : > { %6725 = vrot.lane.b32.xlu0 %v15529_v28, %s12904_s28  ;;  %6833 = vrot.lane.b32.xlu1 %v15523_v25, %s12905_s1 }
 0xa7b   : > { %6835 = vrot.lane.b32.xlu0 %v15529_v28, %s12905_s1  ;;  %6939 = vrot.lane.b32.xlu1 %v15513_v57, %s12906_s4 }
 0xa7f   : > { %6941 = vrot.lane.b32.xlu0 %v15521_v61, %s12906_s4  ;;  %7049 = vrot.lane.b32.xlu1 %v15513_v57, %s12907_s5 }
 0xa83   : > { %7051 = vrot.lane.b32.xlu0 %v15521_v61, %s12907_s5  ;;  %6937 = vrot.lane.b32.xlu1 %v15515_v42, %s12906_s4 }
 0xa87   : > { %7047 = vrot.lane.b32.xlu0 %v15515_v42, %s12907_s5  ;;  %6943 = vrot.lane.b32.xlu1 %v15523_v25, %s12906_s4 }
 0xa8b   : > { %6945 = vrot.lane.b32.xlu0 %v15529_v28, %s12906_s4  ;;  %7053 = vrot.lane.b32.xlu1 %v15523_v25, %s12907_s5 }
 0xa8f   : > { %7055 = vrot.lane.b32.xlu0 %v15529_v28, %s12907_s5  ;;  %7159 = vrot.lane.b32.xlu1 %v15513_v57, %s12908_s6 }
 0xa93   : > { %7161 = vrot.lane.b32.xlu0 %v15521_v61, %s12908_s6  ;;  %7269 = vrot.lane.b32.xlu1 %v15513_v57, %s12909_s7 }
 0xa95   : > { %v5950_v36 = vpop.permute.xlu0 %5949  ;;  %v5948_v20 = vpop.permute.xlu1 %5947 }
 0xa96   : > { %v5980_v16 = vsel %vm5979_vm9, %v5948_v20, %v5950_v36 }
 0xa97   : > { %7271 = vrot.lane.b32.xlu0 %v15521_v61, %s12909_s7  ;;  %7157 = vrot.lane.b32.xlu1 %v15515_v42, %s12908_s6  ;;  %v12118_v60 = vpack.c.bf16 %v5980_v16, %v15515_v42 }
 0xa99   : > { %v5952_v6 = vpop.permute.xlu0 %5951  ;;  %v5954_v22 = vpop.permute.xlu1 %5953 }
 0xa9a   : > { %v5981_v26 = vsel %vm5979_vm9, %v5950_v36, %v5952_v6  ;;  %v5982_v52 = vsel %vm5979_vm9, %v5952_v6, %v5954_v22 }
 0xa9b   : > { %7267 = vrot.lane.b32.xlu0 %v15515_v42, %s12909_s7  ;;  %7163 = vrot.lane.b32.xlu1 %v15523_v25, %s12908_s6  ;;  %v12116_v54 = vpack.c.bf16 %v5981_v26, %v15513_v57  ;;  %v12150_v11 = vpack.c.bf16 %v5982_v52, %v15521_v61 }
 0xa9d   : > { %v15652_v24 = vpop.permute.xlu0 %5955  ;;  %v6060_v56 = vpop.permute.xlu1 %6059  ;;  %12117 = vmatprep.subr.bf16.mxu0 %v12116_v54 }
 0xa9e   : > { %v5983_v38 = vsel %vm5979_vm9, %v5954_v22, %v15652_v24  ;;  %12119 = vmatpush1.bf16.msra.mxu0 %v12118_v60 }
 0xa9f   : > { %7165 = vrot.lane.b32.xlu0 %v15529_v28, %s12908_s6  ;;  %7273 = vrot.lane.b32.xlu1 %v15523_v25, %s12909_s7  ;;  %v12148_v37 = vpack.c.bf16 %v5983_v38, %v15523_v25 }
 0xaa1   : > { %v6062_v23 = vpop.permute.xlu0 %6061  ;;  %v6170_v59 = vpop.permute.xlu1 %6169  ;;  %12149 = vmatprep.subr.bf16.mxu1 %v12148_v37 }
 0xaa2   : > { %12151 = vmatpush1.bf16.msra.mxu1 %v12150_v11  ;;  %v6091_v47 = vsel %vm6089_vm13, %v6060_v56, %v6062_v23 }
 0xaa3   : > { %7275 = vrot.lane.b32.xlu0 %v15529_v28, %s12909_s7  ;;  %7379 = vrot.lane.b32.xlu1 %v15513_v57, %s12911_s16 }
 0xaa5   : > { %v6172_v41 = vpop.permute.xlu0 %6171  ;;  %v6058_v15 = vpop.permute.xlu1 %6057 }
 0xaa6   : > { %v6201_v51 = vsel %vm6199_vm14, %v6170_v59, %v6172_v41  ;;  %v6090_v9 = vsel %vm6089_vm13, %v6058_v15, %v6060_v56 }
 0xaa7   : > { %7381 = vrot.lane.b32.xlu0 %v15521_v61, %s12911_s16  ;;  %7377 = vrot.lane.b32.xlu1 %v15515_v42, %s12911_s16  ;;  %v12120_v48 = vpack.c.bf16 %v6201_v51, %v6091_v47 }
 0xaa9   : > { %v6168_v63 = vpop.permute.xlu0 %6167  ;;  %v6064_v12 = vpop.permute.xlu1 %6063  ;;  %12121 = vmatprep.subr.bf16.mxu0 %v12120_v48 }
 0xaaa   : > { %v6200_v8 = vsel %vm6199_vm14, %v6168_v63, %v6170_v59  ;;  %v6092_v1 = vsel %vm6089_vm13, %v6062_v23, %v6064_v12 }
 0xaab   : > { %5957 = vrot.lane.b32.xlu0 %v15674_v19, %s12897_s2  ;;  %5959 = vrot.lane.b32.xlu1 %v15676_v0, %s12897_s2  ;;  %v12122_v29 = vpack.c.bf16 %v6200_v8, %v6090_v9 }
 0xaad   : > { %v15684_v62 = vpop.permute.xlu0 %6065  ;;  %v6174_v34 = vpop.permute.xlu1 %6173  ;;  %12123 = vmatpush1.bf16.msra.mxu0 %v12122_v29 }
 0xaae   : > { %v6202_v43 = vsel %vm6199_vm14, %v6172_v41, %v6174_v34  ;;  %v6093_v3 = vsel %vm6089_vm13, %v6064_v12, %v15684_v62 }
 0xaaf   : > { %7383 = vrot.lane.b32.xlu0 %v15523_v25, %s12911_s16  ;;  %7385 = vrot.lane.b32.xlu1 %v15529_v28, %s12911_s16  ;;  %v12154_v7 = vpack.c.bf16 %v6202_v43, %v6092_v1 }
 0xab1   : > { %v15695_v18 = vpop.permute.xlu0 %6175  ;;  %v6280_v27 = vpop.permute.xlu1 %6279 }
 0xab2   : > { %v6203_v49 = vsel %vm6199_vm14, %v6174_v34, %v15695_v18 }
 0xab3   : > { %5961 = vrot.lane.b32.xlu0 %v15690_v44, %s12897_s2  ;;  %5963 = vrot.lane.b32.xlu1 %v15692_v21, %s12897_s2  ;;  %v12152_v10 = vpack.c.bf16 %v6203_v49, %v6093_v3 }
 0xab5   : > { %v6282_v55 = vpop.permute.xlu0 %6281  ;;  %v6390_v30 = vpop.permute.xlu1 %6389  ;;  %12153 = vmatprep.subr.bf16.mxu1 %v12152_v10 }
 0xab6   : > { %12155 = vmatpush1.bf16.msra.mxu1 %v12154_v7  ;;  %v6311_v5 = vsel %vm6309_vm15, %v6280_v27, %v6282_v55 }
 0xab7   : > { %6067 = vrot.lane.b32.xlu0 %v15674_v19, %s12898_s3  ;;  %6069 = vrot.lane.b32.xlu1 %v15676_v0, %s12898_s3 }
 0xab9   : > { %v6392_v58 = vpop.permute.xlu0 %6391  ;;  %v6278_v17 = vpop.permute.xlu1 %6277 }
 0xaba   : > { %v6421_v40 = vsel %vm6419_vm0, %v6390_v30, %v6392_v58  ;;  %v6310_v45 = vsel %vm6309_vm15, %v6278_v17, %v6280_v27 }
 0xabb   : > { %6177 = vrot.lane.b32.xlu0 %v15674_v19, %s12899_s13  ;;  %6179 = vrot.lane.b32.xlu1 %v15676_v0, %s12899_s13  ;;  %v12124_v2 = vpack.c.bf16 %v6421_v40, %v6311_v5 }
 0xabd   : > { %v6388_v31 = vpop.permute.xlu0 %6387  ;;  %v6284_v39 = vpop.permute.xlu1 %6283  ;;  %12125 = vmatprep.subr.bf16.mxu0 %v12124_v2 }
 0xabe   : > { %v6420_v32 = vsel %vm6419_vm0, %v6388_v31, %v6390_v30  ;;  %v6312_v42 = vsel %vm6309_vm15, %v6282_v55, %v6284_v39 }
 0xabf   : > { %6071 = vrot.lane.b32.xlu0 %v15690_v44, %s12898_s3  ;;  %6073 = vrot.lane.b32.xlu1 %v15692_v21, %s12898_s3  ;;  %v12126_v53 = vpack.c.bf16 %v6420_v32, %v6310_v45 }
 0xac1   : > { %v15722_v13 = vpop.permute.xlu0 %6285  ;;  %v6394_v50 = vpop.permute.xlu1 %6393  ;;  %12127 = vmatpush1.bf16.msra.mxu0 %v12126_v53 }
 0xac2   : > { %v6422_v4 = vsel %vm6419_vm0, %v6392_v58, %v6394_v50  ;;  %v6313_v33 = vsel %vm6309_vm15, %v6284_v39, %v15722_v13 }
 0xac3   : > { %6181 = vrot.lane.b32.xlu0 %v15690_v44, %s12899_s13  ;;  %6183 = vrot.lane.b32.xlu1 %v15692_v21, %s12899_s13  ;;  %v12158_v25 = vpack.c.bf16 %v6422_v4, %v6312_v42 }
 0xac5   : > { %v15729_v35 = vpop.permute.xlu0 %6395  ;;  %v6500_v46 = vpop.permute.xlu1 %6499 }
 0xac6   : > { %v6423_v57 = vsel %vm6419_vm0, %v6394_v50, %v15729_v35 }
 0xac7   : > { %6287 = vrot.lane.b32.xlu0 %v15674_v19, %s12900_s12  ;;  %6289 = vrot.lane.b32.xlu1 %v15676_v0, %s12900_s12  ;;  %v12156_v61 = vpack.c.bf16 %v6423_v57, %v6313_v33 }
 0xac9   : > { %v6502_v28 = vpop.permute.xlu0 %6501  ;;  %v6610_v36 = vpop.permute.xlu1 %6609  ;;  %12157 = vmatprep.subr.bf16.mxu1 %v12156_v61 }
 0xaca   : > { %12159 = vmatpush1.bf16.msra.mxu1 %v12158_v25  ;;  %v6531_v6 = vsel %vm6529_vm1, %v6500_v46, %v6502_v28 }
 0xacb   : > { %6397 = vrot.lane.b32.xlu0 %v15674_v19, %s12901_s24  ;;  %6399 = vrot.lane.b32.xlu1 %v15676_v0, %s12901_s24 }
 0xacd   : > { %v6612_v20 = vpop.permute.xlu0 %6611  ;;  %v6498_v16 = vpop.permute.xlu1 %6497 }
 0xace   : > { %v6641_v22 = vsel %vm6639_vm2, %v6610_v36, %v6612_v20  ;;  %v6530_v52 = vsel %vm6529_vm1, %v6498_v16, %v6500_v46 }
 0xacf   : > { %6291 = vrot.lane.b32.xlu0 %v15690_v44, %s12900_s12  ;;  %6293 = vrot.lane.b32.xlu1 %v15692_v21, %s12900_s12  ;;  %v12128_v26 = vpack.c.bf16 %v6641_v22, %v6531_v6 }
 0xad1   : > { %v6608_v54 = vpop.permute.xlu0 %6607  ;;  %v6504_v60 = vpop.permute.xlu1 %6503  ;;  %12129 = vmatprep.subr.bf16.mxu0 %v12128_v26 }
 0xad2   : > { %v6640_v56 = vsel %vm6639_vm2, %v6608_v54, %v6610_v36  ;;  %v6532_v51 = vsel %vm6529_vm1, %v6502_v28, %v6504_v60 }
 0xad3   : > { %6401 = vrot.lane.b32.xlu0 %v15690_v44, %s12901_s24  ;;  %6403 = vrot.lane.b32.xlu1 %v15692_v21, %s12901_s24  ;;  %v12130_v38 = vpack.c.bf16 %v6640_v56, %v6530_v52 }
 0xad5   : > { %v15756_v37 = vpop.permute.xlu0 %6505  ;;  %v6614_v11 = vpop.permute.xlu1 %6613  ;;  %12131 = vmatpush1.bf16.msra.mxu0 %v12130_v38 }
 0xad6   : > { %v6642_v23 = vsel %vm6639_vm2, %v6612_v20, %v6614_v11  ;;  %v6533_v15 = vsel %vm6529_vm1, %v6504_v60, %v15756_v37 }
 0xad7   : > { %6507 = vrot.lane.b32.xlu0 %v15674_v19, %s12902_s14  ;;  %6509 = vrot.lane.b32.xlu1 %v15676_v0, %s12902_s14  ;;  %v12162_v63 = vpack.c.bf16 %v6642_v23, %v6532_v51 }
 0xad9   : > { %v15763_v59 = vpop.permute.xlu0 %6615  ;;  %v6720_v41 = vpop.permute.xlu1 %6719 }
 0xada   : > { %v6643_v47 = vsel %vm6639_vm2, %v6614_v11, %v15763_v59 }
 0xadb   : > { %6617 = vrot.lane.b32.xlu0 %v15674_v19, %s12903_s26  ;;  %6619 = vrot.lane.b32.xlu1 %v15676_v0, %s12903_s26  ;;  %v12160_v48 = vpack.c.bf16 %v6643_v47, %v6533_v15 }
 0xadd   : > { %v6722_v12 = vpop.permute.xlu0 %6721  ;;  %v6830_v9 = vpop.permute.xlu1 %6829  ;;  %12161 = vmatprep.subr.bf16.mxu1 %v12160_v48 }
 0xade   : > { %12163 = vmatpush1.bf16.msra.mxu1 %v12162_v63  ;;  %v6751_v34 = vsel %vm6749_vm3, %v6720_v41, %v6722_v12 }
 0xadf   : > { %6511 = vrot.lane.b32.xlu0 %v15690_v44, %s12902_s14  ;;  %6513 = vrot.lane.b32.xlu1 %v15692_v21, %s12902_s14 }
 0xae1   : > { %v6832_v8 = vpop.permute.xlu0 %6831  ;;  %v6718_v29 = vpop.permute.xlu1 %6717 }
 0xae2   : > { %v6861_v43 = vsel %vm6859_vm4, %v6830_v9, %v6832_v8  ;;  %v6750_v1 = vsel %vm6749_vm3, %v6718_v29, %v6720_v41 }
 0xae3   : > { %6621 = vrot.lane.b32.xlu0 %v15690_v44, %s12903_s26  ;;  %6623 = vrot.lane.b32.xlu1 %v15692_v21, %s12903_s26  ;;  %v12132_v27 = vpack.c.bf16 %v6861_v43, %v6751_v34 }
 0xae5   : > { %v6828_v3 = vpop.permute.xlu0 %6827  ;;  %v6724_v49 = vpop.permute.xlu1 %6723  ;;  %12133 = vmatprep.subr.bf16.mxu0 %v12132_v27 }
 0xae6   : > { %v6860_v10 = vsel %vm6859_vm4, %v6828_v3, %v6830_v9  ;;  %v6752_v31 = vsel %vm6749_vm3, %v6722_v12, %v6724_v49 }
 0xae7   : > { %6727 = vrot.lane.b32.xlu0 %v15674_v19, %s12904_s28  ;;  %6729 = vrot.lane.b32.xlu1 %v15676_v0, %s12904_s28  ;;  %v12134_v7 = vpack.c.bf16 %v6860_v10, %v6750_v1 }
 0xae9   : > { %v15790_v55 = vpop.permute.xlu0 %6725  ;;  %v6834_v30 = vpop.permute.xlu1 %6833  ;;  %12135 = vmatpush1.bf16.msra.mxu0 %v12134_v7 }
 0xaea   : > { %v6862_v58 = vsel %vm6859_vm4, %v6832_v8, %v6834_v30  ;;  %v6753_v40 = vsel %vm6749_vm3, %v6724_v49, %v15790_v55 }
 0xaeb   : > { %6837 = vrot.lane.b32.xlu0 %v15674_v19, %s12905_s1  ;;  %6839 = vrot.lane.b32.xlu1 %v15676_v0, %s12905_s1  ;;  %v12166_v45 = vpack.c.bf16 %v6862_v58, %v6752_v31  ;;  %v7681_v31 = vld [vmem:[#allocation2 + $0x708] sm:$0xff] }
 0xaed   : > { %v15797_v17 = vpop.permute.xlu0 %6835  ;;  %v6940_v5 = vpop.permute.xlu1 %6939 }
 0xaee   : > { %v6863_v2 = vsel %vm6859_vm4, %v6834_v30, %v15797_v17  ;;  %v15876_v30 = vld [vmem:[#allocation4 + $0x48] sm:$0xff] }
 0xaef   : > { %6731 = vrot.lane.b32.xlu0 %v15690_v44, %s12904_s28  ;;  %6733 = vrot.lane.b32.xlu1 %v15692_v21, %s12904_s28  ;;  %v12164_v39 = vpack.c.bf16 %v6863_v2, %v6753_v40  ;;  %v7682_v2 = vld [vmem:[#allocation2 + $0x710] sm:$0xff] }
 0xaf1   : > { %v6942_v32 = vpop.permute.xlu0 %6941  ;;  %v7050_v53 = vpop.permute.xlu1 %7049  ;;  %12165 = vmatprep.subr.bf16.mxu1 %v12164_v39 }
 0xaf2   : > { %12167 = vmatpush1.bf16.msra.mxu1 %v12166_v45  ;;  %v6971_v46 = vsel %vm6969_vm5, %v6940_v5, %v6942_v32 }
 0xaf3   : > { %6841 = vrot.lane.b32.xlu0 %v15690_v44, %s12905_s1  ;;  %6843 = vrot.lane.b32.xlu1 %v15692_v21, %s12905_s1 }
 0xaf5   : > { %v7052_v50 = vpop.permute.xlu0 %7051  ;;  %v6938_v4 = vpop.permute.xlu1 %6937 }
 0xaf6   : > { %v7081_v33 = vsel %vm7079_vm6, %v7050_v53, %v7052_v50  ;;  %v6970_v25 = vsel %vm6969_vm5, %v6938_v4, %v6940_v5  ;;  %v15878_v5 = vld [vmem:[#allocation4 + $0x50] sm:$0xff] }
 0xaf7   : > { %6947 = vrot.lane.b32.xlu0 %v15674_v19, %s12906_s4  ;;  %6949 = vrot.lane.b32.xlu1 %v15676_v0, %s12906_s4  ;;  %v12136_v57 = vpack.c.bf16 %v7081_v33, %v6971_v46  ;;  %v5889_v46 = vld [vmem:[#allocation4 + $0x20] sm:$0xff] }
 0xaf9   : > { %v7048_v42 = vpop.permute.xlu0 %7047  ;;  %v6944_v61 = vpop.permute.xlu1 %6943  ;;  %12137 = vmatprep.subr.bf16.mxu0 %v12136_v57 }
 0xafa   : > { %v7080_v28 = vsel %vm7079_vm6, %v7048_v42, %v7050_v53  ;;  %v6972_v52 = vsel %vm6969_vm5, %v6942_v32, %v6944_v61 }
 0xafb   : > { %7057 = vrot.lane.b32.xlu0 %v15674_v19, %s12907_s5  ;;  %7059 = vrot.lane.b32.xlu1 %v15676_v0, %s12907_s5  ;;  %v12138_v36 = vpack.c.bf16 %v7080_v28, %v6970_v25  ;;  %v15890_v25 = vld [vmem:[%s13085_s25] sm:$0xff]  ;;  %v15896_v28 = vld [vmem:[#allocation4 + $0x58] sm:$0xff] }
 0xafd   : > { %v15824_v20 = vpop.permute.xlu0 %6945  ;;  %v7054_v16 = vpop.permute.xlu1 %7053  ;;  %12139 = vmatpush1.bf16.msra.mxu0 %v12138_v36 }
 0xafe   : > { %v7082_v6 = vsel %vm7079_vm6, %v7052_v50, %v7054_v16  ;;  %v6973_v54 = vsel %vm6969_vm5, %v6944_v61, %v15824_v20 }
 0xaff   : > { %6951 = vrot.lane.b32.xlu0 %v15690_v44, %s12906_s4  ;;  %6953 = vrot.lane.b32.xlu1 %v15692_v21, %s12906_s4  ;;  %v12170_v38 = vpack.c.bf16 %v7082_v6, %v6972_v52  ;;  %v15899_v6 = vld [vmem:[#allocation4 + $0x60] sm:$0xff] }
 0xb01   : > { %v15831_v22 = vpop.permute.xlu0 %7055  ;;  %v7160_v26 = vpop.permute.xlu1 %7159 }
 0xb02   : > { %v7083_v60 = vsel %vm7079_vm6, %v7054_v16, %v15831_v22 }
 0xb03   : > { %7061 = vrot.lane.b32.xlu0 %v15690_v44, %s12907_s5  ;;  %7063 = vrot.lane.b32.xlu1 %v15692_v21, %s12907_s5  ;;  %v12168_v56 = vpack.c.bf16 %v7083_v60, %v6973_v54 }
 0xb05   : > { %v7162_v11 = vpop.permute.xlu0 %7161  ;;  %v7270_v23 = vpop.permute.xlu1 %7269  ;;  %12169 = vmatprep.subr.bf16.mxu1 %v12168_v56 }
 0xb06   : > { %12171 = vmatpush1.bf16.msra.mxu1 %v12170_v38  ;;  %v7191_v47 = vsel %vm7189_vm7, %v7160_v26, %v7162_v11 }
 0xb07   : > { %7167 = vrot.lane.b32.xlu0 %v15674_v19, %s12908_s6  ;;  %7169 = vrot.lane.b32.xlu1 %v15676_v0, %s12908_s6 }
 0xb09   : > { %v7272_v41 = vpop.permute.xlu0 %7271  ;;  %v7158_v15 = vpop.permute.xlu1 %7157 }
 0xb0a   : > { %v7301_v51 = vsel %vm7299_vm8, %v7270_v23, %v7272_v41  ;;  %v7190_v9 = vsel %vm7189_vm7, %v7158_v15, %v7160_v26  ;;  %v7684_v26 = vld [vmem:[#allocation2 + $0x720] sm:$0xff] }
 0xb0b   : > { %7277 = vrot.lane.b32.xlu0 %v15674_v19, %s12909_s7  ;;  %7279 = vrot.lane.b32.xlu1 %v15676_v0, %s12909_s7  ;;  %v12140_v48 = vpack.c.bf16 %v7301_v51, %v7191_v47 }
 0xb0d   : > { %v7268_v63 = vpop.permute.xlu0 %7267  ;;  %v7164_v12 = vpop.permute.xlu1 %7163  ;;  %12141 = vmatprep.subr.bf16.mxu0 %v12140_v48 }
 0xb0e   : > { %v7300_v8 = vsel %vm7299_vm8, %v7268_v63, %v7270_v23  ;;  %v7192_v7 = vsel %vm7189_vm7, %v7162_v11, %v7164_v12 }
 0xb0f   : > { %7171 = vrot.lane.b32.xlu0 %v15690_v44, %s12908_s6  ;;  %7173 = vrot.lane.b32.xlu1 %v15692_v21, %s12908_s6  ;;  %v12142_v29 = vpack.c.bf16 %v7300_v8, %v7190_v9 }
 0xb11   : > { %v15858_v34 = vpop.permute.xlu0 %7165  ;;  %v7274_v43 = vpop.permute.xlu1 %7273  ;;  %12143 = vmatpush1.bf16.msra.mxu0 %v12142_v29 }
 0xb12   : > { %v7302_v27 = vsel %vm7299_vm8, %v7272_v41, %v7274_v43  ;;  %v7193_v1 = vsel %vm7189_vm7, %v7164_v12, %v15858_v34 }
 0xb13   : > { %7281 = vrot.lane.b32.xlu0 %v15690_v44, %s12909_s7  ;;  %7283 = vrot.lane.b32.xlu1 %v15692_v21, %s12909_s7  ;;  %v12174_v40 = vpack.c.bf16 %v7302_v27, %v7192_v7 }
 0xb15   : > { %v15865_v3 = vpop.permute.xlu0 %7275  ;;  %v7380_v49 = vpop.permute.xlu1 %7379 }
 0xb16   : > { %v7303_v10 = vsel %vm7299_vm8, %v7274_v43, %v15865_v3 }
 0xb17   : > { %7387 = vrot.lane.b32.xlu0 %v15674_v19, %s12911_s16  ;;  %7389 = vrot.lane.b32.xlu1 %v15676_v0, %s12911_s16  ;;  %v12172_v58 = vpack.c.bf16 %v7303_v10, %v7193_v1 }
 0xb19   : > { %v7382_v39 = vpop.permute.xlu0 %7381  ;;  %v7378_v45 = vpop.permute.xlu1 %7377  ;;  %12173 = vmatprep.subr.bf16.mxu1 %v12172_v58 }
 0xb1a   : > { %v7411_v32 = vsel %vm7409_vm10, %v7380_v49, %v7382_v39  ;;  %v7410_v53 = vsel %vm7409_vm10, %v7378_v45, %v7380_v49  ;;  %12175 = vmatpush1.bf16.msra.mxu1 %v12174_v40 }
 0xb1b   : > { %5965 = vrot.lane.b32.xlu0 %v15876_v30, %s12897_s2  ;;  %5967 = vrot.lane.b32.xlu1 %v15878_v5, %s12897_s2  ;;  %v12144_v50 = vpack.c.bf16 %v7682_v2, %v7411_v32  ;;  %v12146_v4 = vpack.c.bf16 %v7681_v31, %v7410_v53 }
 0xb1d   : > { %v5958_v33 = vpop.permute.xlu0 %5957  ;;  %v5960_v57 = vpop.permute.xlu1 %5959  ;;  %12145 = vmatprep.subr.bf16.mxu0 %v12144_v50 }
 0xb1e   : > { %v5984_v42 = vsel %vm5979_vm9, %v15652_v24, %v5958_v33  ;;  %v5985_v61 = vsel %vm5979_vm9, %v5958_v33, %v5960_v57  ;;  %12147 = vmatpush1.bf16.msra.mxu0 %v12146_v4  ;;  %v7683_v24 = vld [vmem:[#allocation2 + $0x718] sm:$0xff] }
 0xb1f   : > { %7391 = vrot.lane.b32.xlu0 %v15690_v44, %s12911_s16  ;;  %7393 = vrot.lane.b32.xlu1 %v15692_v21, %s12911_s16  ;;  %v12180_v36 = vpack.c.bf16 %v5985_v61, %v15674_v19  ;;  %v12182_v16 = vpack.c.bf16 %v5984_v42, %v5889_v46 }
 0xb21   : > { %v7384_v54 = vpop.permute.xlu0 %7383  ;;  %v15901_v60 = vpop.permute.xlu1 %7385  ;;  %12181 = vmatprep.subr.bf16.mxu0 %v12180_v36  ;;  %7761 = vmatmul.mubr.f32.vlgmr.msra.gmra.mrb[0].mxu0 %v15890_v25 }
 0xb22   : > { %v7412_v52 = vsel %vm7409_vm10, %v7382_v39, %v7384_v54  ;;  %v7413_v21 = vsel %vm7409_vm10, %v7384_v54, %v15901_v60  ;;  %12183 = vmatpush1.bf16.msra.mxu0 %v12182_v16  ;;  %7902 = vmatprep.mubr.f32.mxu0 %v12910_v14 }
 0xb23   : > { %5969 = vrot.lane.b32.xlu0 %v15896_v28, %s12897_s2  ;;  %5971 = vrot.lane.b32.xlu1 %v15899_v6, %s12897_s2  ;;  %v12176_v19 = vpack.c.bf16 %v7684_v26, %v7413_v21  ;;  %v12178_v56 = vpack.c.bf16 %v7683_v24, %v7412_v52 }
 0xb25   : > { %v5962_v38 = vpop.permute.xlu0 %5961  ;;  %v15912_v11 = vpop.permute.xlu1 %5963  ;;  %12177 = vmatprep.subr.bf16.mxu1 %v12176_v19 }
 0xb26   : > { %v5986_v23 = vsel %vm5979_vm9, %v5960_v57, %v5962_v38  ;;  %v5987_v41 = vsel %vm5979_vm9, %v5962_v38, %v15912_v11  ;;  %12179 = vmatpush1.bf16.msra.mxu1 %v12178_v56 }
 0xb27   : > { %6075 = vrot.lane.b32.xlu0 %v15876_v30, %s12898_s3  ;;  %6077 = vrot.lane.b32.xlu1 %v15878_v5, %s12898_s3  ;;  %v12212_v15 = vpack.c.bf16 %v5987_v41, %v15690_v44  ;;  %v12214_v47 = vpack.c.bf16 %v5986_v23, %v15676_v0 }
 0xb29   : > { %v6068_v51 = vpop.permute.xlu0 %6067  ;;  %v6070_v48 = vpop.permute.xlu1 %6069  ;;  %12213 = vmatprep.subr.bf16.mxu1 %v12212_v15  ;;  %7832 = vmatmul.mubr.f32.vlgmr.msra.gmra.mrb[0].mxu1 %v15890_v25 }
 0xb2a   : > { %12215 = vmatpush1.bf16.msra.mxu1 %v12214_v47  ;;  %7973 = vmatprep.mubr.f32.mxu1 %v12910_v14  ;;  %v6094_v44 = vsel %vm6089_vm13, %v15684_v62, %v6068_v51  ;;  %v6095_v0 = vsel %vm6089_vm13, %v6068_v51, %v6070_v48 }
 0xb2b   : > { %6185 = vrot.lane.b32.xlu0 %v15876_v30, %s12899_s13  ;;  %6187 = vrot.lane.b32.xlu1 %v15878_v5, %s12899_s13 }
 0xb2d   : > { %v6178_v63 = vpop.permute.xlu0 %6177  ;;  %v6180_v12 = vpop.permute.xlu1 %6179 }
 0xb2e   : > { %v6204_v9 = vsel %vm6199_vm14, %v15695_v18, %v6178_v63  ;;  %v6205_v8 = vsel %vm6199_vm14, %v6178_v63, %v6180_v12 }
 0xb2f   : > { %6079 = vrot.lane.b32.xlu0 %v15896_v28, %s12898_s3  ;;  %6081 = vrot.lane.b32.xlu1 %v15899_v6, %s12898_s3  ;;  %v12184_v29 = vpack.c.bf16 %v6205_v8, %v6095_v0  ;;  %v12186_v43 = vpack.c.bf16 %v6204_v9, %v6094_v44 }
 0xb31   : > { %v6072_v27 = vpop.permute.xlu0 %6071  ;;  %v15939_v49 = vpop.permute.xlu1 %6073  ;;  %12185 = vmatprep.subr.bf16.mxu0 %v12184_v29 }
 0xb32   : > { %12187 = vmatpush1.bf16.msra.mxu0 %v12186_v43  ;;  %v6096_v1 = vsel %vm6089_vm13, %v6070_v48, %v6072_v27  ;;  %v6097_v10 = vsel %vm6089_vm13, %v6072_v27, %v15939_v49 }
 0xb33   : > { %6189 = vrot.lane.b32.xlu0 %v15896_v28, %s12899_s13  ;;  %6191 = vrot.lane.b32.xlu1 %v15899_v6, %s12899_s13 }
 0xb35   : > { %v6182_v62 = vpop.permute.xlu0 %6181  ;;  %v15945_v18 = vpop.permute.xlu1 %6183 }
 0xb36   : > { %v6206_v7 = vsel %vm6199_vm14, %v6180_v12, %v6182_v62  ;;  %v6207_v58 = vsel %vm6199_vm14, %v6182_v62, %v15945_v18 }
 0xb37   : > { %6295 = vrot.lane.b32.xlu0 %v15876_v30, %s12900_s12  ;;  %6297 = vrot.lane.b32.xlu1 %v15878_v5, %s12900_s12  ;;  %v12216_v40 = vpack.c.bf16 %v6207_v58, %v6097_v10  ;;  %v12218_v2 = vpack.c.bf16 %v6206_v7, %v6096_v1 }
 0xb39   : > { %v6288_v31 = vpop.permute.xlu0 %6287  ;;  %v6290_v39 = vpop.permute.xlu1 %6289  ;;  %12217 = vmatprep.subr.bf16.mxu1 %v12216_v40 }
 0xb3a   : > { %12219 = vmatpush1.bf16.msra.mxu1 %v12218_v2  ;;  %v6314_v53 = vsel %vm6309_vm15, %v15722_v13, %v6288_v31  ;;  %v6315_v50 = vsel %vm6309_vm15, %v6288_v31, %v6290_v39 }
 0xb3b   : > { %6405 = vrot.lane.b32.xlu0 %v15876_v30, %s12901_s24  ;;  %6407 = vrot.lane.b32.xlu1 %v15878_v5, %s12901_s24 }
 0xb3d   : > { %v6398_v45 = vpop.permute.xlu0 %6397  ;;  %v6400_v32 = vpop.permute.xlu1 %6399 }
 0xb3e   : > { %v6424_v4 = vsel %vm6419_vm0, %v15729_v35, %v6398_v45  ;;  %v6425_v46 = vsel %vm6419_vm0, %v6398_v45, %v6400_v32 }
 0xb3f   : > { %6299 = vrot.lane.b32.xlu0 %v15896_v28, %s12900_s12  ;;  %6301 = vrot.lane.b32.xlu1 %v15899_v6, %s12900_s12  ;;  %v12188_v33 = vpack.c.bf16 %v6425_v46, %v6315_v50  ;;  %v12190_v57 = vpack.c.bf16 %v6424_v4, %v6314_v53 }
 0xb41   : > { %v6292_v42 = vpop.permute.xlu0 %6291  ;;  %v15971_v61 = vpop.permute.xlu1 %6293  ;;  %12189 = vmatprep.subr.bf16.mxu0 %v12188_v33 }
 0xb42   : > { %12191 = vmatpush1.bf16.msra.mxu0 %v12190_v57  ;;  %v6316_v36 = vsel %vm6309_vm15, %v6290_v39, %v6292_v42  ;;  %v6317_v16 = vsel %vm6309_vm15, %v6292_v42, %v15971_v61 }
 0xb43   : > { %6409 = vrot.lane.b32.xlu0 %v15896_v28, %s12901_s24  ;;  %6411 = vrot.lane.b32.xlu1 %v15899_v6, %s12901_s24 }
 0xb45   : > { %v6402_v13 = vpop.permute.xlu0 %6401  ;;  %v15977_v35 = vpop.permute.xlu1 %6403 }
 0xb46   : > { %v6426_v26 = vsel %vm6419_vm0, %v6400_v32, %v6402_v13  ;;  %v6427_v24 = vsel %vm6419_vm0, %v6402_v13, %v15977_v35 }
 0xb47   : > { %6515 = vrot.lane.b32.xlu0 %v15876_v30, %s12902_s14  ;;  %6517 = vrot.lane.b32.xlu1 %v15878_v5, %s12902_s14  ;;  %v12220_v54 = vpack.c.bf16 %v6427_v24, %v6317_v16  ;;  %v12222_v52 = vpack.c.bf16 %v6426_v26, %v6316_v36 }
 0xb49   : > { %v6508_v21 = vpop.permute.xlu0 %6507  ;;  %v6510_v19 = vpop.permute.xlu1 %6509  ;;  %12221 = vmatprep.subr.bf16.mxu1 %v12220_v54 }
 0xb4a   : > { %12223 = vmatpush1.bf16.msra.mxu1 %v12222_v52  ;;  %v6534_v23 = vsel %vm6529_vm1, %v15756_v37, %v6508_v21  ;;  %v6535_v41 = vsel %vm6529_vm1, %v6508_v21, %v6510_v19 }
 0xb4b   : > { %6625 = vrot.lane.b32.xlu0 %v15876_v30, %s12903_s26  ;;  %6627 = vrot.lane.b32.xlu1 %v15878_v5, %s12903_s26 }
 0xb4d   : > { %v6618_v56 = vpop.permute.xlu0 %6617  ;;  %v6620_v38 = vpop.permute.xlu1 %6619 }
 0xb4e   : > { %v6644_v15 = vsel %vm6639_vm2, %v15763_v59, %v6618_v56  ;;  %v6645_v47 = vsel %vm6639_vm2, %v6618_v56, %v6620_v38 }
 0xb4f   : > { %6519 = vrot.lane.b32.xlu0 %v15896_v28, %s12902_s14  ;;  %6521 = vrot.lane.b32.xlu1 %v15899_v6, %s12902_s14  ;;  %v12192_v51 = vpack.c.bf16 %v6645_v47, %v6535_v41  ;;  %v12194_v48 = vpack.c.bf16 %v6644_v15, %v6534_v23 }
 0xb51   : > { %v6512_v63 = vpop.permute.xlu0 %6511  ;;  %v16003_v12 = vpop.permute.xlu1 %6513  ;;  %12193 = vmatprep.subr.bf16.mxu0 %v12192_v51 }
 0xb52   : > { %12195 = vmatpush1.bf16.msra.mxu0 %v12194_v48  ;;  %v6536_v44 = vsel %vm6529_vm1, %v6510_v19, %v6512_v63  ;;  %v6537_v0 = vsel %vm6529_vm1, %v6512_v63, %v16003_v12 }
 0xb53   : > { %6629 = vrot.lane.b32.xlu0 %v15896_v28, %s12903_s26  ;;  %6631 = vrot.lane.b32.xlu1 %v15899_v6, %s12903_s26 }
 0xb55   : > { %v6622_v37 = vpop.permute.xlu0 %6621  ;;  %v16009_v59 = vpop.permute.xlu1 %6623 }
 0xb56   : > { %v6646_v9 = vsel %vm6639_vm2, %v6620_v38, %v6622_v37  ;;  %v6647_v8 = vsel %vm6639_vm2, %v6622_v37, %v16009_v59 }
 0xb57   : > { %6735 = vrot.lane.b32.xlu0 %v15876_v30, %s12904_s28  ;;  %6737 = vrot.lane.b32.xlu1 %v15878_v5, %s12904_s28  ;;  %v12224_v29 = vpack.c.bf16 %v6647_v8, %v6537_v0  ;;  %v12226_v43 = vpack.c.bf16 %v6646_v9, %v6536_v44 }
 0xb59   : > { %v6728_v27 = vpop.permute.xlu0 %6727  ;;  %v6730_v62 = vpop.permute.xlu1 %6729  ;;  %12225 = vmatprep.subr.bf16.mxu1 %v12224_v29 }
 0xb5a   : > { %12227 = vmatpush1.bf16.msra.mxu1 %v12226_v43  ;;  %v6754_v7 = vsel %vm6749_vm3, %v15790_v55, %v6728_v27  ;;  %v6755_v58 = vsel %vm6749_vm3, %v6728_v27, %v6730_v62 }
 0xb5b   : > { %6845 = vrot.lane.b32.xlu0 %v15876_v30, %s12905_s1  ;;  %6847 = vrot.lane.b32.xlu1 %v15878_v5, %s12905_s1 }
 0xb5d   : > { %v6838_v1 = vpop.permute.xlu0 %6837  ;;  %v6840_v10 = vpop.permute.xlu1 %6839 }
 0xb5e   : > { %v6864_v40 = vsel %vm6859_vm4, %v15797_v17, %v6838_v1  ;;  %v6865_v2 = vsel %vm6859_vm4, %v6838_v1, %v6840_v10 }
 0xb5f   : > { %6739 = vrot.lane.b32.xlu0 %v15896_v28, %s12904_s28  ;;  %6741 = vrot.lane.b32.xlu1 %v15899_v6, %s12904_s28  ;;  %v12196_v31 = vpack.c.bf16 %v6865_v2, %v6755_v58  ;;  %v12198_v39 = vpack.c.bf16 %v6864_v40, %v6754_v7 }
 0xb61   : > { %v6732_v45 = vpop.permute.xlu0 %6731  ;;  %v16035_v32 = vpop.permute.xlu1 %6733  ;;  %12197 = vmatprep.subr.bf16.mxu0 %v12196_v31  ;;  %v16117_v31 = vld [vmem:[#allocation4 + $0x68] sm:$0xff] }
 0xb62   : > { %12199 = vmatpush1.bf16.msra.mxu0 %v12198_v39  ;;  %v6756_v53 = vsel %vm6749_vm3, %v6730_v62, %v6732_v45  ;;  %v6757_v50 = vsel %vm6749_vm3, %v6732_v45, %v16035_v32 }
 0xb63   : > { %6849 = vrot.lane.b32.xlu0 %v15896_v28, %s12905_s1  ;;  %6851 = vrot.lane.b32.xlu1 %v15899_v6, %s12905_s1 }
 0xb65   : > { %v6842_v55 = vpop.permute.xlu0 %6841  ;;  %v16041_v17 = vpop.permute.xlu1 %6843 }
 0xb66   : > { %v6866_v4 = vsel %vm6859_vm4, %v6840_v10, %v6842_v55  ;;  %v6867_v46 = vsel %vm6859_vm4, %v6842_v55, %v16041_v17  ;;  %v16119_v55 = vld [vmem:[#allocation4 + $0x70] sm:$0xff] }
 0xb67   : > { %6955 = vrot.lane.b32.xlu0 %v15876_v30, %s12906_s4  ;;  %6957 = vrot.lane.b32.xlu1 %v15878_v5, %s12906_s4  ;;  %v12228_v33 = vpack.c.bf16 %v6867_v46, %v6757_v50  ;;  %v12230_v57 = vpack.c.bf16 %v6866_v4, %v6756_v53  ;;  %v7686_v53 = vld [vmem:[#allocation2 + $0x730] sm:$0xff]  ;;  %v7685_v50 = vld [vmem:[#allocation2 + $0x728] sm:$0xff] }
 0xb69   : > { %v6948_v42 = vpop.permute.xlu0 %6947  ;;  %v6950_v13 = vpop.permute.xlu1 %6949  ;;  %12229 = vmatprep.subr.bf16.mxu1 %v12228_v33 }
 0xb6a   : > { %12231 = vmatpush1.bf16.msra.mxu1 %v12230_v57  ;;  %v6974_v26 = vsel %vm6969_vm5, %v15824_v20, %v6948_v42  ;;  %v6975_v24 = vsel %vm6969_vm5, %v6948_v42, %v6950_v13 }
 0xb6b   : > { %7065 = vrot.lane.b32.xlu0 %v15876_v30, %s12907_s5  ;;  %7067 = vrot.lane.b32.xlu1 %v15878_v5, %s12907_s5 }
 0xb6d   : > { %v7058_v36 = vpop.permute.xlu0 %7057  ;;  %v7060_v16 = vpop.permute.xlu1 %7059 }
 0xb6e   : > { %v7084_v54 = vsel %vm7079_vm6, %v15831_v22, %v7058_v36  ;;  %v7085_v52 = vsel %vm7079_vm6, %v7058_v36, %v7060_v16 }
 0xb6f   : > { %6959 = vrot.lane.b32.xlu0 %v15896_v28, %s12906_s4  ;;  %6961 = vrot.lane.b32.xlu1 %v15899_v6, %s12906_s4  ;;  %v12200_v21 = vpack.c.bf16 %v7085_v52, %v6975_v24  ;;  %v12202_v19 = vpack.c.bf16 %v7084_v54, %v6974_v26  ;;  %v7688_v52 = vld [vmem:[#allocation2 + $0x740] sm:$0xff] }
 0xb71   : > { %v6952_v56 = vpop.permute.xlu0 %6951  ;;  %v16067_v38 = vpop.permute.xlu1 %6953  ;;  %12201 = vmatprep.subr.bf16.mxu0 %v12200_v21  ;;  %v7687_v21 = vld [vmem:[#allocation2 + $0x738] sm:$0xff] }
 0xb72   : > { %12203 = vmatpush1.bf16.msra.mxu0 %v12202_v19  ;;  %v6976_v23 = vsel %vm6969_vm5, %v6950_v13, %v6952_v56  ;;  %v6977_v41 = vsel %vm6969_vm5, %v6952_v56, %v16067_v38  ;;  %v5893_v13 = vld [vmem:[#allocation4 + $0x40] sm:$0xff] }
 0xb73   : > { %7069 = vrot.lane.b32.xlu0 %v15896_v28, %s12907_s5  ;;  %7071 = vrot.lane.b32.xlu1 %v15899_v6, %s12907_s5 }
 0xb75   : > { %v7062_v20 = vpop.permute.xlu0 %7061  ;;  %v16073_v22 = vpop.permute.xlu1 %7063 }
 0xb76   : > { %v7086_v15 = vsel %vm7079_vm6, %v7060_v16, %v7062_v20  ;;  %v7087_v47 = vsel %vm7079_vm6, %v7062_v20, %v16073_v22 }
 0xb77   : > { %7175 = vrot.lane.b32.xlu0 %v15876_v30, %s12908_s6  ;;  %7177 = vrot.lane.b32.xlu1 %v15878_v5, %s12908_s6  ;;  %v12232_v51 = vpack.c.bf16 %v7087_v47, %v6977_v41  ;;  %v12234_v48 = vpack.c.bf16 %v7086_v15, %v6976_v23  ;;  %v5895_v23 = vld [vmem:[#allocation4 + $0x50] sm:$0xff] }
 0xb79   : > { %v7168_v63 = vpop.permute.xlu0 %7167  ;;  %v7170_v37 = vpop.permute.xlu1 %7169  ;;  %12233 = vmatprep.subr.bf16.mxu1 %v12232_v51 }
 0xb7a   : > { %12235 = vmatpush1.bf16.msra.mxu1 %v12234_v48  ;;  %v7194_v9 = vsel %vm7189_vm7, %v15858_v34, %v7168_v63  ;;  %v7195_v8 = vsel %vm7189_vm7, %v7168_v63, %v7170_v37 }
 0xb7b   : > { %7285 = vrot.lane.b32.xlu0 %v15876_v30, %s12909_s7  ;;  %7287 = vrot.lane.b32.xlu1 %v15878_v5, %s12909_s7 }
 0xb7d   : > { %v7278_v44 = vpop.permute.xlu0 %7277  ;;  %v7280_v0 = vpop.permute.xlu1 %7279 }
 0xb7e   : > { %v7304_v29 = vsel %vm7299_vm8, %v15865_v3, %v7278_v44  ;;  %v7305_v43 = vsel %vm7299_vm8, %v7278_v44, %v7280_v0 }
 0xb7f   : > { %7179 = vrot.lane.b32.xlu0 %v15896_v28, %s12908_s6  ;;  %7181 = vrot.lane.b32.xlu1 %v15899_v6, %s12908_s6  ;;  %v12204_v27 = vpack.c.bf16 %v7305_v43, %v7195_v8  ;;  %v12206_v62 = vpack.c.bf16 %v7304_v29, %v7194_v9 }
 0xb81   : > { %v7172_v1 = vpop.permute.xlu0 %7171  ;;  %v16099_v10 = vpop.permute.xlu1 %7173  ;;  %12205 = vmatprep.subr.bf16.mxu0 %v12204_v27 }
 0xb82   : > { %12207 = vmatpush1.bf16.msra.mxu0 %v12206_v62  ;;  %v7196_v7 = vsel %vm7189_vm7, %v7170_v37, %v7172_v1  ;;  %v7197_v58 = vsel %vm7189_vm7, %v7172_v1, %v16099_v10  ;;  %v16157_v37 = vld [vmem:[#allocation4 + $0x78] sm:$0xff] }
 0xb83   : > { %7289 = vrot.lane.b32.xlu0 %v15896_v28, %s12909_s7  ;;  %7291 = vrot.lane.b32.xlu1 %v15899_v6, %s12909_s7 }
 0xb85   : > { %v7282_v34 = vpop.permute.xlu0 %7281  ;;  %v16105_v3 = vpop.permute.xlu1 %7283 }
 0xb86   : > { %v7306_v40 = vsel %vm7299_vm8, %v7280_v0, %v7282_v34  ;;  %v7307_v2 = vsel %vm7299_vm8, %v7282_v34, %v16105_v3 }
 0xb87   : > { %7395 = vrot.lane.b32.xlu0 %v15876_v30, %s12911_s16  ;;  %7397 = vrot.lane.b32.xlu1 %v15878_v5, %s12911_s16  ;;  %v12236_v39 = vpack.c.bf16 %v7307_v2, %v7197_v58  ;;  %v12238_v45 = vpack.c.bf16 %v7306_v40, %v7196_v7 }
 0xb89   : > { %v7388_v4 = vpop.permute.xlu0 %7387  ;;  %v7390_v46 = vpop.permute.xlu1 %7389  ;;  %12237 = vmatprep.subr.bf16.mxu1 %v12236_v39 }
 0xb8a   : > { %v7414_v33 = vsel %vm7409_vm10, %v15901_v60, %v7388_v4  ;;  %v7415_v57 = vsel %vm7409_vm10, %v7388_v4, %v7390_v46  ;;  %12239 = vmatpush1.bf16.msra.mxu1 %v12238_v45 }
 0xb8b   : > { %5973 = vrot.lane.b32.xlu0 %v16117_v31, %s12897_s2  ;;  %5975 = vrot.lane.b32.xlu1 %v16119_v55, %s12897_s2  ;;  %v12208_v5 = vpack.c.bf16 %v7686_v53, %v7415_v57  ;;  %v12210_v42 = vpack.c.bf16 %v7685_v50, %v7414_v33 }
 0xb8d   : > { %v5966_v36 = vpop.permute.xlu0 %5965  ;;  %v5968_v16 = vpop.permute.xlu1 %5967  ;;  %12209 = vmatprep.subr.bf16.mxu0 %v12208_v5 }
 0xb8e   : > { %v5988_v26 = vsel %vm5979_vm9, %v15912_v11, %v5966_v36  ;;  %v5989_v60 = vsel %vm5979_vm9, %v5966_v36, %v5968_v16  ;;  %12211 = vmatpush1.bf16.msra.mxu0 %v12210_v42 }
 0xb8f   : > { %7399 = vrot.lane.b32.xlu0 %v15896_v28, %s12911_s16  ;;  %7401 = vrot.lane.b32.xlu1 %v15899_v6, %s12911_s16  ;;  %v12244_v24 = vpack.c.bf16 %v5989_v60, %v15876_v30  ;;  %v12246_v54 = vpack.c.bf16 %v5988_v26, %v5893_v13 }
 0xb91   : > { %v7392_v19 = vpop.permute.xlu0 %7391  ;;  %v16136_v56 = vpop.permute.xlu1 %7393  ;;  %12245 = vmatprep.subr.bf16.mxu0 %v12244_v24  ;;  %7903 = vmatmul.mubr.f32.vlgmr.msra.gmra.mrb[2].mxu0 %v15890_v25 }
 0xb92   : > { %v7416_v11 = vsel %vm7409_vm10, %v7390_v46, %v7392_v19  ;;  %v7417_v20 = vsel %vm7409_vm10, %v7392_v19, %v16136_v56  ;;  %12247 = vmatpush1.bf16.msra.mxu0 %v12246_v54  ;;  %8044 = vmatprep.mubr.f32.mxu0 %v12910_v14 }
 0xb93   : > { %6083 = vrot.lane.b32.xlu0 %v16117_v31, %s12898_s3  ;;  %6085 = vrot.lane.b32.xlu1 %v16119_v55, %s12898_s3  ;;  %v12240_v30 = vpack.c.bf16 %v7688_v52, %v7417_v20  ;;  %v12242_v6 = vpack.c.bf16 %v7687_v21, %v7416_v11 }
 0xb95   : > { %v5970_v41 = vpop.permute.xlu0 %5969  ;;  %v16147_v15 = vpop.permute.xlu1 %5971  ;;  %12241 = vmatprep.subr.bf16.mxu1 %v12240_v30 }
 0xb96   : > { %v5990_v47 = vsel %vm5979_vm9, %v5968_v16, %v5970_v41  ;;  %v5991_v51 = vsel %vm5979_vm9, %v5970_v41, %v16147_v15  ;;  %12243 = vmatpush1.bf16.msra.mxu1 %v12242_v6 }
 0xb97   : > { %6193 = vrot.lane.b32.xlu0 %v16117_v31, %s12899_s13  ;;  %6195 = vrot.lane.b32.xlu1 %v16119_v55, %s12899_s13  ;;  %v12276_v48 = vpack.c.bf16 %v5991_v51, %v15896_v28  ;;  %v12278_v63 = vpack.c.bf16 %v5990_v47, %v5895_v23 }
 0xb99   : > { %v6076_v44 = vpop.permute.xlu0 %6075  ;;  %v6078_v0 = vpop.permute.xlu1 %6077  ;;  %12277 = vmatprep.subr.bf16.mxu1 %v12276_v48  ;;  %7974 = vmatmul.mubr.f32.vlgmr.msra.gmra.mrb[2].mxu1 %v15890_v25 }
 0xb9a   : > { %12279 = vmatpush1.bf16.msra.mxu1 %v12278_v63  ;;  %8115 = vmatprep.mubr.f32.mxu1 %v12910_v14  ;;  %v6098_v28 = vsel %vm6089_vm13, %v15939_v49, %v6076_v44  ;;  %v6099_v29 = vsel %vm6089_vm13, %v6076_v44, %v6078_v0 }
 0xb9b   : > { %5977 = vrot.lane.b32.xlu0 %v16157_v37, %s12897_s2  ;;  %6303 = vrot.lane.b32.xlu1 %v16117_v31, %s12900_s12  ;;  %s12919_s2 = smov 106  }
 0xb9d   : > { %v6186_v9 = vpop.permute.xlu0 %6185  ;;  %v6188_v8 = vpop.permute.xlu1 %6187 }
 0xb9e   : > { %v6208_v43 = vsel %vm6199_vm14, %v15945_v18, %v6186_v9  ;;  %v6209_v27 = vsel %vm6199_vm14, %v6186_v9, %v6188_v8 }
 0xb9f   : > { %6305 = vrot.lane.b32.xlu0 %v16119_v55, %s12900_s12  ;;  %6413 = vrot.lane.b32.xlu1 %v16117_v31, %s12901_s24  ;;  %v12248_v62 = vpack.c.bf16 %v6209_v27, %v6099_v29  ;;  %v12250_v1 = vpack.c.bf16 %v6208_v43, %v6098_v28 }
 0xba1   : > { %v6080_v34 = vpop.permute.xlu0 %6079  ;;  %v16175_v7 = vpop.permute.xlu1 %6081  ;;  %12249 = vmatprep.subr.bf16.mxu0 %v12248_v62 }
 0xba2   : > { %12251 = vmatpush1.bf16.msra.mxu0 %v12250_v1  ;;  %v6100_v58 = vsel %vm6089_vm13, %v6078_v0, %v6080_v34  ;;  %v6101_v40 = vsel %vm6089_vm13, %v6080_v34, %v16175_v7 }
 0xba3   : > { %6415 = vrot.lane.b32.xlu0 %v16119_v55, %s12901_s24  ;;  %6087 = vrot.lane.b32.xlu1 %v16157_v37, %s12898_s3  ;;  %s12920_s3 = smov 76  }
 0xba5   : > { %v6190_v49 = vpop.permute.xlu0 %6189  ;;  %v16181_v18 = vpop.permute.xlu1 %6191 }
 0xba6   : > { %v6210_v2 = vsel %vm6199_vm14, %v6188_v8, %v6190_v49  ;;  %v6211_v39 = vsel %vm6199_vm14, %v6190_v49, %v16181_v18 }
 0xba7   : > { %6197 = vrot.lane.b32.xlu0 %v16157_v37, %s12899_s13  ;;  %6523 = vrot.lane.b32.xlu1 %v16117_v31, %s12902_s14  ;;  %v12280_v45 = vpack.c.bf16 %v6211_v39, %v6101_v40  ;;  %v12282_v53 = vpack.c.bf16 %v6210_v2, %v6100_v58  ;;  %s12921_s13 = smov 46  }
 0xba9   : > { %v6296_v50 = vpop.permute.xlu0 %6295  ;;  %v6298_v4 = vpop.permute.xlu1 %6297  ;;  %12281 = vmatprep.subr.bf16.mxu1 %v12280_v45 }
 0xbaa   : > { %12283 = vmatpush1.bf16.msra.mxu1 %v12282_v53  ;;  %v6318_v57 = vsel %vm6309_vm15, %v15971_v61, %v6296_v50  ;;  %v6319_v5 = vsel %vm6309_vm15, %v6296_v50, %v6298_v4 }
 0xbab   : > { %6525 = vrot.lane.b32.xlu0 %v16119_v55, %s12902_s14  ;;  %6633 = vrot.lane.b32.xlu1 %v16117_v31, %s12903_s26 }
 0xbad   : > { %v6406_v46 = vpop.permute.xlu0 %6405  ;;  %v6408_v33 = vpop.permute.xlu1 %6407 }
 0xbae   : > { %v6428_v42 = vsel %vm6419_vm0, %v15977_v35, %v6406_v46  ;;  %v6429_v13 = vsel %vm6419_vm0, %v6406_v46, %v6408_v33 }
 0xbaf   : > { %6635 = vrot.lane.b32.xlu0 %v16119_v55, %s12903_s26  ;;  %6307 = vrot.lane.b32.xlu1 %v16157_v37, %s12900_s12  ;;  %v12252_v36 = vpack.c.bf16 %v6429_v13, %v6319_v5  ;;  %v12254_v16 = vpack.c.bf16 %v6428_v42, %v6318_v57  ;;  %s12922_s12 = smov 16  }
 0xbb1   : > { %v6300_v26 = vpop.permute.xlu0 %6299  ;;  %v16207_v60 = vpop.permute.xlu1 %6301  ;;  %12253 = vmatprep.subr.bf16.mxu0 %v12252_v36 }
 0xbb2   : > { %12255 = vmatpush1.bf16.msra.mxu0 %v12254_v16  ;;  %v6320_v24 = vsel %vm6309_vm15, %v6298_v4, %v6300_v26  ;;  %v6321_v54 = vsel %vm6309_vm15, %v6300_v26, %v16207_v60 }
 0xbb3   : > { %6417 = vrot.lane.b32.xlu0 %v16157_v37, %s12901_s24  ;;  %6743 = vrot.lane.b32.xlu1 %v16117_v31, %s12904_s28  ;;  %s12923_s24 = smov 84  }
 0xbb5   : > { %v6410_v61 = vpop.permute.xlu0 %6409  ;;  %v16213_v35 = vpop.permute.xlu1 %6411 }
 0xbb6   : > { %v6430_v52 = vsel %vm6419_vm0, %v6408_v33, %v6410_v61  ;;  %v6431_v21 = vsel %vm6419_vm0, %v6410_v61, %v16213_v35 }
 0xbb7   : > { %6745 = vrot.lane.b32.xlu0 %v16119_v55, %s12904_s28  ;;  %6853 = vrot.lane.b32.xlu1 %v16117_v31, %s12905_s1  ;;  %v12284_v19 = vpack.c.bf16 %v6431_v21, %v6321_v54  ;;  %v12286_v11 = vpack.c.bf16 %v6430_v52, %v6320_v24 }
 0xbb9   : > { %v6516_v20 = vpop.permute.xlu0 %6515  ;;  %v6518_v30 = vpop.permute.xlu1 %6517  ;;  %12285 = vmatprep.subr.bf16.mxu1 %v12284_v19 }
 0xbba   : > { %12287 = vmatpush1.bf16.msra.mxu1 %v12286_v11  ;;  %v6538_v41 = vsel %vm6529_vm1, %v16003_v12, %v6516_v20  ;;  %v6539_v47 = vsel %vm6529_vm1, %v6516_v20, %v6518_v30 }
 0xbbb   : > { %6855 = vrot.lane.b32.xlu0 %v16119_v55, %s12905_s1  ;;  %6527 = vrot.lane.b32.xlu1 %v16157_v37, %s12902_s14 }
 0xbbd   : > { %v6626_v6 = vpop.permute.xlu0 %6625  ;;  %v6628_v23 = vpop.permute.xlu1 %6627 }
 0xbbe   : > { %v6648_v51 = vsel %vm6639_vm2, %v16009_v59, %v6626_v6  ;;  %v6649_v48 = vsel %vm6639_vm2, %v6626_v6, %v6628_v23 }
 0xbbf   : > { %6637 = vrot.lane.b32.xlu0 %v16157_v37, %s12903_s26  ;;  %6963 = vrot.lane.b32.xlu1 %v16117_v31, %s12906_s4  ;;  %v12256_v63 = vpack.c.bf16 %v6649_v48, %v6539_v47  ;;  %v12258_v44 = vpack.c.bf16 %v6648_v51, %v6538_v41  ;;  %v8269_v41 = vlaneseq  ;;  %s12924_s26 = smov 54  }
 0xbc1   : > { %v6520_v0 = vpop.permute.xlu0 %6519  ;;  %v16239_v9 = vpop.permute.xlu1 %6521  ;;  %12257 = vmatprep.subr.bf16.mxu0 %v12256_v63 }
 0xbc2   : > { %12259 = vmatpush1.bf16.msra.mxu0 %v12258_v44  ;;  %v6540_v8 = vsel %vm6529_vm1, %v6518_v30, %v6520_v0  ;;  %v6541_v28 = vsel %vm6529_vm1, %v6520_v0, %v16239_v9 }
 0xbc3   : > { %6965 = vrot.lane.b32.xlu0 %v16119_v55, %s12906_s4  ;;  %7073 = vrot.lane.b32.xlu1 %v16117_v31, %s12907_s5 }
 0xbc5   : > { %v6630_v12 = vpop.permute.xlu0 %6629  ;;  %v16245_v59 = vpop.permute.xlu1 %6631 }
 0xbc6   : > { %v6650_v29 = vsel %vm6639_vm2, %v6628_v23, %v6630_v12  ;;  %v6651_v43 = vsel %vm6639_vm2, %v6630_v12, %v16245_v59  ;;  %v16313_v12 = vshrl.u32 %v8269_v41, 7 }
 0xbc7   : > { %7075 = vrot.lane.b32.xlu0 %v16119_v55, %s12907_s5  ;;  %6747 = vrot.lane.b32.xlu1 %v16157_v37, %s12904_s28  ;;  %v12288_v27 = vpack.c.bf16 %v6651_v43, %v6541_v28  ;;  %v12290_v62 = vpack.c.bf16 %v6650_v29, %v6540_v8  ;;  %s12925_s28 = smov 24  }
 0xbc8   : > { %v16316_v29 = vsub.s32 0, %v16313_v12 }
 0xbc9   : > { %v6736_v1 = vpop.permute.xlu0 %6735  ;;  %v6738_v34 = vpop.permute.xlu1 %6737  ;;  %12289 = vmatprep.subr.bf16.mxu1 %v12288_v27 }
 0xbca   : > { %12291 = vmatpush1.bf16.msra.mxu1 %v12290_v62  ;;  %v6758_v40 = vsel %vm6749_vm3, %v16035_v32, %v6736_v1  ;;  %v6759_v2 = vsel %vm6749_vm3, %v6736_v1, %v6738_v34 }
 0xbcb   : > { %6857 = vrot.lane.b32.xlu0 %v16157_v37, %s12905_s1  ;;  %7183 = vrot.lane.b32.xlu1 %v16117_v31, %s12908_s6  ;;  %s12926_s1 = smov 92  }
 0xbcd   : > { %v6846_v49 = vpop.permute.xlu0 %6845  ;;  %v6848_v58 = vpop.permute.xlu1 %6847 }
 0xbce   : > { %v6868_v39 = vsel %vm6859_vm4, %v16041_v17, %v6846_v49  ;;  %v6869_v45 = vsel %vm6859_vm4, %v6846_v49, %v6848_v58 }
 0xbcf   : > { %7185 = vrot.lane.b32.xlu0 %v16119_v55, %s12908_s6  ;;  %7293 = vrot.lane.b32.xlu1 %v16117_v31, %s12909_s7  ;;  %v12260_v53 = vpack.c.bf16 %v6869_v45, %v6759_v2  ;;  %v12262_v50 = vpack.c.bf16 %v6868_v39, %v6758_v40  ;;  %v16328_v40 = vsub.s32 1, %v16313_v12 }
 0xbd1   : > { %v6740_v4 = vpop.permute.xlu0 %6739  ;;  %v16271_v46 = vpop.permute.xlu1 %6741  ;;  %12261 = vmatprep.subr.bf16.mxu0 %v12260_v53 }
 0xbd2   : > { %12263 = vmatpush1.bf16.msra.mxu0 %v12262_v50  ;;  %v6760_v33 = vsel %vm6749_vm3, %v6738_v34, %v6740_v4  ;;  %v6761_v57 = vsel %vm6749_vm3, %v6740_v4, %v16271_v46  ;;  %v16325_v34 = vld [vmem:[%s13125_s20] sm:$0xff] }
 0xbd3   : > { %7295 = vrot.lane.b32.xlu0 %v16119_v55, %s12909_s7  ;;  %6967 = vrot.lane.b32.xlu1 %v16157_v37, %s12906_s4 }
 0xbd5   : > { %v6850_v32 = vpop.permute.xlu0 %6849  ;;  %v16277_v17 = vpop.permute.xlu1 %6851 }
 0xbd6   : > { %v6870_v5 = vsel %vm6859_vm4, %v6848_v58, %v6850_v32  ;;  %v6871_v42 = vsel %vm6859_vm4, %v6850_v32, %v16277_v17  ;;  %v16342_v32 = vsub.s32 2, %v16313_v12 }
 0xbd7   : > { %7077 = vrot.lane.b32.xlu0 %v16157_v37, %s12907_s5  ;;  %7403 = vrot.lane.b32.xlu1 %v16117_v31, %s12911_s16  ;;  %v12292_v13 = vpack.c.bf16 %v6871_v42, %v6761_v57  ;;  %v12294_v36 = vpack.c.bf16 %v6870_v5, %v6760_v33 }
 0xbd9   : > { %v6956_v16 = vpop.permute.xlu0 %6955  ;;  %v6958_v26 = vpop.permute.xlu1 %6957  ;;  %12293 = vmatprep.subr.bf16.mxu1 %v12292_v13 }
 0xbda   : > { %12295 = vmatpush1.bf16.msra.mxu1 %v12294_v36  ;;  %v6978_v54 = vsel %vm6969_vm5, %v16067_v38, %v6956_v16  ;;  %v6979_v52 = vsel %vm6969_vm5, %v6956_v16, %v6958_v26 }
 0xbdb   : > { %7405 = vrot.lane.b32.xlu0 %v16119_v55, %s12911_s16  ;;  %7187 = vrot.lane.b32.xlu1 %v16157_v37, %s12908_s6 }
 0xbdd   : > { %v7066_v61 = vpop.permute.xlu0 %7065  ;;  %v7068_v24 = vpop.permute.xlu1 %7067 }
 0xbde   : > { %v7088_v21 = vsel %vm7079_vm6, %v16073_v22, %v7066_v61  ;;  %v7089_v19 = vsel %vm7079_vm6, %v7066_v61, %v7068_v24 }
 0xbdf   : > { %7297 = vrot.lane.b32.xlu0 %v16157_v37, %s12909_s7  ;;  %7407 = vrot.lane.b32.xlu1 %v16157_v37, %s12911_s16  ;;  %v12264_v11 = vpack.c.bf16 %v7089_v19, %v6979_v52  ;;  %v12266_v20 = vpack.c.bf16 %v7088_v21, %v6978_v54  ;;  %v7689_v54 = vld [vmem:[#allocation2 + $0x748] sm:$0xff]  ;;  %v16355_v52 = vsub.s32 3, %v16313_v12 }
 0xbe1   : > { %v6960_v30 = vpop.permute.xlu0 %6959  ;;  %v16303_v6 = vpop.permute.xlu1 %6961  ;;  %12265 = vmatprep.subr.bf16.mxu0 %v12264_v11 }
 0xbe2   : > { %12267 = vmatpush1.bf16.msra.mxu0 %v12266_v20  ;;  %v6980_v22 = vsel %vm6969_vm5, %v6958_v26, %v6960_v30  ;;  %v6981_v47 = vsel %vm6969_vm5, %v6960_v30, %v16303_v6  ;;  %v8280_v30 = vrot.slane %v16325_v34, %v16342_v32 }
 0xbe5   : > { %v7070_v38 = vpop.permute.xlu0 %7069  ;;  %v16305_v23 = vpop.permute.xlu1 %7071 }
 0xbe6   : > { %v7090_v51 = vsel %vm7079_vm6, %v7068_v24, %v7070_v38  ;;  %v7091_v37 = vsel %vm7079_vm6, %v7070_v38, %v16305_v23  ;;  %v7690_v24 = vld [vmem:[#allocation2 + $0x750] sm:$0xff] }
 0xbe7   : > { %v12296_v48 = vpack.c.bf16 %v7091_v37, %v6981_v47  ;;  %v12298_v63 = vpack.c.bf16 %v7090_v51, %v6980_v22  ;;  %v5897_v37 = vld [vmem:[#allocation4 + $0x60] sm:$0xff] }
 0xbe9   : > { %v7176_v44 = vpop.permute.xlu0 %7175  ;;  %v7178_v0 = vpop.permute.xlu1 %7177  ;;  %12297 = vmatprep.subr.bf16.mxu1 %v12296_v48 }
 0xbea   : > { %12299 = vmatpush1.bf16.msra.mxu1 %v12298_v63  ;;  %v7198_v43 = vsel %vm7189_vm7, %v16099_v10, %v7176_v44  ;;  %v7199_v27 = vsel %vm7189_vm7, %v7176_v44, %v7178_v0  ;;  %v8272_v10 = vrot.slane %v16325_v34, %v16316_v29  ;;  %v8284_v63 = vrot.slane %v16325_v34, %v16355_v52 }
 0xbed   : > { %v7286_v8 = vpop.permute.xlu0 %7285  ;;  %v7288_v28 = vpop.permute.xlu1 %7287 }
 0xbee   : > { %v7308_v62 = vsel %vm7299_vm8, %v16105_v3, %v7286_v8  ;;  %v7309_v1 = vsel %vm7299_vm8, %v7286_v8, %v7288_v28  ;;  %v8276_v3 = vrot.slane %v16325_v34, %v16328_v40 }
 0xbef   : > { %v12268_v49 = vpack.c.bf16 %v7309_v1, %v7199_v27  ;;  %v12270_v58 = vpack.c.bf16 %v7308_v62, %v7198_v43 }
 0xbf1   : > { %v7180_v2 = vpop.permute.xlu0 %7179  ;;  %v16330_v39 = vpop.permute.xlu1 %7181  ;;  %12269 = vmatprep.subr.bf16.mxu0 %v12268_v49 }
 0xbf2   : > { %12271 = vmatpush1.bf16.msra.mxu0 %v12270_v58  ;;  %v7200_v33 = vsel %vm7189_vm7, %v7178_v0, %v7180_v2  ;;  %v7201_v57 = vsel %vm7189_vm7, %v7180_v2, %v16330_v39  ;;  %v7692_v58 = vld [vmem:[#allocation2 + $0x760] sm:$0xff]  ;;  %v7691_v2 = vld [vmem:[#allocation2 + $0x758] sm:$0xff] }
 0xbf4   : > { %v16336_v45 = vpop.f32.mrb[0].mxu0 }
 0xbf5   : > { %v7290_v53 = vpop.permute.xlu0 %7289  ;;  %v16338_v50 = vpop.permute.xlu1 %7291  ;;  %v8344_v4 = vmul.f32 %v8272_v10, %v16336_v45 }
 0xbf6   : > { %v7310_v5 = vsel %vm7299_vm8, %v7288_v28, %v7290_v53  ;;  %v7311_v42 = vsel %vm7299_vm8, %v7290_v53, %v16338_v50  ;;  %v16350_v13 = vpop.f32.mrb[1].mxu0 }
 0xbf7   : > { %v12300_v36 = vpack.c.bf16 %v7311_v42, %v7201_v57  ;;  %v12302_v16 = vpack.c.bf16 %v7310_v5, %v7200_v33  ;;  %v8376_v26 = vmul.f32 %v8344_v4, %v16336_v45  ;;  %v8345_v61 = vmul.f32 %v8276_v3, %v16350_v13 }
 0xbf9   : > { %v7396_v21 = vpop.permute.xlu0 %7395  ;;  %v7398_v19 = vpop.permute.xlu1 %7397  ;;  %12301 = vmatprep.subr.bf16.mxu1 %v12300_v36  ;;  %v8359_v11 = vadd.f32 %v8345_v61, %v8344_v4  ;;  %v8377_v20 = vmul.f32 %v8345_v61, %v16350_v13 }
 0xbfa   : > { %v7418_v38 = vsel %vm7409_vm10, %v16136_v56, %v7396_v21  ;;  %v7419_v41 = vsel %vm7409_vm10, %v7396_v21, %v7398_v19  ;;  %12303 = vmatpush1.bf16.msra.mxu1 %v12302_v16 }
 0xbfb   : > { %v12272_v22 = vpack.c.bf16 %v7690_v24, %v7419_v41  ;;  %v12274_v47 = vpack.c.bf16 %v7689_v54, %v7418_v38  ;;  %v8391_v51 = vadd.f32 %v8377_v20, %v8376_v26  ;;  %v12912_v26 = vmov 0.0|0.0   ;;  %v16390_v54 = vld [vmem:[%s13085_s25] sm:$0xff]  ;;  %s12917_s25 = smov 38  }
 0xbfc   : > { %v16363_v48 = vpop.f32.mrb[0].mxu1 }
 0xbfd   : > { %v5974_v44 = vpop.permute.xlu0 %5973  ;;  %v5976_v0 = vpop.permute.xlu1 %5975  ;;  %12273 = vmatprep.subr.bf16.mxu0 %v12272_v22  ;;  %v8346_v8 = vmul.f32 %v8280_v30, %v16363_v48 }
 0xbfe   : > { %v5992_v56 = vsel %vm5979_vm9, %v16147_v15, %v5974_v44  ;;  %v5993_v28 = vsel %vm5979_vm9, %v5974_v44, %v5976_v0  ;;  %12275 = vmatpush1.bf16.msra.mxu0 %v12274_v47  ;;  %v16371_v43 = vpop.f32.mrb[1].mxu1 }
 0xbff   : > { %v12308_v27 = vpack.c.bf16 %v5993_v28, %v16117_v31  ;;  %v12310_v62 = vpack.c.bf16 %v5992_v56, %v5897_v37  ;;  %v8360_v1 = vadd.f32 %v8359_v11, %v8346_v8  ;;  %v8378_v49 = vmul.f32 %v8346_v8, %v16363_v48 }
 0xc00   : > { %v8347_v10 = vmul.f32 %v8284_v63, %v16371_v43 }
 0xc01   : > { %v7400_v3 = vpop.permute.xlu0 %7399  ;;  %v16376_v53 = vpop.permute.xlu1 %7401  ;;  %12309 = vmatprep.subr.bf16.mxu0 %v12308_v27  ;;  %8045 = vmatmul.mubr.f32.vlgmr.msra.gmra.mrb[4].mxu0 %v15890_v25  ;;  %v8392_v15 = vadd.f32 %v8391_v51, %v8378_v49 }
 0xc02   : > { %v7420_v4 = vsel %vm7409_vm10, %v7398_v19, %v7400_v3  ;;  %v7421_v31 = vsel %vm7409_vm10, %v7400_v3, %v16376_v53  ;;  %12311 = vmatpush1.bf16.msra.mxu0 %v12310_v62  ;;  %8186 = vmatprep.mubr.f32.mxu0 %v12910_v14  ;;  %v16383_v33 = vadd.f32 %v8360_v1, %v8347_v10 }
 0xc03   : > { %v12304_v57 = vpack.c.bf16 %v7692_v58, %v7421_v31  ;;  %v12306_v5 = vpack.c.bf16 %v7691_v2, %v7420_v4  ;;  %v8379_v42 = vmul.f32 %v8347_v10, %v16371_v43 }
 0xc05   : > { %v6084_v36 = vpop.permute.xlu0 %6083  ;;  %v6086_v16 = vpop.permute.xlu1 %6085  ;;  %12305 = vmatprep.subr.bf16.mxu1 %v12304_v57  ;;  %v16386_v25 = vadd.f32 %v8392_v15, %v8379_v42 }
 0xc06   : > { %12307 = vmatpush1.bf16.msra.mxu1 %v12306_v5  ;;  %v6102_v21 = vsel %vm6089_vm13, %v16175_v7, %v6084_v36  ;;  %v6103_v19 = vsel %vm6089_vm13, %v6084_v36, %v6086_v16 }
 0xc07   : > { %12340 = vmatprep.subr.bf16.mxu1 %v12912_v26 }
 0xc09   : > { %v6194_v61 = vpop.permute.xlu0 %6193  ;;  %v6196_v24 = vpop.permute.xlu1 %6195  ;;  %8116 = vmatmul.mubr.f32.vlgmr.msra.gmra.mrb[4].mxu1 %v16390_v54 }
 0xc0a   : > { %v6212_v11 = vsel %vm6199_vm14, %v16181_v18, %v6194_v61  ;;  %v6213_v20 = vsel %vm6199_vm14, %v6194_v61, %v6196_v24  ;;  %11582 = vmatprep.mubr.msk.f32.mxu1 %vm12913_vm11, %v12910_v14 }
 0xc0b   : > { %v12312_v30 = vpack.c.bf16 %v6213_v20, %v6103_v19  ;;  %v12314_v38 = vpack.c.bf16 %v6212_v11, %v6102_v21 }
 0xc0d   : > { %v5978_v41 = vpop.permute.xlu0 %5977  ;;  %v6304_v22 = vpop.permute.xlu1 %6303  ;;  %12313 = vmatprep.subr.bf16.mxu0 %v12312_v30 }
 0xc0e   : > { %v5994_v47 = vsel %vm5979_vm9, %v5976_v0, %v5978_v41  ;;  %12315 = vmatpush1.bf16.msra.mxu0 %v12314_v38  ;;  %v6322_v0 = vsel %vm6309_vm15, %v16207_v60, %v6304_v22  ;;  %vm8689_vm9 = vcmask 556032  }
 0xc0f   : > { %v12341_v7 = vpack.c.bf16 %v5994_v47, %v16119_v55 }
 0xc11   : > { %v6306_v51 = vpop.permute.xlu0 %6305  ;;  %v6414_v37 = vpop.permute.xlu1 %6413  ;;  %12342 = vmatpush3.bf16.msra.mxu1 %v12341_v7 }
 0xc12   : > { %12343 = vmatprep.subr.bf16.mxu1 %v12912_v26  ;;  %v6432_v18 = vsel %vm6419_vm0, %v16213_v35, %v6414_v37  ;;  %v6323_v8 = vsel %vm6309_vm15, %v6304_v22, %v6306_v51 }
 0xc13   : > { %v12318_v27 = vpack.c.bf16 %v6432_v18, %v6322_v0 }
 0xc15   : > { %v6416_v63 = vpop.permute.xlu0 %6415  ;;  %v6088_v44 = vpop.permute.xlu1 %6087 }
 0xc16   : > { %v6433_v56 = vsel %vm6419_vm0, %v6414_v37, %v6416_v63  ;;  %v6104_v1 = vsel %vm6089_vm13, %v6086_v16, %v6088_v44  ;;  %vm8799_vm13 = vcmask 310272  }
 0xc17   : > { %v12316_v28 = vpack.c.bf16 %v6433_v56, %v6323_v8 }
 0xc19   : > { %v6198_v55 = vpop.permute.xlu0 %6197  ;;  %v6524_v62 = vpop.permute.xlu1 %6523  ;;  %12317 = vmatprep.subr.bf16.mxu0 %v12316_v28 }
 0xc1a   : > { %v6214_v49 = vsel %vm6199_vm14, %v6196_v24, %v6198_v55  ;;  %12319 = vmatpush1.bf16.msra.mxu0 %v12318_v27  ;;  %v6542_v31 = vsel %vm6529_vm1, %v16239_v9, %v6524_v62  ;;  %vm8909_vm14 = vcmask 64512  }
 0xc1b   : > { %v12344_v35 = vpack.c.bf16 %v6214_v49, %v6104_v1 }
 0xc1d   : > { %v6526_v58 = vpop.permute.xlu0 %6525  ;;  %v6634_v2 = vpop.permute.xlu1 %6633  ;;  %12345 = vmatpush3.bf16.msra.mxu1 %v12344_v35 }
 0xc1e   : > { %12346 = vmatprep.subr.bf16.mxu1 %v12912_v26  ;;  %v6652_v10 = vsel %vm6639_vm2, %v16245_v59, %v6634_v2  ;;  %v6543_v15 = vsel %vm6529_vm1, %v6524_v62, %v6526_v58 }
 0xc1f   : > { %v12322_v5 = vpack.c.bf16 %v6652_v10, %v6542_v31 }
 0xc21   : > { %v6636_v60 = vpop.permute.xlu0 %6635  ;;  %v6308_v3 = vpop.permute.xlu1 %6307 }
 0xc22   : > { %v6653_v4 = vsel %vm6639_vm2, %v6634_v2, %v6636_v60  ;;  %v6324_v16 = vsel %vm6309_vm15, %v6306_v51, %v6308_v3  ;;  %vm9019_vm15 = vcmask 867328  }
 0xc23   : > { %v12320_v57 = vpack.c.bf16 %v6653_v4, %v6543_v15 }
 0xc25   : > { %v6418_v42 = vpop.permute.xlu0 %6417  ;;  %v6744_v36 = vpop.permute.xlu1 %6743  ;;  %12321 = vmatprep.subr.bf16.mxu0 %v12320_v57 }
 0xc26   : > { %v6434_v61 = vsel %vm6419_vm0, %v6416_v63, %v6418_v42  ;;  %12323 = vmatpush1.bf16.msra.mxu0 %v12322_v5  ;;  %v6762_v38 = vsel %vm6749_vm3, %v16271_v46, %v6744_v36  ;;  %vm9129_vm0 = vcmask 621568  }
 0xc27   : > { %v12347_v59 = vpack.c.bf16 %v6434_v61, %v6324_v16  ;;  %v7694_v61 = vld [vmem:[#allocation2 + $0x770] sm:$0xff] }
 0xc29   : > { %v6746_v24 = vpop.permute.xlu0 %6745  ;;  %v6854_v21 = vpop.permute.xlu1 %6853  ;;  %12348 = vmatpush3.bf16.msra.mxu1 %v12347_v59 }
 0xc2a   : > { %12349 = vmatprep.subr.bf16.mxu1 %v12912_v26  ;;  %v6872_v19 = vsel %vm6859_vm4, %v16277_v17, %v6854_v21  ;;  %v6763_v20 = vsel %vm6749_vm3, %v6744_v36, %v6746_v24 }
 0xc2b   : > { %v12326_v22 = vpack.c.bf16 %v6872_v19, %v6762_v38  ;;  %v7693_v19 = vld [vmem:[#allocation2 + $0x768] sm:$0xff] }
 0xc2d   : > { %v6856_v9 = vpop.permute.xlu0 %6855  ;;  %v6528_v11 = vpop.permute.xlu1 %6527 }
 0xc2e   : > { %v6873_v30 = vsel %vm6859_vm4, %v6854_v21, %v6856_v9  ;;  %v6544_v51 = vsel %vm6529_vm1, %v6526_v58, %v6528_v11 }
 0xc2f   : > { %v12324_v41 = vpack.c.bf16 %v6873_v30, %v6763_v20 }
 0xc31   : > { %v6638_v47 = vpop.permute.xlu0 %6637  ;;  %v6964_v7 = vpop.permute.xlu1 %6963  ;;  %12325 = vmatprep.subr.bf16.mxu0 %v12324_v41 }
 0xc32   : > { %v6654_v37 = vsel %vm6639_vm2, %v6636_v60, %v6638_v47  ;;  %12327 = vmatpush1.bf16.msra.mxu0 %v12326_v22  ;;  %v6982_v28 = vsel %vm6969_vm5, %v16303_v6, %v6964_v7  ;;  %v7695_v47 = vld [vmem:[#allocation2 + $0x778] sm:$0xff]  ;;  %vm9239_vm2 = vcmask 375808  }
 0xc33   : > { %v12350_v17 = vpack.c.bf16 %v6654_v37, %v6544_v51  ;;  %v16460_v51 = vsub.s32 4, %v16313_v12  ;;  %v16464_v37 = vsub.s32 5, %v16313_v12 }
 0xc35   : > { %v6966_v18 = vpop.permute.xlu0 %6965  ;;  %v7074_v63 = vpop.permute.xlu1 %7073  ;;  %12351 = vmatpush3.bf16.msra.mxu1 %v12350_v17  ;;  %v8288_v17 = vrot.slane %v16325_v34, %v16460_v51 }
 0xc36   : > { %12352 = vmatprep.subr.bf16.mxu1 %v12912_v26  ;;  %v7092_v44 = vsel %vm7079_vm6, %v16305_v23, %v7074_v63  ;;  %v6983_v56 = vsel %vm6969_vm5, %v6964_v7, %v6966_v18 }
 0xc37   : > { %v12330_v55 = vpack.c.bf16 %v7092_v44, %v6982_v28 }
 0xc39   : > { %v7076_v46 = vpop.permute.xlu0 %7075  ;;  %v6748_v8 = vpop.permute.xlu1 %6747 }
 0xc3a   : > { %v7093_v0 = vsel %vm7079_vm6, %v7074_v63, %v7076_v46  ;;  %v6764_v49 = vsel %vm6749_vm3, %v6746_v24, %v6748_v8  ;;  %vm9349_vm3 = vcmask 130048  }
 0xc3b   : > { %v12328_v27 = vpack.c.bf16 %v7093_v0, %v6983_v56  ;;  %v8299_v56 = vsub.s32 7, %v16313_v12 }
 0xc3d   : > { %v6858_v62 = vpop.permute.xlu0 %6857  ;;  %v7184_v1 = vpop.permute.xlu1 %7183  ;;  %12329 = vmatprep.subr.bf16.mxu0 %v12328_v27 }
 0xc3e   : > { %v6874_v35 = vsel %vm6859_vm4, %v6856_v9, %v6858_v62  ;;  %12331 = vmatpush1.bf16.msra.mxu0 %v12330_v55  ;;  %v7202_v4 = vsel %vm7189_vm7, %v16330_v39, %v7184_v1  ;;  %vm9568_vm4 = vcmask 687104  }
 0xc3f   : > { %v12353_v23 = vpack.c.bf16 %v6874_v35, %v6764_v49  ;;  %v8300_v49 = vrot.slane %v16325_v34, %v8299_v56 }
 0xc41   : > { %v7186_v58 = vpop.permute.xlu0 %7185  ;;  %v7294_v2 = vpop.permute.xlu1 %7293  ;;  %12354 = vmatpush3.bf16.msra.mxu1 %v12353_v23 }
 0xc42   : > { %12355 = vmatprep.subr.bf16.mxu1 %v12912_v26  ;;  %v7312_v10 = vsel %vm7299_vm8, %v16338_v50, %v7294_v2  ;;  %v7203_v3 = vsel %vm7189_vm7, %v7184_v1, %v7186_v58 }
 0xc43   : > { %v12334_v57 = vpack.c.bf16 %v7312_v10, %v7202_v4  ;;  %v8264_v4 = vld [vmem:[%s13125_s20 + $0x8] sm:$0xff]  ;;  %s12918_s20 = smov 8  }
 0xc45   : > { %v7296_v6 = vpop.permute.xlu0 %7295  ;;  %v6968_v60 = vpop.permute.xlu1 %6967 }
 0xc46   : > { %v7313_v15 = vsel %vm7299_vm8, %v7294_v2, %v7296_v6  ;;  %v6984_v36 = vsel %vm6969_vm5, %v6966_v18, %v6968_v60  ;;  %v8292_v18 = vrot.slane %v16325_v34, %v16464_v37  ;;  %vm9678_vm5 = vcmask 441344  }
 0xc47   : > { %v12332_v31 = vpack.c.bf16 %v7313_v15, %v7203_v3 }
 0xc49   : > { %v7078_v5 = vpop.permute.xlu0 %7077  ;;  %v7404_v42 = vpop.permute.xlu1 %7403  ;;  %12333 = vmatprep.subr.bf16.mxu0 %v12332_v31  ;;  %v8308_v31 = vrot.slane %v8264_v4, %v16328_v40 }
 0xc4a   : > { %v7094_v16 = vsel %vm7079_vm6, %v7076_v46, %v7078_v5  ;;  %12335 = vmatpush1.bf16.msra.mxu0 %v12334_v57  ;;  %v7422_v59 = vsel %vm7409_vm10, %v16376_v53, %v7404_v42  ;;  %vm9788_vm6 = vcmask 195584  }
 0xc4b   : > { %v12356_v50 = vpack.c.bf16 %v7094_v16, %v6984_v36  ;;  %v12338_v11 = vpack.c.bf16 %v7693_v19, %v7422_v59  ;;  %v8316_v19 = vrot.slane %v8264_v4, %v16355_v52 }
 0xc4d   : > { %v7406_v24 = vpop.permute.xlu0 %7405  ;;  %v7188_v21 = vpop.permute.xlu1 %7187  ;;  %12357 = vmatpush3.bf16.msra.mxu1 %v12356_v50 }
 0xc4e   : > { %v7423_v39 = vsel %vm7409_vm10, %v7404_v42, %v7406_v24  ;;  %12358 = vmatprep.subr.bf16.mxu1 %v12912_v26  ;;  %v7204_v38 = vsel %vm7189_vm7, %v7186_v58, %v7188_v21  ;;  %v8312_v21 = vrot.slane %v8264_v4, %v16342_v32  ;;  %vm10007_vm7 = vcmask 752640  }
 0xc4f   : > { %v12336_v9 = vpack.c.bf16 %v7694_v61, %v7423_v39 }
 0xc51   : > { %v7298_v20 = vpop.permute.xlu0 %7297  ;;  %v7408_v30 = vpop.permute.xlu1 %7407  ;;  %12337 = vmatprep.subr.bf16.mxu0 %v12336_v9 }
 0xc52   : > { %v7314_v41 = vsel %vm7299_vm8, %v7296_v6, %v7298_v20  ;;  %12339 = vmatpush1.bf16.msra.mxu0 %v12338_v11  ;;  %v7424_v53 = vsel %vm7409_vm10, %v7406_v24, %v7408_v30 }
 0xc53   : > { %v12359_v22 = vpack.c.bf16 %v7314_v41, %v7204_v38  ;;  %v12362_v7 = vpack.c.bf16 %v7695_v47, %v7424_v53 }
 0xc55   : > { %8187 = vmatmul.mubr.f32.vlgmr.msra.gmra.mrb[6].mxu0 %v16390_v54  ;;  %12360 = vmatpush3.bf16.msra.mxu1 %v12359_v22 }
 0xc56   : > { %12361 = vmatprep.subr.bf16.mxu1 %v12912_v26  ;;  %10358 = vmatprep.mubr.f32.mxu0 %v12910_v14 }
 0xc59   : > { %12363 = vmatpush3.bf16.msra.mxu1 %v12362_v7 }
 0xc5c   : > { %11583 = vmatmul.mubr.f32.vlgmr.msra.gmra.mrb[6].mxu1 %v16390_v54  ;;  %v16476_v54 = vsub.s32 6, %v16313_v12 }
 0xc5d   : > { %10429 = vmatprep.mubr.f32.mxu1 %v12910_v14 }
 0xc5e   : > { %v8296_v1 = vrot.slane %v16325_v34, %v16476_v54  ;;  %v8304_v34 = vrot.slane %v8264_v4, %v16316_v29 }
 0xc64   : > { %v16470_v63 = vpop.f32.mrb[2].mxu0 }
 0xc65   : > { %v8348_v44 = vmul.f32 %v8288_v17, %v16470_v63  ;;  %v16473_v46 = vpop.f32.mrb[3].mxu0  ;;  %v8320_v17 = vrot.slane %v8264_v4, %v16460_v51 }
 0xc66   : > { %v8349_v8 = vmul.f32 %v8292_v18, %v16473_v46  ;;  %v8324_v18 = vrot.slane %v8264_v4, %v16464_v37 }
 0xc67   : > { %v8362_v0 = vadd.f32 %v16383_v33, %v8348_v44  ;;  %v8380_v28 = vmul.f32 %v8348_v44, %v16470_v63 }
 0xc68   : > { %v8381_v27 = vmul.f32 %v8349_v8, %v16473_v46 }
 0xc69   : > { %v8394_v55 = vadd.f32 %v16386_v25, %v8380_v28  ;;  %v8363_v62 = vadd.f32 %v8362_v0, %v8349_v8 }
 0xc6b   : > { %v8395_v35 = vadd.f32 %v8394_v55, %v8381_v27 }
 0xc6c   : > { %v16489_v23 = vpop.f32.mrb[2].mxu1 }
 0xc6d   : > { %v8350_v33 = vmul.f32 %v8296_v1, %v16489_v23  ;;  %v16492_v58 = vpop.f32.mrb[3].mxu1  ;;  %v8328_v1 = vrot.slane %v8264_v4, %v16476_v54 }
 0xc6e   : > { %v8351_v2 = vmul.f32 %v8300_v49, %v16492_v58 }
 0xc6f   : > { %v8364_v10 = vadd.f32 %v8363_v62, %v8350_v33  ;;  %v8382_v25 = vmul.f32 %v8350_v33, %v16489_v23 }
 0xc70   : > { %v8383_v6 = vmul.f32 %v8351_v2, %v16492_v58 }
 0xc71   : > { %v8396_v60 = vadd.f32 %v8395_v35, %v8382_v25  ;;  %v8365_v3 = vadd.f32 %v8364_v10, %v8351_v2 }
 0xc73   : > { %v8397_v15 = vadd.f32 %v8396_v60, %v8383_v6 }
 0xcd4   : > { %v16500_v57 = vpop.f32.mrb[4].mxu0 }
 0xcd5   : > { %v8352_v5 = vmul.f32 %v8304_v34, %v16500_v57  ;;  %v16503_v42 = vpop.f32.mrb[5].mxu0 }
 0xcd6   : > { %v8353_v36 = vmul.f32 %v8308_v31, %v16503_v42 }
 0xcd7   : > { %v8366_v16 = vadd.f32 %v8365_v3, %v8352_v5  ;;  %v8384_v50 = vmul.f32 %v8352_v5, %v16500_v57 }
 0xcd8   : > { %v8385_v61 = vmul.f32 %v8353_v36, %v16503_v42 }
 0xcd9   : > { %v8398_v59 = vadd.f32 %v8397_v15, %v8384_v50  ;;  %v8367_v24 = vadd.f32 %v8366_v16, %v8353_v36  ;;  %v12914_v15 = vmov 0  }
 0xcda   : > { %12747 = vset.pattern.permute.xlu0 %v12914_v15  ;;  %12748 = vset.pattern.permute.xlu1 %v12914_v15 }
 0xcdb   : > { %v8399_v39 = vadd.f32 %v8398_v59, %v8385_v61  ;;  %v8265_v61 = vld [vmem:[%s13095_s19] sm:$0xff]  ;;  %s12916_s19 = smov 98  }
 0xcdc   : > { %v8117_v9 = vpop.f32.mrb[4].mxu1 }
 0xcdd   : > { %v8354_v11 = vmul.f32 %v8312_v21, %v8117_v9  ;;  %v8119_v20 = vpop.f32.mrb[5].mxu1  ;;  %v8266_v21 = vld [vmem:[%s13100_s17] sm:$0xff]  ;;  %s12915_s17 = smov 68  }
 0xcde   : > { %v8355_v30 = vmul.f32 %v8316_v19, %v8119_v20 }
 0xcdf   : > { %v8368_v38 = vadd.f32 %v8367_v24, %v8354_v11  ;;  %v8386_v41 = vmul.f32 %v8354_v11, %v8117_v9 }
 0xce0   : > { %v8387_v22 = vmul.f32 %v8355_v30, %v8119_v20 }
 0xce1   : > { %v8400_v53 = vadd.f32 %v8399_v39, %v8386_v41  ;;  %v8369_v47 = vadd.f32 %v8368_v38, %v8355_v30 }
 0xce3   : > { %v8401_v7 = vadd.f32 %v8400_v53, %v8387_v22 }
 0xd28   : > { %v8188_v44 = vpop.f32.mrb[6].mxu0 }
 0xd29   : > { %v8356_v8 = vmul.f32 %v8320_v17, %v8188_v44  ;;  %v8190_v0 = vpop.f32.mrb[7].mxu0 }
 0xd2a   : > { %v8357_v28 = vmul.f32 %v8324_v18, %v8190_v0 }
 0xd2b   : > { %v8370_v27 = vadd.f32 %v8369_v47, %v8356_v8  ;;  %v8388_v55 = vmul.f32 %v8356_v8, %v8188_v44 }
 0xd2c   : > { %v8389_v62 = vmul.f32 %v8357_v28, %v8190_v0 }
 0xd2d   : > { %v8402_v49 = vadd.f32 %v8401_v7, %v8388_v55  ;;  %v8371_v35 = vadd.f32 %v8370_v27, %v8357_v28 }
 0xd2f   : > { %v8403_v33 = vadd.f32 %v8402_v49, %v8389_v62  ;;  %v8259_v2 = vpop.f32.mrb[6].mxu1 }
 0xd30   : > { %v8358_v10 = vmul.f32 %v8328_v1, %v8259_v2  ;;  %v11584_v25 = vpop.f32.mrb[7].mxu1 }
 0xd32   : > { %v8390_v6 = vmul.f32 %v8358_v10, %v8259_v2  ;;  %v8372_v60 = vadd.f32 %v8371_v35, %v8358_v10 }
 0xd34   : > { %8373 = vadd.xlane.f32.xlu0 %v8372_v60  ;;  %v8404_v3 = vadd.f32 %v8403_v33, %v8390_v6 }
 0xd36   : > { %8405 = vadd.xlane.f32.xlu1 %v8404_v3 }
 0xdc1   : > { %v8374_v34 = vpop.xlane.xlu0 %8373 }
 0xdc2   : > { %v8375_v31 = vmul.f32 0.0010416667, %v8374_v34 }
 0xdc3   : > { %v8406_v5 = vpop.xlane.xlu1 %8405 }
 0xdc4   : > { %v8408_v4 = vmul.f32 %v8375_v31, %v8375_v31  ;;  %v8407_v36 = vmul.f32 0.0010416667, %v8406_v5 }
 0xdc6   : > { %v8409_v16 = vsub.f32 %v8407_v36, %v8408_v4 }
 0xdc8   : > { %v8410_v50 = vadd.f32 1e-05, %v8409_v16 }
 0xdca   : > { %12749 = vrsqrt.f32 %v8410_v50 }
 0xdd4   : > { %v12750_v59 = vpop.eup %12749 }
 0xdd5   : > { %v8412_v24 = vmul.f32 %v12750_v59, %v8265_v61 }
 0xdd7   : > { %8417 = vperm.xlu0 %12747, %v8412_v24   ;;  %v8413_v19 = vmul.f32 %v8412_v24, %v8375_v31 }
 0xdd9   : > { %v8414_v39 = vsub.f32 %v8266_v21, %v8413_v19 }
 0xddb   : > { %8437 = vperm.xlu1 %12748, %v8414_v39  }
 0xe56   : > { %v8418_v11 = vpop.permute.xlu0 %8417 }
 0xe57   : > { %v8422_v30 = vmul.f32 %v8418_v11, %v16363_v48  ;;  %v8421_v38 = vmul.f32 %v8418_v11, %v16350_v13  ;;  %v8420_v41 = vmul.f32 %v8418_v11, %v16336_v45  ;;  %v8424_v22 = vmul.f32 %v8418_v11, %v16470_v63 }
 0xe58   : > { %v8423_v53 = vmul.f32 %v8418_v11, %v16371_v43  ;;  %v8425_v47 = vmul.f32 %v8418_v11, %v16473_v46  ;;  %v8426_v7 = vmul.f32 %v8418_v11, %v16489_v23  ;;  %v8427_v17 = vmul.f32 %v8418_v11, %v16492_v58 }
 0xe59   : > { %v8428_v18 = vmul.f32 %v8418_v11, %v16500_v57  ;;  %v8429_v8 = vmul.f32 %v8418_v11, %v16503_v42  ;;  %v8430_v28 = vmul.f32 %v8418_v11, %v8117_v9  ;;  %v8431_v27 = vmul.f32 %v8418_v11, %v8119_v20 }
 0xe5a   : > { %v8438_v48 = vpop.permute.xlu1 %8437  ;;  %v8432_v13 = vmul.f32 %v8418_v11, %v8188_v44  ;;  %v8433_v55 = vmul.f32 %v8418_v11, %v8190_v0  ;;  %v8434_v45 = vmul.f32 %v8418_v11, %v8259_v2 }
 0xe5b   : > { %v8442_v62 = vadd.f32 %v8438_v48, %v8422_v30  ;;  %v8441_v63 = vadd.f32 %v8438_v48, %v8421_v38  ;;  %v8440_v1 = vadd.f32 %v8438_v48, %v8420_v41  ;;  %v8444_v43 = vadd.f32 %v8438_v48, %v8424_v22 }
 0xe5c   : > { %v8443_v49 = vadd.f32 %v8438_v48, %v8423_v53  ;;  %v8445_v46 = vadd.f32 %v8438_v48, %v8425_v47  ;;  %v8446_v35 = vadd.f32 %v8438_v48, %v8426_v7  ;;  %v8447_v23 = vadd.f32 %v8438_v48, %v8427_v17 }
 0xe5d   : > { %v16525_v33 = vmax.f32 %v8442_v62, 0.0  ;;  %v16527_v58 = vmax.f32 %v8441_v63, 0.0  ;;  %v16529_v57 = vmax.f32 %v8440_v1, 0.0  ;;  %v16531_v42 = vmax.f32 %v8444_v43, 0.0 }
 0xe5e   : > { %v16533_v9 = vmax.f32 %v8443_v49, 0.0  ;;  %v16535_v20 = vmax.f32 %v8445_v46, 0.0  ;;  %v16537_v44 = vmax.f32 %v8446_v35, 0.0  ;;  %v16539_v0 = vmax.f32 %v8447_v23, 0.0 }
 0xe5f   : > { %8661 = vrot.lane.b32.xlu0 %v16525_v33, %s12915_s17  ;;  %8549 = vrot.lane.b32.xlu1 %v16527_v58, %s12916_s19  ;;  %8474 = vst [vmem:[#allocation3 + $0x20] sm:$0xff] %v16531_v42  ;;  %v8448_v2 = vadd.f32 %v8438_v48, %v8428_v18  ;;  %v8449_v10 = vadd.f32 %v8438_v48, %v8429_v8 }
 0xe60   : > { %v8450_v25 = vadd.f32 %v8438_v48, %v8430_v28  ;;  %8475 = vst [vmem:[#allocation3 + $0x28] sm:$0xff] %v16535_v20  ;;  %8476 = vst [vmem:[#allocation3 + $0x30] sm:$0xff] %v16537_v44  ;;  %v8451_v6 = vadd.f32 %v8438_v48, %v8431_v27  ;;  %v8452_v60 = vadd.f32 %v8438_v48, %v8432_v13 }
 0xe61   : > { %8477 = vst [vmem:[#allocation3 + $0x38] sm:$0xff] %v16539_v0  ;;  %v8453_v3 = vadd.f32 %v8438_v48, %v8433_v55  ;;  %v8454_v15 = vadd.f32 %v8438_v48, %v8434_v45  ;;  %v16549_v34 = vmax.f32 %v8448_v2, 0.0  ;;  %v16551_v31 = vmax.f32 %v8449_v10, 0.0 }
 0xe62   : > { %v16553_v5 = vmax.f32 %v8450_v25, 0.0  ;;  %v16555_v4 = vmax.f32 %v8451_v6, 0.0  ;;  %v16557_v36 = vmax.f32 %v8452_v60, 0.0 }
 0xe63   : > { %v8468_v16 = vmax.f32 %v8453_v3, 0.0  ;;  %v8469_v50 = vmax.f32 %v8454_v15, 0.0  ;;  %8771 = vrot.lane.b32.xlu0 %v16525_v33, %s12917_s25  ;;  %8551 = vrot.lane.b32.xlu1 %v16525_v33, %s12916_s19  ;;  %8478 = vst [vmem:[#allocation3 + $0x40] sm:$0xff] %v16549_v34  ;;  %8479 = vst [vmem:[#allocation3 + $0x48] sm:$0xff] %v16551_v31 }
 0xe64   : > { %8480 = vst [vmem:[#allocation3 + $0x50] sm:$0xff] %v16553_v5  ;;  %8481 = vst [vmem:[#allocation3 + $0x58] sm:$0xff] %v16555_v4 }
 0xe65   : > { %8482 = vst [vmem:[#allocation3 + $0x60] sm:$0xff] %v16557_v36  ;;  %8483 = vst [vmem:[#allocation3 + $0x68] sm:$0xff] %v8468_v16 }
 0xe66   : > { %8484 = vst [vmem:[#allocation3 + $0x70] sm:$0xff] %v8469_v50  ;;  %v16568_v61 = vld [vmem:[#allocation3 + $0x20] sm:$0xff] }
 0xe67   : > { %8767 = vrot.lane.b32.xlu0 %v16529_v57, %s12917_s25  ;;  %8547 = vrot.lane.b32.xlu1 %v16529_v57, %s12916_s19  ;;  %v16574_v59 = vld [vmem:[#allocation3 + $0x28] sm:$0xff]  ;;  %v16578_v21 = vld [vmem:[#allocation3 + $0x30] sm:$0xff] }
 0xe68   : > { %v16576_v24 = vld [vmem:[#allocation3 + $0x38] sm:$0xff] }
 0xe6a   : > { %v8494_v19 = vld [vmem:[#allocation3 + $0x48] sm:$0xff]  ;;  %v8493_v39 = vld [vmem:[#allocation3 + $0x40] sm:$0xff] }
 0xe6b   : > { %v8495_v11 = vld [vmem:[#allocation3 + $0x50] sm:$0xff]  ;;  %8665 = vrot.lane.b32.xlu0 %v16531_v42, %s12915_s17  ;;  %8553 = vrot.lane.b32.xlu1 %v16533_v9, %s12916_s19  ;;  %8509 = vst [vmem:[#allocation2 + $0x48] sm:$0xff] %v8494_v19  ;;  %8508 = vst [vmem:[#allocation2 + $0x40] sm:$0xff] %v8493_v39  ;;  %v8496_v30 = vld [vmem:[#allocation3 + $0x58] sm:$0xff] }
 0xe6c   : > { %8510 = vst [vmem:[#allocation2 + $0x50] sm:$0xff] %v8495_v11  ;;  %v8498_v38 = vld [vmem:[#allocation3 + $0x68] sm:$0xff]  ;;  %v8497_v41 = vld [vmem:[#allocation3 + $0x60] sm:$0xff]  ;;  %8511 = vst [vmem:[#allocation2 + $0x58] sm:$0xff] %v8496_v30 }
 0xe6d   : > { %8513 = vst [vmem:[#allocation2 + $0x68] sm:$0xff] %v8498_v38  ;;  %8512 = vst [vmem:[#allocation2 + $0x60] sm:$0xff] %v8497_v41  ;;  %v8499_v22 = vld [vmem:[#allocation3 + $0x70] sm:$0xff] }
 0xe6e   : > { %8514 = vst [vmem:[#allocation2 + $0x70] sm:$0xff] %v8499_v22 }
 0xe6f   : > { %8775 = vrot.lane.b32.xlu0 %v16531_v42, %s12917_s25  ;;  %8555 = vrot.lane.b32.xlu1 %v16531_v42, %s12916_s19 }
 0xe73   : > { %8881 = vrot.lane.b32.xlu0 %v16525_v33, %s12918_s20  ;;  %8659 = vrot.lane.b32.xlu1 %v16527_v58, %s12915_s17 }
 0xe77   : > { %8991 = vrot.lane.b32.xlu0 %v16533_v9, %s12919_s2  ;;  %8769 = vrot.lane.b32.xlu1 %v16527_v58, %s12917_s25 }
 0xe7b   : > { %8987 = vrot.lane.b32.xlu0 %v16527_v58, %s12919_s2  ;;  %8657 = vrot.lane.b32.xlu1 %v16529_v57, %s12915_s17 }
 0xe7f   : > { %8885 = vrot.lane.b32.xlu0 %v16531_v42, %s12918_s20  ;;  %8663 = vrot.lane.b32.xlu1 %v16533_v9, %s12915_s17 }
 0xe83   : > { %8995 = vrot.lane.b32.xlu0 %v16535_v20, %s12919_s2  ;;  %8773 = vrot.lane.b32.xlu1 %v16533_v9, %s12917_s25 }
 0xe87   : > { %9101 = vrot.lane.b32.xlu0 %v16533_v9, %s12920_s3  ;;  %8879 = vrot.lane.b32.xlu1 %v16527_v58, %s12918_s20 }
 0xe8b   : > { %9211 = vrot.lane.b32.xlu0 %v16533_v9, %s12921_s13  ;;  %8989 = vrot.lane.b32.xlu1 %v16525_v33, %s12919_s2 }
 0xe8f   : > { %9207 = vrot.lane.b32.xlu0 %v16527_v58, %s12921_s13  ;;  %8877 = vrot.lane.b32.xlu1 %v16529_v57, %s12918_s20 }
 0xe93   : > { %9105 = vrot.lane.b32.xlu0 %v16535_v20, %s12920_s3  ;;  %8883 = vrot.lane.b32.xlu1 %v16533_v9, %s12918_s20 }
 0xe97   : > { %9215 = vrot.lane.b32.xlu0 %v16535_v20, %s12921_s13  ;;  %8993 = vrot.lane.b32.xlu1 %v16531_v42, %s12919_s2 }
 0xe9b   : > { %9321 = vrot.lane.b32.xlu0 %v16533_v9, %s12922_s12  ;;  %9099 = vrot.lane.b32.xlu1 %v16525_v33, %s12920_s3 }
 0xe9f   : > { %9431 = vrot.lane.b32.xlu0 %v16531_v42, %s12911_s16  ;;  %9209 = vrot.lane.b32.xlu1 %v16525_v33, %s12921_s13 }
 0xea3   : > { %9427 = vrot.lane.b32.xlu0 %v16525_v33, %s12911_s16  ;;  %9097 = vrot.lane.b32.xlu1 %v16527_v58, %s12920_s3 }
 0xea7   : > { %9325 = vrot.lane.b32.xlu0 %v16535_v20, %s12922_s12  ;;  %9103 = vrot.lane.b32.xlu1 %v16531_v42, %s12920_s3 }
 0xeab   : > { %9435 = vrot.lane.b32.xlu0 %v16537_v44, %s12911_s16  ;;  %9213 = vrot.lane.b32.xlu1 %v16531_v42, %s12921_s13 }
 0xeaf   : > { %9540 = vrot.lane.b32.xlu0 %v16531_v42, %s12923_s24  ;;  %9319 = vrot.lane.b32.xlu1 %v16525_v33, %s12922_s12 }
 0xeb3   : > { %9650 = vrot.lane.b32.xlu0 %v16531_v42, %s12924_s26  ;;  %9429 = vrot.lane.b32.xlu1 %v16533_v9, %s12911_s16 }
 0xeb7   : > { %9646 = vrot.lane.b32.xlu0 %v16525_v33, %s12924_s26  ;;  %9317 = vrot.lane.b32.xlu1 %v16527_v58, %s12922_s12 }
 0xebb   : > { %9544 = vrot.lane.b32.xlu0 %v16537_v44, %s12923_s24  ;;  %9323 = vrot.lane.b32.xlu1 %v16531_v42, %s12922_s12 }
 0xebf   : > { %9654 = vrot.lane.b32.xlu0 %v16537_v44, %s12924_s26  ;;  %9433 = vrot.lane.b32.xlu1 %v16535_v20, %s12911_s16 }
 0xec3   : > { %9760 = vrot.lane.b32.xlu0 %v16531_v42, %s12925_s28  ;;  %9538 = vrot.lane.b32.xlu1 %v16533_v9, %s12923_s24 }
 0xec7   : > { %9870 = vrot.lane.b32.xlu0 %v16535_v20, %s12902_s14  ;;  %9648 = vrot.lane.b32.xlu1 %v16533_v9, %s12924_s26 }
 0xecb   : > { %9866 = vrot.lane.b32.xlu0 %v16533_v9, %s12902_s14  ;;  %9536 = vrot.lane.b32.xlu1 %v16525_v33, %s12923_s24 }
 0xecf   : > { %9764 = vrot.lane.b32.xlu0 %v16537_v44, %s12925_s28  ;;  %9542 = vrot.lane.b32.xlu1 %v16535_v20, %s12923_s24 }
 0xed1   : > { %v8662_v53 = vpop.permute.xlu0 %8661  ;;  %v8550_v47 = vpop.permute.xlu1 %8549 }
 0xed3   : > { %9874 = vrot.lane.b32.xlu0 %v16539_v0, %s12902_s14  ;;  %9652 = vrot.lane.b32.xlu1 %v16535_v20, %s12924_s26 }
 0xed5   : > { %v8772_v7 = vpop.permute.xlu0 %8771  ;;  %v8552_v17 = vpop.permute.xlu1 %8551 }
 0xed6   : > { %v8581_v18 = vsel %vm8579_vm12, %v8550_v47, %v8552_v17 }
 0xed7   : > { %9979 = vrot.lane.b32.xlu0 %v16535_v20, %s12926_s1  ;;  %9758 = vrot.lane.b32.xlu1 %v16533_v9, %s12925_s28  ;;  %v12364_v8 = vpack.c.bf16 %v8581_v18, %v16527_v58 }
 0xed9   : > { %v8768_v28 = vpop.permute.xlu0 %8767  ;;  %v8548_v48 = vpop.permute.xlu1 %8547  ;;  %12365 = vmatprep.subr.bf16.mxu0 %v12364_v8 }
 0xeda   : > { %v8580_v27 = vsel %vm8579_vm12, %v8548_v48, %v8550_v47 }
 0xedb   : > { %8557 = vrot.lane.b32.xlu0 %v16535_v20, %s12916_s19  ;;  %9868 = vrot.lane.b32.xlu1 %v16531_v42, %s12902_s14  ;;  %v12366_v13 = vpack.c.bf16 %v8580_v27, %v16529_v57 }
 0xedd   : > { %v16700_v55 = vpop.permute.xlu0 %8665  ;;  %v8554_v45 = vpop.permute.xlu1 %8553  ;;  %12367 = vmatpush1.bf16.msra.mxu0 %v12366_v13 }
 0xede   : > { %v8582_v62 = vsel %vm8579_vm12, %v8552_v17, %v8554_v45 }
 0xedf   : > { %9981 = vrot.lane.b32.xlu0 %v16537_v44, %s12926_s1  ;;  %9756 = vrot.lane.b32.xlu1 %v16525_v33, %s12925_s28  ;;  %v12398_v46 = vpack.c.bf16 %v8582_v62, %v16525_v33 }
 0xee1   : > { %v16707_v63 = vpop.permute.xlu0 %8775  ;;  %v16709_v1 = vpop.permute.xlu1 %8555 }
 0xee2   : > { %v8583_v43 = vsel %vm8579_vm12, %v8554_v45, %v16709_v1 }
 0xee3   : > { %8561 = vrot.lane.b32.xlu0 %v16539_v0, %s12916_s19  ;;  %9762 = vrot.lane.b32.xlu1 %v16535_v20, %s12925_s28  ;;  %v12396_v49 = vpack.c.bf16 %v8583_v43, %v16533_v9 }
 0xee5   : > { %v16719_v35 = vpop.permute.xlu0 %8881  ;;  %v8660_v23 = vpop.permute.xlu1 %8659  ;;  %12397 = vmatprep.subr.bf16.mxu1 %v12396_v49 }
 0xee6   : > { %v8691_v58 = vsel %vm8689_vm9, %v8660_v23, %v8662_v53  ;;  %12399 = vmatpush1.bf16.msra.mxu1 %v12398_v46 }
 0xee7   : > { %8667 = vrot.lane.b32.xlu0 %v16535_v20, %s12915_s17  ;;  %9872 = vrot.lane.b32.xlu1 %v16537_v44, %s12902_s14 }
 0xee9   : > { %v8992_v57 = vpop.permute.xlu0 %8991  ;;  %v8770_v2 = vpop.permute.xlu1 %8769 }
 0xeea   : > { %v8800_v10 = vsel %vm8799_vm13, %v8768_v28, %v8770_v2  ;;  %v8801_v33 = vsel %vm8799_vm13, %v8770_v2, %v8772_v7 }
 0xeeb   : > { %8777 = vrot.lane.b32.xlu0 %v16535_v20, %s12917_s25  ;;  %9977 = vrot.lane.b32.xlu1 %v16531_v42, %s12926_s1  ;;  %v12368_v25 = vpack.c.bf16 %v8801_v33, %v8691_v58 }
 0xeed   : > { %v8988_v6 = vpop.permute.xlu0 %8987  ;;  %v8658_v60 = vpop.permute.xlu1 %8657  ;;  %12369 = vmatprep.subr.bf16.mxu0 %v12368_v25 }
 0xeee   : > { %v8690_v3 = vsel %vm8689_vm9, %v8658_v60, %v8660_v23 }
 0xeef   : > { %8671 = vrot.lane.b32.xlu0 %v16539_v0, %s12915_s17  ;;  %9975 = vrot.lane.b32.xlu1 %v16533_v9, %s12926_s1  ;;  %v12370_v15 = vpack.c.bf16 %v8800_v10, %v8690_v3 }
 0xef1   : > { %v16737_v16 = vpop.permute.xlu0 %8885  ;;  %v8664_v50 = vpop.permute.xlu1 %8663  ;;  %12371 = vmatpush1.bf16.msra.mxu0 %v12370_v15 }
 0xef2   : > { %v8692_v19 = vsel %vm8689_vm9, %v8662_v53, %v8664_v50  ;;  %v8693_v42 = vsel %vm8689_vm9, %v8664_v50, %v16700_v55 }
 0xef3   : > { %8781 = vrot.lane.b32.xlu0 %v16539_v0, %s12917_s25  ;;  %8559 = vrot.lane.b32.xlu1 %v16537_v44, %s12916_s19 }
 0xef5   : > { %v16746_v39 = vpop.permute.xlu0 %8995  ;;  %v8774_v11 = vpop.permute.xlu1 %8773 }
 0xef6   : > { %v8802_v9 = vsel %vm8799_vm13, %v8772_v7, %v8774_v11  ;;  %v8803_v30 = vsel %vm8799_vm13, %v8774_v11, %v16707_v63 }
 0xef7   : > { %8887 = vrot.lane.b32.xlu0 %v16535_v20, %s12918_s20  ;;  %9983 = vrot.lane.b32.xlu1 %v16539_v0, %s12926_s1  ;;  %v12400_v38 = vpack.c.bf16 %v8803_v30, %v8693_v42  ;;  %v12402_v41 = vpack.c.bf16 %v8802_v9, %v8692_v19 }
 0xef9   : > { %v16755_v22 = vpop.permute.xlu0 %9101  ;;  %v8880_v53 = vpop.permute.xlu1 %8879  ;;  %12401 = vmatprep.subr.bf16.mxu1 %v12400_v38 }
 0xefa   : > { %v8911_v47 = vsel %vm8909_vm14, %v8880_v53, %v16719_v35  ;;  %12403 = vmatpush1.bf16.msra.mxu1 %v12402_v41 }
 0xefb   : > { %8997 = vrot.lane.b32.xlu0 %v16537_v44, %s12919_s2  ;;  %8563 = vrot.lane.b32.xlu1 %v16549_v34, %s12916_s19 }
 0xefd   : > { %v9212_v20 = vpop.permute.xlu0 %9211  ;;  %v8990_v7 = vpop.permute.xlu1 %8989 }
 0xefe   : > { %v9020_v17 = vsel %vm9019_vm15, %v8988_v6, %v8990_v7  ;;  %v9021_v18 = vsel %vm9019_vm15, %v8990_v7, %v8992_v57 }
 0xeff   : > { %8891 = vrot.lane.b32.xlu0 %v16539_v0, %s12918_s20  ;;  %8669 = vrot.lane.b32.xlu1 %v16537_v44, %s12915_s17  ;;  %v12372_v8 = vpack.c.bf16 %v9021_v18, %v8911_v47 }
 0xf01   : > { %v9208_v28 = vpop.permute.xlu0 %9207  ;;  %v8878_v48 = vpop.permute.xlu1 %8877  ;;  %12373 = vmatprep.subr.bf16.mxu0 %v12372_v8 }
 0xf02   : > { %v8910_v27 = vsel %vm8909_vm14, %v8878_v48, %v8880_v53 }
 0xf03   : > { %9001 = vrot.lane.b32.xlu0 %v16549_v34, %s12919_s2  ;;  %8779 = vrot.lane.b32.xlu1 %v16537_v44, %s12917_s25  ;;  %v12374_v13 = vpack.c.bf16 %v9020_v17, %v8910_v27 }
 0xf05   : > { %v16774_v45 = vpop.permute.xlu0 %9105  ;;  %v8884_v62 = vpop.permute.xlu1 %8883  ;;  %12375 = vmatpush1.bf16.msra.mxu0 %v12374_v13 }
 0xf06   : > { %v8912_v43 = vsel %vm8909_vm14, %v16719_v35, %v8884_v62  ;;  %v8913_v49 = vsel %vm8909_vm14, %v8884_v62, %v16737_v16 }
 0xf07   : > { %9107 = vrot.lane.b32.xlu0 %v16537_v44, %s12920_s3  ;;  %8673 = vrot.lane.b32.xlu1 %v16549_v34, %s12915_s17 }
 0xf09   : > { %v16784_v46 = vpop.permute.xlu0 %9215  ;;  %v8994_v23 = vpop.permute.xlu1 %8993 }
 0xf0a   : > { %v9022_v58 = vsel %vm9019_vm15, %v8992_v57, %v8994_v23  ;;  %v9023_v2 = vsel %vm9019_vm15, %v8994_v23, %v16746_v39 }
 0xf0b   : > { %9217 = vrot.lane.b32.xlu0 %v16537_v44, %s12921_s13  ;;  %8783 = vrot.lane.b32.xlu1 %v16549_v34, %s12917_s25  ;;  %v12404_v35 = vpack.c.bf16 %v9023_v2, %v8913_v49  ;;  %v12406_v10 = vpack.c.bf16 %v9022_v58, %v8912_v43 }
 0xf0d   : > { %v16793_v33 = vpop.permute.xlu0 %9321  ;;  %v9100_v25 = vpop.permute.xlu1 %9099  ;;  %12405 = vmatprep.subr.bf16.mxu1 %v12404_v35 }
 0xf0e   : > { %v9131_v6 = vsel %vm9129_vm0, %v9100_v25, %v16755_v22  ;;  %12407 = vmatpush1.bf16.msra.mxu1 %v12406_v10 }
 0xf0f   : > { %9111 = vrot.lane.b32.xlu0 %v16549_v34, %s12920_s3  ;;  %8889 = vrot.lane.b32.xlu1 %v16537_v44, %s12918_s20 }
 0xf11   : > { %v9432_v57 = vpop.permute.xlu0 %9431  ;;  %v9210_v60 = vpop.permute.xlu1 %9209 }
 0xf12   : > { %v9240_v3 = vsel %vm9239_vm2, %v9208_v28, %v9210_v60  ;;  %v9241_v15 = vsel %vm9239_vm2, %v9210_v60, %v9212_v20 }
 0xf13   : > { %9221 = vrot.lane.b32.xlu0 %v16549_v34, %s12921_s13  ;;  %8999 = vrot.lane.b32.xlu1 %v16539_v0, %s12919_s2  ;;  %v12376_v50 = vpack.c.bf16 %v9241_v15, %v9131_v6 }
 0xf15   : > { %v9428_v19 = vpop.permute.xlu0 %9427  ;;  %v9098_v42 = vpop.permute.xlu1 %9097  ;;  %12377 = vmatprep.subr.bf16.mxu0 %v12376_v50 }
 0xf16   : > { %v9130_v11 = vsel %vm9129_vm0, %v9098_v42, %v9100_v25 }
 0xf17   : > { %9327 = vrot.lane.b32.xlu0 %v16537_v44, %s12922_s12  ;;  %8893 = vrot.lane.b32.xlu1 %v16549_v34, %s12918_s20  ;;  %v12378_v9 = vpack.c.bf16 %v9240_v3, %v9130_v11 }
 0xf19   : > { %v16812_v30 = vpop.permute.xlu0 %9325  ;;  %v9104_v38 = vpop.permute.xlu1 %9103  ;;  %12379 = vmatpush1.bf16.msra.mxu0 %v12378_v9 }
 0xf1a   : > { %v9132_v41 = vsel %vm9129_vm0, %v16755_v22, %v9104_v38  ;;  %v9133_v53 = vsel %vm9129_vm0, %v9104_v38, %v16774_v45 }
 0xf1b   : > { %9437 = vrot.lane.b32.xlu0 %v16539_v0, %s12911_s16  ;;  %9003 = vrot.lane.b32.xlu1 %v16551_v31, %s12919_s2 }
 0xf1d   : > { %v16822_v44 = vpop.permute.xlu0 %9435  ;;  %v9214_v47 = vpop.permute.xlu1 %9213 }
 0xf1e   : > { %v9242_v7 = vsel %vm9239_vm2, %v9212_v20, %v9214_v47  ;;  %v9243_v17 = vsel %vm9239_vm2, %v9214_v47, %v16784_v46 }
 0xf1f   : > { %9331 = vrot.lane.b32.xlu0 %v16549_v34, %s12922_s12  ;;  %9109 = vrot.lane.b32.xlu1 %v16539_v0, %s12920_s3  ;;  %v12408_v22 = vpack.c.bf16 %v9243_v17, %v9133_v53  ;;  %v12410_v18 = vpack.c.bf16 %v9242_v7, %v9132_v41 }
 0xf21   : > { %v16831_v8 = vpop.permute.xlu0 %9540  ;;  %v9320_v28 = vpop.permute.xlu1 %9319  ;;  %12409 = vmatprep.subr.bf16.mxu1 %v12408_v22 }
 0xf22   : > { %v9351_v48 = vsel %vm9349_vm3, %v9320_v28, %v16793_v33  ;;  %12411 = vmatpush1.bf16.msra.mxu1 %v12410_v18 }
 0xf23   : > { %9441 = vrot.lane.b32.xlu0 %v16551_v31, %s12911_s16  ;;  %9219 = vrot.lane.b32.xlu1 %v16539_v0, %s12921_s13 }
 0xf25   : > { %v9651_v20 = vpop.permute.xlu0 %9650  ;;  %v9430_v27 = vpop.permute.xlu1 %9429 }
 0xf26   : > { %v9459_v13 = vsel %vm7409_vm10, %v9428_v19, %v9430_v27  ;;  %v9460_v62 = vsel %vm7409_vm10, %v9430_v27, %v9432_v57 }
 0xf27   : > { %9546 = vrot.lane.b32.xlu0 %v16539_v0, %s12923_s24  ;;  %9113 = vrot.lane.b32.xlu1 %v16551_v31, %s12920_s3  ;;  %v12380_v43 = vpack.c.bf16 %v9460_v62, %v9351_v48 }
 0xf29   : > { %v9647_v49 = vpop.permute.xlu0 %9646  ;;  %v9318_v23 = vpop.permute.xlu1 %9317  ;;  %12381 = vmatprep.subr.bf16.mxu0 %v12380_v43 }
 0xf2a   : > { %v9350_v58 = vsel %vm9349_vm3, %v9318_v23, %v9320_v28 }
 0xf2b   : > { %9656 = vrot.lane.b32.xlu0 %v16539_v0, %s12924_s26  ;;  %9223 = vrot.lane.b32.xlu1 %v16551_v31, %s12921_s13  ;;  %v12382_v2 = vpack.c.bf16 %v9459_v13, %v9350_v58 }
 0xf2d   : > { %v16850_v35 = vpop.permute.xlu0 %9544  ;;  %v9324_v10 = vpop.permute.xlu1 %9323  ;;  %12383 = vmatpush1.bf16.msra.mxu0 %v12382_v2 }
 0xf2e   : > { %v9352_v25 = vsel %vm9349_vm3, %v16793_v33, %v9324_v10  ;;  %v9353_v6 = vsel %vm9349_vm3, %v9324_v10, %v16812_v30 }
 0xf2f   : > { %9550 = vrot.lane.b32.xlu0 %v16551_v31, %s12923_s24  ;;  %9329 = vrot.lane.b32.xlu1 %v16539_v0, %s12922_s12 }
 0xf31   : > { %v16860_v60 = vpop.permute.xlu0 %9654  ;;  %v9434_v3 = vpop.permute.xlu1 %9433 }
 0xf32   : > { %v9461_v15 = vsel %vm7409_vm10, %v9432_v57, %v9434_v3  ;;  %v9462_v50 = vsel %vm7409_vm10, %v9434_v3, %v16822_v44 }
 0xf33   : > { %9660 = vrot.lane.b32.xlu0 %v16551_v31, %s12924_s26  ;;  %9439 = vrot.lane.b32.xlu1 %v16549_v34, %s12911_s16  ;;  %v12412_v33 = vpack.c.bf16 %v9462_v50, %v9353_v6  ;;  %v12414_v19 = vpack.c.bf16 %v9461_v15, %v9352_v25 }
 0xf35   : > { %v16869_v42 = vpop.permute.xlu0 %9760  ;;  %v9539_v11 = vpop.permute.xlu1 %9538  ;;  %12413 = vmatprep.subr.bf16.mxu1 %v12412_v33 }
 0xf36   : > { %v9570_v9 = vsel %vm9568_vm4, %v9539_v11, %v16831_v8  ;;  %12415 = vmatpush1.bf16.msra.mxu1 %v12414_v19 }
 0xf37   : > { %9766 = vrot.lane.b32.xlu0 %v16539_v0, %s12925_s28  ;;  %9333 = vrot.lane.b32.xlu1 %v16551_v31, %s12922_s12 }
 0xf39   : > { %v16877_v57 = vpop.permute.xlu0 %9870  ;;  %v9649_v38 = vpop.permute.xlu1 %9648 }
 0xf3a   : > { %v9679_v41 = vsel %vm9678_vm5, %v9647_v49, %v9649_v38  ;;  %v9680_v53 = vsel %vm9678_vm5, %v9649_v38, %v9651_v20 }
 0xf3b   : > { %9876 = vrot.lane.b32.xlu0 %v16549_v34, %s12902_s14  ;;  %9443 = vrot.lane.b32.xlu1 %v16553_v5, %s12911_s16  ;;  %v12384_v47 = vpack.c.bf16 %v9680_v53, %v9570_v9 }
 0xf3d   : > { %v9867_v7 = vpop.permute.xlu0 %9866  ;;  %v9537_v0 = vpop.permute.xlu1 %9536  ;;  %12385 = vmatprep.subr.bf16.mxu0 %v12384_v47 }
 0xf3e   : > { %v9569_v17 = vsel %vm9568_vm4, %v9537_v0, %v9539_v11 }
 0xf3f   : > { %9770 = vrot.lane.b32.xlu0 %v16551_v31, %s12925_s28  ;;  %9548 = vrot.lane.b32.xlu1 %v16549_v34, %s12923_s24  ;;  %v12386_v22 = vpack.c.bf16 %v9679_v41, %v9569_v17 }
 0xf41   : > { %v16890_v18 = vpop.permute.xlu0 %9764  ;;  %v9543_v28 = vpop.permute.xlu1 %9542  ;;  %12387 = vmatpush1.bf16.msra.mxu0 %v12386_v22 }
 0xf42   : > { %v9571_v48 = vsel %vm9568_vm4, %v16831_v8, %v9543_v28  ;;  %v9572_v27 = vsel %vm9568_vm4, %v9543_v28, %v16850_v35 }
 0xf43   : > { %9880 = vrot.lane.b32.xlu0 %v16553_v5, %s12902_s14  ;;  %9658 = vrot.lane.b32.xlu1 %v16549_v34, %s12924_s26 }
 0xf45   : > { %v16900_v13 = vpop.permute.xlu0 %9874  ;;  %v9653_v62 = vpop.permute.xlu1 %9652 }
 0xf46   : > { %v9681_v43 = vsel %vm9678_vm5, %v9651_v20, %v9653_v62  ;;  %v9682_v49 = vsel %vm9678_vm5, %v9653_v62, %v16860_v60 }
 0xf47   : > { %9985 = vrot.lane.b32.xlu0 %v16549_v34, %s12926_s1  ;;  %9552 = vrot.lane.b32.xlu1 %v16553_v5, %s12923_s24  ;;  %v12416_v8 = vpack.c.bf16 %v9682_v49, %v9572_v27  ;;  %v12418_v23 = vpack.c.bf16 %v9681_v43, %v9571_v48  ;;  %v10280_v48 = vld [vmem:[#allocation2 + $0x710] sm:$0xff]  ;;  %v10279_v49 = vld [vmem:[#allocation2 + $0x708] sm:$0xff] }
 0xf49   : > { %v9980_v58 = vpop.permute.xlu0 %9979  ;;  %v9759_v2 = vpop.permute.xlu1 %9758  ;;  %12417 = vmatprep.subr.bf16.mxu1 %v12416_v8 }
 0xf4a   : > { %v9790_v10 = vsel %vm9788_vm6, %v9759_v2, %v16869_v42  ;;  %12419 = vmatpush1.bf16.msra.mxu1 %v12418_v23 }
 0xf4b   : > { %8565 = vrot.lane.b32.xlu0 %v16551_v31, %s12916_s19  ;;  %9662 = vrot.lane.b32.xlu1 %v16553_v5, %s12924_s26 }
 0xf4d   : > { %v8558_v20 = vpop.permute.xlu0 %8557  ;;  %v9869_v25 = vpop.permute.xlu1 %9868 }
 0xf4e   : > { %v16917_v6 = vsel %vm8579_vm12, %v16709_v1, %v8558_v20  ;;  %v9898_v3 = vsel %vm6529_vm1, %v9867_v7, %v9869_v25  ;;  %v9899_v15 = vsel %vm6529_vm1, %v9869_v25, %v16877_v57  ;;  %v16981_v25 = vld [vmem:[%s13090_s15] sm:$0xff] }
 0xf4f   : > { %9989 = vrot.lane.b32.xlu0 %v16553_v5, %s12926_s1  ;;  %9768 = vrot.lane.b32.xlu1 %v16549_v34, %s12925_s28  ;;  %v12388_v50 = vpack.c.bf16 %v9899_v15, %v9790_v10 }
 0xf51   : > { %v9982_v33 = vpop.permute.xlu0 %9981  ;;  %v9757_v19 = vpop.permute.xlu1 %9756  ;;  %12389 = vmatprep.subr.bf16.mxu0 %v12388_v50 }
 0xf52   : > { %v16927_v11 = vsel %vm10007_vm7, %v9980_v58, %v9982_v33  ;;  %v9789_v1 = vsel %vm9788_vm6, %v9757_v19, %v9759_v2  ;;  %v12430_v19 = vpack.c.bf16 %v16917_v6, %v16568_v61 }
 0xf53   : > { %8569 = vrot.lane.b32.xlu0 %v16555_v4, %s12916_s19  ;;  %9878 = vrot.lane.b32.xlu1 %v16551_v31, %s12902_s14  ;;  %v12390_v9 = vpack.c.bf16 %v9898_v3, %v9789_v1  ;;  %v10282_v1 = vld [vmem:[#allocation2 + $0x720] sm:$0xff] }
 0xf55   : > { %v16934_v38 = vpop.permute.xlu0 %8561  ;;  %v9763_v34 = vpop.permute.xlu1 %9762  ;;  %12391 = vmatpush1.bf16.msra.mxu0 %v12390_v9 }
 0xf56   : > { %v9791_v41 = vsel %vm9788_vm6, %v16869_v42, %v9763_v34  ;;  %v9792_v53 = vsel %vm9788_vm6, %v9763_v34, %v16890_v18 }
 0xf57   : > { %8675 = vrot.lane.b32.xlu0 %v16551_v31, %s12915_s17  ;;  %9772 = vrot.lane.b32.xlu1 %v16553_v5, %s12925_s28 }
 0xf59   : > { %v16944_v47 = vpop.permute.xlu0 %8667  ;;  %v9873_v7 = vpop.permute.xlu1 %9872 }
 0xf5a   : > { %v16949_v0 = vsel %vm8689_vm9, %v16700_v55, %v16944_v47  ;;  %v9900_v42 = vsel %vm6529_vm1, %v16877_v57, %v9873_v7  ;;  %v9901_v17 = vsel %vm6529_vm1, %v9873_v7, %v16900_v13 }
 0xf5b   : > { %8785 = vrot.lane.b32.xlu0 %v16551_v31, %s12917_s25  ;;  %9882 = vrot.lane.b32.xlu1 %v16555_v4, %s12902_s14  ;;  %v12420_v22 = vpack.c.bf16 %v9901_v17, %v9792_v53  ;;  %v12422_v28 = vpack.c.bf16 %v9900_v42, %v9791_v41 }
 0xf5d   : > { %v16959_v27 = vpop.permute.xlu0 %8777  ;;  %v9978_v62 = vpop.permute.xlu1 %9977  ;;  %12421 = vmatprep.subr.bf16.mxu1 %v12420_v22 }
 0xf5e   : > { %v16964_v55 = vsel %vm8799_vm13, %v16707_v63, %v16959_v27  ;;  %v10009_v57 = vsel %vm10007_vm7, %v9978_v62, %v9980_v58  ;;  %12423 = vmatpush1.bf16.msra.mxu1 %v12422_v28 }
 0xf5f   : > { %8679 = vrot.lane.b32.xlu0 %v16555_v4, %s12915_s17  ;;  %9987 = vrot.lane.b32.xlu1 %v16551_v31, %s12926_s1  ;;  %v12392_v43 = vpack.c.bf16 %v10280_v48, %v10009_v57  ;;  %v12434_v28 = vpack.c.bf16 %v16964_v55, %v16949_v0 }
 0xf61   : > { %v16971_v8 = vpop.permute.xlu0 %8671  ;;  %v9976_v23 = vpop.permute.xlu1 %9975  ;;  %12393 = vmatprep.subr.bf16.mxu0 %v12392_v43 }
 0xf62   : > { %v10008_v2 = vsel %vm10007_vm7, %v9976_v23, %v9978_v62 }
 0xf63   : > { %8789 = vrot.lane.b32.xlu0 %v16555_v4, %s12917_s25  ;;  %8567 = vrot.lane.b32.xlu1 %v16553_v5, %s12916_s19  ;;  %v12394_v63 = vpack.c.bf16 %v10279_v49, %v10008_v2 }
 0xf65   : > { %v16978_v58 = vpop.permute.xlu0 %8781  ;;  %v8560_v10 = vpop.permute.xlu1 %8559  ;;  %12395 = vmatpush1.bf16.msra.mxu0 %v12394_v63 }
 0xf66   : > { %v8585_v3 = vsel %vm8579_vm12, %v8558_v20, %v8560_v10  ;;  %v8586_v15 = vsel %vm8579_vm12, %v8560_v10, %v16934_v38  ;;  %v10281_v20 = vld [vmem:[#allocation2 + $0x718] sm:$0xff]  ;;  %v17071_v10 = vld [vmem:[#allocation3 + $0x60] sm:$0xff] }
 0xf67   : > { %8895 = vrot.lane.b32.xlu0 %v16551_v31, %s12918_s20  ;;  %9991 = vrot.lane.b32.xlu1 %v16555_v4, %s12926_s1  ;;  %v12428_v50 = vpack.c.bf16 %v8585_v3, %v16574_v59  ;;  %v12426_v6 = vpack.c.bf16 %v10281_v20, %v16927_v11  ;;  %v12462_v7 = vpack.c.bf16 %v8586_v15, %v16578_v21 }
 0xf68   : > { %10359 = vmatmul.mubr.f32.vlgmr.msra.gmra.mrb[8].mxu0 %v16981_v25 }
 0xf69   : > { %v8888_v9 = vpop.permute.xlu0 %8887  ;;  %v16994_v34 = vpop.permute.xlu1 %9983  ;;  %12429 = vmatprep.subr.bf16.mxu0 %v12428_v50  ;;  %10500 = vmatprep.mubr.f32.mxu0 %v12910_v14  ;;  %v12758_v50 = vld [vmem:[#allocation3 + $0x50] sm:$0xff] }
 0xf6a   : > { %v16999_v31 = vsel %vm8909_vm14, %v16737_v16, %v8888_v9  ;;  %v10011_v59 = vsel %vm10007_vm7, %v9982_v33, %v16994_v34  ;;  %12431 = vmatpush1.bf16.msra.mxu0 %v12430_v19 }
 0xf6b   : > { %9005 = vrot.lane.b32.xlu0 %v16553_v5, %s12919_s2  ;;  %8571 = vrot.lane.b32.xlu1 %v16557_v36, %s12916_s19  ;;  %v12424_v61 = vpack.c.bf16 %v10282_v1, %v10011_v59 }
 0xf6d   : > { %v8998_v41 = vpop.permute.xlu0 %8997  ;;  %v17008_v53 = vpop.permute.xlu1 %8563  ;;  %12425 = vmatprep.subr.bf16.mxu1 %v12424_v61 }
 0xf6e   : > { %v17012_v16 = vsel %vm9019_vm15, %v16746_v39, %v8998_v41  ;;  %v8587_v33 = vsel %vm8579_vm12, %v16934_v38, %v17008_v53  ;;  %12427 = vmatpush1.bf16.msra.mxu1 %v12426_v6  ;;  %v17096_v6 = vld [vmem:[#allocation3 + $0x68] sm:$0xff] }
 0xf6f   : > { %8899 = vrot.lane.b32.xlu0 %v16555_v4, %s12918_s20  ;;  %8677 = vrot.lane.b32.xlu1 %v16553_v5, %s12915_s17  ;;  %v12460_v11 = vpack.c.bf16 %v8587_v33, %v16576_v24  ;;  %v12438_v1 = vpack.c.bf16 %v17012_v16, %v16999_v31 }
 0xf71   : > { %v8892_v42 = vpop.permute.xlu0 %8891  ;;  %v8670_v17 = vpop.permute.xlu1 %8669  ;;  %12461 = vmatprep.subr.bf16.mxu1 %v12460_v11  ;;  %10430 = vmatmul.mubr.f32.vlgmr.msra.gmra.mrb[8].mxu1 %v16981_v25 }
 0xf72   : > { %v8695_v39 = vsel %vm8689_vm9, %v16944_v47, %v8670_v17  ;;  %v8696_v38 = vsel %vm8689_vm9, %v8670_v17, %v16971_v8  ;;  %12463 = vmatpush1.bf16.msra.mxu1 %v12462_v7  ;;  %10571 = vmatprep.mubr.f32.mxu1 %v12910_v14 }
 0xf73   : > { %9009 = vrot.lane.b32.xlu0 %v16557_v36, %s12919_s2  ;;  %8787 = vrot.lane.b32.xlu1 %v16553_v5, %s12917_s25 }
 0xf75   : > { %v9002_v4 = vpop.permute.xlu0 %9001  ;;  %v8780_v24 = vpop.permute.xlu1 %8779 }
 0xf76   : > { %v8805_v21 = vsel %vm8799_vm13, %v16959_v27, %v8780_v24  ;;  %v8806_v47 = vsel %vm8799_vm13, %v8780_v24, %v16978_v58 }
 0xf77   : > { %9115 = vrot.lane.b32.xlu0 %v16553_v5, %s12920_s3  ;;  %8681 = vrot.lane.b32.xlu1 %v16557_v36, %s12915_s17  ;;  %v12432_v22 = vpack.c.bf16 %v8805_v21, %v8695_v39 }
 0xf79   : > { %v9108_v48 = vpop.permute.xlu0 %9107  ;;  %v17043_v62 = vpop.permute.xlu1 %8673  ;;  %12433 = vmatprep.subr.bf16.mxu0 %v12432_v22 }
 0xf7a   : > { %v17047_v27 = vsel %vm9129_vm0, %v16774_v45, %v9108_v48  ;;  %v8697_v57 = vsel %vm8689_vm9, %v16971_v8, %v17043_v62  ;;  %12435 = vmatpush1.bf16.msra.mxu0 %v12434_v28  ;;  %v12466_v8 = vpack.c.bf16 %v8806_v47, %v8696_v38 }
 0xf7b   : > { %9225 = vrot.lane.b32.xlu0 %v16553_v5, %s12921_s13  ;;  %8791 = vrot.lane.b32.xlu1 %v16557_v36, %s12917_s25 }
 0xf7d   : > { %v9218_v0 = vpop.permute.xlu0 %9217  ;;  %v17056_v55 = vpop.permute.xlu1 %8783 }
 0xf7e   : > { %v17060_v43 = vsel %vm9239_vm2, %v16784_v46, %v9218_v0  ;;  %v8807_v45 = vsel %vm8799_vm13, %v16978_v58, %v17056_v55  ;;  %v17075_v58 = vld [vmem:[#allocation3 + $0x58] sm:$0xff] }
 0xf7f   : > { %9119 = vrot.lane.b32.xlu0 %v16557_v36, %s12920_s3  ;;  %8897 = vrot.lane.b32.xlu1 %v16553_v5, %s12918_s20  ;;  %v12464_v49 = vpack.c.bf16 %v8807_v45, %v8697_v57  ;;  %v12442_v47 = vpack.c.bf16 %v17060_v43, %v17047_v27 }
 0xf81   : > { %v9112_v23 = vpop.permute.xlu0 %9111  ;;  %v8890_v2 = vpop.permute.xlu1 %8889  ;;  %12465 = vmatprep.subr.bf16.mxu1 %v12464_v49 }
 0xf82   : > { %v8915_v63 = vsel %vm8909_vm14, %v8888_v9, %v8890_v2  ;;  %v8916_v46 = vsel %vm8909_vm14, %v8890_v2, %v8892_v42  ;;  %12467 = vmatpush1.bf16.msra.mxu1 %v12466_v8 }
 0xf83   : > { %9229 = vrot.lane.b32.xlu0 %v17071_v10, %s12921_s13  ;;  %9007 = vrot.lane.b32.xlu1 %v17075_v58, %s12919_s2 }
 0xf85   : > { %v9222_v5 = vpop.permute.xlu0 %9221  ;;  %v9000_v36 = vpop.permute.xlu1 %8999 }
 0xf86   : > { %v9025_v3 = vsel %vm9019_vm15, %v8998_v41, %v9000_v36  ;;  %v9026_v15 = vsel %vm9019_vm15, %v9000_v36, %v9002_v4 }
 0xf87   : > { %9335 = vrot.lane.b32.xlu0 %v12758_v50, %s12922_s12  ;;  %8901 = vrot.lane.b32.xlu1 %v17071_v10, %s12918_s20  ;;  %v12436_v19 = vpack.c.bf16 %v9025_v3, %v8915_v63  ;;  %v12470_v11 = vpack.c.bf16 %v9026_v15, %v8916_v46 }
 0xf89   : > { %v9328_v9 = vpop.permute.xlu0 %9327  ;;  %v17086_v20 = vpop.permute.xlu1 %8893  ;;  %12437 = vmatprep.subr.bf16.mxu0 %v12436_v19 }
 0xf8a   : > { %v17090_v59 = vsel %vm9349_vm3, %v16812_v30, %v9328_v9  ;;  %v8917_v61 = vsel %vm8909_vm14, %v8892_v42, %v17086_v20  ;;  %12439 = vmatpush1.bf16.msra.mxu0 %v12438_v1 }
 0xf8b   : > { %9445 = vrot.lane.b32.xlu0 %v17075_v58, %s12911_s16  ;;  %9011 = vrot.lane.b32.xlu1 %v17096_v6, %s12919_s2 }
 0xf8d   : > { %v9438_v31 = vpop.permute.xlu0 %9437  ;;  %v17100_v41 = vpop.permute.xlu1 %9003 }
 0xf8e   : > { %v9463_v16 = vsel %vm7409_vm10, %v16822_v44, %v9438_v31  ;;  %v9027_v30 = vsel %vm9019_vm15, %v9002_v4, %v17100_v41 }
 0xf8f   : > { %9339 = vrot.lane.b32.xlu0 %v17071_v10, %s12922_s12  ;;  %9117 = vrot.lane.b32.xlu1 %v17075_v58, %s12920_s3  ;;  %v12468_v33 = vpack.c.bf16 %v9027_v30, %v8917_v61  ;;  %v12446_v15 = vpack.c.bf16 %v9463_v16, %v17090_v59 }
 0xf91   : > { %v9332_v7 = vpop.permute.xlu0 %9331  ;;  %v9110_v42 = vpop.permute.xlu1 %9109  ;;  %12469 = vmatprep.subr.bf16.mxu1 %v12468_v33 }
 0xf92   : > { %v9135_v17 = vsel %vm9129_vm0, %v9108_v48, %v9110_v42  ;;  %v9136_v39 = vsel %vm9129_vm0, %v9110_v42, %v9112_v23  ;;  %12471 = vmatpush1.bf16.msra.mxu1 %v12470_v11 }
 0xf93   : > { %9449 = vrot.lane.b32.xlu0 %v17096_v6, %s12911_s16  ;;  %9227 = vrot.lane.b32.xlu1 %v17075_v58, %s12921_s13 }
 0xf95   : > { %v9442_v44 = vpop.permute.xlu0 %9441  ;;  %v9220_v38 = vpop.permute.xlu1 %9219 }
 0xf96   : > { %v9245_v4 = vsel %vm9239_vm2, %v9218_v0, %v9220_v38  ;;  %v9246_v24 = vsel %vm9239_vm2, %v9220_v38, %v9222_v5 }
 0xf97   : > { %9554 = vrot.lane.b32.xlu0 %v17075_v58, %s12923_s24  ;;  %9121 = vrot.lane.b32.xlu1 %v17096_v6, %s12920_s3  ;;  %v12440_v21 = vpack.c.bf16 %v9245_v4, %v9135_v17  ;;  %v12474_v49 = vpack.c.bf16 %v9246_v24, %v9136_v39 }
 0xf99   : > { %v9547_v22 = vpop.permute.xlu0 %9546  ;;  %v17124_v28 = vpop.permute.xlu1 %9113  ;;  %12441 = vmatprep.subr.bf16.mxu0 %v12440_v21 }
 0xf9a   : > { %v17128_v48 = vsel %vm9568_vm4, %v16850_v35, %v9547_v22  ;;  %v9137_v57 = vsel %vm9129_vm0, %v9112_v23, %v17124_v28  ;;  %12443 = vmatpush1.bf16.msra.mxu0 %v12442_v47 }
 0xf9b   : > { %9664 = vrot.lane.b32.xlu0 %v17075_v58, %s12924_s26  ;;  %9231 = vrot.lane.b32.xlu1 %v17096_v6, %s12921_s13 }
 0xf9d   : > { %v9657_v0 = vpop.permute.xlu0 %9656  ;;  %v17136_v27 = vpop.permute.xlu1 %9223 }
 0xf9e   : > { %v9683_v43 = vsel %vm9678_vm5, %v16860_v60, %v9657_v0  ;;  %v9247_v35 = vsel %vm9239_vm2, %v9222_v5, %v17136_v27 }
 0xf9f   : > { %9558 = vrot.lane.b32.xlu0 %v17096_v6, %s12923_s24  ;;  %9337 = vrot.lane.b32.xlu1 %v17075_v58, %s12922_s12  ;;  %v12472_v45 = vpack.c.bf16 %v9247_v35, %v9137_v57  ;;  %v12450_v4 = vpack.c.bf16 %v9683_v43, %v17128_v48 }
 0xfa1   : > { %v9551_v8 = vpop.permute.xlu0 %9550  ;;  %v9330_v23 = vpop.permute.xlu1 %9329  ;;  %12473 = vmatprep.subr.bf16.mxu1 %v12472_v45 }
 0xfa2   : > { %v9355_v2 = vsel %vm9349_vm3, %v9328_v9, %v9330_v23  ;;  %v9356_v63 = vsel %vm9349_vm3, %v9330_v23, %v9332_v7  ;;  %12475 = vmatpush1.bf16.msra.mxu1 %v12474_v49 }
 0xfa3   : > { %9668 = vrot.lane.b32.xlu0 %v17096_v6, %s12924_s26  ;;  %9447 = vrot.lane.b32.xlu1 %v17071_v10, %s12911_s16 }
 0xfa5   : > { %v9661_v60 = vpop.permute.xlu0 %9660  ;;  %v9440_v46 = vpop.permute.xlu1 %9439 }
 0xfa6   : > { %v9464_v5 = vsel %vm7409_vm10, %v9438_v31, %v9440_v46  ;;  %v9465_v36 = vsel %vm7409_vm10, %v9440_v46, %v9442_v44  ;;  %v17236_v46 = vld [vmem:[#allocation3 + $0x78] sm:$0xff] }
 0xfa7   : > { %9774 = vrot.lane.b32.xlu0 %v17075_v58, %s12925_s28  ;;  %9341 = vrot.lane.b32.xlu1 %v17096_v6, %s12922_s12  ;;  %v12444_v3 = vpack.c.bf16 %v9464_v5, %v9355_v2  ;;  %v17169_v58 = vld [vmem:[#allocation3 + $0x70] sm:$0xff]  ;;  %v12478_v30 = vpack.c.bf16 %v9465_v36, %v9356_v63 }
 0xfa9   : > { %v9767_v50 = vpop.permute.xlu0 %9766  ;;  %v17159_v19 = vpop.permute.xlu1 %9333  ;;  %12445 = vmatprep.subr.bf16.mxu0 %v12444_v3 }
 0xfaa   : > { %v17163_v1 = vsel %vm9788_vm6, %v16890_v18, %v9767_v50  ;;  %v9357_v9 = vsel %vm9349_vm3, %v9332_v7, %v17159_v19  ;;  %12447 = vmatpush1.bf16.msra.mxu0 %v12446_v15 }
 0xfab   : > { %9884 = vrot.lane.b32.xlu0 %v17071_v10, %s12902_s14  ;;  %9451 = vrot.lane.b32.xlu1 %v17169_v58, %s12911_s16 }
 0xfad   : > { %v9877_v59 = vpop.permute.xlu0 %9876  ;;  %v17173_v61 = vpop.permute.xlu1 %9443 }
 0xfae   : > { %v9902_v31 = vsel %vm6529_vm1, %v16900_v13, %v9877_v59  ;;  %v9466_v18 = vsel %vm7409_vm10, %v9442_v44, %v17173_v61 }
 0xfaf   : > { %9778 = vrot.lane.b32.xlu0 %v17096_v6, %s12925_s28  ;;  %9556 = vrot.lane.b32.xlu1 %v17071_v10, %s12923_s24  ;;  %v12476_v16 = vpack.c.bf16 %v9466_v18, %v9357_v9  ;;  %v12454_v5 = vpack.c.bf16 %v9902_v31, %v17163_v1 }
 0xfb1   : > { %v9771_v33 = vpop.permute.xlu0 %9770  ;;  %v9549_v11 = vpop.permute.xlu1 %9548  ;;  %12477 = vmatprep.subr.bf16.mxu1 %v12476_v16  ;;  %v10284_v16 = vld [vmem:[#allocation2 + $0x730] sm:$0xff] }
 0xfb2   : > { %v9574_v7 = vsel %vm9568_vm4, %v9547_v22, %v9549_v11  ;;  %v9575_v42 = vsel %vm9568_vm4, %v9549_v11, %v9551_v8  ;;  %12479 = vmatpush1.bf16.msra.mxu1 %v12478_v30  ;;  %v10283_v11 = vld [vmem:[#allocation2 + $0x728] sm:$0xff] }
 0xfb3   : > { %9888 = vrot.lane.b32.xlu0 %v17169_v58, %s12902_s14  ;;  %9666 = vrot.lane.b32.xlu1 %v17071_v10, %s12924_s26 }
 0xfb5   : > { %v9881_v13 = vpop.permute.xlu0 %9880  ;;  %v9659_v17 = vpop.permute.xlu1 %9658 }
 0xfb6   : > { %v9684_v39 = vsel %vm9678_vm5, %v9657_v0, %v9659_v17  ;;  %v9685_v44 = vsel %vm9678_vm5, %v9659_v17, %v9661_v60 }
 0xfb7   : > { %9993 = vrot.lane.b32.xlu0 %v17071_v10, %s12926_s1  ;;  %9560 = vrot.lane.b32.xlu1 %v17169_v58, %s12923_s24  ;;  %v12448_v38 = vpack.c.bf16 %v9684_v39, %v9574_v7  ;;  %v12482_v35 = vpack.c.bf16 %v9685_v44, %v9575_v42 }
 0xfb9   : > { %v9986_v24 = vpop.permute.xlu0 %9985  ;;  %v17196_v21 = vpop.permute.xlu1 %9552  ;;  %12449 = vmatprep.subr.bf16.mxu0 %v12448_v38 }
 0xfba   : > { %v17200_v47 = vsel %vm10007_vm7, %v16994_v34, %v9986_v24  ;;  %v9576_v22 = vsel %vm9568_vm4, %v9551_v8, %v17196_v21  ;;  %12451 = vmatpush1.bf16.msra.mxu0 %v12450_v4  ;;  %v12761_v4 = vld [vmem:[#allocation2 + $0x48] sm:$0xff] }
 0xfbb   : > { %8573 = vrot.lane.b32.xlu0 %v17096_v6, %s12916_s19  ;;  %9670 = vrot.lane.b32.xlu1 %v17169_v58, %s12924_s26 }
 0xfbd   : > { %v8566_v57 = vpop.permute.xlu0 %8565  ;;  %v17208_v48 = vpop.permute.xlu1 %9662 }
 0xfbe   : > { %v17212_v0 = vsel %vm8579_vm12, %v17008_v53, %v8566_v57  ;;  %v9686_v34 = vsel %vm9678_vm5, %v9661_v60, %v17208_v48 }
 0xfbf   : > { %9997 = vrot.lane.b32.xlu0 %v17169_v58, %s12926_s1  ;;  %9776 = vrot.lane.b32.xlu1 %v17071_v10, %s12925_s28  ;;  %v12480_v43 = vpack.c.bf16 %v9686_v34, %v9576_v22  ;;  %v12762_v22 = vld [vmem:[#allocation2 + $0x40] sm:$0xff] }
 0xfc0   : > { %v10286_v34 = vld [vmem:[#allocation2 + $0x740] sm:$0xff] }
 0xfc1   : > { %v17220_v45 = vpop.permute.xlu0 %9989  ;;  %v9769_v49 = vpop.permute.xlu1 %9768  ;;  %12481 = vmatprep.subr.bf16.mxu1 %v12480_v43 }
 0xfc2   : > { %v9794_v8 = vsel %vm9788_vm6, %v9767_v50, %v9769_v49  ;;  %v9795_v53 = vsel %vm9788_vm6, %v9769_v49, %v9771_v33  ;;  %12483 = vmatpush1.bf16.msra.mxu1 %v12482_v35 }
 0xfc3   : > { %8683 = vrot.lane.b32.xlu0 %v17096_v6, %s12915_s17  ;;  %9886 = vrot.lane.b32.xlu1 %v17096_v6, %s12902_s14 }
 0xfc5   : > { %v17228_v23 = vpop.permute.xlu0 %8569  ;;  %v9879_v10 = vpop.permute.xlu1 %9878 }
 0xfc6   : > { %v9903_v2 = vsel %vm6529_vm1, %v9877_v59, %v9879_v10  ;;  %v9904_v63 = vsel %vm6529_vm1, %v9879_v10, %v9881_v13 }
 0xfc7   : > { %8793 = vrot.lane.b32.xlu0 %v17096_v6, %s12917_s25  ;;  %9780 = vrot.lane.b32.xlu1 %v17169_v58, %s12925_s28  ;;  %v12452_v60 = vpack.c.bf16 %v9903_v2, %v9794_v8  ;;  %v12486_v18 = vpack.c.bf16 %v9904_v63, %v9795_v53  ;;  %v12763_v63 = vld [vmem:[#allocation2 + $0x58] sm:$0xff] }
 0xfc9   : > { %v17239_v36 = vpop.permute.xlu0 %8675  ;;  %v17241_v3 = vpop.permute.xlu1 %9772  ;;  %12453 = vmatprep.subr.bf16.mxu0 %v12452_v60 }
 0xfca   : > { %v17246_v15 = vsel %vm8689_vm9, %v17043_v62, %v17239_v36  ;;  %v9796_v50 = vsel %vm9788_vm6, %v9771_v33, %v17241_v3  ;;  %12455 = vmatpush1.bf16.msra.mxu0 %v12454_v5  ;;  %v17320_v5 = vld [vmem:[#allocation3 + $0x80] sm:$0xff] }
 0xfcb   : > { %8577 = vrot.lane.b32.xlu0 %v17236_v46, %s12916_s19  ;;  %9890 = vrot.lane.b32.xlu1 %v17236_v46, %s12902_s14 }
 0xfcd   : > { %v17254_v1 = vpop.permute.xlu0 %8785  ;;  %v17256_v9 = vpop.permute.xlu1 %9882 }
 0xfce   : > { %v17261_v59 = vsel %vm8799_vm13, %v17056_v55, %v17254_v1  ;;  %v9905_v62 = vsel %vm6529_vm1, %v9881_v13, %v17256_v9  ;;  %v12458_v13 = vpack.c.bf16 %v10283_v11, %v17200_v47  ;;  %v12494_v47 = vpack.c.bf16 %v17212_v0, %v12762_v22 }
 0xfcf   : > { %8905 = vrot.lane.b32.xlu0 %v17169_v58, %s12918_s20  ;;  %9995 = vrot.lane.b32.xlu1 %v17096_v6, %s12926_s1  ;;  %v12484_v31 = vpack.c.bf16 %v9905_v62, %v9796_v50  ;;  %v12764_v50 = vld [vmem:[#allocation2 + $0x50] sm:$0xff] }
 0xfd1   : > { %v17269_v30 = vpop.permute.xlu0 %8679  ;;  %v9988_v33 = vpop.permute.xlu1 %9987  ;;  %12485 = vmatprep.subr.bf16.mxu1 %v12484_v31 }
 0xfd2   : > { %v10013_v55 = vsel %vm10007_vm7, %v9986_v24, %v9988_v33  ;;  %v10014_v7 = vsel %vm10007_vm7, %v9988_v33, %v17220_v45  ;;  %12487 = vmatpush1.bf16.msra.mxu1 %v12486_v18 }
 0xfd3   : > { %8575 = vrot.lane.b32.xlu1 %v17169_v58, %s12916_s19  ;;  %9015 = vrot.lane.b32.xlu0 %v17236_v46, %s12919_s2  ;;  %v12456_v42 = vpack.c.bf16 %v10284_v16, %v10013_v55 }
 0xfd5   : > { %v17279_v17 = vpop.permute.xlu0 %8789  ;;  %v8568_v39 = vpop.permute.xlu1 %8567  ;;  %12457 = vmatprep.subr.bf16.mxu0 %v12456_v42 }
 0xfd6   : > { %v8589_v44 = vsel %vm8579_vm12, %v8566_v57, %v8568_v39  ;;  %v8590_v38 = vsel %vm8579_vm12, %v8568_v39, %v17228_v23  ;;  %12459 = vmatpush1.bf16.msra.mxu0 %v12458_v13  ;;  %v10285_v57 = vld [vmem:[#allocation2 + $0x738] sm:$0xff] }
 0xfd7   : > { %9999 = vrot.lane.b32.xlu1 %v17236_v46, %s12926_s1  ;;  %8797 = vrot.lane.b32.xlu0 %v17236_v46, %s12917_s25  ;;  %v12492_v24 = vpack.c.bf16 %v8589_v44, %v12761_v4  ;;  %v12490_v53 = vpack.c.bf16 %v10285_v57, %v10014_v7  ;;  %v12526_v62 = vpack.c.bf16 %v8590_v38, %v12764_v50 }
 0xfd9   : > { %v17289_v43 = vpop.permute.xlu0 %8895  ;;  %v17291_v35 = vpop.permute.xlu1 %9991  ;;  %12493 = vmatprep.subr.bf16.mxu0 %v12492_v24  ;;  %10501 = vmatmul.mubr.f32.vlgmr.msra.gmra.mrb[10].mxu0 %v16981_v25 }
 0xfda   : > { %v17297_v49 = vsel %vm8909_vm14, %v17086_v20, %v17289_v43  ;;  %v10015_v8 = vsel %vm10007_vm7, %v17220_v45, %v17291_v35  ;;  %12495 = vmatpush1.bf16.msra.mxu0 %v12494_v47  ;;  %10642 = vmatprep.mubr.f32.mxu0 %v12910_v14 }
 0xfdb   : > { %8685 = vrot.lane.b32.xlu1 %v17169_v58, %s12915_s17  ;;  %9125 = vrot.lane.b32.xlu0 %v17236_v46, %s12920_s3  ;;  %v12488_v0 = vpack.c.bf16 %v10286_v34, %v10015_v8 }
 0xfdd   : > { %v9006_v10 = vpop.permute.xlu0 %9005  ;;  %v17307_v2 = vpop.permute.xlu1 %8571  ;;  %12489 = vmatprep.subr.bf16.mxu1 %v12488_v0 }
 0xfde   : > { %v17311_v20 = vsel %vm9019_vm15, %v17100_v41, %v9006_v10  ;;  %v8591_v45 = vsel %vm8579_vm12, %v17228_v23, %v17307_v2  ;;  %12491 = vmatpush1.bf16.msra.mxu1 %v12490_v53 }
 0xfdf   : > { %8795 = vrot.lane.b32.xlu1 %v17169_v58, %s12917_s25  ;;  %9235 = vrot.lane.b32.xlu0 %v17236_v46, %s12921_s13  ;;  %v12524_v60 = vpack.c.bf16 %v8591_v45, %v12763_v63  ;;  %v12502_v57 = vpack.c.bf16 %v17311_v20, %v17297_v49 }
 0xfe1   : > { %v8900_v31 = vpop.permute.xlu0 %8899  ;;  %v8678_v41 = vpop.permute.xlu1 %8677  ;;  %12525 = vmatprep.subr.bf16.mxu1 %v12524_v60  ;;  %10572 = vmatmul.mubr.f32.vlgmr.msra.gmra.mrb[10].mxu1 %v16981_v25 }
 0xfe2   : > { %v8699_v23 = vsel %vm8689_vm9, %v17239_v36, %v8678_v41  ;;  %v8700_v18 = vsel %vm8689_vm9, %v8678_v41, %v17269_v30  ;;  %12527 = vmatpush1.bf16.msra.mxu1 %v12526_v62  ;;  %10713 = vmatprep.mubr.f32.mxu1 %v12910_v14 }
 0xfe3   : > { %8903 = vrot.lane.b32.xlu1 %v17096_v6, %s12918_s20  ;;  %9017 = vrot.lane.b32.xlu0 %v17320_v5, %s12919_s2  ;;  %v12498_v6 = vpack.c.bf16 %v17261_v59, %v17246_v15 }
 0xfe5   : > { %v9010_v16 = vpop.permute.xlu0 %9009  ;;  %v8788_v33 = vpop.permute.xlu1 %8787 }
 0xfe6   : > { %v8809_v25 = vsel %vm8799_vm13, %v17254_v1, %v8788_v33  ;;  %v8810_v36 = vsel %vm8799_vm13, %v8788_v33, %v17279_v17 }
 0xfe7   : > { %9013 = vrot.lane.b32.xlu1 %v17169_v58, %s12919_s2  ;;  %9345 = vrot.lane.b32.xlu0 %v17236_v46, %s12922_s12  ;;  %v12496_v11 = vpack.c.bf16 %v8809_v25, %v8699_v23  ;;  %v12530_v39 = vpack.c.bf16 %v8810_v36, %v8700_v18 }
 0xfe9   : > { %v9116_v55 = vpop.permute.xlu0 %9115  ;;  %v17342_v7 = vpop.permute.xlu1 %8681  ;;  %12497 = vmatprep.subr.bf16.mxu0 %v12496_v11 }
 0xfea   : > { %v17346_v1 = vsel %vm9129_vm0, %v17124_v28, %v9116_v55  ;;  %v8701_v42 = vsel %vm8689_vm9, %v17269_v30, %v17342_v7  ;;  %12499 = vmatpush1.bf16.msra.mxu0 %v12498_v6 }
 0xfeb   : > { %8687 = vrot.lane.b32.xlu1 %v17236_v46, %s12915_s17  ;;  %9455 = vrot.lane.b32.xlu0 %v17320_v5, %s12911_s16 }
 0xfed   : > { %v9226_v15 = vpop.permute.xlu0 %9225  ;;  %v17355_v59 = vpop.permute.xlu1 %8791 }
 0xfee   : > { %v9248_v13 = vsel %vm9239_vm2, %v17136_v27, %v9226_v15  ;;  %v8811_v28 = vsel %vm8799_vm13, %v17279_v17, %v17355_v59 }
 0xfef   : > { %9123 = vrot.lane.b32.xlu1 %v17169_v58, %s12920_s3  ;;  %9237 = vrot.lane.b32.xlu0 %v17320_v5, %s12921_s13  ;;  %v12528_v30 = vpack.c.bf16 %v8811_v28, %v8701_v42  ;;  %v12506_v33 = vpack.c.bf16 %v9248_v13, %v17346_v1 }
 0xff1   : > { %v9120_v44 = vpop.permute.xlu0 %9119  ;;  %v8898_v38 = vpop.permute.xlu1 %8897  ;;  %12529 = vmatprep.subr.bf16.mxu1 %v12528_v30 }
 0xff2   : > { %v8919_v4 = vsel %vm8909_vm14, %v17289_v43, %v8898_v38  ;;  %v8920_v27 = vsel %vm8909_vm14, %v8898_v38, %v8900_v31  ;;  %12531 = vmatpush1.bf16.msra.mxu1 %v12530_v39  ;;  %v17379_v43 = vld [vmem:[#allocation3 + $0x88] sm:$0xff] }
 0xff3   : > { %9233 = vrot.lane.b32.xlu1 %v17169_v58, %s12921_s13  ;;  %9564 = vrot.lane.b32.xlu0 %v17320_v5, %s12923_s24 }
 0xff5   : > { %v9230_v17 = vpop.permute.xlu0 %9229  ;;  %v9008_v24 = vpop.permute.xlu1 %9007 }
 0xff6   : > { %v9029_v22 = vsel %vm9019_vm15, %v9006_v10, %v9008_v24  ;;  %v9030_v47 = vsel %vm9019_vm15, %v9008_v24, %v9010_v16 }
 0xff7   : > { %8907 = vrot.lane.b32.xlu1 %v17236_v46, %s12918_s20  ;;  %9674 = vrot.lane.b32.xlu0 %v17320_v5, %s12924_s26  ;;  %v12500_v34 = vpack.c.bf16 %v9029_v22, %v8919_v4 }
 0xff9   : > { %v9336_v8 = vpop.permute.xlu0 %9335  ;;  %v17383_v0 = vpop.permute.xlu1 %8901  ;;  %12501 = vmatprep.subr.bf16.mxu0 %v12500_v34 }
 0xffa   : > { %v17387_v53 = vsel %vm9349_vm3, %v17159_v19, %v9336_v8  ;;  %v8921_v10 = vsel %vm8909_vm14, %v8900_v31, %v17383_v0  ;;  %12503 = vmatpush1.bf16.msra.mxu0 %v12502_v57 }
 0xffb   : > { %9343 = vrot.lane.b32.xlu1 %v17169_v58, %s12922_s12  ;;  %9457 = vrot.lane.b32.xlu0 %v17379_v43, %s12911_s16  ;;  %v12534_v58 = vpack.c.bf16 %v9030_v47, %v8920_v27 }
 0xffd   : > { %v9446_v45 = vpop.permute.xlu0 %9445  ;;  %v17395_v49 = vpop.permute.xlu1 %9011 }
 0xffe   : > { %v9467_v20 = vsel %vm7409_vm10, %v17173_v61, %v9446_v45  ;;  %v9031_v19 = vsel %vm9019_vm15, %v9010_v16, %v17395_v49 }
 0xfff   : > { %9453 = vrot.lane.b32.xlu1 %v17236_v46, %s12911_s16  ;;  %9784 = vrot.lane.b32.xlu0 %v17320_v5, %s12925_s28  ;;  %v12532_v63 = vpack.c.bf16 %v9031_v19, %v8921_v10  ;;  %v12510_v22 = vpack.c.bf16 %v9467_v20, %v17387_v53 }
0x1001   : > { %v9340_v60 = vpop.permute.xlu0 %9339  ;;  %v9118_v50 = vpop.permute.xlu1 %9117  ;;  %12533 = vmatprep.subr.bf16.mxu1 %v12532_v63 }
0x1002   : > { %v9139_v62 = vsel %vm9129_vm0, %v9116_v55, %v9118_v50  ;;  %v9140_v31 = vsel %vm9129_vm0, %v9118_v50, %v9120_v44  ;;  %12535 = vmatpush1.bf16.msra.mxu1 %v12534_v58  ;;  %v9849_v55 = vld [vmem:[#allocation3 + $0x90] sm:$0xff] }
0x1003   : > { %9127 = vrot.lane.b32.xlu1 %v17320_v5, %s12920_s3  ;;  %9894 = vrot.lane.b32.xlu0 %v17379_v43, %s12902_s14 }
0x1005   : > { %v9450_v61 = vpop.permute.xlu0 %9449  ;;  %v9228_v41 = vpop.permute.xlu1 %9227 }
0x1006   : > { %v9249_v23 = vsel %vm9239_vm2, %v9226_v15, %v9228_v41  ;;  %v9250_v18 = vsel %vm9239_vm2, %v9228_v41, %v9230_v17 }
0x1007   : > { %9562 = vrot.lane.b32.xlu1 %v17236_v46, %s12923_s24  ;;  %9676 = vrot.lane.b32.xlu0 %v17379_v43, %s12924_s26  ;;  %v12504_v16 = vpack.c.bf16 %v9249_v23, %v9139_v62  ;;  %v12538_v28 = vpack.c.bf16 %v9250_v18, %v9140_v31 }
0x1009   : > { %v9555_v25 = vpop.permute.xlu0 %9554  ;;  %v17418_v36 = vpop.permute.xlu1 %9121  ;;  %12505 = vmatprep.subr.bf16.mxu0 %v12504_v16 }
0x100a   : > { %v9577_v11 = vsel %vm9568_vm4, %v17196_v21, %v9555_v25  ;;  %v9141_v6 = vsel %vm9129_vm0, %v9120_v44, %v17418_v36  ;;  %12507 = vmatpush1.bf16.msra.mxu0 %v12506_v33 }
0x100b   : > { %9672 = vrot.lane.b32.xlu1 %v17236_v46, %s12924_s26  ;;  %10003 = vrot.lane.b32.xlu0 %v17379_v43, %s12926_s1 }
0x100d   : > { %v9665_v42 = vpop.permute.xlu0 %9664  ;;  %v17428_v1 = vpop.permute.xlu1 %9231 }
0x100e   : > { %v9687_v15 = vsel %vm9678_vm5, %v17208_v48, %v9665_v42  ;;  %v9251_v21 = vsel %vm9239_vm2, %v9230_v17, %v17428_v1 }
0x100f   : > { %9347 = vrot.lane.b32.xlu1 %v17320_v5, %s12922_s12  ;;  %9896 = vrot.lane.b32.xlu0 %v9849_v55, %s12902_s14  ;;  %v12536_v13 = vpack.c.bf16 %v9251_v21, %v9141_v6 }
0x1011   : > { %v9559_v30 = vpop.permute.xlu0 %9558  ;;  %v9338_v39 = vpop.permute.xlu1 %9337  ;;  %12537 = vmatprep.subr.bf16.mxu1 %v12536_v13 }
0x1012   : > { %v9359_v44 = vsel %vm9349_vm3, %v9336_v8, %v9338_v39  ;;  %v9360_v38 = vsel %vm9349_vm3, %v9338_v39, %v9340_v60  ;;  %12539 = vmatpush1.bf16.msra.mxu1 %v12538_v28 }
0x1013   : > { %9782 = vrot.lane.b32.xlu1 %v17236_v46, %s12925_s28 }
0x1015   : > { %v9669_v48 = vpop.permute.xlu0 %9668  ;;  %v9448_v4 = vpop.permute.xlu1 %9447 }
0x1016   : > { %v9468_v27 = vsel %vm7409_vm10, %v9446_v45, %v9448_v4  ;;  %v9469_v17 = vsel %vm7409_vm10, %v9448_v4, %v9450_v61 }
0x1017   : > { %9892 = vrot.lane.b32.xlu1 %v17320_v5, %s12902_s14  ;;  %v12508_v24 = vpack.c.bf16 %v9468_v27, %v9359_v44  ;;  %v12542_v20 = vpack.c.bf16 %v9469_v17, %v9360_v38 }
0x1019   : > { %v9775_v47 = vpop.permute.xlu0 %9774  ;;  %v17446_v34 = vpop.permute.xlu1 %9341  ;;  %12509 = vmatprep.subr.bf16.mxu0 %v12508_v24 }
0x101a   : > { %v9797_v57 = vsel %vm9788_vm6, %v17241_v3, %v9775_v47  ;;  %v9361_v46 = vsel %vm9349_vm3, %v9340_v60, %v17446_v34  ;;  %12511 = vmatpush1.bf16.msra.mxu0 %v12510_v22 }
0x101b   : > { %9566 = vrot.lane.b32.xlu1 %v17379_v43, %s12923_s24 }
0x101d   : > { %v9885_v8 = vpop.permute.xlu0 %9884  ;;  %v17454_v10 = vpop.permute.xlu1 %9451 }
0x101e   : > { %v9906_v53 = vsel %vm6529_vm1, %v17256_v9, %v9885_v8  ;;  %v9470_v45 = vsel %vm7409_vm10, %v9450_v61, %v17454_v10  ;;  %v12514_v61 = vpack.c.bf16 %v9687_v15, %v9577_v11 }
0x101f   : > { %10001 = vrot.lane.b32.xlu1 %v17320_v5, %s12926_s1  ;;  %v12540_v3 = vpack.c.bf16 %v9470_v45, %v9361_v46 }
0x1021   : > { %v9779_v19 = vpop.permute.xlu0 %9778  ;;  %v9557_v63 = vpop.permute.xlu1 %9556  ;;  %12541 = vmatprep.subr.bf16.mxu1 %v12540_v3 }
0x1022   : > { %v9578_v58 = vsel %vm9568_vm4, %v9555_v25, %v9557_v63  ;;  %v9579_v60 = vsel %vm9568_vm4, %v9557_v63, %v9559_v30  ;;  %12543 = vmatpush1.bf16.msra.mxu1 %v12542_v20 }
0x1023   : > { %9786 = vrot.lane.b32.xlu1 %v17379_v43, %s12925_s28 }
0x1025   : > { %v9889_v9 = vpop.permute.xlu0 %9888  ;;  %v9667_v50 = vpop.permute.xlu1 %9666 }
0x1026   : > { %v9688_v62 = vsel %vm9678_vm5, %v9665_v42, %v9667_v50  ;;  %v9689_v31 = vsel %vm9678_vm5, %v9667_v50, %v9669_v48 }
0x1027   : > { %10005 = vrot.lane.b32.xlu1 %v9849_v55, %s12926_s1  ;;  %v12512_v5 = vpack.c.bf16 %v9688_v62, %v9578_v58  ;;  %v12546_v55 = vpack.c.bf16 %v9689_v31, %v9579_v60  ;;  %v10288_v60 = vld [vmem:[#allocation2 + $0x750] sm:$0xff]  ;;  %v10287_v31 = vld [vmem:[#allocation2 + $0x748] sm:$0xff] }
0x1029   : > { %v9994_v41 = vpop.permute.xlu0 %9993  ;;  %v17469_v23 = vpop.permute.xlu1 %9560  ;;  %12513 = vmatprep.subr.bf16.mxu0 %v12512_v5 }
0x102a   : > { %v17473_v18 = vsel %vm10007_vm7, %v17291_v35, %v9994_v41  ;;  %v9580_v43 = vsel %vm9568_vm4, %v9559_v30, %v17469_v23  ;;  %12515 = vmatpush1.bf16.msra.mxu0 %v12514_v61 }
0x102d   : > { %v8574_v16 = vpop.permute.xlu0 %8573  ;;  %v17477_v33 = vpop.permute.xlu1 %9670 }
0x102e   : > { %v17481_v25 = vsel %vm8579_vm12, %v17307_v2, %v8574_v16  ;;  %v9690_v11 = vsel %vm9678_vm5, %v9669_v48, %v17477_v33  ;;  %v17494_v2 = vld [vmem:[%s17950_s10] sm:$0xff]  ;;  %v12518_v48 = vpack.c.bf16 %v9906_v53, %v9797_v57 }
0x102f   : > { %v12544_v6 = vpack.c.bf16 %v9690_v11, %v9580_v43  ;;  %v17505_v4 = vrot.slane %v17494_v2, %v16316_v29  ;;  %v17513_v24 = vrot.slane %v17494_v2, %v16328_v40  ;;  %v17540_v61 = vrot.slane %v17494_v2, %v16342_v32 }
0x1031   : > { %v17485_v42 = vpop.permute.xlu0 %9997  ;;  %v9777_v35 = vpop.permute.xlu1 %9776  ;;  %12545 = vmatprep.subr.bf16.mxu1 %v12544_v6  ;;  %v12522_v6 = vpack.c.bf16 %v10287_v31, %v17473_v18  ;;  %v12765_v18 = vld [vmem:[#allocation2 + $0x68] sm:$0xff] }
0x1032   : > { %v9798_v15 = vsel %vm9788_vm6, %v9775_v47, %v9777_v35  ;;  %v9799_v21 = vsel %vm9788_vm6, %v9777_v35, %v9779_v19  ;;  %12547 = vmatpush1.bf16.msra.mxu1 %v12546_v55  ;;  %v17550_v35 = vrot.slane %v17494_v2, %v16355_v52 }
0x1035   : > { %v17489_v13 = vpop.permute.xlu0 %8683  ;;  %v9887_v28 = vpop.permute.xlu1 %9886 }
0x1036   : > { %v17499_v30 = vsel %vm8689_vm9, %v17342_v7, %v17489_v13  ;;  %v9907_v39 = vsel %vm6529_vm1, %v9885_v8, %v9887_v28  ;;  %v9908_v44 = vsel %vm6529_vm1, %v9887_v28, %v9889_v9 }
0x1037   : > { %v12516_v38 = vpack.c.bf16 %v9907_v39, %v9798_v15  ;;  %v12550_v58 = vpack.c.bf16 %v9908_v44, %v9799_v21 }
0x1039   : > { %v17507_v27 = vpop.permute.xlu0 %8793  ;;  %v17509_v17 = vpop.permute.xlu1 %9780  ;;  %12517 = vmatprep.subr.bf16.mxu0 %v12516_v38 }
0x103a   : > { %v17518_v7 = vsel %vm8799_vm13, %v17355_v59, %v17507_v27  ;;  %v9800_v22 = vsel %vm9788_vm6, %v9779_v19, %v17509_v17  ;;  %12519 = vmatpush1.bf16.msra.mxu0 %v12518_v48 }
0x103b   : > { %v17522_v47 = vpop.f32.mrb[8].mxu0 }
0x103c   : > { %v10942_v57 = vmul.f32 %v17505_v4, %v17522_v47  ;;  %v17526_v46 = vpop.f32.mrb[9].mxu0 }
0x103d   : > { %v8578_v8 = vpop.permute.xlu0 %8577  ;;  %v17528_v53 = vpop.permute.xlu1 %9890  ;;  %v10943_v45 = vmul.f32 %v17513_v24, %v17526_v46 }
0x103e   : > { %v9909_v59 = vsel %vm6529_vm1, %v9889_v9, %v17528_v53  ;;  %v10974_v3 = vmul.f32 %v10942_v57, %v17522_v47 }
0x103f   : > { %v12548_v20 = vpack.c.bf16 %v9909_v59, %v9800_v22  ;;  %v10957_v19 = vadd.f32 %v10943_v45, %v10942_v57  ;;  %v10975_v63 = vmul.f32 %v10943_v45, %v17526_v46  ;;  %v12766_v57 = vld [vmem:[#allocation2 + $0x60] sm:$0xff] }
0x1040   : > { %v12558_v45 = vpack.c.bf16 %v17481_v25, %v12766_v57  ;;  %v10290_v59 = vld [vmem:[#allocation2 + $0x760] sm:$0xff] }
0x1041   : > { %v17536_v50 = vpop.permute.xlu0 %8905  ;;  %v9996_v62 = vpop.permute.xlu1 %9995  ;;  %12549 = vmatprep.subr.bf16.mxu1 %v12548_v20  ;;  %v10989_v5 = vadd.f32 %v10975_v63, %v10974_v3  ;;  %v17565_v63 = vld [vmem:[%s13090_s15] sm:$0xff] }
0x1042   : > { %v10017_v9 = vsel %vm10007_vm7, %v9994_v41, %v9996_v62  ;;  %v10018_v43 = vsel %vm10007_vm7, %v9996_v62, %v17485_v42  ;;  %12551 = vmatpush1.bf16.msra.mxu1 %v12550_v58 }
0x1043   : > { %v12520_v11 = vpack.c.bf16 %v10288_v60, %v10017_v9 }
0x1044   : > { %v17546_v55 = vpop.f32.mrb[8].mxu1 }
0x1045   : > { %v8576_v15 = vpop.permute.xlu1 %8575  ;;  %v9016_v21 = vpop.permute.xlu0 %9015  ;;  %12521 = vmatprep.subr.bf16.mxu0 %v12520_v11  ;;  %v10944_v41 = vmul.f32 %v17540_v61, %v17546_v55 }
0x1046   : > { %v8593_v28 = vsel %vm8579_vm12, %v8574_v16, %v8576_v15  ;;  %v8594_v39 = vsel %vm8579_vm12, %v8576_v15, %v8578_v8  ;;  %12523 = vmatpush1.bf16.msra.mxu0 %v12522_v6  ;;  %v17556_v44 = vpop.f32.mrb[9].mxu1  ;;  %v10289_v8 = vld [vmem:[#allocation2 + $0x758] sm:$0xff] }
0x1047   : > { %v12556_v38 = vpack.c.bf16 %v8593_v28, %v12765_v18  ;;  %v10958_v48 = vadd.f32 %v10957_v19, %v10944_v41  ;;  %v10976_v22 = vmul.f32 %v10944_v41, %v17546_v55  ;;  %v10945_v3 = vmul.f32 %v17550_v35, %v17556_v44 }
0x1048   : > { %v12554_v31 = vpack.c.bf16 %v10289_v8, %v10018_v43 }
0x1049   : > { %v17562_v20 = vpop.permute.xlu1 %9999  ;;  %v8798_v16 = vpop.permute.xlu0 %8797  ;;  %10643 = vmatmul.mubr.f32.vlgmr.msra.gmra.mrb[12].mxu0 %v17565_v63  ;;  %12557 = vmatprep.subr.bf16.mxu0 %v12556_v38  ;;  %v10990_v58 = vadd.f32 %v10989_v5, %v10976_v22  ;;  %v17572_v25 = vadd.f32 %v10958_v48, %v10945_v3  ;;  %v10977_v60 = vmul.f32 %v10945_v3, %v17556_v44 }
0x104a   : > { %v10019_v19 = vsel %vm10007_vm7, %v17485_v42, %v17562_v20  ;;  %12559 = vmatpush1.bf16.msra.mxu0 %v12558_v45  ;;  %10784 = vmatprep.mubr.f32.mxu0 %v12910_v14  ;;  %v12768_v42 = vld [vmem:[#allocation2 + $0x70] sm:$0xff] }
0x104b   : > { %v12552_v62 = vpack.c.bf16 %v10290_v59, %v10019_v19  ;;  %v17575_v9 = vadd.f32 %v10990_v58, %v10977_v60  ;;  %v12589_v15 = vpack.c.bf16 %v8594_v39, %v12768_v42 }
0x104d   : > { %v8686_v11 = vpop.permute.xlu1 %8685  ;;  %v17577_v6 = vpop.permute.xlu0 %9125  ;;  %12553 = vmatprep.subr.bf16.mxu1 %v12552_v62 }
0x104e   : > { %v8703_v5 = vsel %vm8689_vm9, %v17489_v13, %v8686_v11  ;;  %12555 = vmatpush1.bf16.msra.mxu1 %v12554_v31  ;;  %v12562_v13 = vpack.c.bf16 %v17518_v7, %v17499_v30 }
0x104f   : > { %12588 = vmatprep.subr.bf16.mxu1 %v12912_v26 }
0x1051   : > { %v8796_v41 = vpop.permute.xlu1 %8795  ;;  %v9236_v28 = vpop.permute.xlu0 %9235  ;;  %10714 = vmatmul.mubr.f32.vlgmr.msra.gmra.mrb[12].mxu1 %v17565_v63 }
0x1052   : > { %v8813_v43 = vsel %vm8799_vm13, %v17507_v27, %v8796_v41  ;;  %v8814_v18 = vsel %vm8799_vm13, %v8796_v41, %v8798_v16  ;;  %12590 = vmatpush3.bf16.msra.mxu1 %v12589_v15  ;;  %11617 = vmatprep.mubr.msk.f32.mxu1 %vm12913_vm11, %v12910_v14 }
0x1053   : > { %v12560_v38 = vpack.c.bf16 %v8813_v43, %v8703_v5  ;;  %12591 = vmatprep.subr.bf16.mxu1 %v12912_v26 }
0x1055   : > { %v8904_v39 = vpop.permute.xlu1 %8903  ;;  %v9018_v48 = vpop.permute.xlu0 %9017  ;;  %12561 = vmatprep.subr.bf16.mxu0 %v12560_v38 }
0x1056   : > { %v8922_v22 = vsel %vm8909_vm14, %v17383_v0, %v8904_v39  ;;  %v8923_v27 = vsel %vm8909_vm14, %v8904_v39, %v17536_v50  ;;  %v9034_v57 = vsel %vm9019_vm15, %v9016_v21, %v9018_v48  ;;  %12563 = vmatpush1.bf16.msra.mxu0 %v12562_v13 }
0x1059   : > { %v9014_v45 = vpop.permute.xlu1 %9013  ;;  %v17596_v14 = vpop.permute.xlu0 %9345 }
0x105a   : > { %v9032_v59 = vsel %vm9019_vm15, %v17395_v49, %v9014_v45  ;;  %v9033_v30 = vsel %vm9019_vm15, %v9014_v45, %v9016_v21 }
0x105b   : > { %v12564_v7 = vpack.c.bf16 %v9033_v30, %v8923_v27  ;;  %v12566_v3 = vpack.c.bf16 %v9032_v59, %v8922_v22 }
0x105d   : > { %v8688_v16 = vpop.permute.xlu1 %8687  ;;  %v9456_v8 = vpop.permute.xlu0 %9455  ;;  %12565 = vmatprep.subr.bf16.mxu0 %v12564_v7 }
0x105e   : > { %v8704_v0 = vsel %vm8689_vm9, %v8686_v11, %v8688_v16  ;;  %12567 = vmatpush1.bf16.msra.mxu0 %v12566_v3 }
0x105f   : > { %v12592_v58 = vpack.c.bf16 %v8814_v18, %v8704_v0 }
0x1061   : > { %v9124_v19 = vpop.permute.xlu1 %9123  ;;  %v9238_v60 = vpop.permute.xlu0 %9237  ;;  %12593 = vmatpush3.bf16.msra.mxu1 %v12592_v58 }
0x1062   : > { %v9142_v62 = vsel %vm9129_vm0, %v17418_v36, %v9124_v19  ;;  %v9143_v49 = vsel %vm9129_vm0, %v9124_v19, %v17577_v6  ;;  %v9254_v21 = vsel %vm9239_vm2, %v9236_v28, %v9238_v60  ;;  %12594 = vmatprep.subr.bf16.mxu1 %v12912_v26 }
0x1065   : > { %v9234_v31 = vpop.permute.xlu1 %9233  ;;  %v17608_v5 = vpop.permute.xlu0 %9564 }
0x1066   : > { %v9252_v11 = vsel %vm9239_vm2, %v17428_v1, %v9234_v31  ;;  %v9253_v42 = vsel %vm9239_vm2, %v9234_v31, %v9236_v28 }
0x1067   : > { %v12568_v15 = vpack.c.bf16 %v9253_v42, %v9143_v49  ;;  %v12570_v41 = vpack.c.bf16 %v9252_v11, %v9142_v62 }
0x1069   : > { %v8908_v43 = vpop.permute.xlu1 %8907  ;;  %v9675_v18 = vpop.permute.xlu0 %9674  ;;  %12569 = vmatprep.subr.bf16.mxu0 %v12568_v15 }
0x106a   : > { %v8924_v36 = vsel %vm8909_vm14, %v17536_v50, %v8908_v43  ;;  %12571 = vmatpush1.bf16.msra.mxu0 %v12570_v41 }
0x106b   : > { %v12595_v38 = vpack.c.bf16 %v9034_v57, %v8924_v36 }
0x106d   : > { %v9344_v13 = vpop.permute.xlu1 %9343  ;;  %v9458_v39 = vpop.permute.xlu0 %9457  ;;  %12596 = vmatpush3.bf16.msra.mxu1 %v12595_v38 }
0x106e   : > { %v9362_v48 = vsel %vm9349_vm3, %v17446_v34, %v9344_v13  ;;  %v9363_v1 = vsel %vm9349_vm3, %v9344_v13, %v17596_v14  ;;  %v9473_v28 = vsel %vm7409_vm10, %v9456_v8, %v9458_v39  ;;  %12597 = vmatprep.subr.bf16.mxu1 %v12912_v26 }
0x1071   : > { %v9454_v22 = vpop.permute.xlu1 %9453  ;;  %v9785_v27 = vpop.permute.xlu0 %9784 }
0x1072   : > { %v9471_v50 = vsel %vm7409_vm10, %v17454_v10, %v9454_v22  ;;  %v9472_v57 = vsel %vm7409_vm10, %v9454_v22, %v9456_v8 }
0x1073   : > { %v12572_v45 = vpack.c.bf16 %v9472_v57, %v9363_v1  ;;  %v12574_v59 = vpack.c.bf16 %v9471_v50, %v9362_v48 }
0x1075   : > { %v9128_v30 = vpop.permute.xlu1 %9127  ;;  %v9895_v7 = vpop.permute.xlu0 %9894  ;;  %12573 = vmatprep.subr.bf16.mxu0 %v12572_v45 }
0x1076   : > { %v9144_v34 = vsel %vm9129_vm0, %v17577_v6, %v9128_v30  ;;  %12575 = vmatpush1.bf16.msra.mxu0 %v12574_v59 }
0x1077   : > { %v12598_v3 = vpack.c.bf16 %v9254_v21, %v9144_v34 }
0x1079   : > { %v9563_v16 = vpop.permute.xlu1 %9562  ;;  %v9677_v0 = vpop.permute.xlu0 %9676  ;;  %12599 = vmatpush3.bf16.msra.mxu1 %v12598_v3 }
0x107a   : > { %v9581_v58 = vsel %vm9568_vm4, %v17469_v23, %v9563_v16  ;;  %v9582_v10 = vsel %vm9568_vm4, %v9563_v16, %v17608_v5  ;;  %v9693_v8 = vsel %vm9678_vm5, %v9675_v18, %v9677_v0  ;;  %12600 = vmatprep.subr.bf16.mxu1 %v12912_v26  ;;  %v17658_v16 = vrot.slane %v17494_v2, %v16460_v51 }
0x107d   : > { %v9673_v19 = vpop.permute.xlu1 %9672  ;;  %v10004_v60 = vpop.permute.xlu0 %10003 }
0x107e   : > { %v9691_v6 = vsel %vm9678_vm5, %v17477_v33, %v9673_v19  ;;  %v9692_v62 = vsel %vm9678_vm5, %v9673_v19, %v9675_v18 }
0x107f   : > { %v12576_v49 = vpack.c.bf16 %v9692_v62, %v9582_v10  ;;  %v12578_v21 = vpack.c.bf16 %v9691_v6, %v9581_v58  ;;  %v17678_v62 = vrot.slane %v17494_v2, %v16476_v54 }
0x1081   : > { %v9348_v31 = vpop.permute.xlu1 %9347  ;;  %v9897_v11 = vpop.permute.xlu0 %9896  ;;  %12577 = vmatprep.subr.bf16.mxu0 %v12576_v49  ;;  %v17683_v49 = vrot.slane %v17494_v2, %v8299_v56 }
0x1082   : > { %v9364_v23 = vsel %vm9349_vm3, %v17596_v14, %v9348_v31  ;;  %v9912_v42 = vsel %vm6529_vm1, %v9895_v7, %v9897_v11  ;;  %12579 = vmatpush1.bf16.msra.mxu0 %v12578_v21 }
0x1083   : > { %v12601_v15 = vpack.c.bf16 %v9473_v28, %v9364_v23  ;;  %v10291_v28 = vld [vmem:[#allocation2 + $0x768] sm:$0xff] }
0x1085   : > { %v9783_v41 = vpop.permute.xlu1 %9782  ;;  %12602 = vmatpush3.bf16.msra.mxu1 %v12601_v15 }
0x1086   : > { %v9801_v43 = vsel %vm9788_vm6, %v17509_v17, %v9783_v41  ;;  %v9802_v33 = vsel %vm9788_vm6, %v9783_v41, %v9785_v27  ;;  %12603 = vmatprep.subr.bf16.mxu1 %v12912_v26  ;;  %v10292_v17 = vld [vmem:[#allocation2 + $0x770] sm:$0xff] }
0x1089   : > { %v9893_v18 = vpop.permute.xlu1 %9892 }
0x108a   : > { %v9910_v36 = vsel %vm6529_vm1, %v17528_v53, %v9893_v18  ;;  %v9911_v38 = vsel %vm6529_vm1, %v9893_v18, %v9895_v7  ;;  %v10293_v7 = vld [vmem:[#allocation2 + $0x778] sm:$0xff] }
0x108b   : > { %v12580_v14 = vpack.c.bf16 %v9911_v38, %v9802_v33  ;;  %v12582_v13 = vpack.c.bf16 %v9910_v36, %v9801_v43 }
0x108d   : > { %v9567_v39 = vpop.permute.xlu1 %9566  ;;  %12581 = vmatprep.subr.bf16.mxu0 %v12580_v14 }
0x108e   : > { %v9583_v48 = vsel %vm9568_vm4, %v17608_v5, %v9567_v39  ;;  %12583 = vmatpush1.bf16.msra.mxu0 %v12582_v13 }
0x108f   : > { %v12604_v1 = vpack.c.bf16 %v9693_v8, %v9583_v48 }
0x1091   : > { %v10002_v22 = vpop.permute.xlu1 %10001  ;;  %12605 = vmatpush3.bf16.msra.mxu1 %v12604_v1 }
0x1092   : > { %v10020_v50 = vsel %vm10007_vm7, %v17562_v20, %v10002_v22  ;;  %v10021_v53 = vsel %vm10007_vm7, %v10002_v22, %v10004_v60  ;;  %12606 = vmatprep.subr.bf16.mxu1 %v12912_v26 }
0x1093   : > { %v12584_v57 = vpack.c.bf16 %v10292_v17, %v10021_v53  ;;  %v12586_v45 = vpack.c.bf16 %v10291_v28, %v10020_v50 }
0x1095   : > { %v9787_v59 = vpop.permute.xlu1 %9786  ;;  %12585 = vmatprep.subr.bf16.mxu0 %v12584_v57 }
0x1096   : > { %v9803_v30 = vsel %vm9788_vm6, %v9785_v27, %v9787_v59  ;;  %12587 = vmatpush1.bf16.msra.mxu0 %v12586_v45  ;;  %v17662_v27 = vrot.slane %v17494_v2, %v16464_v37  ;;  %v10862_v2 = vld [vmem:[%s17950_s10 + $0x8] sm:$0xff] }
0x1097   : > { %v12607_v5 = vpack.c.bf16 %v9912_v42, %v9803_v30  ;;  %v17699_v43 = vrot.slane %v10862_v2, %v16316_v29  ;;  %v17702_v33 = vrot.slane %v10862_v2, %v16328_v40  ;;  %v17715_v40 = vrot.slane %v10862_v2, %v16342_v32 }
0x1098   : > { %v17718_v17 = vrot.slane %v10862_v2, %v16355_v52 }
0x1099   : > { %v10006_v34 = vpop.permute.xlu1 %10005  ;;  %10785 = vmatmul.mubr.f32.vlgmr.msra.gmra.mrb[14].mxu0 %v17565_v63  ;;  %12608 = vmatpush3.bf16.msra.mxu1 %v12607_v5 }
0x109a   : > { %v10022_v3 = vsel %vm10007_vm7, %v10004_v60, %v10006_v34  ;;  %12609 = vmatprep.subr.bf16.mxu1 %v12912_v26  ;;  %v17734_v34 = vrot.slane %v10862_v2, %v16464_v37 }
0x109b   : > { %v12610_v20 = vpack.c.bf16 %v10293_v7, %v10022_v3  ;;  %v17731_v7 = vrot.slane %v10862_v2, %v16460_v51  ;;  %v17747_v51 = vrot.slane %v10862_v2, %v16476_v54 }
0x109d   : > { %12611 = vmatpush3.bf16.msra.mxu1 %v12610_v20 }
0x10a0   : > { %11618 = vmatmul.mubr.f32.vlgmr.msra.gmra.mrb[14].mxu1 %v17565_v63 }
0x10ac   : > { %v17664_v0 = vpop.f32.mrb[10].mxu0 }
0x10ad   : > { %v10946_v58 = vmul.f32 %v17658_v16, %v17664_v0  ;;  %v17668_v10 = vpop.f32.mrb[11].mxu0 }
0x10ae   : > { %v10947_v26 = vmul.f32 %v17662_v27, %v17668_v10 }
0x10af   : > { %v10960_v63 = vadd.f32 %v17572_v25, %v10946_v58  ;;  %v10978_v8 = vmul.f32 %v10946_v58, %v17664_v0 }
0x10b0   : > { %v10979_v19 = vmul.f32 %v10947_v26, %v17668_v10 }
0x10b1   : > { %v10992_v60 = vadd.f32 %v17575_v9, %v10978_v8  ;;  %v10961_v6 = vadd.f32 %v10960_v63, %v10947_v26 }
0x10b3   : > { %v10993_v21 = vadd.f32 %v10992_v60, %v10979_v19 }
0x10b4   : > { %v17685_v31 = vpop.f32.mrb[10].mxu1 }
0x10b5   : > { %v10948_v25 = vmul.f32 %v17678_v62, %v17685_v31  ;;  %v17689_v11 = vpop.f32.mrb[11].mxu1 }
0x10b6   : > { %v10949_v9 = vmul.f32 %v17683_v49, %v17689_v11 }
0x10b7   : > { %v10962_v23 = vadd.f32 %v10961_v6, %v10948_v25  ;;  %v10980_v42 = vmul.f32 %v10948_v25, %v17685_v31 }
0x10b8   : > { %v10981_v15 = vmul.f32 %v10949_v9, %v17689_v11 }
0x10b9   : > { %v10994_v12 = vadd.f32 %v10993_v21, %v10980_v42  ;;  %v10963_v41 = vadd.f32 %v10962_v23, %v10949_v9 }
0x10bb   : > { %v10995_v56 = vadd.f32 %v10994_v12, %v10981_v15 }
0x111c   : > { %v17704_v18 = vpop.f32.mrb[12].mxu0 }
0x111d   : > { %v10950_v36 = vmul.f32 %v17699_v43, %v17704_v18  ;;  %v17708_v38 = vpop.f32.mrb[13].mxu0 }
0x111e   : > { %v10951_v14 = vmul.f32 %v17702_v33, %v17708_v38 }
0x111f   : > { %v10964_v13 = vadd.f32 %v10963_v41, %v10950_v36  ;;  %v10982_v39 = vmul.f32 %v10950_v36, %v17704_v18 }
0x1120   : > { %v10983_v48 = vmul.f32 %v10951_v14, %v17708_v38 }
0x1121   : > { %v10996_v29 = vadd.f32 %v10995_v56, %v10982_v39  ;;  %v10965_v1 = vadd.f32 %v10964_v13, %v10951_v14  ;;  %v10863_v13 = vld [vmem:[%s13105_s22] sm:$0xff] }
0x1123   : > { %v10997_v28 = vadd.f32 %v10996_v29, %v10983_v48  ;;  %v10864_v29 = vld [vmem:[%s13110_s30] sm:$0xff] }
0x1124   : > { %v17720_v22 = vpop.f32.mrb[12].mxu1 }
0x1125   : > { %v10952_v50 = vmul.f32 %v17715_v40, %v17720_v22  ;;  %v17724_v53 = vpop.f32.mrb[13].mxu1 }
0x1126   : > { %v10953_v57 = vmul.f32 %v17718_v17, %v17724_v53 }
0x1127   : > { %v10966_v45 = vadd.f32 %v10965_v1, %v10952_v50  ;;  %v10984_v59 = vmul.f32 %v10952_v50, %v17720_v22 }
0x1128   : > { %v10985_v32 = vmul.f32 %v10953_v57, %v17724_v53 }
0x1129   : > { %v10998_v30 = vadd.f32 %v10997_v28, %v10984_v59  ;;  %v10967_v5 = vadd.f32 %v10966_v45, %v10953_v57 }
0x112b   : > { %v10999_v52 = vadd.f32 %v10998_v30, %v10985_v32 }
0x116c   : > { %v17736_v3 = vpop.f32.mrb[14].mxu0 }
0x116d   : > { %v10954_v20 = vmul.f32 %v17731_v7, %v17736_v3  ;;  %v17740_v58 = vpop.f32.mrb[15].mxu0 }
0x116e   : > { %v10955_v26 = vmul.f32 %v17734_v34, %v17740_v58 }
0x116f   : > { %v10968_v63 = vadd.f32 %v10967_v5, %v10954_v20  ;;  %v10986_v8 = vmul.f32 %v10954_v20, %v17736_v3 }
0x1170   : > { %v10987_v19 = vmul.f32 %v10955_v26, %v17740_v58 }
0x1171   : > { %v11000_v37 = vadd.f32 %v10999_v52, %v10986_v8  ;;  %v10969_v60 = vadd.f32 %v10968_v63, %v10955_v26 }
0x1173   : > { %v11001_v6 = vadd.f32 %v11000_v37, %v10987_v19  ;;  %v17749_v21 = vpop.f32.mrb[14].mxu1 }
0x1174   : > { %v10956_v25 = vmul.f32 %v17747_v51, %v17749_v21  ;;  %v11619_v9 = vpop.f32.mrb[15].mxu1 }
0x1176   : > { %v10988_v23 = vmul.f32 %v10956_v25, %v17749_v21  ;;  %v10970_v42 = vadd.f32 %v10969_v60, %v10956_v25 }
0x1178   : > { %10971 = vadd.xlane.f32.xlu0 %v10970_v42  ;;  %v11002_v15 = vadd.f32 %v11001_v6, %v10988_v23 }
0x117a   : > { %11003 = vadd.xlane.f32.xlu1 %v11002_v15 }
0x1205   : > { %v10972_v12 = vpop.xlane.xlu0 %10971 }
0x1206   : > { %v10973_v54 = vmul.f32 0.001953125, %v10972_v12 }
0x1207   : > { %v11004_v41 = vpop.xlane.xlu1 %11003 }
0x1208   : > { %v11006_v56 = vmul.f32 %v10973_v54, %v10973_v54  ;;  %v11005_v2 = vmul.f32 0.001953125, %v11004_v41 }
0x120a   : > { %v11007_v36 = vsub.f32 %v11005_v2, %v11006_v56 }
0x120c   : > { %v11008_v14 = vadd.f32 1e-05, %v11007_v36 }
0x120e   : > { %12751 = vrsqrt.f32 %v11008_v14 }
0x1218   : > { %v12752_v39 = vpop.eup %12751 }
0x1219   : > { %v11010_v48 = vmul.f32 %v12752_v39, %v10863_v13 }
0x121b   : > { %11015 = vperm.xlu0 %12747, %v11010_v48   ;;  %v11011_v1 = vmul.f32 %v11010_v48, %v10973_v54 }
0x121d   : > { %v11012_v28 = vsub.f32 %v10864_v29, %v11011_v1 }
0x121f   : > { %11035 = vperm.xlu1 %12748, %v11012_v28  }
0x129a   : > { %v17756_v50 = vpop.permute.xlu0 %11015 }
0x129b   : > { %v11018_v57 = vmul.f32 %v17756_v50, %v17522_v47  ;;  %v11019_v45 = vmul.f32 %v17756_v50, %v17526_v46  ;;  %v11020_v5 = vmul.f32 %v17756_v50, %v17546_v55  ;;  %v11021_v52 = vmul.f32 %v17756_v50, %v17556_v44 }
0x129c   : > { %v11022_v47 = vmul.f32 %v17756_v50, %v17664_v0  ;;  %v11023_v19 = vmul.f32 %v17756_v50, %v17668_v10  ;;  %v11024_v0 = vmul.f32 %v17756_v50, %v17685_v31  ;;  %v11025_v25 = vmul.f32 %v17756_v50, %v17689_v11 }
0x129d   : > { %v11026_v31 = vmul.f32 %v17756_v50, %v17704_v18  ;;  %v11027_v41 = vmul.f32 %v17756_v50, %v17708_v38  ;;  %v11028_v13 = vmul.f32 %v17756_v50, %v17720_v22 }
0x129e   : > { %v17762_v59 = vpop.permute.xlu1 %11035 }
0x129f   : > { %v11038_v32 = vadd.f32 %v17762_v59, %v11018_v57  ;;  %v11039_v30 = vadd.f32 %v17762_v59, %v11019_v45  ;;  %v11040_v20 = vadd.f32 %v17762_v59, %v11020_v5  ;;  %v11041_v63 = vadd.f32 %v17762_v59, %v11021_v52 }
0x12a0   : > { %v11042_v8 = vadd.f32 %v17762_v59, %v11022_v47  ;;  %v11043_v60 = vadd.f32 %v17762_v59, %v11023_v19  ;;  %v11044_v10 = vadd.f32 %v17762_v59, %v11024_v0  ;;  %v11045_v15 = vadd.f32 %v17762_v59, %v11025_v25 }
0x12a1   : > { %v17771_v26 = vmax.f32 %v11038_v32, 0.0  ;;  %v17775_v46 = vmax.f32 %v11039_v30, 0.0  ;;  %v17781_v55 = vmax.f32 %v11040_v20, 0.0  ;;  %v17790_v6 = vmax.f32 %v11041_v63, 0.0 }
0x12a2   : > { %v17795_v9 = vmax.f32 %v11042_v8, 0.0  ;;  %v17804_v12 = vmax.f32 %v11043_v60, 0.0  ;;  %v17811_v56 = vmax.f32 %v11044_v10, 0.0  ;;  %v17819_v39 = vmax.f32 %v11045_v15, 0.0 }
0x12a3   : > { %v11070_v44 = vmul.f32 %v17771_v26, %v17505_v4  ;;  %v11071_v37 = vmul.f32 %v17775_v46, %v17513_v24  ;;  %v11072_v4 = vmul.f32 %v17781_v55, %v17540_v61  ;;  %v11073_v11 = vmul.f32 %v17790_v6, %v17550_v35 }
0x12a4   : > { %v11046_v61 = vadd.f32 %v17762_v59, %v11026_v31  ;;  %v11074_v2 = vmul.f32 %v17795_v9, %v17658_v16  ;;  %v11047_v35 = vadd.f32 %v17762_v59, %v11027_v41  ;;  %v11075_v38 = vmul.f32 %v17804_v12, %v17662_v27 }
0x12a5   : > { %v11085_v23 = vadd.f32 %v11071_v37, %v11070_v44  ;;  %v11102_v24 = vmul.f32 %v11070_v44, %v17771_v26  ;;  %v11103_v42 = vmul.f32 %v11071_v37, %v17775_v46  ;;  %v11104_v18 = vmul.f32 %v11072_v4, %v17781_v55 }
0x12a6   : > { %v11105_v29 = vmul.f32 %v11073_v11, %v17790_v6  ;;  %v11029_v16 = vmul.f32 %v17756_v50, %v17724_v53  ;;  %v11048_v28 = vadd.f32 %v17762_v59, %v11028_v13  ;;  %v17827_v57 = vmax.f32 %v11046_v61, 0.0 }
0x12a7   : > { %v11086_v54 = vadd.f32 %v11085_v23, %v11072_v4  ;;  %v11117_v14 = vadd.f32 %v11103_v42, %v11102_v24  ;;  %v11076_v22 = vmul.f32 %v17811_v56, %v17678_v62  ;;  %v11106_v32 = vmul.f32 %v11074_v2, %v17795_v9 }
0x12a8   : > { %v11030_v27 = vmul.f32 %v17756_v50, %v17736_v3  ;;  %v11049_v5 = vadd.f32 %v17762_v59, %v11029_v16  ;;  %v17835_v52 = vmax.f32 %v11047_v35, 0.0  ;;  %v11077_v53 = vmul.f32 %v17819_v39, %v17683_v49 }
0x12a9   : > { %v11087_v36 = vadd.f32 %v11086_v54, %v11073_v11  ;;  %v11118_v1 = vadd.f32 %v11117_v14, %v11104_v18  ;;  %v11107_v47 = vmul.f32 %v11075_v38, %v17804_v12  ;;  %v11031_v62 = vmul.f32 %v17756_v50, %v17740_v58 }
0x12aa   : > { %v11050_v8 = vadd.f32 %v17762_v59, %v11030_v27  ;;  %v17843_v19 = vmax.f32 %v11048_v28, 0.0  ;;  %v11078_v3 = vmul.f32 %v17827_v57, %v17699_v43  ;;  %v11108_v37 = vmul.f32 %v11076_v22, %v17811_v56 }
0x12ab   : > { %v11088_v48 = vadd.f32 %v11087_v36, %v11074_v2  ;;  %v11119_v30 = vadd.f32 %v11118_v1, %v11105_v29  ;;  %v11032_v49 = vmul.f32 %v17756_v50, %v17749_v21  ;;  %v11051_v60 = vadd.f32 %v17762_v59, %v11031_v62  ;;  %v11069_v62 = vld [vmem:[%s13120_s23] sm:$0xff] }
0x12ac   : > { %v17851_v25 = vmax.f32 %v11049_v5, 0.0  ;;  %v11079_v58 = vmul.f32 %v17835_v52, %v17702_v33  ;;  %v11109_v4 = vmul.f32 %v11077_v53, %v17819_v39  ;;  %v11065_v24 = vmax.f32 %v11050_v8, 0.0 }
0x12ad   : > { %v11089_v45 = vadd.f32 %v11088_v48, %v11075_v38  ;;  %v11120_v63 = vadd.f32 %v11119_v30, %v11106_v32  ;;  %v11052_v43 = vadd.f32 %v17762_v59, %v11032_v49  ;;  %v11080_v42 = vmul.f32 %v17843_v19, %v17715_v40 }
0x12ae   : > { %v11110_v21 = vmul.f32 %v11078_v3, %v17827_v57  ;;  %v11066_v15 = vmax.f32 %v11051_v60, 0.0  ;;  %v11081_v11 = vmul.f32 %v17851_v25, %v17718_v17  ;;  %v11111_v33 = vmul.f32 %v11079_v58, %v17835_v52 }
0x12af   : > { %v11090_v20 = vadd.f32 %v11089_v45, %v11076_v22  ;;  %v11121_v0 = vadd.f32 %v11120_v63, %v11107_v47  ;;  %v11067_v61 = vmax.f32 %v11052_v43, 0.0  ;;  %v11082_v2 = vmul.f32 %v11065_v24, %v17731_v7 }
0x12b0   : > { %v11112_v36 = vmul.f32 %v11080_v42, %v17843_v19  ;;  %v11083_v40 = vmul.f32 %v11066_v15, %v17734_v34  ;;  %v11113_v13 = vmul.f32 %v11081_v11, %v17851_v25 }
0x12b1   : > { %v11091_v44 = vadd.f32 %v11090_v20, %v11077_v53  ;;  %v11122_v23 = vadd.f32 %v11121_v0, %v11108_v37  ;;  %v11084_v38 = vmul.f32 %v11067_v61, %v17747_v51  ;;  %v11114_v48 = vmul.f32 %v11082_v2, %v11065_v24  ;;  %v11068_v20 = vld [vmem:[%s13115_s0] sm:$0xff] }
0x12b2   : > { %v11115_v16 = vmul.f32 %v11083_v40, %v11066_v15 }
0x12b3   : > { %v11092_v10 = vadd.f32 %v11091_v44, %v11078_v3  ;;  %v11123_v50 = vadd.f32 %v11122_v23, %v11109_v4  ;;  %v11116_v7 = vmul.f32 %v11084_v38, %v11067_v61 }
0x12b5   : > { %v11093_v31 = vadd.f32 %v11092_v10, %v11079_v58  ;;  %v11124_v41 = vadd.f32 %v11123_v50, %v11110_v21 }
0x12b7   : > { %v11094_v54 = vadd.f32 %v11093_v31, %v11080_v42  ;;  %v11125_v18 = vadd.f32 %v11124_v41, %v11111_v33 }
0x12b9   : > { %v11095_v59 = vadd.f32 %v11094_v54, %v11081_v11  ;;  %v11126_v35 = vadd.f32 %v11125_v18, %v11112_v36 }
0x12bb   : > { %v11096_v14 = vadd.f32 %v11095_v59, %v11082_v2  ;;  %v11127_v29 = vadd.f32 %v11126_v35, %v11113_v13 }
0x12bd   : > { %v11097_v17 = vadd.f32 %v11096_v14, %v11083_v40  ;;  %v11128_v28 = vadd.f32 %v11127_v29, %v11114_v48 }
0x12bf   : > { %v11098_v1 = vadd.f32 %v11097_v17, %v11084_v38  ;;  %v11129_v22 = vadd.f32 %v11128_v28, %v11115_v16 }
0x12c1   : > { %11099 = vadd.xlane.f32.xlu0 %v11098_v1  ;;  %v11130_v45 = vadd.f32 %v11129_v22, %v11116_v7 }
0x12c3   : > { %11131 = vadd.xlane.f32.xlu1 %v11130_v45 }
0x134e   : > { %v11100_v34 = vpop.xlane.xlu0 %11099 }
0x134f   : > { %v11101_v32 = vmul.f32 0.001953125, %v11100_v34 }
0x1350   : > { %v11132_v27 = vpop.xlane.xlu1 %11131 }
0x1351   : > { %v11134_v30 = vmul.f32 %v11101_v32, %v11101_v32  ;;  %v11133_v5 = vmul.f32 0.001953125, %v11132_v27 }
0x1353   : > { %v11135_v53 = vsub.f32 %v11133_v5, %v11134_v30 }
0x1355   : > { %v11136_v51 = vadd.f32 1e-05, %v11135_v53 }
0x1357   : > { %12753 = vrsqrt.f32 %v11136_v51 }
0x1361   : > { %v12754_v47 = vpop.eup %12753 }
0x1362   : > { %v11138_v63 = vmul.f32 %v12754_v47, %v11068_v20 }
0x1364   : > { %11143 = vperm.xlu0 %12747, %v11138_v63   ;;  %v11139_v8 = vmul.f32 %v11138_v63, %v11101_v32 }
0x1366   : > { %v11140_v3 = vsub.f32 %v11069_v62, %v11139_v8 }
0x1368   : > { %11163 = vperm.xlu1 %12748, %v11140_v3  }
0x13e3   : > { %v11144_v44 = vpop.permute.xlu0 %11143 }
0x13e4   : > { %v11146_v37 = vmul.f32 %v11144_v44, %v17771_v26  ;;  %v11147_v0 = vmul.f32 %v11144_v44, %v17775_v46  ;;  %v11148_v49 = vmul.f32 %v11144_v44, %v17781_v55  ;;  %v11149_v60 = vmul.f32 %v11144_v44, %v17790_v6 }
0x13e5   : > { %v11150_v58 = vmul.f32 %v11144_v44, %v17795_v9  ;;  %v11151_v10 = vmul.f32 %v11144_v44, %v17804_v12  ;;  %v11152_v4 = vmul.f32 %v11144_v44, %v17811_v56  ;;  %v11153_v23 = vmul.f32 %v11144_v44, %v17819_v39 }
0x13e6   : > { %v11154_v43 = vmul.f32 %v11144_v44, %v17827_v57  ;;  %v11155_v42 = vmul.f32 %v11144_v44, %v17835_v52  ;;  %v11156_v26 = vmul.f32 %v11144_v44, %v17843_v19  ;;  %v11157_v46 = vmul.f32 %v11144_v44, %v17851_v25 }
0x13e7   : > { %v11158_v31 = vmul.f32 %v11144_v44, %v11065_v24  ;;  %v11159_v55 = vmul.f32 %v11144_v44, %v11066_v15  ;;  %v11160_v21 = vmul.f32 %v11144_v44, %v11067_v61  ;;  %v11164_v6 = vpop.permute.xlu1 %11163 }
0x13e8   : > { %v11166_v50 = vadd.f32 %v11164_v6, %v11146_v37  ;;  %v11167_v9 = vadd.f32 %v11164_v6, %v11147_v0  ;;  %v11168_v11 = vadd.f32 %v11164_v6, %v11148_v49  ;;  %v11169_v12 = vadd.f32 %v11164_v6, %v11149_v60 }
0x13e9   : > { %v11170_v54 = vadd.f32 %v11164_v6, %v11150_v58  ;;  %v11171_v56 = vadd.f32 %v11164_v6, %v11151_v10  ;;  %v11172_v33 = vadd.f32 %v11164_v6, %v11152_v4  ;;  %v11173_v39 = vadd.f32 %v11164_v6, %v11153_v23 }
0x13ea   : > { %v11174_v41 = vadd.f32 %v11164_v6, %v11154_v43  ;;  %v11175_v57 = vadd.f32 %v11164_v6, %v11155_v42  ;;  %v11176_v52 = vadd.f32 %v11164_v6, %v11156_v26  ;;  %v11177_v2 = vadd.f32 %v11164_v6, %v11157_v46 }
0x13eb   : > { %v11178_v19 = vadd.f32 %v11164_v6, %v11158_v31  ;;  %v11179_v59 = vadd.f32 %v11164_v6, %v11159_v55  ;;  %v11180_v25 = vadd.f32 %v11164_v6, %v11160_v21  ;;  %v11181_v24 = vmax.f32 %v11166_v50, 0.0 }
0x13ec   : > { %v11182_v15 = vmax.f32 %v11167_v9, 0.0  ;;  %v11183_v61 = vmax.f32 %v11168_v11, 0.0  ;;  %v11184_v36 = vmax.f32 %v11169_v12, 0.0  ;;  %v11185_v18 = vmax.f32 %v11170_v54, 0.0 }
0x13ed   : > { %v11186_v40 = vmax.f32 %v11171_v56, 0.0  ;;  %v11187_v14 = vmax.f32 %v11172_v33, 0.0  ;;  %v11188_v13 = vmax.f32 %v11173_v39, 0.0  ;;  %v11189_v35 = vmax.f32 %v11174_v41, 0.0  ;;  %11196 = vst [vmem:[%s13128_s29] sm:$0xff] %v11181_v24 }
0x13ee   : > { %v11190_v38 = vmax.f32 %v11175_v57, 0.0  ;;  %v11191_v17 = vmax.f32 %v11176_v52, 0.0  ;;  %v11192_v48 = vmax.f32 %v11177_v2, 0.0  ;;  %v11193_v29 = vmax.f32 %v11178_v19, 0.0  ;;  %11197 = vst [vmem:[%s13128_s29 + $0x8] sm:$0xff] %v11182_v15  ;;  %11198 = vst [vmem:[%s13128_s29 + $0x10] sm:$0xff] %v11183_v61 }
0x13ef   : > { %11199 = vst [vmem:[%s13128_s29 + $0x18] sm:$0xff] %v11184_v36  ;;  %11200 = vst [vmem:[%s13128_s29 + $0x20] sm:$0xff] %v11185_v18  ;;  %v11194_v1 = vmax.f32 %v11179_v59, 0.0  ;;  %v11195_v16 = vmax.f32 %v11180_v25, 0.0 }
0x13f0   : > { %11201 = vst [vmem:[%s13128_s29 + $0x28] sm:$0xff] %v11186_v40  ;;  %11202 = vst [vmem:[%s13128_s29 + $0x30] sm:$0xff] %v11187_v14 }
0x13f1   : > { %11203 = vst [vmem:[%s13128_s29 + $0x38] sm:$0xff] %v11188_v13  ;;  %11204 = vst [vmem:[%s13128_s29 + $0x40] sm:$0xff] %v11189_v35 }
0x13f2   : > { %11205 = vst [vmem:[%s13128_s29 + $0x48] sm:$0xff] %v11190_v38  ;;  %11206 = vst [vmem:[%s13128_s29 + $0x50] sm:$0xff] %v11191_v17 }
0x13f3   : > { %11207 = vst [vmem:[%s13128_s29 + $0x58] sm:$0xff] %v11192_v48  ;;  %11208 = vst [vmem:[%s13128_s29 + $0x60] sm:$0xff] %v11193_v29 }
0x13f4   : > { %11209 = vst [vmem:[%s13128_s29 + $0x68] sm:$0xff] %v11194_v1  ;;  %11210 = vst [vmem:[%s13128_s29 + $0x70] sm:$0xff] %v11195_v16 }
0x13f5 PF: > { %s12614_s22 = smul.u32 1920, %s13009_s21  ;;  %s11226_s30 = sshll.u32 %s13128_s29, 4  ;;  %s11227_s30 = int_to_ptr.vmem [resolvable:$true] %s11226_s30 }
0x13f6   : > { %s18064_s7 = sand.u32 1, %s12855_s18   ;;  %s12797_s17 = scalar_lea.vmem %s11227_s30, 1920 }
0x13f7   : > { %s17902_s6 = scalar_lea.hbm %s17951_s11, %s12614_s22  ;;  %s11212_s16 = scalar_lea.sflag [#allocation6], %s18064_s7 }
0x13f8   : > { %p12798_p10 = scmp.ne.s32.totalorder %s11227_s30, %s12797_s17  ;;  %p18065_p11 = scmp.ne.s32.totalorder %s18023_s27, 0 }
0x13f9   : > { %s12927_s19 = smov [#allocation7]  }
0x13fa   : > { %p12799_p13 = pnand %p12798_p10, %p18065_p11  ;;  %s12801_s25 = sshll.u32 %s12927_s19, 4  ;;  %s12802_s25 = int_to_ptr.vmem [resolvable:$false] %s12801_s25 }
0x13fb   : > { %s12803_s20 = scalar_lea.vmem %s12802_s25, 3840  ;;  %p12804_p4 = scmp.lt.s32.totalorder %s11227_s30, %s12802_s25 }
0x13fc   : > { %p12800_p3 = pneg %p12799_p13  ;;  %p12805_p7 = scmp.lt.s32.totalorder %s12803_s20, %s12797_s17 }
0x13fe   : > { %p12806_p8 = por %p12805_p7, %p12804_p4 }
0x1400   : > { %p12807_p12 = pnand %p12806_p8, %p12800_p3 }
0x1402   : > { %12810 = shalt.err (!%p12807_p12)
}
0x1403   : > { %s12811_s21 = scalar_lea.hbm %s17902_s6, 1920  ;;  %s12815_s3 = scalar_lea.hbm %s17951_s11, 3840 }
0x1404   : > { %p12812_p0 = scmp.ne.s32.totalorder %s17902_s6, %s12811_s21  ;;  %p12816_p5 = scmp.lt.u32.totalorder %s17902_s6, %s17951_s11 }
0x1405   : > { %p12817_p6 = scmp.lt.u32.totalorder %s12815_s3, %s12811_s21  ;;  %p12819_p10 = scmp.lt.u32.totalorder %s12811_s21, %s17902_s6 }
0x1406   : > { %p12813_p2 = pnand %p12812_p0, %p18065_p11 }
0x1407   : > { %p12818_p9 = por %p12817_p6, %p12816_p5 }
0x1408   : > { %p12814_p1 = pneg %p12813_p2 }
0x1409   : > { %p12820_p13 = por %p12819_p10, %p12818_p9 }
0x140b   : > { %p12821_p3 = pnand %p12820_p13, %p12814_p1 }
0x140d   : > { %12824 = shalt.err (!%p12821_p3)
}
0x140e   : > { %12619 = dma.vmem_to_hbm [thread:$0]  (%p18065_p11), %s11227_s30, 1920, %s17902_s6, %s11212_s16  }
0x140f PF: > { %s18066_s24 = sld [smem:[#allocation12_spill]]  ;;  %s18067_s26 = sld [smem:[#allocation10_spill]] }
0x1410   : > { %s18068_s28 = sld [smem:[#allocation15_spill]] }
0x1415   : > { %p12631_p4 = scmp.ge.s32.totalorder %s18066_s24, 2  ;;  %s11238_s1 = sand.u32 1, %s18067_s26  }
0x1416   : > { %p18069_p7 = scmp.ne.s32.totalorder %s18068_s28, 0  ;;  %s11239_s14 = scalar_lea.sflag [#allocation6], %s11238_s1 }
0x1418   : > { %p12626_p8 = pnand %p12631_p4, %p18069_p7 }
0x141a   : > { %12846 = dma.done.wait (!%p12626_p8), %s11239_s14, 1920  }
0x141b   : > { %12848 = vsyncadd (!%p12626_p8), %s11239_s14, 4294965376  ;;  %s18070_s20 = sld [smem:[#allocation13_spill]]  ;;  %s18071_s4 = sld [smem:[#allocation11_spill]] }
0x141c   : > { %s18072_s19 = sld [smem:[#allocation14_spill]]  ;;  %s18073_s17 = smov %s12855_s18 }
0x1421   : > { %p22_p12 = scmp.ge.s32.totalorder %s18070_s20, 4   ;;  %s18074_s18 = smov %s18071_s4 }
0x1423   :  { %24 = sbr.rel (!%p22_p12) target bundleno = 13 (0xd), region = 136 }
0x142a   :  { %11244 = vsyncpa [#allocation5], 1 }
0x142b   :  { %11246 = vsyncpa [#allocation5 + $0x1], 1 }
0x142c   :  { %11247 = vsyncpa [#allocation6], 1 }
0x142d   :  { %11249 = vsyncpa [#allocation6 + $0x1], 1 }

</bundles_post_ra>
